<compile_context>
chip_gen: v7x
topology: tpu7x:2x2x1
jax: 0.10.0
libtpu: 0.0.40
codegen_flags: <defaults>
</compile_context>

<pallas_src>
import jax
import jax.numpy as jnp
import numpy as np
from jax.experimental import pallas as pl
from jax.experimental.pallas import tpu as pltpu

EPS = 1e-5


# --------------------------------------------------------------------------
# In-kernel helpers.
# --------------------------------------------------------------------------
def _zero_halo_border(halo_ref, H, W, Cp):
    """Zero the 1-pixel halo border (interior is fully overwritten each step)."""
    zrow = jnp.zeros((1, W + 2, Cp), jnp.bfloat16)
    halo_ref[0:1, :, :] = zrow
    halo_ref[H + 1:H + 2, :, :] = zrow
    zcol = jnp.zeros((H, 1, Cp), jnp.bfloat16)
    halo_ref[1:H + 1, 0:1, :] = zcol
    halo_ref[1:H + 1, W + 1:W + 2, :] = zcol


def _conv3x3_from_halo(halo_ref, w_ref, H, W, Cp):
    """3x3 'same' conv as 9 accumulating MXU matmuls.

    Each tap's LHS is read directly from the shifted (bf16) halo window — no
    im2col slab stores, no slab re-load.  The f32 accumulator is a value, so
    the compiler keeps it in vregs / VMEM as needed (no explicit acc stores).
    Returns the (H*W, Cp) f32 conv output.
    """
    M = H * W
    acc = None
    for t in range(9):
        dh, dw = divmod(t, 3)
        tap = halo_ref[dh:dh + H, dw:dw + W, :].reshape(M, Cp)        # bf16
        p = jnp.dot(tap, w_ref[t], preferred_element_type=jnp.float32)
        acc = p if acc is None else acc + p
    return acc


# --------------------------------------------------------------------------
# Pass 1: Conv1 + per-image BN1 partial stats.
# --------------------------------------------------------------------------
def _conv1_kernel(x_ref, w_ref, y_ref, s_ref, halo_ref):
    _, H, W, Cp = x_ref.shape
    _zero_halo_border(halo_ref, H, W, Cp)
    halo_ref[1:H + 1, 1:W + 1, :] = x_ref[0]          # input already bf16
    y = _conv3x3_from_halo(halo_ref, w_ref, H, W, Cp)  # (M, Cp) f32
    y_ref[...] = y.astype(jnp.bfloat16).reshape(1, H, W, Cp)
    s_ref[:, 0:1, :] = jnp.sum(y, axis=0).reshape(1, 1, Cp)
    s_ref[:, 1:2, :] = jnp.sum(y * y, axis=0).reshape(1, 1, Cp)


# --------------------------------------------------------------------------
# Pass 2: apply BN1 (scale/shift) + PReLU, Conv2, per-image BN2 partial stats.
# --------------------------------------------------------------------------
def _bn_prelu_conv2_kernel(y1_ref, w_ref, sc_ref, sh_ref, a_ref,
                           y2_ref, s_ref, halo_ref):
    _, H, W, Cp = y1_ref.shape
    act = y1_ref[0].astype(jnp.float32) * sc_ref[...] + sh_ref[...]   # (H,W,Cp)
    alpha = a_ref[0, 0]                                 # scalar from SMEM
    act = jnp.where(act > 0.0, act, alpha * act)
    _zero_halo_border(halo_ref, H, W, Cp)
    halo_ref[1:H + 1, 1:W + 1, :] = act.astype(jnp.bfloat16)   # single cast
    z = _conv3x3_from_halo(halo_ref, w_ref, H, W, Cp)           # (M, Cp) f32
    y2_ref[...] = z.astype(jnp.bfloat16).reshape(1, H, W, Cp)
    s_ref[:, 0:1, :] = jnp.sum(z, axis=0).reshape(1, 1, Cp)
    s_ref[:, 1:2, :] = jnp.sum(z * z, axis=0).reshape(1, 1, Cp)


# --------------------------------------------------------------------------
# Pass 3: apply BN2 + residual add; read/write the original C channels only.
# --------------------------------------------------------------------------
def _bn2_residual_kernel(y2_ref, x_ref, sc_ref, sh_ref, o_ref):
    _, H, W, Cp = y2_ref.shape
    C = o_ref.shape[-1]
    z = y2_ref[0].astype(jnp.float32) * sc_ref[...] + sh_ref[...]     # (H,W,Cp)
    o_ref[...] = (x_ref[0] + z[:, :, :C]).reshape(1, H, W, C)


def _bn_affine(sums, gamma, beta, m_total):
    """Fold global batch stats + gamma/beta into per-channel scale/shift."""
    tot = jnp.sum(sums, axis=0)                         # (2, Cp)
    mean = tot[0] / m_total
    var = jnp.maximum(tot[1] / m_total - mean * mean, 0.0)
    scale = gamma * jax.lax.rsqrt(var + EPS)
    shift = beta - mean * scale
    return scale.reshape(1, -1), shift.reshape(1, -1)


@jax.jit
def residual_block(x_nhwc, w1, w2, g1, b1, g2, b2, alpha):
    """x_nhwc: (N,H,W,C) f32; w1,w2: (3,3,C,C) HWIO; g/b: (C,); alpha scalar."""
    N, H, W, C = x_nhwc.shape
    Cp = max(128, ((C + 127) // 128) * 128)     # lane-dense channel width
    M = H * W
    Mtot = N * M
    pad_c = Cp - C

    # Single fused cast+pad of the conv-pass input (XLA fuses into one op).
    x_bf16 = jnp.pad(x_nhwc.astype(jnp.bfloat16),
                     ((0, 0), (0, 0), (0, 0), (0, pad_c)))

    def prep_w(w):                               # (3,3,C,C) -> (9, Cp, Cp) bf16
        wp = jnp.pad(w.astype(jnp.float32),
                     ((0, 0), (0, 0), (0, pad_c), (0, pad_c)))
        return wp.reshape(9, Cp, Cp).astype(jnp.bfloat16)

    w1r, w2r = prep_w(w1), prep_w(w2)
    g1p = jnp.pad(g1.astype(jnp.float32), (0, pad_c))
    b1p = jnp.pad(b1.astype(jnp.float32), (0, pad_c))
    g2p = jnp.pad(g2.astype(jnp.float32), (0, pad_c))
    b2p = jnp.pad(b2.astype(jnp.float32), (0, pad_c))
    a_smem = jnp.reshape(jnp.asarray(alpha, jnp.float32), (1, 1))

    img_pad_spec = pl.BlockSpec((1, H, W, Cp), lambda n: (n, 0, 0, 0))
    img_c_spec = pl.BlockSpec((1, H, W, C), lambda n: (n, 0, 0, 0))
    w_spec = pl.BlockSpec((9, Cp, Cp), lambda n: (0, 0, 0))
    vec_spec = pl.BlockSpec((1, Cp), lambda n: (0, 0))
    sum_spec = pl.BlockSpec((1, 2, Cp), lambda n: (n, 0, 0))
    smem_spec = pl.BlockSpec(memory_space=pltpu.MemorySpace.SMEM)
    parallel = pltpu.CompilerParams(dimension_semantics=("parallel",))
    halo_scratch = [pltpu.VMEM((H + 2, W + 2, Cp), jnp.bfloat16)]

    # ---- pass 1: Conv1 + BN1 partial stats ----
    y1, s1 = pl.pallas_call(
        _conv1_kernel,
        out_shape=(jax.ShapeDtypeStruct((N, H, W, Cp), jnp.bfloat16),
                   jax.ShapeDtypeStruct((N, 2, Cp), jnp.float32)),
        grid=(N,),
        in_specs=[img_pad_spec, w_spec],
        out_specs=(img_pad_spec, sum_spec),
        scratch_shapes=halo_scratch,
        compiler_params=parallel,
    )(x_bf16, w1r)

    sc1, sh1 = _bn_affine(s1, g1p, b1p, Mtot)

    # ---- pass 2: BN1 + PReLU + Conv2 + BN2 partial stats ----
    y2, s2 = pl.pallas_call(
        _bn_prelu_conv2_kernel,
        out_shape=(jax.ShapeDtypeStruct((N, H, W, Cp), jnp.bfloat16),
                   jax.ShapeDtypeStruct((N, 2, Cp), jnp.float32)),
        grid=(N,),
        in_specs=[img_pad_spec, w_spec, vec_spec, vec_spec, smem_spec],
        out_specs=(img_pad_spec, sum_spec),
        scratch_shapes=halo_scratch,
        compiler_params=parallel,
    )(y1, w2r, sc1, sh1, a_smem)

    sc2, sh2 = _bn_affine(s2, g2p, b2p, Mtot)

    # ---- pass 3: BN2 + residual, direct C-channel output ----
    out = pl.pallas_call(
        _bn2_residual_kernel,
        out_shape=jax.ShapeDtypeStruct((N, H, W, C), jnp.float32),
        grid=(N,),
        in_specs=[img_pad_spec, img_c_spec, vec_spec, vec_spec],
        out_specs=img_c_spec,
        compiler_params=parallel,
    )(y2, x_nhwc, sc2, sh2)

    return out


def ref_forward(x_nhwc, w1, w2, g1, b1, g2, b2, alpha):
    """Pure-JAX reference mirroring the PyTorch training-mode forward.
    Convs use bf16 operands with f32 accumulation (same MXU precision policy
    as the kernel); BN / PReLU / residual are f32.  The kernel additionally
    stores the inter-pass conv outputs in bf16 (perf-review item), hence the
    slightly relaxed comparison tolerance below."""
    def conv(v, w):
        return jax.lax.conv_general_dilated(
            v.astype(jnp.bfloat16), w.astype(jnp.bfloat16), (1, 1), 'SAME',
            dimension_numbers=('NHWC', 'HWIO', 'NHWC'),
            preferred_element_type=jnp.float32)

    def bn(y, g, b):
        mean = jnp.mean(y, axis=(0, 1, 2), keepdims=True)
        var = jnp.mean((y - mean) ** 2, axis=(0, 1, 2), keepdims=True)
        return (y - mean) * jax.lax.rsqrt(var + EPS) * g + b

    y = bn(conv(x_nhwc, w1), g1, b1)
    y = jnp.where(y > 0, y, alpha * y)
    y = bn(conv(y, w2), g2, b2)
    return x_nhwc + y


if __name__ == "__main__":
    key = jax.random.PRNGKey(0)
    k1, k2, k3 = jax.random.split(key, 3)

    # Small shapes consistent with the module (default C=64; use C=4 here).
    N, C, H, W = 2, 4, 16, 16
    x_nchw = jax.random.normal(k1, (N, C, H, W), jnp.float32)    # PyTorch NCHW
    w1 = jax.random.normal(k2, (3, 3, C, C), jnp.float32) * 0.1  # HWIO
    w2 = jax.random.normal(k3, (3, 3, C, C), jnp.float32) * 0.1  # HWIO
    g1 = jnp.ones((C,), jnp.float32)
    b1 = jnp.zeros((C,), jnp.float32)
    g2 = jnp.ones((C,), jnp.float32)
    b2 = jnp.zeros((C,), jnp.float32)
    alpha = 0.25  # PReLU default init

    x_nhwc = jnp.transpose(x_nchw, (0, 2, 3, 1))

    out = residual_block(x_nhwc, w1, w2, g1, b1, g2, b2, alpha)
    out = jax.block_until_ready(out)

    ref = ref_forward(x_nhwc, w1, w2, g1, b1, g2, b2, alpha)
    np.testing.assert_allclose(np.asarray(out), np.asarray(ref),
                               rtol=2e-2, atol=2e-2)
    print("KERNEL_OK")
</pallas_src>

<mosaic_0001>
module attributes {stable_mosaic.version = 11 : i64} {
  func.func @_conv1_kernel(%arg0: i32, %arg1: memref<1x16x16x128xbf16, #tpu.memory_space<vmem>>, %arg2: memref<9x128x128xbf16, #tpu.memory_space<vmem>>, %arg3: memref<1x16x16x128xbf16, #tpu.memory_space<vmem>>, %arg4: memref<1x2x128xf32, #tpu.memory_space<vmem>>, %arg5: memref<18x18x128xbf16, #tpu.memory_space<vmem>>) attributes {dimension_semantics = [#tpu.dimension_semantics<parallel>], iteration_bounds = array<i64: 2>, scalar_prefetch = 0 : i64, scratch_operands = 1 : i64, tpu.core_type = #tpu.core_type<tc>, window_params = [{transform_indices = @transform_0, window_bounds = array<i64: 1, 16, 16, 128>}, {pipeline_mode = #tpu.pipeline_mode<synchronous>, transform_indices = @transform_1, window_bounds = array<i64: 9, 128, 128>}, {transform_indices = @transform_2, window_bounds = array<i64: 1, 16, 16, 128>}, {transform_indices = @transform_3, window_bounds = array<i64: 1, 2, 128>}]} {
    %cst = arith.constant 0.000000e+00 : bf16
    %0 = vector.broadcast %cst : bf16 to vector<1x18x128xbf16>
    %c0 = arith.constant 0 : index
    %c0_0 = arith.constant 0 : index
    %c0_1 = arith.constant 0 : index
    %1 = vector.load %arg5[%c0, %c0_0, %c0_1] : memref<18x18x128xbf16, #tpu.memory_space<vmem>>, vector<1x18x128xbf16>
    tpu.vector_store %arg5[%c0, %c0_0, %c0_1], %0 {strides = array<i32>} : memref<18x18x128xbf16, #tpu.memory_space<vmem>>, vector<1x18x128xbf16>,
    %c17 = arith.constant 17 : index
    %c0_2 = arith.constant 0 : index
    %c0_3 = arith.constant 0 : index
    %2 = vector.load %arg5[%c17, %c0_2, %c0_3] : memref<18x18x128xbf16, #tpu.memory_space<vmem>>, vector<1x18x128xbf16>
    tpu.vector_store %arg5[%c17, %c0_2, %c0_3], %0 {strides = array<i32>} : memref<18x18x128xbf16, #tpu.memory_space<vmem>>, vector<1x18x128xbf16>,
    %cst_4 = arith.constant 0.000000e+00 : bf16
    %3 = vector.broadcast %cst_4 : bf16 to vector<16x1x128xbf16>
    %c1 = arith.constant 1 : index
    %c0_5 = arith.constant 0 : index
    %c0_6 = arith.constant 0 : index
    %4 = vector.load %arg5[%c1, %c0_5, %c0_6] : memref<18x18x128xbf16, #tpu.memory_space<vmem>>, vector<16x1x128xbf16>
    tpu.vector_store %arg5[%c1, %c0_5, %c0_6], %3 {strides = array<i32>} : memref<18x18x128xbf16, #tpu.memory_space<vmem>>, vector<16x1x128xbf16>,
    %c1_7 = arith.constant 1 : index
    %c17_8 = arith.constant 17 : index
    %c0_9 = arith.constant 0 : index
    %5 = vector.load %arg5[%c1_7, %c17_8, %c0_9] : memref<18x18x128xbf16, #tpu.memory_space<vmem>>, vector<16x1x128xbf16>
    tpu.vector_store %arg5[%c1_7, %c17_8, %c0_9], %3 {strides = array<i32>} : memref<18x18x128xbf16, #tpu.memory_space<vmem>>, vector<16x1x128xbf16>,
    %c0_10 = arith.constant 0 : index
    %c0_11 = arith.constant 0 : index
    %c0_12 = arith.constant 0 : index
    %c0_13 = arith.constant 0 : index
    %6 = vector.load %arg1[%c0_10, %c0_11, %c0_12, %c0_13] : memref<1x16x16x128xbf16, #tpu.memory_space<vmem>>, vector<1x16x16x128xbf16>
    %7 = vector.shape_cast %6 : vector<1x16x16x128xbf16> to vector<16x16x128xbf16>
    %c1_14 = arith.constant 1 : index
    %c1_15 = arith.constant 1 : index
    %c0_16 = arith.constant 0 : index
    %8 = vector.load %arg5[%c1_14, %c1_15, %c0_16] : memref<18x18x128xbf16, #tpu.memory_space<vmem>>, vector<16x16x128xbf16>
    tpu.vector_store %arg5[%c1_14, %c1_15, %c0_16], %7 {strides = array<i32>} : memref<18x18x128xbf16, #tpu.memory_space<vmem>>, vector<16x16x128xbf16>,
    %c0_17 = arith.constant 0 : index
    %c0_18 = arith.constant 0 : index
    %c0_19 = arith.constant 0 : index
    %9 = vector.load %arg5[%c0_17, %c0_18, %c0_19] : memref<18x18x128xbf16, #tpu.memory_space<vmem>>, vector<16x16x128xbf16>
    %10 = vector.shape_cast %9 : vector<16x16x128xbf16> to vector<256x128xbf16>
    %c0_20 = arith.constant 0 : index
    %c0_21 = arith.constant 0 : index
    %c0_22 = arith.constant 0 : index
    %11 = vector.load %arg2[%c0_20, %c0_21, %c0_22] : memref<9x128x128xbf16, #tpu.memory_space<vmem>>, vector<1x128x128xbf16>
    %12 = vector.shape_cast %11 : vector<1x128x128xbf16> to vector<128x128xbf16>
    %cst_23 = arith.constant dense<0.000000e+00> : vector<256x128xf32>
    %13 = tpu.matmul %10, %12, %cst_23 {dimension_numbers = #tpu.dot_dimension_numbers<[1], [0], [0], [1], [0, 0, 1, 1], [], []>} : vector<256x128xbf16>, vector<128x128xbf16>, vector<256x128xf32> -> vector<256x128xf32>
    %c0_24 = arith.constant 0 : index
    %c1_25 = arith.constant 1 : index
    %c0_26 = arith.constant 0 : index
    %14 = vector.load %arg5[%c0_24, %c1_25, %c0_26] : memref<18x18x128xbf16, #tpu.memory_space<vmem>>, vector<16x16x128xbf16>
    %15 = vector.shape_cast %14 : vector<16x16x128xbf16> to vector<256x128xbf16>
    %c1_27 = arith.constant 1 : index
    %c0_28 = arith.constant 0 : index
    %c0_29 = arith.constant 0 : index
    %16 = vector.load %arg2[%c1_27, %c0_28, %c0_29] : memref<9x128x128xbf16, #tpu.memory_space<vmem>>, vector<1x128x128xbf16>
    %17 = vector.shape_cast %16 : vector<1x128x128xbf16> to vector<128x128xbf16>
    %cst_30 = arith.constant dense<0.000000e+00> : vector<256x128xf32>
    %18 = tpu.matmul %15, %17, %cst_30 {dimension_numbers = #tpu.dot_dimension_numbers<[1], [0], [0], [1], [0, 0, 1, 1], [], []>} : vector<256x128xbf16>, vector<128x128xbf16>, vector<256x128xf32> -> vector<256x128xf32>
    %19 = arith.addf %13, %18 : vector<256x128xf32>
    %c0_31 = arith.constant 0 : index
    %c2 = arith.constant 2 : index
    %c0_32 = arith.constant 0 : index
    %20 = vector.load %arg5[%c0_31, %c2, %c0_32] : memref<18x18x128xbf16, #tpu.memory_space<vmem>>, vector<16x16x128xbf16>
    %21 = vector.shape_cast %20 : vector<16x16x128xbf16> to vector<256x128xbf16>
    %c2_33 = arith.constant 2 : index
    %c0_34 = arith.constant 0 : index
    %c0_35 = arith.constant 0 : index
    %22 = vector.load %arg2[%c2_33, %c0_34, %c0_35] : memref<9x128x128xbf16, #tpu.memory_space<vmem>>, vector<1x128x128xbf16>
    %23 = vector.shape_cast %22 : vector<1x128x128xbf16> to vector<128x128xbf16>
    %cst_36 = arith.constant dense<0.000000e+00> : vector<256x128xf32>
    %24 = tpu.matmul %21, %23, %cst_36 {dimension_numbers = #tpu.dot_dimension_numbers<[1], [0], [0], [1], [0, 0, 1, 1], [], []>} : vector<256x128xbf16>, vector<128x128xbf16>, vector<256x128xf32> -> vector<256x128xf32>
    %25 = arith.addf %19, %24 : vector<256x128xf32>
    %c1_37 = arith.constant 1 : index
    %c0_38 = arith.constant 0 : index
    %c0_39 = arith.constant 0 : index
    %26 = vector.load %arg5[%c1_37, %c0_38, %c0_39] : memref<18x18x128xbf16, #tpu.memory_space<vmem>>, vector<16x16x128xbf16>
    %27 = vector.shape_cast %26 : vector<16x16x128xbf16> to vector<256x128xbf16>
    %c3 = arith.constant 3 : index
    %c0_40 = arith.constant 0 : index
    %c0_41 = arith.constant 0 : index
    %28 = vector.load %arg2[%c3, %c0_40, %c0_41] : memref<9x128x128xbf16, #tpu.memory_space<vmem>>, vector<1x128x128xbf16>
    %29 = vector.shape_cast %28 : vector<1x128x128xbf16> to vector<128x128xbf16>
    %cst_42 = arith.constant dense<0.000000e+00> : vector<256x128xf32>
    %30 = tpu.matmul %27, %29, %cst_42 {dimension_numbers = #tpu.dot_dimension_numbers<[1], [0], [0], [1], [0, 0, 1, 1], [], []>} : vector<256x128xbf16>, vector<128x128xbf16>, vector<256x128xf32> -> vector<256x128xf32>
    %31 = arith.addf %25, %30 : vector<256x128xf32>
    %c1_43 = arith.constant 1 : index
    %c1_44 = arith.constant 1 : index
    %c0_45 = arith.constant 0 : index
    %32 = vector.load %arg5[%c1_43, %c1_44, %c0_45] : memref<18x18x128xbf16, #tpu.memory_space<vmem>>, vector<16x16x128xbf16>
    %33 = vector.shape_cast %32 : vector<16x16x128xbf16> to vector<256x128xbf16>
    %c4 = arith.constant 4 : index
    %c0_46 = arith.constant 0 : index
    %c0_47 = arith.constant 0 : index
    %34 = vector.load %arg2[%c4, %c0_46, %c0_47] : memref<9x128x128xbf16, #tpu.memory_space<vmem>>, vector<1x128x128xbf16>
    %35 = vector.shape_cast %34 : vector<1x128x128xbf16> to vector<128x128xbf16>
    %cst_48 = arith.constant dense<0.000000e+00> : vector<256x128xf32>
    %36 = tpu.matmul %33, %35, %cst_48 {dimension_numbers = #tpu.dot_dimension_numbers<[1], [0], [0], [1], [0, 0, 1, 1], [], []>} : vector<256x128xbf16>, vector<128x128xbf16>, vector<256x128xf32> -> vector<256x128xf32>
    %37 = arith.addf %31, %36 : vector<256x128xf32>
    %c1_49 = arith.constant 1 : index
    %c2_50 = arith.constant 2 : index
    %c0_51 = arith.constant 0 : index
    %38 = vector.load %arg5[%c1_49, %c2_50, %c0_51] : memref<18x18x128xbf16, #tpu.memory_space<vmem>>, vector<16x16x128xbf16>
    %39 = vector.shape_cast %38 : vector<16x16x128xbf16> to vector<256x128xbf16>
    %c5 = arith.constant 5 : index
    %c0_52 = arith.constant 0 : index
    %c0_53 = arith.constant 0 : index
    %40 = vector.load %arg2[%c5, %c0_52, %c0_53] : memref<9x128x128xbf16, #tpu.memory_space<vmem>>, vector<1x128x128xbf16>
    %41 = vector.shape_cast %40 : vector<1x128x128xbf16> to vector<128x128xbf16>
    %cst_54 = arith.constant dense<0.000000e+00> : vector<256x128xf32>
    %42 = tpu.matmul %39, %41, %cst_54 {dimension_numbers = #tpu.dot_dimension_numbers<[1], [0], [0], [1], [0, 0, 1, 1], [], []>} : vector<256x128xbf16>, vector<128x128xbf16>, vector<256x128xf32> -> vector<256x128xf32>
    %43 = arith.addf %37, %42 : vector<256x128xf32>
    %c2_55 = arith.constant 2 : index
    %c0_56 = arith.constant 0 : index
    %c0_57 = arith.constant 0 : index
    %44 = vector.load %arg5[%c2_55, %c0_56, %c0_57] : memref<18x18x128xbf16, #tpu.memory_space<vmem>>, vector<16x16x128xbf16>
    %45 = vector.shape_cast %44 : vector<16x16x128xbf16> to vector<256x128xbf16>
    %c6 = arith.constant 6 : index
    %c0_58 = arith.constant 0 : index
    %c0_59 = arith.constant 0 : index
    %46 = vector.load %arg2[%c6, %c0_58, %c0_59] : memref<9x128x128xbf16, #tpu.memory_space<vmem>>, vector<1x128x128xbf16>
    %47 = vector.shape_cast %46 : vector<1x128x128xbf16> to vector<128x128xbf16>
    %cst_60 = arith.constant dense<0.000000e+00> : vector<256x128xf32>
    %48 = tpu.matmul %45, %47, %cst_60 {dimension_numbers = #tpu.dot_dimension_numbers<[1], [0], [0], [1], [0, 0, 1, 1], [], []>} : vector<256x128xbf16>, vector<128x128xbf16>, vector<256x128xf32> -> vector<256x128xf32>
    %49 = arith.addf %43, %48 : vector<256x128xf32>
    %c2_61 = arith.constant 2 : index
    %c1_62 = arith.constant 1 : index
    %c0_63 = arith.constant 0 : index
    %50 = vector.load %arg5[%c2_61, %c1_62, %c0_63] : memref<18x18x128xbf16, #tpu.memory_space<vmem>>, vector<16x16x128xbf16>
    %51 = vector.shape_cast %50 : vector<16x16x128xbf16> to vector<256x128xbf16>
    %c7 = arith.constant 7 : index
    %c0_64 = arith.constant 0 : index
    %c0_65 = arith.constant 0 : index
    %52 = vector.load %arg2[%c7, %c0_64, %c0_65] : memref<9x128x128xbf16, #tpu.memory_space<vmem>>, vector<1x128x128xbf16>
    %53 = vector.shape_cast %52 : vector<1x128x128xbf16> to vector<128x128xbf16>
    %cst_66 = arith.constant dense<0.000000e+00> : vector<256x128xf32>
    %54 = tpu.matmul %51, %53, %cst_66 {dimension_numbers = #tpu.dot_dimension_numbers<[1], [0], [0], [1], [0, 0, 1, 1], [], []>} : vector<256x128xbf16>, vector<128x128xbf16>, vector<256x128xf32> -> vector<256x128xf32>
    %55 = arith.addf %49, %54 : vector<256x128xf32>
    %c2_67 = arith.constant 2 : index
    %c2_68 = arith.constant 2 : index
    %c0_69 = arith.constant 0 : index
    %56 = vector.load %arg5[%c2_67, %c2_68, %c0_69] : memref<18x18x128xbf16, #tpu.memory_space<vmem>>, vector<16x16x128xbf16>
    %57 = vector.shape_cast %56 : vector<16x16x128xbf16> to vector<256x128xbf16>
    %c8 = arith.constant 8 : index
    %c0_70 = arith.constant 0 : index
    %c0_71 = arith.constant 0 : index
    %58 = vector.load %arg2[%c8, %c0_70, %c0_71] : memref<9x128x128xbf16, #tpu.memory_space<vmem>>, vector<1x128x128xbf16>
    %59 = vector.shape_cast %58 : vector<1x128x128xbf16> to vector<128x128xbf16>
    %cst_72 = arith.constant dense<0.000000e+00> : vector<256x128xf32>
    %60 = tpu.matmul %57, %59, %cst_72 {dimension_numbers = #tpu.dot_dimension_numbers<[1], [0], [0], [1], [0, 0, 1, 1], [], []>} : vector<256x128xbf16>, vector<128x128xbf16>, vector<256x128xf32> -> vector<256x128xf32>
    %61 = arith.addf %55, %60 : vector<256x128xf32>
    %62 = arith.truncf %61 : vector<256x128xf32> to vector<256x128xbf16>
    %63 = vector.shape_cast %62 : vector<256x128xbf16> to vector<1x16x16x128xbf16>
    %c0_73 = arith.constant 0 : index
    %c0_74 = arith.constant 0 : index
    %c0_75 = arith.constant 0 : index
    %c0_76 = arith.constant 0 : index
    %64 = vector.load %arg3[%c0_73, %c0_74, %c0_75, %c0_76] : memref<1x16x16x128xbf16, #tpu.memory_space<vmem>>, vector<1x16x16x128xbf16>
    tpu.vector_store %arg3[%c0_73, %c0_74, %c0_75, %c0_76], %63 {strides = array<i32>} : memref<1x16x16x128xbf16, #tpu.memory_space<vmem>>, vector<1x16x16x128xbf16>,
    %cst_77 = arith.constant dense<0.000000e+00> : vector<128xf32>
    %65 = vector.multi_reduction <add>, %61, %cst_77 [0] : vector<256x128xf32> to vector<128xf32>
    %66 = vector.shape_cast %65 : vector<128xf32> to vector<1x1x128xf32>
    %c0_78 = arith.constant 0 : index
    %c0_79 = arith.constant 0 : index
    %c0_80 = arith.constant 0 : index
    %67 = vector.load %arg4[%c0_78, %c0_79, %c0_80] : memref<1x2x128xf32, #tpu.memory_space<vmem>>, vector<1x1x128xf32>
    tpu.vector_store %arg4[%c0_78, %c0_79, %c0_80], %66 {strides = array<i32>} : memref<1x2x128xf32, #tpu.memory_space<vmem>>, vector<1x1x128xf32>,
    %68 = arith.mulf %61, %61 : vector<256x128xf32>
    %cst_81 = arith.constant dense<0.000000e+00> : vector<128xf32>
    %69 = vector.multi_reduction <add>, %68, %cst_81 [0] : vector<256x128xf32> to vector<128xf32>
    %70 = vector.shape_cast %69 : vector<128xf32> to vector<1x1x128xf32>
    %c0_82 = arith.constant 0 : index
    %c1_83 = arith.constant 1 : index
    %c0_84 = arith.constant 0 : index
    %71 = vector.load %arg4[%c0_82, %c1_83, %c0_84] : memref<1x2x128xf32, #tpu.memory_space<vmem>>, vector<1x1x128xf32>
    tpu.vector_store %arg4[%c0_82, %c1_83, %c0_84], %70 {strides = array<i32>} : memref<1x2x128xf32, #tpu.memory_space<vmem>>, vector<1x1x128xf32>,
    return
  }
  func.func @transform_0(%arg0: i32) -> (i32, i32, i32, i32) {
    %c0_i32 = arith.constant 0 : i32
    %c0_i32_0 = arith.constant 0 : i32
    %c0_i32_1 = arith.constant 0 : i32
    %c0_i32_2 = arith.constant 0 : i32
    return %arg0, %c0_i32, %c0_i32_0, %c0_i32_1 : i32, i32, i32, i32
  }
  func.func @transform_1(%arg0: i32) -> (i32, i32, i32) {
    %c0_i32 = arith.constant 0 : i32
    %c0_i32_0 = arith.constant 0 : i32
    %c0_i32_1 = arith.constant 0 : i32
    %c0_i32_2 = arith.constant 0 : i32
    return %c0_i32, %c0_i32_0, %c0_i32_1 : i32, i32, i32
  }
  func.func @transform_2(%arg0: i32) -> (i32, i32, i32, i32) {
    %c0_i32 = arith.constant 0 : i32
    %c0_i32_0 = arith.constant 0 : i32
    %c0_i32_1 = arith.constant 0 : i32
    %c0_i32_2 = arith.constant 0 : i32
    return %arg0, %c0_i32, %c0_i32_0, %c0_i32_1 : i32, i32, i32, i32
  }
  func.func @transform_3(%arg0: i32) -> (i32, i32, i32) {
    %c0_i32 = arith.constant 0 : i32
    %c0_i32_0 = arith.constant 0 : i32
    %c0_i32_1 = arith.constant 0 : i32
    return %arg0, %c0_i32, %c0_i32_0 : i32, i32, i32
  }
}

module attributes {stable_mosaic.version = 11 : i64} {
  func.func @_bn_prelu_conv2_kernel(%arg0: i32, %arg1: memref<1x16x16x128xbf16, #tpu.memory_space<vmem>>, %arg2: memref<9x128x128xbf16, #tpu.memory_space<vmem>>, %arg3: memref<1x128xf32, #tpu.memory_space<vmem>>, %arg4: memref<1x128xf32, #tpu.memory_space<vmem>>, %arg5: memref<1x1xf32, #tpu.memory_space<smem>>, %arg6: memref<1x16x16x128xbf16, #tpu.memory_space<vmem>>, %arg7: memref<1x2x128xf32, #tpu.memory_space<vmem>>, %arg8: memref<18x18x128xbf16, #tpu.memory_space<vmem>>) attributes {dimension_semantics = [#tpu.dimension_semantics<parallel>], iteration_bounds = array<i64: 2>, scalar_prefetch = 0 : i64, scratch_operands = 1 : i64, tpu.core_type = #tpu.core_type<tc>, window_params = [{transform_indices = @transform_0, window_bounds = array<i64: 1, 16, 16, 128>}, {pipeline_mode = #tpu.pipeline_mode<synchronous>, transform_indices = @transform_1, window_bounds = array<i64: 9, 128, 128>}, {pipeline_mode = #tpu.pipeline_mode<synchronous>, transform_indices = @transform_2, window_bounds = array<i64: 1, 128>}, {pipeline_mode = #tpu.pipeline_mode<synchronous>, transform_indices = @transform_3, window_bounds = array<i64: 1, 128>}, {transform_indices = @transform_4, window_bounds = array<i64: 1, 1>}, {transform_indices = @transform_5, window_bounds = array<i64: 1, 16, 16, 128>}, {transform_indices = @transform_6, window_bounds = array<i64: 1, 2, 128>}]} {
    %c0 = arith.constant 0 : index
    %c0_0 = arith.constant 0 : index
    %c0_1 = arith.constant 0 : index
    %c0_2 = arith.constant 0 : index
    %0 = vector.load %arg1[%c0, %c0_0, %c0_1, %c0_2] : memref<1x16x16x128xbf16, #tpu.memory_space<vmem>>, vector<1x16x16x128xbf16>
    %1 = vector.shape_cast %0 : vector<1x16x16x128xbf16> to vector<16x16x128xbf16>
    %2 = arith.extf %1 : vector<16x16x128xbf16> to vector<16x16x128xf32>
    %c0_3 = arith.constant 0 : index
    %c0_4 = arith.constant 0 : index
    %3 = vector.load %arg3[%c0_3, %c0_4] : memref<1x128xf32, #tpu.memory_space<vmem>>, vector<1x128xf32>
    %4 = vector.shape_cast %3 : vector<1x128xf32> to vector<1x1x128xf32>
    %5 = vector.broadcast %4 : vector<1x1x128xf32> to vector<16x16x128xf32>
    %6 = arith.mulf %2, %5 : vector<16x16x128xf32>
    %c0_5 = arith.constant 0 : index
    %c0_6 = arith.constant 0 : index
    %7 = vector.load %arg4[%c0_5, %c0_6] : memref<1x128xf32, #tpu.memory_space<vmem>>, vector<1x128xf32>
    %8 = vector.shape_cast %7 : vector<1x128xf32> to vector<1x1x128xf32>
    %9 = vector.broadcast %8 : vector<1x1x128xf32> to vector<16x16x128xf32>
    %10 = arith.addf %6, %9 : vector<16x16x128xf32>
    %c0_7 = arith.constant 0 : index
    %c0_8 = arith.constant 0 : index
    %11 = memref.load %arg5[%c0_7, %c0_8] : memref<1x1xf32, #tpu.memory_space<smem>>
    %cst = arith.constant 0.000000e+00 : f32
    %12 = vector.broadcast %cst : f32 to vector<16x16x128xf32>
    %13 = arith.cmpf ogt, %10, %12 : vector<16x16x128xf32>
    %14 = vector.broadcast %11 : f32 to vector<16x16x128xf32>
    %15 = arith.mulf %14, %10 : vector<16x16x128xf32>
    %16 = arith.select %13, %10, %15 : vector<16x16x128xi1>, vector<16x16x128xf32>
    %cst_9 = arith.constant 0.000000e+00 : bf16
    %17 = vector.broadcast %cst_9 : bf16 to vector<1x18x128xbf16>
    %c0_10 = arith.constant 0 : index
    %c0_11 = arith.constant 0 : index
    %c0_12 = arith.constant 0 : index
    %18 = vector.load %arg8[%c0_10, %c0_11, %c0_12] : memref<18x18x128xbf16, #tpu.memory_space<vmem>>, vector<1x18x128xbf16>
    tpu.vector_store %arg8[%c0_10, %c0_11, %c0_12], %17 {strides = array<i32>} : memref<18x18x128xbf16, #tpu.memory_space<vmem>>, vector<1x18x128xbf16>,
    %c17 = arith.constant 17 : index
    %c0_13 = arith.constant 0 : index
    %c0_14 = arith.constant 0 : index
    %19 = vector.load %arg8[%c17, %c0_13, %c0_14] : memref<18x18x128xbf16, #tpu.memory_space<vmem>>, vector<1x18x128xbf16>
    tpu.vector_store %arg8[%c17, %c0_13, %c0_14], %17 {strides = array<i32>} : memref<18x18x128xbf16, #tpu.memory_space<vmem>>, vector<1x18x128xbf16>,
    %cst_15 = arith.constant 0.000000e+00 : bf16
    %20 = vector.broadcast %cst_15 : bf16 to vector<16x1x128xbf16>
    %c1 = arith.constant 1 : index
    %c0_16 = arith.constant 0 : index
    %c0_17 = arith.constant 0 : index
    %21 = vector.load %arg8[%c1, %c0_16, %c0_17] : memref<18x18x128xbf16, #tpu.memory_space<vmem>>, vector<16x1x128xbf16>
    tpu.vector_store %arg8[%c1, %c0_16, %c0_17], %20 {strides = array<i32>} : memref<18x18x128xbf16, #tpu.memory_space<vmem>>, vector<16x1x128xbf16>,
    %c1_18 = arith.constant 1 : index
    %c17_19 = arith.constant 17 : index
    %c0_20 = arith.constant 0 : index
    %22 = vector.load %arg8[%c1_18, %c17_19, %c0_20] : memref<18x18x128xbf16, #tpu.memory_space<vmem>>, vector<16x1x128xbf16>
    tpu.vector_store %arg8[%c1_18, %c17_19, %c0_20], %20 {strides = array<i32>} : memref<18x18x128xbf16, #tpu.memory_space<vmem>>, vector<16x1x128xbf16>,
    %23 = arith.truncf %16 : vector<16x16x128xf32> to vector<16x16x128xbf16>
    %c1_21 = arith.constant 1 : index
    %c1_22 = arith.constant 1 : index
    %c0_23 = arith.constant 0 : index
    %24 = vector.load %arg8[%c1_21, %c1_22, %c0_23] : memref<18x18x128xbf16, #tpu.memory_space<vmem>>, vector<16x16x128xbf16>
    tpu.vector_store %arg8[%c1_21, %c1_22, %c0_23], %23 {strides = array<i32>} : memref<18x18x128xbf16, #tpu.memory_space<vmem>>, vector<16x16x128xbf16>,
    %c0_24 = arith.constant 0 : index
    %c0_25 = arith.constant 0 : index
    %c0_26 = arith.constant 0 : index
    %25 = vector.load %arg8[%c0_24, %c0_25, %c0_26] : memref<18x18x128xbf16, #tpu.memory_space<vmem>>, vector<16x16x128xbf16>
    %26 = vector.shape_cast %25 : vector<16x16x128xbf16> to vector<256x128xbf16>
    %c0_27 = arith.constant 0 : index
    %c0_28 = arith.constant 0 : index
    %c0_29 = arith.constant 0 : index
    %27 = vector.load %arg2[%c0_27, %c0_28, %c0_29] : memref<9x128x128xbf16, #tpu.memory_space<vmem>>, vector<1x128x128xbf16>
    %28 = vector.shape_cast %27 : vector<1x128x128xbf16> to vector<128x128xbf16>
    %cst_30 = arith.constant dense<0.000000e+00> : vector<256x128xf32>
    %29 = tpu.matmul %26, %28, %cst_30 {dimension_numbers = #tpu.dot_dimension_numbers<[1], [0], [0], [1], [0, 0, 1, 1], [], []>} : vector<256x128xbf16>, vector<128x128xbf16>, vector<256x128xf32> -> vector<256x128xf32>
    %c0_31 = arith.constant 0 : index
    %c1_32 = arith.constant 1 : index
    %c0_33 = arith.constant 0 : index
    %30 = vector.load %arg8[%c0_31, %c1_32, %c0_33] : memref<18x18x128xbf16, #tpu.memory_space<vmem>>, vector<16x16x128xbf16>
    %31 = vector.shape_cast %30 : vector<16x16x128xbf16> to vector<256x128xbf16>
    %c1_34 = arith.constant 1 : index
    %c0_35 = arith.constant 0 : index
    %c0_36 = arith.constant 0 : index
    %32 = vector.load %arg2[%c1_34, %c0_35, %c0_36] : memref<9x128x128xbf16, #tpu.memory_space<vmem>>, vector<1x128x128xbf16>
    %33 = vector.shape_cast %32 : vector<1x128x128xbf16> to vector<128x128xbf16>
    %cst_37 = arith.constant dense<0.000000e+00> : vector<256x128xf32>
    %34 = tpu.matmul %31, %33, %cst_37 {dimension_numbers = #tpu.dot_dimension_numbers<[1], [0], [0], [1], [0, 0, 1, 1], [], []>} : vector<256x128xbf16>, vector<128x128xbf16>, vector<256x128xf32> -> vector<256x128xf32>
    %35 = arith.addf %29, %34 : vector<256x128xf32>
    %c0_38 = arith.constant 0 : index
    %c2 = arith.constant 2 : index
    %c0_39 = arith.constant 0 : index
    %36 = vector.load %arg8[%c0_38, %c2, %c0_39] : memref<18x18x128xbf16, #tpu.memory_space<vmem>>, vector<16x16x128xbf16>
    %37 = vector.shape_cast %36 : vector<16x16x128xbf16> to vector<256x128xbf16>
    %c2_40 = arith.constant 2 : index
    %c0_41 = arith.constant 0 : index
    %c0_42 = arith.constant 0 : index
    %38 = vector.load %arg2[%c2_40, %c0_41, %c0_42] : memref<9x128x128xbf16, #tpu.memory_space<vmem>>, vector<1x128x128xbf16>
    %39 = vector.shape_cast %38 : vector<1x128x128xbf16> to vector<128x128xbf16>
    %cst_43 = arith.constant dense<0.000000e+00> : vector<256x128xf32>
    %40 = tpu.matmul %37, %39, %cst_43 {dimension_numbers = #tpu.dot_dimension_numbers<[1], [0], [0], [1], [0, 0, 1, 1], [], []>} : vector<256x128xbf16>, vector<128x128xbf16>, vector<256x128xf32> -> vector<256x128xf32>
    %41 = arith.addf %35, %40 : vector<256x128xf32>
    %c1_44 = arith.constant 1 : index
    %c0_45 = arith.constant 0 : index
    %c0_46 = arith.constant 0 : index
    %42 = vector.load %arg8[%c1_44, %c0_45, %c0_46] : memref<18x18x128xbf16, #tpu.memory_space<vmem>>, vector<16x16x128xbf16>
    %43 = vector.shape_cast %42 : vector<16x16x128xbf16> to vector<256x128xbf16>
    %c3 = arith.constant 3 : index
    %c0_47 = arith.constant 0 : index
    %c0_48 = arith.constant 0 : index
    %44 = vector.load %arg2[%c3, %c0_47, %c0_48] : memref<9x128x128xbf16, #tpu.memory_space<vmem>>, vector<1x128x128xbf16>
    %45 = vector.shape_cast %44 : vector<1x128x128xbf16> to vector<128x128xbf16>
    %cst_49 = arith.constant dense<0.000000e+00> : vector<256x128xf32>
    %46 = tpu.matmul %43, %45, %cst_49 {dimension_numbers = #tpu.dot_dimension_numbers<[1], [0], [0], [1], [0, 0, 1, 1], [], []>} : vector<256x128xbf16>, vector<128x128xbf16>, vector<256x128xf32> -> vector<256x128xf32>
    %47 = arith.addf %41, %46 : vector<256x128xf32>
    %c1_50 = arith.constant 1 : index
    %c1_51 = arith.constant 1 : index
    %c0_52 = arith.constant 0 : index
    %48 = vector.load %arg8[%c1_50, %c1_51, %c0_52] : memref<18x18x128xbf16, #tpu.memory_space<vmem>>, vector<16x16x128xbf16>
    %49 = vector.shape_cast %48 : vector<16x16x128xbf16> to vector<256x128xbf16>
    %c4 = arith.constant 4 : index
    %c0_53 = arith.constant 0 : index
    %c0_54 = arith.constant 0 : index
    %50 = vector.load %arg2[%c4, %c0_53, %c0_54] : memref<9x128x128xbf16, #tpu.memory_space<vmem>>, vector<1x128x128xbf16>
    %51 = vector.shape_cast %50 : vector<1x128x128xbf16> to vector<128x128xbf16>
    %cst_55 = arith.constant dense<0.000000e+00> : vector<256x128xf32>
    %52 = tpu.matmul %49, %51, %cst_55 {dimension_numbers = #tpu.dot_dimension_numbers<[1], [0], [0], [1], [0, 0, 1, 1], [], []>} : vector<256x128xbf16>, vector<128x128xbf16>, vector<256x128xf32> -> vector<256x128xf32>
    %53 = arith.addf %47, %52 : vector<256x128xf32>
    %c1_56 = arith.constant 1 : index
    %c2_57 = arith.constant 2 : index
    %c0_58 = arith.constant 0 : index
    %54 = vector.load %arg8[%c1_56, %c2_57, %c0_58] : memref<18x18x128xbf16, #tpu.memory_space<vmem>>, vector<16x16x128xbf16>
    %55 = vector.shape_cast %54 : vector<16x16x128xbf16> to vector<256x128xbf16>
    %c5 = arith.constant 5 : index
    %c0_59 = arith.constant 0 : index
    %c0_60 = arith.constant 0 : index
    %56 = vector.load %arg2[%c5, %c0_59, %c0_60] : memref<9x128x128xbf16, #tpu.memory_space<vmem>>, vector<1x128x128xbf16>
    %57 = vector.shape_cast %56 : vector<1x128x128xbf16> to vector<128x128xbf16>
    %cst_61 = arith.constant dense<0.000000e+00> : vector<256x128xf32>
    %58 = tpu.matmul %55, %57, %cst_61 {dimension_numbers = #tpu.dot_dimension_numbers<[1], [0], [0], [1], [0, 0, 1, 1], [], []>} : vector<256x128xbf16>, vector<128x128xbf16>, vector<256x128xf32> -> vector<256x128xf32>
    %59 = arith.addf %53, %58 : vector<256x128xf32>
    %c2_62 = arith.constant 2 : index
    %c0_63 = arith.constant 0 : index
    %c0_64 = arith.constant 0 : index
    %60 = vector.load %arg8[%c2_62, %c0_63, %c0_64] : memref<18x18x128xbf16, #tpu.memory_space<vmem>>, vector<16x16x128xbf16>
    %61 = vector.shape_cast %60 : vector<16x16x128xbf16> to vector<256x128xbf16>
    %c6 = arith.constant 6 : index
    %c0_65 = arith.constant 0 : index
    %c0_66 = arith.constant 0 : index
    %62 = vector.load %arg2[%c6, %c0_65, %c0_66] : memref<9x128x128xbf16, #tpu.memory_space<vmem>>, vector<1x128x128xbf16>
    %63 = vector.shape_cast %62 : vector<1x128x128xbf16> to vector<128x128xbf16>
    %cst_67 = arith.constant dense<0.000000e+00> : vector<256x128xf32>
    %64 = tpu.matmul %61, %63, %cst_67 {dimension_numbers = #tpu.dot_dimension_numbers<[1], [0], [0], [1], [0, 0, 1, 1], [], []>} : vector<256x128xbf16>, vector<128x128xbf16>, vector<256x128xf32> -> vector<256x128xf32>
    %65 = arith.addf %59, %64 : vector<256x128xf32>
    %c2_68 = arith.constant 2 : index
    %c1_69 = arith.constant 1 : index
    %c0_70 = arith.constant 0 : index
    %66 = vector.load %arg8[%c2_68, %c1_69, %c0_70] : memref<18x18x128xbf16, #tpu.memory_space<vmem>>, vector<16x16x128xbf16>
    %67 = vector.shape_cast %66 : vector<16x16x128xbf16> to vector<256x128xbf16>
    %c7 = arith.constant 7 : index
    %c0_71 = arith.constant 0 : index
    %c0_72 = arith.constant 0 : index
    %68 = vector.load %arg2[%c7, %c0_71, %c0_72] : memref<9x128x128xbf16, #tpu.memory_space<vmem>>, vector<1x128x128xbf16>
    %69 = vector.shape_cast %68 : vector<1x128x128xbf16> to vector<128x128xbf16>
    %cst_73 = arith.constant dense<0.000000e+00> : vector<256x128xf32>
    %70 = tpu.matmul %67, %69, %cst_73 {dimension_numbers = #tpu.dot_dimension_numbers<[1], [0], [0], [1], [0, 0, 1, 1], [], []>} : vector<256x128xbf16>, vector<128x128xbf16>, vector<256x128xf32> -> vector<256x128xf32>
    %71 = arith.addf %65, %70 : vector<256x128xf32>
    %c2_74 = arith.constant 2 : index
    %c2_75 = arith.constant 2 : index
    %c0_76 = arith.constant 0 : index
    %72 = vector.load %arg8[%c2_74, %c2_75, %c0_76] : memref<18x18x128xbf16, #tpu.memory_space<vmem>>, vector<16x16x128xbf16>
    %73 = vector.shape_cast %72 : vector<16x16x128xbf16> to vector<256x128xbf16>
    %c8 = arith.constant 8 : index
    %c0_77 = arith.constant 0 : index
    %c0_78 = arith.constant 0 : index
    %74 = vector.load %arg2[%c8, %c0_77, %c0_78] : memref<9x128x128xbf16, #tpu.memory_space<vmem>>, vector<1x128x128xbf16>
    %75 = vector.shape_cast %74 : vector<1x128x128xbf16> to vector<128x128xbf16>
    %cst_79 = arith.constant dense<0.000000e+00> : vector<256x128xf32>
    %76 = tpu.matmul %73, %75, %cst_79 {dimension_numbers = #tpu.dot_dimension_numbers<[1], [0], [0], [1], [0, 0, 1, 1], [], []>} : vector<256x128xbf16>, vector<128x128xbf16>, vector<256x128xf32> -> vector<256x128xf32>
    %77 = arith.addf %71, %76 : vector<256x128xf32>
    %78 = arith.truncf %77 : vector<256x128xf32> to vector<256x128xbf16>
    %79 = vector.shape_cast %78 : vector<256x128xbf16> to vector<1x16x16x128xbf16>
    %c0_80 = arith.constant 0 : index
    %c0_81 = arith.constant 0 : index
    %c0_82 = arith.constant 0 : index
    %c0_83 = arith.constant 0 : index
    %80 = vector.load %arg6[%c0_80, %c0_81, %c0_82, %c0_83] : memref<1x16x16x128xbf16, #tpu.memory_space<vmem>>, vector<1x16x16x128xbf16>
    tpu.vector_store %arg6[%c0_80, %c0_81, %c0_82, %c0_83], %79 {strides = array<i32>} : memref<1x16x16x128xbf16, #tpu.memory_space<vmem>>, vector<1x16x16x128xbf16>,
    %cst_84 = arith.constant dense<0.000000e+00> : vector<128xf32>
    %81 = vector.multi_reduction <add>, %77, %cst_84 [0] : vector<256x128xf32> to vector<128xf32>
    %82 = vector.shape_cast %81 : vector<128xf32> to vector<1x1x128xf32>
    %c0_85 = arith.constant 0 : index
    %c0_86 = arith.constant 0 : index
    %c0_87 = arith.constant 0 : index
    %83 = vector.load %arg7[%c0_85, %c0_86, %c0_87] : memref<1x2x128xf32, #tpu.memory_space<vmem>>, vector<1x1x128xf32>
    tpu.vector_store %arg7[%c0_85, %c0_86, %c0_87], %82 {strides = array<i32>} : memref<1x2x128xf32, #tpu.memory_space<vmem>>, vector<1x1x128xf32>,
    %84 = arith.mulf %77, %77 : vector<256x128xf32>
    %cst_88 = arith.constant dense<0.000000e+00> : vector<128xf32>
    %85 = vector.multi_reduction <add>, %84, %cst_88 [0] : vector<256x128xf32> to vector<128xf32>
    %86 = vector.shape_cast %85 : vector<128xf32> to vector<1x1x128xf32>
    %c0_89 = arith.constant 0 : index
    %c1_90 = arith.constant 1 : index
    %c0_91 = arith.constant 0 : index
    %87 = vector.load %arg7[%c0_89, %c1_90, %c0_91] : memref<1x2x128xf32, #tpu.memory_space<vmem>>, vector<1x1x128xf32>
    tpu.vector_store %arg7[%c0_89, %c1_90, %c0_91], %86 {strides = array<i32>} : memref<1x2x128xf32, #tpu.memory_space<vmem>>, vector<1x1x128xf32>,
    return
  }
  func.func @transform_0(%arg0: i32) -> (i32, i32, i32, i32) {
    %c0_i32 = arith.constant 0 : i32
    %c0_i32_0 = arith.constant 0 : i32
    %c0_i32_1 = arith.constant 0 : i32
    %c0_i32_2 = arith.constant 0 : i32
    return %arg0, %c0_i32, %c0_i32_0, %c0_i32_1 : i32, i32, i32, i32
  }
  func.func @transform_1(%arg0: i32) -> (i32, i32, i32) {
    %c0_i32 = arith.constant 0 : i32
    %c0_i32_0 = arith.constant 0 : i32
    %c0_i32_1 = arith.constant 0 : i32
    %c0_i32_2 = arith.constant 0 : i32
    return %c0_i32, %c0_i32_0, %c0_i32_1 : i32, i32, i32
  }
  func.func @transform_2(%arg0: i32) -> (i32, i32) {
    %c0_i32 = arith.constant 0 : i32
    %c0_i32_0 = arith.constant 0 : i32
    %c0_i32_1 = arith.constant 0 : i32
    return %c0_i32, %c0_i32_0 : i32, i32
  }
  func.func @transform_3(%arg0: i32) -> (i32, i32) {
    %c0_i32 = arith.constant 0 : i32
    %c0_i32_0 = arith.constant 0 : i32
    %c0_i32_1 = arith.constant 0 : i32
    return %c0_i32, %c0_i32_0 : i32, i32
  }
  func.func @transform_4(%arg0: i32) -> (i32, i32) {
    %c0_i32 = arith.constant 0 : i32
    %c0_i32_0 = arith.constant 0 : i32
    %c0_i32_1 = arith.constant 0 : i32
    return %c0_i32, %c0_i32_0 : i32, i32
  }
  func.func @transform_5(%arg0: i32) -> (i32, i32, i32, i32) {
    %c0_i32 = arith.constant 0 : i32
    %c0_i32_0 = arith.constant 0 : i32
    %c0_i32_1 = arith.constant 0 : i32
    %c0_i32_2 = arith.constant 0 : i32
    return %arg0, %c0_i32, %c0_i32_0, %c0_i32_1 : i32, i32, i32, i32
  }
  func.func @transform_6(%arg0: i32) -> (i32, i32, i32) {
    %c0_i32 = arith.constant 0 : i32
    %c0_i32_0 = arith.constant 0 : i32
    %c0_i32_1 = arith.constant 0 : i32
    return %arg0, %c0_i32, %c0_i32_0 : i32, i32, i32
  }
}

module attributes {stable_mosaic.version = 11 : i64} {
  func.func @_bn2_residual_kernel(%arg0: i32, %arg1: memref<1x16x16x128xbf16, #tpu.memory_space<vmem>>, %arg2: memref<1x16x16x4xf32, #tpu.memory_space<vmem>>, %arg3: memref<1x128xf32, #tpu.memory_space<vmem>>, %arg4: memref<1x128xf32, #tpu.memory_space<vmem>>, %arg5: memref<1x16x16x4xf32, #tpu.memory_space<vmem>>) attributes {dimension_semantics = [#tpu.dimension_semantics<parallel>], iteration_bounds = array<i64: 2>, scalar_prefetch = 0 : i64, scratch_operands = 0 : i64, tpu.core_type = #tpu.core_type<tc>, window_params = [{transform_indices = @transform_0, window_bounds = array<i64: 1, 16, 16, 128>}, {transform_indices = @transform_1, window_bounds = array<i64: 1, 16, 16, 4>}, {pipeline_mode = #tpu.pipeline_mode<synchronous>, transform_indices = @transform_2, window_bounds = array<i64: 1, 128>}, {pipeline_mode = #tpu.pipeline_mode<synchronous>, transform_indices = @transform_3, window_bounds = array<i64: 1, 128>}, {transform_indices = @transform_4, window_bounds = array<i64: 1, 16, 16, 4>}]} {
    %c0 = arith.constant 0 : index
    %c0_0 = arith.constant 0 : index
    %c0_1 = arith.constant 0 : index
    %c0_2 = arith.constant 0 : index
    %0 = vector.load %arg1[%c0, %c0_0, %c0_1, %c0_2] : memref<1x16x16x128xbf16, #tpu.memory_space<vmem>>, vector<1x16x16x128xbf16>
    %1 = vector.shape_cast %0 : vector<1x16x16x128xbf16> to vector<16x16x128xbf16>
    %2 = arith.extf %1 : vector<16x16x128xbf16> to vector<16x16x128xf32>
    %c0_3 = arith.constant 0 : index
    %c0_4 = arith.constant 0 : index
    %3 = vector.load %arg3[%c0_3, %c0_4] : memref<1x128xf32, #tpu.memory_space<vmem>>, vector<1x128xf32>
    %4 = vector.shape_cast %3 : vector<1x128xf32> to vector<1x1x128xf32>
    %5 = vector.broadcast %4 : vector<1x1x128xf32> to vector<16x16x128xf32>
    %6 = arith.mulf %2, %5 : vector<16x16x128xf32>
    %c0_5 = arith.constant 0 : index
    %c0_6 = arith.constant 0 : index
    %7 = vector.load %arg4[%c0_5, %c0_6] : memref<1x128xf32, #tpu.memory_space<vmem>>, vector<1x128xf32>
    %8 = vector.shape_cast %7 : vector<1x128xf32> to vector<1x1x128xf32>
    %9 = vector.broadcast %8 : vector<1x1x128xf32> to vector<16x16x128xf32>
    %10 = arith.addf %6, %9 : vector<16x16x128xf32>
    %c0_7 = arith.constant 0 : index
    %c0_8 = arith.constant 0 : index
    %c0_9 = arith.constant 0 : index
    %c0_10 = arith.constant 0 : index
    %11 = vector.load %arg2[%c0_7, %c0_8, %c0_9, %c0_10] : memref<1x16x16x4xf32, #tpu.memory_space<vmem>>, vector<1x16x16x4xf32>
    %12 = vector.shape_cast %11 : vector<1x16x16x4xf32> to vector<16x16x4xf32>
    %13 = vector.extract_strided_slice %10 {offsets = [0, 0, 0], sizes = [16, 16, 4], strides = [1, 1, 1]} : vector<16x16x128xf32> to vector<16x16x4xf32>
    %14 = arith.addf %12, %13 : vector<16x16x4xf32>
    %15 = vector.shape_cast %14 : vector<16x16x4xf32> to vector<1x16x16x4xf32>
    %c0_11 = arith.constant 0 : index
    %c0_12 = arith.constant 0 : index
    %c0_13 = arith.constant 0 : index
    %c0_14 = arith.constant 0 : index
    %16 = vector.load %arg5[%c0_11, %c0_12, %c0_13, %c0_14] : memref<1x16x16x4xf32, #tpu.memory_space<vmem>>, vector<1x16x16x4xf32>
    tpu.vector_store %arg5[%c0_11, %c0_12, %c0_13, %c0_14], %15 {strides = array<i32>} : memref<1x16x16x4xf32, #tpu.memory_space<vmem>>, vector<1x16x16x4xf32>,
    return
  }
  func.func @transform_0(%arg0: i32) -> (i32, i32, i32, i32) {
    %c0_i32 = arith.constant 0 : i32
    %c0_i32_0 = arith.constant 0 : i32
    %c0_i32_1 = arith.constant 0 : i32
    %c0_i32_2 = arith.constant 0 : i32
    return %arg0, %c0_i32, %c0_i32_0, %c0_i32_1 : i32, i32, i32, i32
  }
  func.func @transform_1(%arg0: i32) -> (i32, i32, i32, i32) {
    %c0_i32 = arith.constant 0 : i32
    %c0_i32_0 = arith.constant 0 : i32
    %c0_i32_1 = arith.constant 0 : i32
    %c0_i32_2 = arith.constant 0 : i32
    return %arg0, %c0_i32, %c0_i32_0, %c0_i32_1 : i32, i32, i32, i32
  }
  func.func @transform_2(%arg0: i32) -> (i32, i32) {
    %c0_i32 = arith.constant 0 : i32
    %c0_i32_0 = arith.constant 0 : i32
    %c0_i32_1 = arith.constant 0 : i32
    return %c0_i32, %c0_i32_0 : i32, i32
  }
  func.func @transform_3(%arg0: i32) -> (i32, i32) {
    %c0_i32 = arith.constant 0 : i32
    %c0_i32_0 = arith.constant 0 : i32
    %c0_i32_1 = arith.constant 0 : i32
    return %c0_i32, %c0_i32_0 : i32, i32
  }
  func.func @transform_4(%arg0: i32) -> (i32, i32, i32, i32) {
    %c0_i32 = arith.constant 0 : i32
    %c0_i32_0 = arith.constant 0 : i32
    %c0_i32_1 = arith.constant 0 : i32
    %c0_i32_2 = arith.constant 0 : i32
    return %arg0, %c0_i32, %c0_i32_0, %c0_i32_1 : i32, i32, i32, i32
  }
}

</mosaic_0001>

<bundles_post_ra>
// kernel: residual_block.5
= control target key start
LH: loop header
LB: loop body
LE: loop exit
PB: predicated region body
PF: predicated region fallthrough
CT: control target
= control target key end

     0   :  { %s662_s15 = smov 0   ;;  %s882_s0 = inlined_call_operand.vmem [shape: bf16[2,16,16,128], index: 0, kind: input, shape index: {}]   ;;  %s883_s1 = inlined_call_operand.vmem [shape: f32[2,16,16,4], index: 1, kind: input, shape index: {}]   ;;  %s884_s2 = inlined_call_operand.vmem [shape: f32[1,128], index: 2, kind: input, shape index: {}]   ;;  %s885_s3 = inlined_call_operand.vmem [shape: f32[1,128], index: 3, kind: input, shape index: {}]   ;;  %s886_s4 = inlined_call_operand.vmem [shape: f32[2,16,16,4], index: 4, kind: output, shape index: {}]  }
   0x1 LB: > { %s524_s16 = sadd.s32 4294967295, %s635_s15   ;;  %p528_p0 = scmp.ge.s32.totalorder %s635_s15, 1  ;;  %s635_s15 = sphi %s662_s15, %s14_s15  }
   0x2   : > { %p172_p1 = scmp.lt.s32.totalorder %s635_s15, 3 }
   0x4   : > { %p173_p2 = pnand %p528_p0, %p172_p1 }
   0x5   : > { %p203_p3 = scmp.lt.s32.totalorder (!%p173_p2), %s524_s16, 1  ;;  %v683_v1 = vld [vmem:[%s884_s2] ss:$0 sm:$0xff] (!%p173_p2)  ;;  %vm424_vm0 = vcmask (!%p173_p2), 31744  }
   0x6   : > { %176 = sbr.rel (%p173_p2) target bundleno = 52 (0x34), region = 36  ;;  %v696_v5 = vld [vmem:[%s885_s3] ss:$0 sm:$0xff] (!%p173_p2) }
   0xd   : > { %s888_s16 = smov (!%p203_p3, %s524_s16), 1 }
   0xe   : > { %s539_s17 = sshll.u32 %s888_s16, 7  ;;  %s540_s18 = sshll.u32 %s888_s16, 8 }
   0xf   : > { %s677_s21 = scalar_lea.vmem %s882_s0, %s539_s17  ;;  %s690_s26 = scalar_lea.vmem %s883_s1, %s540_s18 }
  0x10   : > { %v543_v0 = vld [vmem:[%s677_s21] sm:$0xff]   ;;  %v606_v4 = vld [vmem:[%s677_s21 + $0x8] sm:$0xff]   ;;  %v607_v8 = vld [vmem:[%s677_s21 + $0x10] sm:$0xff]   ;;  %s717_s5 = scalar_lea.vmem %s886_s4, %s540_s18 }
  0x11   : > { %v544_v2 = vunpack.c.l.bf16 %v543_v0  ;;  %v545_v3 = vunpack.c.h.bf16 %v543_v0  ;;  %v548_v6 = vunpack.c.l.bf16 %v606_v4  ;;  %v549_v7 = vunpack.c.h.bf16 %v606_v4  ;;  %v608_v13 = vld [vmem:[%s677_s21 + $0x18] sm:$0xff]   ;;  %v360_v14 = vld [vmem:[%s690_s26] sm:$0xff]  ;;  %v361_v15 = vld [vmem:[%s690_s26 + $0x8] sm:$0xff] }
  0x12   : > { %v552_v11 = vunpack.c.l.bf16 %v607_v8  ;;  %v553_v12 = vunpack.c.h.bf16 %v607_v8  ;;  %v556_v18 = vunpack.c.l.bf16 %v608_v13  ;;  %v557_v19 = vunpack.c.h.bf16 %v608_v13  ;;  %v362_v22 = vld [vmem:[%s690_s26 + $0x10] sm:$0xff]  ;;  %v363_v23 = vld [vmem:[%s690_s26 + $0x18] sm:$0xff]  ;;  %v364_v28 = vld [vmem:[%s690_s26 + $0x20] sm:$0xff] }
  0x13   : > { %v289_v9 = vmul.f32 %v544_v2, %v683_v1  ;;  %v290_v10 = vmul.f32 %v545_v3, %v683_v1  ;;  %v291_v16 = vmul.f32 %v548_v6, %v683_v1  ;;  %v292_v17 = vmul.f32 %v549_v7, %v683_v1  ;;  %v365_v29 = vld [vmem:[%s690_s26 + $0x28] sm:$0xff]  ;;  %v609_v32 = vld [vmem:[%s677_s21 + $0x20] sm:$0xff]   ;;  %v366_v37 = vld [vmem:[%s690_s26 + $0x30] sm:$0xff] }
  0x14   : > { %v293_v24 = vmul.f32 %v552_v11, %v683_v1  ;;  %v294_v25 = vmul.f32 %v553_v12, %v683_v1  ;;  %v295_v30 = vmul.f32 %v556_v18, %v683_v1  ;;  %v296_v31 = vmul.f32 %v557_v19, %v683_v1  ;;  %v367_v38 = vld [vmem:[%s690_s26 + $0x38] sm:$0xff]  ;;  %v610_v39 = vld [vmem:[%s677_s21 + $0x28] sm:$0xff]   ;;  %v611_v44 = vld [vmem:[%s677_s21 + $0x30] sm:$0xff]  }
  0x15   : > { %v328_v20 = vadd.f32 %v696_v5, %v289_v9  ;;  %v329_v21 = vadd.f32 %v696_v5, %v290_v10  ;;  %v330_v26 = vadd.f32 %v696_v5, %v291_v16  ;;  %v331_v27 = vadd.f32 %v696_v5, %v292_v17  ;;  %v612_v49 = vld [vmem:[%s677_s21 + $0x38] sm:$0xff]   ;;  %v368_v58 = vld [vmem:[%s690_s26 + $0x40] sm:$0xff]  ;;  %v369_v59 = vld [vmem:[%s690_s26 + $0x48] sm:$0xff] }
  0x16   : > { %v332_v35 = vadd.f32 %v696_v5, %v293_v24  ;;  %v333_v36 = vadd.f32 %v696_v5, %v294_v25  ;;  %v334_v42 = vadd.f32 %v696_v5, %v295_v30  ;;  %v335_v43 = vadd.f32 %v696_v5, %v296_v31  ;;  %v370_v3 = vld [vmem:[%s690_s26 + $0x50] sm:$0xff]  ;;  %v371_v4 = vld [vmem:[%s690_s26 + $0x58] sm:$0xff]  ;;  %v372_v10 = vld [vmem:[%s690_s26 + $0x60] sm:$0xff] }
  0x17   : > { %v392_v33 = vadd.f32 %v360_v14, %v328_v20  ;;  %v393_v34 = vadd.f32 %v361_v15, %v329_v21  ;;  %v394_v40 = vadd.f32 %v362_v22, %v330_v26  ;;  %v395_v41 = vadd.f32 %v363_v23, %v331_v27  ;;  %v373_v11 = vld [vmem:[%s690_s26 + $0x68] sm:$0xff]  ;;  %v613_v14 = vld [vmem:[%s677_s21 + $0x40] sm:$0xff]   ;;  %v374_v19 = vld [vmem:[%s690_s26 + $0x70] sm:$0xff] }
  0x18   : > { %v396_v45 = vadd.f32 %v364_v28, %v332_v35  ;;  %v397_v46 = vadd.f32 %v365_v29, %v333_v36  ;;  %v560_v47 = vunpack.c.l.bf16 %v609_v32  ;;  %v561_v48 = vunpack.c.h.bf16 %v609_v32  ;;  %v375_v20 = vld [vmem:[%s690_s26 + $0x78] sm:$0xff]  ;;  %v614_v21 = vld [vmem:[%s677_s21 + $0x48] sm:$0xff]   ;;  %v615_v26 = vld [vmem:[%s677_s21 + $0x50] sm:$0xff]  }
  0x19   : > { %425 = vst.msk [vmem:[%s717_s5] sm:$0xff] %vm424_vm0, %v392_v33  ;;  %426 = vst.msk [vmem:[%s717_s5 + $0x8] sm:$0xff] %vm424_vm0, %v393_v34  ;;  %v398_v50 = vadd.f32 %v366_v37, %v334_v42  ;;  %v399_v51 = vadd.f32 %v367_v38, %v335_v43  ;;  %v564_v52 = vunpack.c.l.bf16 %v610_v39  ;;  %v565_v53 = vunpack.c.h.bf16 %v610_v39  ;;  %v616_v31 = vld [vmem:[%s677_s21 + $0x58] sm:$0xff]  }
  0x1a   : > { %427 = vst.msk [vmem:[%s717_s5 + $0x10] sm:$0xff] %vm424_vm0, %v394_v40  ;;  %428 = vst.msk [vmem:[%s717_s5 + $0x18] sm:$0xff] %vm424_vm0, %v395_v41  ;;  %v297_v54 = vmul.f32 %v560_v47, %v683_v1  ;;  %v298_v55 = vmul.f32 %v561_v48, %v683_v1  ;;  %v568_v56 = vunpack.c.l.bf16 %v611_v44  ;;  %v569_v57 = vunpack.c.h.bf16 %v611_v44  ;;  %v376_v40 = vld [vmem:[%s690_s26 + $0x80] sm:$0xff]  ;;  %v377_v41 = vld [vmem:[%s690_s26 + $0x88] sm:$0xff] }
  0x1b   : > { %429 = vst.msk [vmem:[%s717_s5 + $0x20] sm:$0xff] %vm424_vm0, %v396_v45  ;;  %430 = vst.msk [vmem:[%s717_s5 + $0x28] sm:$0xff] %vm424_vm0, %v397_v46  ;;  %v299_v60 = vmul.f32 %v564_v52, %v683_v1  ;;  %v300_v61 = vmul.f32 %v565_v53, %v683_v1  ;;  %v572_v62 = vunpack.c.l.bf16 %v612_v49  ;;  %v573_v63 = vunpack.c.h.bf16 %v612_v49  ;;  %v378_v48 = vld [vmem:[%s690_s26 + $0x90] sm:$0xff]  ;;  %v379_v49 = vld [vmem:[%s690_s26 + $0x98] sm:$0xff] }
  0x1c   : > { %431 = vst.msk [vmem:[%s717_s5 + $0x30] sm:$0xff] %vm424_vm0, %v398_v50  ;;  %432 = vst.msk [vmem:[%s717_s5 + $0x38] sm:$0xff] %vm424_vm0, %v399_v51  ;;  %v336_v0 = vadd.f32 %v696_v5, %v297_v54  ;;  %v337_v2 = vadd.f32 %v696_v5, %v298_v55  ;;  %v301_v6 = vmul.f32 %v568_v56, %v683_v1  ;;  %v576_v29 = vunpack.c.l.bf16 %v613_v14  ;;  %v380_v54 = vld [vmem:[%s690_s26 + $0xa0] sm:$0xff]  ;;  %v381_v55 = vld [vmem:[%s690_s26 + $0xa8] sm:$0xff] }
  0x1d   : > { %v302_v7 = vmul.f32 %v569_v57, %v683_v1  ;;  %v338_v8 = vadd.f32 %v696_v5, %v299_v60  ;;  %v339_v9 = vadd.f32 %v696_v5, %v300_v61  ;;  %v303_v12 = vmul.f32 %v572_v62, %v683_v1 }
  0x1e   : > { %v304_v13 = vmul.f32 %v573_v63, %v683_v1  ;;  %v400_v15 = vadd.f32 %v368_v58, %v336_v0  ;;  %v401_v16 = vadd.f32 %v369_v59, %v337_v2  ;;  %v340_v17 = vadd.f32 %v696_v5, %v301_v6  ;;  %v617_v58 = vld [vmem:[%s677_s21 + $0x60] sm:$0xff]   ;;  %v382_v63 = vld [vmem:[%s690_s26 + $0xb0] sm:$0xff]  ;;  %v383_v0 = vld [vmem:[%s690_s26 + $0xb8] sm:$0xff] }
  0x1f   : > { %v341_v18 = vadd.f32 %v696_v5, %v302_v7  ;;  %v402_v22 = vadd.f32 %v370_v3, %v338_v8  ;;  %v403_v23 = vadd.f32 %v371_v4, %v339_v9  ;;  %v342_v24 = vadd.f32 %v696_v5, %v303_v12  ;;  %v618_v2 = vld [vmem:[%s677_s21 + $0x68] sm:$0xff]   ;;  %v619_v8 = vld [vmem:[%s677_s21 + $0x70] sm:$0xff]  }
  0x20   : > { %v343_v25 = vadd.f32 %v696_v5, %v304_v13  ;;  %433 = vst.msk [vmem:[%s717_s5 + $0x40] sm:$0xff] %vm424_vm0, %v400_v15  ;;  %434 = vst.msk [vmem:[%s717_s5 + $0x48] sm:$0xff] %vm424_vm0, %v401_v16  ;;  %v404_v27 = vadd.f32 %v372_v10, %v340_v17  ;;  %v577_v30 = vunpack.c.h.bf16 %v613_v14  ;;  %v580_v34 = vunpack.c.l.bf16 %v614_v21  ;;  %v620_v13 = vld [vmem:[%s677_s21 + $0x78] sm:$0xff]  }
  0x21   : > { %v405_v28 = vadd.f32 %v373_v11, %v341_v18  ;;  %435 = vst.msk [vmem:[%s717_s5 + $0x50] sm:$0xff] %vm424_vm0, %v402_v22  ;;  %436 = vst.msk [vmem:[%s717_s5 + $0x58] sm:$0xff] %vm424_vm0, %v403_v23  ;;  %v406_v32 = vadd.f32 %v374_v19, %v342_v24  ;;  %v581_v35 = vunpack.c.h.bf16 %v614_v21  ;;  %v305_v36 = vmul.f32 %v576_v29, %v683_v1  ;;  %v384_v22 = vld [vmem:[%s690_s26 + $0xc0] sm:$0xff]  ;;  %v385_v23 = vld [vmem:[%s690_s26 + $0xc8] sm:$0xff] }
  0x22   : > { %v407_v33 = vadd.f32 %v375_v20, %v343_v25  ;;  %437 = vst.msk [vmem:[%s717_s5 + $0x60] sm:$0xff] %vm424_vm0, %v404_v27  ;;  %v306_v37 = vmul.f32 %v577_v30, %v683_v1  ;;  %v584_v38 = vunpack.c.l.bf16 %v615_v26  ;;  %v585_v39 = vunpack.c.h.bf16 %v615_v26  ;;  %v386_v30 = vld [vmem:[%s690_s26 + $0xd0] sm:$0xff] }
  0x23   : > { %438 = vst.msk [vmem:[%s717_s5 + $0x68] sm:$0xff] %vm424_vm0, %v405_v28  ;;  %439 = vst.msk [vmem:[%s717_s5 + $0x70] sm:$0xff] %vm424_vm0, %v406_v32  ;;  %v307_v42 = vmul.f32 %v580_v34, %v683_v1  ;;  %v308_v43 = vmul.f32 %v581_v35, %v683_v1  ;;  %v588_v44 = vunpack.c.l.bf16 %v616_v31  ;;  %v589_v45 = vunpack.c.h.bf16 %v616_v31  ;;  %v387_v31 = vld [vmem:[%s690_s26 + $0xd8] sm:$0xff] }
  0x24   : > { %440 = vst.msk [vmem:[%s717_s5 + $0x78] sm:$0xff] %vm424_vm0, %v407_v33  ;;  %v344_v46 = vadd.f32 %v696_v5, %v305_v36  ;;  %v345_v47 = vadd.f32 %v696_v5, %v306_v37  ;;  %v309_v50 = vmul.f32 %v584_v38, %v683_v1  ;;  %v310_v51 = vmul.f32 %v585_v39, %v683_v1  ;;  %v388_v36 = vld [vmem:[%s690_s26 + $0xe0] sm:$0xff]  ;;  %v389_v37 = vld [vmem:[%s690_s26 + $0xe8] sm:$0xff] }
  0x25   : > { %v346_v52 = vadd.f32 %v696_v5, %v307_v42  ;;  %v347_v53 = vadd.f32 %v696_v5, %v308_v43  ;;  %v311_v56 = vmul.f32 %v588_v44, %v683_v1  ;;  %v312_v57 = vmul.f32 %v589_v45, %v683_v1  ;;  %v390_v44 = vld [vmem:[%s690_s26 + $0xf0] sm:$0xff]  ;;  %v391_v45 = vld [vmem:[%s690_s26 + $0xf8] sm:$0xff] }
  0x26   : > { %v408_v59 = vadd.f32 %v376_v40, %v344_v46  ;;  %v409_v60 = vadd.f32 %v377_v41, %v345_v47  ;;  %v348_v61 = vadd.f32 %v696_v5, %v309_v50  ;;  %v349_v62 = vadd.f32 %v696_v5, %v310_v51 }
  0x27   : > { %v410_v3 = vadd.f32 %v378_v48, %v346_v52  ;;  %v411_v4 = vadd.f32 %v379_v49, %v347_v53  ;;  %v350_v6 = vadd.f32 %v696_v5, %v311_v56  ;;  %v351_v7 = vadd.f32 %v696_v5, %v312_v57 }
  0x28   : > { %441 = vst.msk [vmem:[%s717_s5 + $0x80] sm:$0xff] %vm424_vm0, %v408_v59  ;;  %442 = vst.msk [vmem:[%s717_s5 + $0x88] sm:$0xff] %vm424_vm0, %v409_v60  ;;  %v412_v9 = vadd.f32 %v380_v54, %v348_v61  ;;  %v413_v10 = vadd.f32 %v381_v55, %v349_v62  ;;  %v592_v11 = vunpack.c.l.bf16 %v617_v58  ;;  %v593_v12 = vunpack.c.h.bf16 %v617_v58 }
  0x29   : > { %443 = vst.msk [vmem:[%s717_s5 + $0x90] sm:$0xff] %vm424_vm0, %v410_v3  ;;  %444 = vst.msk [vmem:[%s717_s5 + $0x98] sm:$0xff] %vm424_vm0, %v411_v4  ;;  %v414_v14 = vadd.f32 %v382_v63, %v350_v6  ;;  %v415_v15 = vadd.f32 %v383_v0, %v351_v7  ;;  %v596_v16 = vunpack.c.l.bf16 %v618_v2  ;;  %v597_v17 = vunpack.c.h.bf16 %v618_v2 }
  0x2a   : > { %445 = vst.msk [vmem:[%s717_s5 + $0xa0] sm:$0xff] %vm424_vm0, %v412_v9  ;;  %446 = vst.msk [vmem:[%s717_s5 + $0xa8] sm:$0xff] %vm424_vm0, %v413_v10  ;;  %v313_v18 = vmul.f32 %v592_v11, %v683_v1  ;;  %v314_v19 = vmul.f32 %v593_v12, %v683_v1  ;;  %v600_v20 = vunpack.c.l.bf16 %v619_v8  ;;  %v601_v21 = vunpack.c.h.bf16 %v619_v8 }
  0x2b   : > { %447 = vst.msk [vmem:[%s717_s5 + $0xb0] sm:$0xff] %vm424_vm0, %v414_v14  ;;  %448 = vst.msk [vmem:[%s717_s5 + $0xb8] sm:$0xff] %vm424_vm0, %v415_v15  ;;  %v315_v24 = vmul.f32 %v596_v16, %v683_v1  ;;  %v316_v25 = vmul.f32 %v597_v17, %v683_v1  ;;  %v604_v26 = vunpack.c.l.bf16 %v620_v13  ;;  %v605_v27 = vunpack.c.h.bf16 %v620_v13 }
  0x2c   : > { %v352_v28 = vadd.f32 %v696_v5, %v313_v18  ;;  %v353_v29 = vadd.f32 %v696_v5, %v314_v19  ;;  %v317_v32 = vmul.f32 %v600_v20, %v683_v1  ;;  %v318_v33 = vmul.f32 %v601_v21, %v683_v1 }
  0x2d   : > { %v354_v34 = vadd.f32 %v696_v5, %v315_v24  ;;  %v355_v35 = vadd.f32 %v696_v5, %v316_v25  ;;  %v319_v38 = vmul.f32 %v604_v26, %v683_v1  ;;  %v320_v39 = vmul.f32 %v605_v27, %v683_v1 }
  0x2e   : > { %v416_v40 = vadd.f32 %v384_v22, %v352_v28  ;;  %v417_v41 = vadd.f32 %v385_v23, %v353_v29  ;;  %v356_v42 = vadd.f32 %v696_v5, %v317_v32  ;;  %v357_v43 = vadd.f32 %v696_v5, %v318_v33 }
  0x2f   : > { %v418_v46 = vadd.f32 %v386_v30, %v354_v34  ;;  %v419_v47 = vadd.f32 %v387_v31, %v355_v35  ;;  %v358_v48 = vadd.f32 %v696_v5, %v319_v38  ;;  %v359_v49 = vadd.f32 %v696_v5, %v320_v39 }
  0x30   : > { %449 = vst.msk [vmem:[%s717_s5 + $0xc0] sm:$0xff] %vm424_vm0, %v416_v40  ;;  %450 = vst.msk [vmem:[%s717_s5 + $0xc8] sm:$0xff] %vm424_vm0, %v417_v41  ;;  %v420_v1 = vadd.f32 %v388_v36, %v356_v42  ;;  %v421_v50 = vadd.f32 %v389_v37, %v357_v43 }
  0x31   : > { %451 = vst.msk [vmem:[%s717_s5 + $0xd0] sm:$0xff] %vm424_vm0, %v418_v46  ;;  %452 = vst.msk [vmem:[%s717_s5 + $0xd8] sm:$0xff] %vm424_vm0, %v419_v47  ;;  %v422_v51 = vadd.f32 %v390_v44, %v358_v48  ;;  %v423_v52 = vadd.f32 %v391_v45, %v359_v49 }
  0x32   : > { %453 = vst.msk [vmem:[%s717_s5 + $0xe0] sm:$0xff] %vm424_vm0, %v420_v1  ;;  %454 = vst.msk [vmem:[%s717_s5 + $0xe8] sm:$0xff] %vm424_vm0, %v421_v50 }
  0x33   : > { %455 = vst.msk [vmem:[%s717_s5 + $0xf0] sm:$0xff] %vm424_vm0, %v422_v51  ;;  %456 = vst.msk [vmem:[%s717_s5 + $0xf8] sm:$0xff] %vm424_vm0, %v423_v52 }
  0x34 PF: > { %s14_s15 = sadd.s32 1, %s635_s15  }
  0x35   : > { %p11_p4 = scmp.ge.s32.totalorder %s14_s15, 4  }
  0x37   :  { %13 = sbr.rel (!%p11_p4) target bundleno = 1 (0x1), region = 69 }

// kernel: residual_block.3
= control target key start
LH: loop header
LB: loop body
LE: loop exit
PB: predicated region body
PF: predicated region fallthrough
CT: control target
= control target key end

     0   :  { %s7640_s12 = smov 0   ;;  %s9519_s0 = inlined_call_operand.vmem [shape: bf16[2,16,16,128], index: 0, kind: input, shape index: {}]   ;;  %s9520_s1 = inlined_call_operand.vmem [shape: bf16[9,128,128], index: 1, kind: input, shape index: {}]   ;;  %s9521_s2 = inlined_call_operand.vmem [shape: bf16[2,16,16,128], index: 2, kind: output, shape index: {0}]   ;;  %s9522_s3 = inlined_call_operand.vmem [shape: f32[2,2,128], index: 3, kind: output, shape index: {1}]  }
   0x1 LB: > { %s5922_s13 = sadd.s32 4294967295, %s7617_s12   ;;  %p5926_p0 = scmp.ge.s32.totalorder %s7617_s12, 1  ;;  %s7617_s12 = sphi %s7640_s12, %s14_s12  }
   0x2   : > { %p140_p1 = scmp.lt.s32.totalorder %s7617_s12, 3 }
   0x4   : > { %p141_p2 = pnand %p5926_p0, %p140_p1 }
   0x6   : > { %144 = sbr.rel (%p141_p2) target bundleno = 681 (0x2a9), region = 28 }
   0xd   : > { %v7416_v0 = vld [vmem:[%s9520_s1 + $0x40] sm:$0xff]   ;;  %v7619_v2 = vmov 0   ;;  %v7418_v3 = vld [vmem:[%s9520_s1 + $0x48] sm:$0xff]   ;;  %v7420_v5 = vld [vmem:[%s9520_s1 + $0x50] sm:$0xff]   ;;  %p168_p3 = scmp.lt.s32.totalorder %s5922_s13, 1  ;;  %vm191_vm0 = vcmask 1040384  }
   0xe   : > { %v7417_v1 = vld [vmem:[%s9520_s1 + $0x100] sm:$0xff]   ;;  %183 = vst [vmem:[#allocation2] sm:$0xf] %v7619_v2  ;;  %184 = vst [vmem:[#allocation2 + $0x4] sm:$0xf] %v7619_v2  ;;  %6703 = vmatprep.subr.bf16.mxu1 %v7416_v0  ;;  %v7419_v4 = vld [vmem:[%s9520_s1 + $0x108] sm:$0xff]  }
   0xf   : > { %185 = vst [vmem:[#allocation2 + $0x8] sm:$0x1] %v7619_v2  ;;  %187 = vst [vmem:[#allocation2 + $0xcc] sm:$0xf] %v7619_v2  ;;  %6895 = vmatprep.subr.bf16.mxu0 %v7417_v1  ;;  %6704 = vmatpush3.bf16.msra.mxu1 %v7416_v0  ;;  %v7421_v6 = vld [vmem:[%s9520_s1 + $0x110] sm:$0xff]   ;;  %v7422_v7 = vld [vmem:[%s9520_s1 + $0x58] sm:$0xff]  }
  0x10   : > { %188 = vst [vmem:[#allocation2 + $0xd0] sm:$0xf] %v7619_v2  ;;  %189 = vst [vmem:[#allocation2 + $0xd4] sm:$0x1] %v7619_v2  ;;  %6896 = vmatpush3.bf16.msra.mxu0 %v7417_v1  ;;  %6705 = vmatprep.subr.bf16.mxu1 %v7418_v3  ;;  %v7423_v8 = vld [vmem:[%s9520_s1 + $0x118] sm:$0xff]   ;;  %s9601_s13 = smov (!%p168_p3, %s5922_s13), 1 }
  0x11   : > { %6897 = vmatprep.subr.bf16.mxu0 %v7419_v4  ;;  %v7424_v9 = vld [vmem:[%s9520_s1 + $0x60] sm:$0xff]   ;;  %v7426_v11 = vld [vmem:[%s9520_s1 + $0x68] sm:$0xff]   ;;  %s6358_s11 = sshll.u32 %s9601_s13, 7  ;;  %vm824_vm1 = vsmask.f32 3328  ;;  %v7428_v18 = vld [vmem:[%s9520_s1 + $0x70] sm:$0xff]  }
  0x12   : > { %v7425_v10 = vld [vmem:[%s9520_s1 + $0x120] sm:$0xff]   ;;  %v7427_v12 = vld [vmem:[%s9520_s1 + $0x128] sm:$0xff]   ;;  %vm825_vm2 = vsmask.f32 7440  ;;  %s7699_s18 = scalar_lea.vmem %s9519_s0, %s6358_s11  ;;  %vm192_vm3 = vsmask.f32 256  ;;  %s9490_s14 = scalar_lea.vmem %s9521_s2, %s6358_s11 }
  0x13   : > { %6706 = vmatpush3.bf16.msra.mxu1 %v7418_v3  ;;  %v194_v22 = vld [vmem:[#allocation2 + $0xc] sm:$0x1]  ;;  %vm242_vm4 = vsmask.f32 7938  ;;  %v7429_v25 = vld [vmem:[%s9520_s1 + $0x130] sm:$0xff]   ;;  %vm7706_vm5 = vmand %vm191_vm0, %vm192_vm3  ;;  %vm646_vm6 = vcmask 1043456  }
  0x14   : > { %6898 = vmatpush3.bf16.msra.mxu0 %v7419_v4  ;;  %6707 = vmatprep.subr.bf16.mxu1 %v7420_v5  ;;  %v244_v29 = vld [vmem:[#allocation2 + $0x14] sm:$0x1]  ;;  %v195_v32 = vsel %vm7706_vm5, 0, %v194_v22  ;;  %vm7714_vm7 = vmand %vm191_vm0, %vm242_vm4  ;;  %v292_v34 = vld [vmem:[%s7699_s18] sm:$0xf]  ;;  %vm1854_vm12 = vcmask 1042432  }
  0x15   : > { %6899 = vmatprep.subr.bf16.mxu0 %v7421_v6  ;;  %v760_v13 = vld [vmem:[#allocation2] sm:$0xf]  ;;  %v761_v14 = vld [vmem:[#allocation2 + $0x4] sm:$0xf]  ;;  %v7430_v36 = vld [vmem:[%s9520_s1 + $0x78] sm:$0xff]   ;;  %v245_v39 = vsel %vm7714_vm7, 0, %v244_v29 }
  0x16   : > { %v808_v15 = vld [vmem:[#allocation2 + $0x8] sm:$0x1]  ;;  %v828_v16 = vshrl.u32 %v760_v13, 16  ;;  %v831_v17 = vshll.u32 %v760_v13, 16  ;;  %v837_v19 = vshll.u32 %v761_v14, 16  ;;  %v841_v20 = vshrl.u32 %v761_v14, 16  ;;  %vm7725_vm8 = vmor %vm824_vm1, %vm825_vm2 }
  0x17   : > { %6708 = vmatpush3.bf16.msra.mxu1 %v7420_v5  ;;  %v847_v21 = vshll.u32 %v808_v15, 16  ;;  %v293_v35 = vld [vmem:[%s7699_s18 + $0x4] sm:$0xf]  ;;  %196 = vst [vmem:[#allocation2 + $0xc] sm:$0x1] %v195_v32  ;;  %v327_v40 = vshrl.u32 %v292_v34, 16  ;;  %vm7757_vm11 = vmand %vm646_vm6, %vm242_vm4 }
  0x18   : > { %6900 = vmatpush3.bf16.msra.mxu0 %v7421_v6  ;;  %6709 = vmatprep.subr.bf16.mxu1 %v7422_v7  ;;  %v830_v23 = vrot.slane %v828_v16, 4  ;;  %v833_v24 = vrot.slane %v831_v17, 5  ;;  %v839_v26 = vrot.slane %v837_v19, 5  ;;  %v843_v27 = vrot.slane %v841_v20, 4  ;;  %246 = vst [vmem:[#allocation2 + $0x14] sm:$0x1] %v245_v39 }
  0x19   : > { %6901 = vmatprep.subr.bf16.mxu0 %v7423_v8  ;;  %v849_v31 = vrot.slane %v847_v21, 5  ;;  %vm324_vm9 = vsmask.f32 4368  ;;  %v330_v42 = vshll.u32 %v292_v34, 16  ;;  %v335_v43 = vshrl.u32 %v293_v35, 16  ;;  %v7431_v49 = vld [vmem:[%s9520_s1 + $0x138] sm:$0xff]  }
  0x1a   : > { %v834_v30 = vor.u32 %v833_v24, %v830_v23  ;;  %v844_v38 = vor.u32 %v843_v27, %v839_v26  ;;  %v338_v44 = vshll.u32 %v293_v35, 16  ;;  %v329_v46 = vrot.slane %v327_v40, 7  ;;  %v197_v47 = vld [vmem:[#allocation2 + $0x18] sm:$0x1]  ;;  %v247_v48 = vld [vmem:[#allocation2 + $0x20] sm:$0x1]  ;;  %vm7745_vm10 = vmor %vm192_vm3, %vm324_vm9 }
  0x1b   : > { %6710 = vmatpush3.bf16.msra.mxu1 %v7422_v7  ;;  %v337_v51 = vrot.slane %v335_v43, 7  ;;  %v198_v52 = vsel %vm7706_vm5, 0, %v197_v47  ;;  %v248_v53 = vsel %vm7714_vm7, 0, %v247_v48  ;;  %v294_v54 = vld [vmem:[%s7699_s18 + $0x8] sm:$0xf]  ;;  %v7752_v59 = vld [vmem:[%s9520_s1] sm:$0xff]  }
  0x1c   : > { %6902 = vmatpush3.bf16.msra.mxu0 %v7423_v8  ;;  %6711 = vmatprep.subr.bf16.mxu1 %v7424_v9  ;;  %v835_v41 = vrot.slane %v834_v30, 4  ;;  %v845_v45 = vrot.slane %v844_v38, 4  ;;  %v332_v57 = vor.u32 %v330_v42, %v329_v46  ;;  %v333_v58 = vrot.slane %v329_v46, 4  ;;  %199 = vst [vmem:[#allocation2 + $0x18] sm:$0x1] %v198_v52  ;;  %v7764_v6 = vld [vmem:[%s9520_s1 + $0x140] sm:$0xff]  }
  0x1d   : > { %6903 = vmatprep.subr.bf16.mxu0 %v7425_v10  ;;  %249 = vst [vmem:[#allocation2 + $0x20] sm:$0x1] %v248_v53  ;;  %v295_v60 = vld [vmem:[%s7699_s18 + $0xc] sm:$0xf]  ;;  %v344_v61 = vshrl.u32 %v294_v54, 16  ;;  %v340_v63 = vor.u32 %v338_v44, %v337_v51  ;;  %v342_v0 = vrot.slane %v337_v51, 4 }
  0x1e   : > { %v840_v50 = vsel %vm7725_vm8, %v835_v41, %v839_v26  ;;  %v850_v55 = vsel %vm7725_vm8, %v845_v45, %v849_v31  ;;  %v347_v2 = vshll.u32 %v294_v54, 16  ;;  %v352_v4 = vshrl.u32 %v295_v60, 16  ;;  %v648_v8 = vld [vmem:[#allocation2 + $0xc] sm:$0xf]  ;;  %v296_v16 = vld [vmem:[%s7699_s18 + $0x10] sm:$0xf] }
  0x1f   : > { %6712 = vmatpush3.bf16.msra.mxu1 %v7424_v9  ;;  %v5948_v62 = vcombine.low %v840_v50, %v850_v55  ;;  %v346_v3 = vrot.slane %v344_v61, 7  ;;  %v355_v5 = vshll.u32 %v295_v60, 16  ;;  %v341_v7 = vsel %vm7745_vm10, %v333_v58, %v340_v63  ;;  %v200_v9 = vld [vmem:[#allocation2 + $0x24] sm:$0x1]  ;;  %v297_v20 = vld [vmem:[%s7699_s18 + $0x14] sm:$0xf] }
  0x20   : > { %6904 = vmatpush3.bf16.msra.mxu0 %v7425_v10  ;;  %6713 = vmatprep.subr.bf16.mxu1 %v7426_v11  ;;  %v250_v10 = vld [vmem:[#allocation2 + $0x2c] sm:$0x1]  ;;  %651 = vst [vmem:[#allocation2 + $0x10] sm:$0xf] %v341_v7  ;;  %v354_v15 = vrot.slane %v352_v4, 7  ;;  %v361_v21 = vshrl.u32 %v296_v16, 16 }
  0x21   : > { %6905 = vmatprep.subr.bf16.mxu0 %v7427_v12  ;;  %6719 = vmatprep.mubr.bf16.mxu1 %v5948_v62  ;;  %v349_v13 = vor.u32 %v347_v2, %v346_v3  ;;  %v350_v14 = vrot.slane %v346_v3, 4  ;;  %v251_v19 = vsel %vm7714_vm7, 0, %v250_v10  ;;  %v364_v24 = vshll.u32 %v296_v16, 16  ;;  %v253_v40 = vld [vmem:[#allocation2 + $0x38] sm:$0x1]  ;;  %s5931_s11 = sshll.u32 %s9601_s13, 1 }
  0x22   : > { %v357_v22 = vor.u32 %v355_v5, %v354_v15  ;;  %v359_v23 = vrot.slane %v354_v15, 4  ;;  %252 = vst [vmem:[#allocation2 + $0x2c] sm:$0x1] %v251_v19  ;;  %v363_v29 = vrot.slane %v361_v21, 7  ;;  %v372_v30 = vshll.u32 %v297_v20, 16  ;;  %v7466_v28 = vld [vmem:[%s9520_s1 + $0x98] sm:$0xff]   ;;  %s181_s17 = scalar_lea.vmem %s9522_s3, %s5931_s11 }
  0x23   : > { %6714 = vmatpush3.bf16.msra.mxu1 %v7426_v11  ;;  %v649_v11 = vsel %vm7757_vm11, %v332_v57, %v648_v8  ;;  %v655_v26 = vld [vmem:[#allocation2 + $0x18] sm:$0xf]  ;;  %v254_v43 = vsel %vm7714_vm7, 0, %v253_v40  ;;  %v7811_v5 = vld [vmem:[%s7699_s18 + $0x1c] sm:$0xf]  ;;  %vm1855_vm13 = vcmask 1046532  }
  0x24   : > { %6906 = vmatpush3.bf16.msra.mxu0 %v7427_v12  ;;  %6715 = vmatprep.subr.bf16.mxu1 %v7428_v18  ;;  %v652_v12 = vld [vmem:[#allocation2 + $0x14] sm:$0x1]  ;;  %650 = vst [vmem:[#allocation2 + $0xc] sm:$0xf] %v649_v11  ;;  %v659_v27 = vld [vmem:[#allocation2 + $0x20] sm:$0x1]  ;;  %v358_v31 = vsel %vm7745_vm10, %v350_v14, %v357_v22  ;;  %v656_v32 = vsel %vm7757_vm11, %v349_v13, %v655_v26  ;;  %vm7909_vm14 = vmor %vm1854_vm12, %vm1855_vm13 }
  0x25   : > { %6907 = vmatprep.subr.bf16.mxu0 %v7429_v25  ;;  %v653_v17 = vsel %vm7706_vm5, %v342_v0, %v652_v12  ;;  %v660_v34 = vsel %vm7706_vm5, %v359_v23, %v659_v27  ;;  %657 = vst [vmem:[#allocation2 + $0x18] sm:$0xf] %v656_v32  ;;  %658 = vst [vmem:[#allocation2 + $0x1c] sm:$0xf] %v358_v31  ;;  %v367_v38 = vrot.slane %v363_v29, 4 }
  0x26   : > { %654 = vst [vmem:[#allocation2 + $0x14] sm:$0x1] %v653_v17  ;;  %661 = vst [vmem:[#allocation2 + $0x20] sm:$0x1] %v660_v34  ;;  %v7791_v41 = vld [vmem:[%s7699_s18 + $0x18] sm:$0xf]  ;;  %v7806_v57 = vor.u32 %v364_v24, %v363_v29 }
  0x27   : > { %6716 = vmatpush3.bf16.msra.mxu1 %v7428_v18  ;;  %v201_v18 = vsel %vm7706_vm5, 0, %v200_v9  ;;  %v7796_v44 = vld [vmem:[#allocation2 + $0x10] sm:$0xf]  ;;  %255 = vst [vmem:[#allocation2 + $0x38] sm:$0x1] %v254_v43  ;;  %v378_v46 = vshrl.u32 %v7791_v41, 16 }
  0x28   : > { %6908 = vmatpush3.bf16.msra.mxu0 %v7429_v25  ;;  %6717 = vmatprep.subr.bf16.mxu1 %v7430_v36  ;;  %202 = vst [vmem:[#allocation2 + $0x24] sm:$0x1] %v201_v18  ;;  %v369_v25 = vshrl.u32 %v297_v20, 16  ;;  %v2735_v48 = vshll.u32 %v7796_v44, 16  ;;  %v763_v55 = vld [vmem:[#allocation2 + $0x10] sm:$0xf] }
  0x29   : > { %6909 = vmatprep.subr.bf16.mxu0 %v7431_v49  ;;  %v381_v63 = vshll.u32 %v7791_v41, 16  ;;  %v861_v9 = vshll.u32 %v763_v55, 16  ;;  %v865_v10 = vshrl.u32 %v763_v55, 16  ;;  %v386_v20 = vshrl.u32 %v7811_v5, 16  ;;  %v666_v55 = vld [vmem:[#allocation2 + $0x2c] sm:$0x1] }
  0x2a   : > { %v7786_v35 = vrot.slane %v369_v25, 7  ;;  %v2737_v58 = vrot.slane %v2735_v48, 5  ;;  %v389_v41 = vshll.u32 %v7811_v5, 16 }
  0x2b   : > { %6718 = vmatpush3.bf16.msra.mxu1 %v7430_v36  ;;  %v203_v36 = vld [vmem:[#allocation2 + $0x30] sm:$0x1]  ;;  %v2677_v47 = vld [vmem:[#allocation2 + $0xc] sm:$0xf]  ;;  %v863_v18 = vrot.slane %v861_v9, 5  ;;  %v867_v19 = vrot.slane %v865_v10, 4 }
  0x2c   : > { %6910 = vmatpush3.bf16.msra.mxu0 %v7431_v49  ;;  %6751 = vmatprep.subr.bf16.mxu1 %v7752_v59  ;;  %v204_v39 = vsel %vm7706_vm5, 0, %v203_v36  ;;  %v374_v42 = vor.u32 %v372_v30, %v7786_v35  ;;  %v376_v45 = vrot.slane %v7786_v35, 4  ;;  %v2739_v49 = vshrl.u32 %v7796_v44, 16  ;;  %v762_v50 = vld [vmem:[#allocation2 + $0xc] sm:$0xf] }
  0x2d   : > { %6943 = vmatprep.subr.bf16.mxu0 %v7764_v6  ;;  %205 = vst [vmem:[#allocation2 + $0x30] sm:$0x1] %v204_v39  ;;  %v7804_v52 = vld [vmem:[#allocation2 + $0x14] sm:$0x1]  ;;  %v2726_v53 = vshrl.u32 %v2677_v47, 16  ;;  %v2729_v54 = vshll.u32 %v2677_v47, 16  ;;  %v868_v26 = vor.u32 %v867_v19, %v863_v18 }
  0x2e   : > { %v375_v51 = vsel %vm7745_vm10, %v367_v38, %v374_v42  ;;  %v2741_v60 = vrot.slane %v2739_v49, 4  ;;  %v2745_v61 = vshll.u32 %v7804_v52, 16  ;;  %v809_v62 = vld [vmem:[#allocation2 + $0x14] sm:$0x1]  ;;  %v852_v3 = vshrl.u32 %v762_v50, 16 }
  0x2f   : > { %665 = vst [vmem:[#allocation2 + $0x28] sm:$0xf] %v375_v51  ;;  %v2728_v0 = vrot.slane %v2726_v53, 4  ;;  %v2731_v2 = vrot.slane %v2729_v54, 5  ;;  %v855_v4 = vshll.u32 %v762_v50, 16  ;;  %v871_v15 = vshll.u32 %v809_v62, 16 }
  0x30   : > { %v2742_v7 = vor.u32 %v2741_v60, %v2737_v58  ;;  %v2747_v8 = vrot.slane %v2745_v61, 5  ;;  %v2680_v11 = vld [vmem:[#allocation2 + $0x18] sm:$0xf]  ;;  %v854_v13 = vrot.slane %v852_v3, 4  ;;  %v7813_v16 = vld [vmem:[#allocation2 + $0x1c] sm:$0xf] }
  0x31   : > { %v2732_v12 = vor.u32 %v2731_v2, %v2728_v0  ;;  %v857_v14 = vrot.slane %v855_v4, 5  ;;  %v873_v23 = vrot.slane %v871_v15, 5  ;;  %v2750_v24 = vshrl.u32 %v2680_v11, 16  ;;  %v7818_v27 = vld [vmem:[#allocation2 + $0x20] sm:$0x1] }
  0x32   : > { %v2743_v17 = vrot.slane %v2742_v7, 4  ;;  %v2753_v29 = vshll.u32 %v2680_v11, 16  ;;  %v2759_v30 = vshll.u32 %v7813_v16, 16  ;;  %v2763_v36 = vshrl.u32 %v7813_v16, 16  ;;  %v764_v38 = vld [vmem:[#allocation2 + $0x18] sm:$0xf] }
  0x33   : > { %v2733_v21 = vrot.slane %v2732_v12, 4  ;;  %v858_v22 = vor.u32 %v857_v14, %v854_v13  ;;  %v2752_v34 = vrot.slane %v2750_v24, 4  ;;  %v869_v40 = vrot.slane %v868_v26, 4  ;;  %v765_v47 = vld [vmem:[#allocation2 + $0x1c] sm:$0xf] }
  0x34   : > { %v2748_v25 = vsel %vm7725_vm8, %v2743_v17, %v2747_v8  ;;  %v2755_v42 = vrot.slane %v2753_v29, 5  ;;  %v2761_v43 = vrot.slane %v2759_v30, 5  ;;  %v662_v48 = vld [vmem:[#allocation2 + $0x24] sm:$0xf]  ;;  %v2765_v50 = vrot.slane %v2763_v36, 4 }
  0x35   : > { %v2738_v31 = vsel %vm7725_vm8, %v2733_v21, %v2737_v58  ;;  %v859_v32 = vrot.slane %v858_v22, 4  ;;  %v2769_v51 = vshll.u32 %v7818_v27, 16  ;;  %v3504_v53 = vrot.slane %v7813_v16, 5  ;;  %v810_v54 = vld [vmem:[#allocation2 + $0x20] sm:$0x1]  ;;  %v7435_v58 = vld [vmem:[%s9520_s1 + $0x8] sm:$0xff]  }
  0x36   : > { %v6108_v39 = vcombine.low %v2738_v31, %v2748_v25  ;;  %v874_v60 = vsel %vm7725_vm8, %v869_v40, %v873_v23  ;;  %v2756_v61 = vor.u32 %v2755_v42, %v2752_v34  ;;  %v3507_v62 = vrot.slane %v7818_v27, 5  ;;  %v2684_v2 = vld [vmem:[#allocation2 + $0x28] sm:$0xf] }
  0x37   : > { %v864_v49 = vsel %vm7725_vm8, %v859_v32, %v863_v18  ;;  %v876_v0 = vshrl.u32 %v764_v38, 16  ;;  %v2766_v4 = vor.u32 %v2765_v50, %v2761_v43  ;;  %v2771_v7 = vrot.slane %v2769_v51, 5  ;;  %v767_v18 = vld [vmem:[#allocation2 + $0x28] sm:$0xf] }
  0x38   : > { %6911 = vmatprep.mubr.bf16.mxu0 %v6108_v39  ;;  %v5949_v3 = vcombine.low %v864_v49, %v874_v60  ;;  %v7836_v8 = vrot.slane %v3504_v53, 4  ;;  %v2757_v9 = vrot.slane %v2756_v61, 4  ;;  %v879_v11 = vshll.u32 %v764_v38, 16  ;;  %v669_v39 = vld [vmem:[#allocation2 + $0x30] sm:$0xf] }
  0x39   : > { %v878_v10 = vrot.slane %v876_v0, 4  ;;  %v885_v12 = vshll.u32 %v765_v47, 16  ;;  %v2767_v13 = vrot.slane %v2766_v4, 4  ;;  %v889_v14 = vshrl.u32 %v765_v47, 16 }
  0x3a   : > { %6720 = vmatmul.mubr.bf16.vlgmr.msra.gmra.mrb[0].mxu1 %v5949_v3  ;;  %v895_v15 = vshll.u32 %v810_v54, 16  ;;  %v663_v17 = vsel %vm7757_vm11, %v7806_v57, %v662_v48  ;;  %v2762_v19 = vsel %vm7725_vm8, %v2757_v9, %v2761_v43  ;;  %v881_v21 = vrot.slane %v879_v11, 5  ;;  %v7434_v57 = vld [vmem:[%s9520_s1 + $0x148] sm:$0xff]   ;;  %v206_v48 = vld [vmem:[#allocation2 + $0x3c] sm:$0x1]  ;;  %v7436_v54 = vld [vmem:[%s9520_s1 + $0x150] sm:$0xff]  }
  0x3b   : > { %6752 = vmatpush3.bf16.msra.mxu1 %v7752_v59  ;;  %v887_v22 = vrot.slane %v885_v12, 5  ;;  %664 = vst [vmem:[#allocation2 + $0x24] sm:$0xf] %v663_v17  ;;  %v667_v23 = vsel %vm7706_vm5, %v376_v45, %v666_v55  ;;  %v2772_v24 = vsel %vm7725_vm8, %v2767_v13, %v2771_v7  ;;  %v891_v25 = vrot.slane %v889_v14, 4  ;;  %v7438_v59 = vld [vmem:[%s9520_s1 + $0x10] sm:$0xff]   ;;  %v7444_v14 = vld [vmem:[%s9520_s1 + $0x20] sm:$0xff]  }
  0x3c   : > { %v897_v26 = vrot.slane %v895_v15, 5  ;;  %668 = vst [vmem:[#allocation2 + $0x2c] sm:$0x1] %v667_v23  ;;  %v2783_v29 = vshll.u32 %v2684_v2, 16  ;;  %6753 = vmatprep.subr.bf16.mxu1 %v7435_v58  ;;  %v6109_v35 = vcombine.low %v2762_v19, %v2772_v24  ;;  %v882_v45 = vor.u32 %v881_v21, %v878_v10  ;;  %v256_v7 = vld [vmem:[#allocation2 + $0x44] sm:$0x1] }
  0x3d   : > { %v2787_v30 = vshrl.u32 %v2684_v2, 16  ;;  %v909_v31 = vshll.u32 %v767_v18, 16  ;;  %v892_v32 = vor.u32 %v891_v25, %v887_v22  ;;  %v913_v36 = vshrl.u32 %v767_v18, 16  ;;  %v300_v13 = vld [vmem:[%s7699_s18 + $0x20] sm:$0xf] }
  0x3e   : > { %v7856_v34 = vrot.slane %v2783_v29, 5  ;;  %v7860_v38 = vrot.slane %v378_v46, 7  ;;  %6912 = vmatmul.mubr.bf16.vlgmr.msra.gmra.mrb[0].mxu0 %v6109_v35  ;;  %v883_v40 = vrot.slane %v882_v45, 4  ;;  %v388_v47 = vrot.slane %v386_v20, 7  ;;  %v7441_v20 = vld [vmem:[%s9520_s1 + $0x18] sm:$0xff]  }
  0x3f   : > { %v2789_v42 = vrot.slane %v2787_v30, 4  ;;  %v7862_v43 = vrot.slane %v909_v31, 5  ;;  %6754 = vmatpush3.bf16.msra.mxu1 %v7435_v58  ;;  %6944 = vmatpush3.bf16.msra.mxu0 %v7764_v6  ;;  %v893_v49 = vrot.slane %v892_v32, 4  ;;  %v915_v50 = vrot.slane %v913_v36, 4  ;;  %v673_v58 = vld [vmem:[#allocation2 + $0x38] sm:$0x1] }
  0x40   : > { %v383_v46 = vor.u32 %v381_v63, %v7860_v38  ;;  %v384_v51 = vrot.slane %v7860_v38, 4  ;;  %6755 = vmatprep.subr.bf16.mxu1 %v7438_v59  ;;  %6945 = vmatprep.subr.bf16.mxu0 %v7434_v57  ;;  %v888_v6 = vsel %vm7725_vm8, %v883_v40, %v887_v22  ;;  %v393_v63 = vrot.slane %v388_v47, 4  ;;  %v7896_v22 = vld [vmem:[%s7699_s18 + $0x24] sm:$0xf]  ;;  %v7437_v29 = vld [vmem:[%s9520_s1 + $0x158] sm:$0xff]  }
  0x41   : > { %v2790_v55 = vor.u32 %v2789_v42, %v7856_v34  ;;  %v898_v60 = vsel %vm7725_vm8, %v893_v49, %v897_v26  ;;  %v916_v2 = vor.u32 %v915_v50, %v7862_v43  ;;  %v207_v4 = vsel %vm7706_vm5, 0, %v206_v48 }
  0x42   : > { %v2683_v61 = vld [vmem:[#allocation2 + $0x24] sm:$0xf]  ;;  %v670_v3 = vsel %vm7757_vm11, %v383_v46, %v669_v39  ;;  %v5950_v9 = vcombine.low %v888_v6, %v898_v60  ;;  %208 = vst [vmem:[#allocation2 + $0x3c] sm:$0x1] %v207_v4  ;;  %v391_v26 = vor.u32 %v389_v41, %v388_v47  ;;  %v674_v45 = vsel %vm7706_vm5, %v393_v63, %v673_v58  ;;  %v7446_v47 = vld [vmem:[%s9520_s1 + $0x28] sm:$0xff]  }
  0x43   : > { %v766_v0 = vld [vmem:[#allocation2 + $0x24] sm:$0xf]  ;;  %v7888_v5 = vld [vmem:[#allocation2 + $0x2c] sm:$0x1]  ;;  %v2774_v10 = vshrl.u32 %v2683_v61, 16  ;;  %v2777_v11 = vshll.u32 %v2683_v61, 16  ;;  %6756 = vmatpush3.bf16.msra.mxu1 %v7438_v59  ;;  %6946 = vmatpush3.bf16.msra.mxu0 %v7434_v57  ;;  %v7932_v63 = vsel %vm7909_vm14, %v7836_v8, %v3507_v62 }
  0x44   : > { %v2791_v12 = vrot.slane %v2790_v55, 4  ;;  %671 = vst [vmem:[#allocation2 + $0x30] sm:$0xf] %v670_v3  ;;  %v2793_v15 = vshll.u32 %v7888_v5, 16  ;;  %v811_v17 = vld [vmem:[#allocation2 + $0x2c] sm:$0x1]  ;;  %6757 = vmatprep.subr.bf16.mxu1 %v7441_v20  ;;  %6723 = vmatprep.mubr.bf16.mxu1 %v5950_v9  ;;  %v392_v32 = vsel %vm7745_vm10, %v384_v51, %v391_v26 }
  0x45   : > { %v900_v18 = vshrl.u32 %v766_v0, 16  ;;  %v903_v19 = vshll.u32 %v766_v0, 16  ;;  %v917_v21 = vrot.slane %v916_v2, 4  ;;  %v2776_v23 = vrot.slane %v2774_v10, 4  ;;  %6947 = vmatprep.subr.bf16.mxu0 %v7436_v54  ;;  %675 = vst [vmem:[#allocation2 + $0x38] sm:$0x1] %v674_v45 }
  0x46   : > { %v2779_v24 = vrot.slane %v2777_v11, 5  ;;  %v919_v25 = vshll.u32 %v811_v17, 16  ;;  %v2795_v57 = vrot.slane %v2793_v15, 5  ;;  %v257_v36 = vsel %vm7714_vm7, 0, %v256_v7  ;;  %672 = vst [vmem:[#allocation2 + $0x34] sm:$0xf] %v392_v32 }
  0x47   : > { %v902_v59 = vrot.slane %v900_v18, 4  ;;  %v905_v35 = vrot.slane %v903_v19, 5  ;;  %6758 = vmatpush3.bf16.msra.mxu1 %v7441_v20  ;;  %v9548_v38 = vmov 0  ;;  %6948 = vmatpush3.bf16.msra.mxu0 %v7436_v54  ;;  %258 = vst [vmem:[#allocation2 + $0x44] sm:$0x1] %v257_v36  ;;  %v395_v40 = vshrl.u32 %v300_v13, 16 }
  0x48   : > { %v2780_v30 = vor.u32 %v2779_v24, %v2776_v23  ;;  %v921_v31 = vrot.slane %v919_v25, 5  ;;  %v9549_v38 = vsel %vm7909_vm14, 4294967295, %v9548_v38  ;;  %v398_v42 = vshll.u32 %v300_v13, 16  ;;  %6759 = vmatprep.subr.bf16.mxu1 %v7444_v14  ;;  %6949 = vmatprep.subr.bf16.mxu0 %v7437_v29  ;;  %v7439_v51 = vld [vmem:[%s9520_s1 + $0x160] sm:$0xff]   ;;  %v7448_v11 = vld [vmem:[%s9520_s1 + $0x30] sm:$0xff]  }
  0x49   : > { %9550 = vst [vmem:[#allocation3_spill] sm:$0xff] %v9549_v38  ;;  %v906_v39 = vor.u32 %v905_v35, %v902_v59  ;;  %v3500_v48 = vrot.slane %v7804_v52, 5  ;;  %v2796_v50 = vsel %vm7725_vm8, %v2791_v12, %v2795_v57  ;;  %v403_v46 = vshrl.u32 %v7896_v22, 16  ;;  %v676_v2 = vld [vmem:[#allocation2 + $0x3c] sm:$0xf]  ;;  %v7442_v59 = vld [vmem:[%s9520_s1 + $0x170] sm:$0xff]  }
  0x4a   : > { %v2781_v49 = vrot.slane %v2780_v30, 4  ;;  %v922_v20 = vsel %vm7725_vm8, %v917_v21, %v921_v31  ;;  %v7925_v41 = vrot.slane %v395_v40, 7  ;;  %v209_v17 = vld [vmem:[#allocation2 + $0x48] sm:$0x1]  ;;  %v259_v57 = vld [vmem:[#allocation2 + $0x50] sm:$0x1] }
  0x4b   : > { %v907_v54 = vrot.slane %v906_v39, 4  ;;  %v2686_v6 = vld [vmem:[#allocation2 + $0x30] sm:$0xf]  ;;  %6760 = vmatpush3.bf16.msra.mxu1 %v7444_v14  ;;  %6950 = vmatpush3.bf16.msra.mxu0 %v7437_v29  ;;  %v406_v14 = vshll.u32 %v7896_v22, 16  ;;  %v302_v32 = vld [vmem:[%s7699_s18 + $0x28] sm:$0xf] }
  0x4c   : > { %v768_v55 = vld [vmem:[#allocation2 + $0x30] sm:$0xf]  ;;  %v2786_v58 = vsel %vm7725_vm8, %v2781_v49, %v7856_v34  ;;  %v2798_v60 = vshrl.u32 %v2686_v6, 16  ;;  %v2801_v61 = vshll.u32 %v2686_v6, 16  ;;  %v400_v7 = vor.u32 %v398_v42, %v7925_v41  ;;  %6761 = vmatprep.subr.bf16.mxu1 %v7446_v47  ;;  %6951 = vmatprep.subr.bf16.mxu0 %v7439_v51  ;;  %v7440_v34 = vld [vmem:[%s9520_s1 + $0x168] sm:$0xff]  }
  0x4d   : > { %v924_v0 = vshrl.u32 %v768_v55, 16  ;;  %v6110_v3 = vcombine.low %v2786_v58, %v2796_v50  ;;  %v912_v4 = vsel %vm7725_vm8, %v907_v54, %v7862_v43  ;;  %v927_v27 = vshll.u32 %v768_v55, 16  ;;  %v7947_v43 = vld [vmem:[#allocation2 + $0x38] sm:$0x1]  ;;  %v7952_v18 = vld [vmem:[#allocation2 + $0x34] sm:$0xf] }
  0x4e   : > { %v5951_v62 = vcombine.low %v912_v4, %v922_v20  ;;  %v2800_v8 = vrot.slane %v2798_v60, 4  ;;  %v2803_v9 = vrot.slane %v2801_v61, 5  ;;  %v812_v12 = vld [vmem:[#allocation2 + $0x38] sm:$0x1]  ;;  %v677_v15 = vsel %vm7757_vm11, %v400_v7, %v676_v2  ;;  %v769_v23 = vld [vmem:[#allocation2 + $0x34] sm:$0xf] }
  0x4f   : > { %v926_v10 = vrot.slane %v924_v0, 4  ;;  %6915 = vmatprep.mubr.bf16.mxu0 %v6110_v3  ;;  %v929_v13 = vrot.slane %v927_v27, 5  ;;  %v2817_v21 = vshll.u32 %v7947_v43, 16  ;;  %v943_v24 = vshll.u32 %v812_v12, 16  ;;  %678 = vst [vmem:[#allocation2 + $0x3c] sm:$0xf] %v677_v15  ;;  %6952 = vmatpush3.bf16.msra.mxu0 %v7439_v51 }
  0x50   : > { %6724 = vmatmul.mubr.bf16.gmra.mrb[4].mxu1 %v5951_v62  ;;  %v2804_v19 = vor.u32 %v2803_v9, %v2800_v8  ;;  %v2807_v25 = vshll.u32 %v7952_v18, 16  ;;  %v2811_v26 = vshrl.u32 %v7952_v18, 16  ;;  %v933_v22 = vshll.u32 %v769_v23, 16  ;;  %6953 = vmatprep.subr.bf16.mxu0 %v7440_v34  ;;  %v680_v51 = vld [vmem:[#allocation2 + $0x44] sm:$0x1]  ;;  %v7443_v20 = vld [vmem:[%s9520_s1 + $0x178] sm:$0xff]  }
  0x51   : > { %v930_v29 = vor.u32 %v929_v13, %v926_v10  ;;  %6762 = vmatpush3.bf16.msra.mxu1 %v7446_v47  ;;  %v2819_v45 = vrot.slane %v2817_v21, 5  ;;  %v937_v30 = vshrl.u32 %v769_v23, 16  ;;  %v401_v31 = vrot.slane %v7925_v41, 4  ;;  %v303_v7 = vld [vmem:[%s7699_s18 + $0x2c] sm:$0xf]  ;;  %v7450_v21 = vld [vmem:[%s9520_s1 + $0x38] sm:$0xff]  }
  0x52   : > { %v2805_v35 = vrot.slane %v2804_v19, 4  ;;  %6763 = vmatprep.subr.bf16.mxu1 %v7448_v11  ;;  %v2809_v36 = vrot.slane %v2807_v25, 5  ;;  %v2813_v39 = vrot.slane %v2811_v26, 4  ;;  %v935_v42 = vrot.slane %v933_v22, 5  ;;  %v262_v12 = vld [vmem:[#allocation2 + $0x5c] sm:$0x1] }
  0x53   : > { %v931_v40 = vrot.slane %v930_v29, 4  ;;  %v939_v49 = vrot.slane %v937_v30, 4  ;;  %v405_v50 = vrot.slane %v403_v46, 7  ;;  %v210_v54 = vsel %vm7706_vm5, 0, %v209_v17  ;;  %6954 = vmatpush3.bf16.msra.mxu0 %v7440_v34  ;;  %v7983_v19 = vld [vmem:[%s7699_s18 + $0x30] sm:$0xf] }
  0x54   : > { %v260_v47 = vsel %vm7714_vm7, 0, %v259_v57  ;;  %v2814_v6 = vor.u32 %v2813_v39, %v2809_v36  ;;  %v945_v55 = vrot.slane %v943_v24, 5  ;;  %211 = vst [vmem:[#allocation2 + $0x48] sm:$0x1] %v210_v54  ;;  %v412_v41 = vshrl.u32 %v302_v32, 16  ;;  %6955 = vmatprep.subr.bf16.mxu0 %v7442_v59  ;;  %v7997_v57 = vld [vmem:[%s9520_s1 + $0x180] sm:$0xff]  }
  0x55   : > { %261 = vst [vmem:[#allocation2 + $0x50] sm:$0x1] %v260_v47  ;;  %6764 = vmatpush3.bf16.msra.mxu1 %v7448_v11  ;;  %v940_v46 = vor.u32 %v939_v49, %v935_v42  ;;  %v408_v58 = vor.u32 %v406_v14, %v405_v50  ;;  %v410_v60 = vrot.slane %v405_v50, 4  ;;  %v415_v61 = vshll.u32 %v302_v32, 16  ;;  %v212_v11 = vld [vmem:[#allocation2 + $0x54] sm:$0x1] }
  0x56   : > { %v2810_v0 = vsel %vm7725_vm8, %v2805_v35, %v2809_v36  ;;  %v2815_v2 = vrot.slane %v2814_v6, 4  ;;  %v936_v3 = vsel %vm7725_vm8, %v931_v40, %v935_v42  ;;  %v2689_v4 = vld [vmem:[#allocation2 + $0x3c] sm:$0xf]  ;;  %v7974_v62 = vrot.slane %v412_v41, 7  ;;  %v7992_v29 = vld [vmem:[%s7699_s18 + $0x34] sm:$0xf]  ;;  %6765 = vmatprep.subr.bf16.mxu1 %v7450_v21 }
  0x57   : > { %v770_v27 = vld [vmem:[#allocation2 + $0x3c] sm:$0xf]  ;;  %v941_v8 = vrot.slane %v940_v46, 4  ;;  %v409_v9 = vsel %vm7745_vm10, %v401_v31, %v408_v58  ;;  %v681_v10 = vsel %vm7706_vm5, %v410_v60, %v680_v51  ;;  %v2822_v34 = vshrl.u32 %v2689_v4, 16  ;;  %6956 = vmatpush3.bf16.msra.mxu0 %v7442_v59  ;;  %v215_v22 = vld [vmem:[#allocation2 + $0x60] sm:$0x1] }
  0x58   : > { %v2820_v13 = vsel %vm7725_vm8, %v2815_v2, %v2819_v45  ;;  %679 = vst [vmem:[#allocation2 + $0x40] sm:$0xf] %v409_v9  ;;  %682 = vst [vmem:[#allocation2 + $0x44] sm:$0x1] %v681_v10  ;;  %v2825_v14 = vshll.u32 %v2689_v4, 16  ;;  %v948_v15 = vshrl.u32 %v770_v27, 16  ;;  %v417_v26 = vor.u32 %v415_v61, %v7974_v62  ;;  %6957 = vmatprep.subr.bf16.mxu0 %v7443_v20 }
  0x59   : > { %v951_v17 = vshll.u32 %v770_v27, 16  ;;  %v6111_v23 = vcombine.low %v2810_v0, %v2820_v13  ;;  %v946_v24 = vsel %vm7725_vm8, %v941_v8, %v945_v55  ;;  %v2824_v25 = vrot.slane %v2822_v34, 4  ;;  %6766 = vmatpush3.bf16.msra.mxu1 %v7450_v21  ;;  %v7545_v56 = vld [vmem:[#allocation2 + $0x24] sm:$0xf] }
  0x5a   : > { %v5952_v59 = vcombine.low %v936_v3, %v946_v24  ;;  %v2827_v35 = vrot.slane %v2825_v14, 5  ;;  %v950_v45 = vrot.slane %v948_v15, 4  ;;  %v418_v31 = vrot.slane %v7974_v62, 4 }
  0x5b   : > { %v953_v30 = vrot.slane %v951_v17, 5  ;;  %6916 = vmatmul.mubr.bf16.gmra.mrb[4].mxu0 %v6111_v23  ;;  %v420_v32 = vshrl.u32 %v303_v7, 16  ;;  %v423_v36 = vshll.u32 %v303_v7, 16  ;;  %v683_v39 = vld [vmem:[#allocation2 + $0x48] sm:$0xf]  ;;  %v213_v40 = vsel %vm7706_vm5, 0, %v212_v11 }
  0x5c   : > { %6727 = vmatprep.mubr.bf16.mxu1 %v5952_v59  ;;  %v2828_v42 = vor.u32 %v2827_v35, %v2824_v25  ;;  %v684_v50 = vsel %vm7757_vm11, %v417_v26, %v683_v39  ;;  %214 = vst [vmem:[#allocation2 + $0x54] sm:$0x1] %v213_v40  ;;  %v263_v51 = vsel %vm7714_vm7, 0, %v262_v12  ;;  %6958 = vmatpush3.bf16.msra.mxu0 %v7443_v20  ;;  %v429_v47 = vshrl.u32 %v7983_v19, 16  ;;  %v687_v58 = vld [vmem:[#allocation2 + $0x50] sm:$0x1] }
  0x5d   : > { %v954_v49 = vor.u32 %v953_v30, %v950_v45  ;;  %v422_v54 = vrot.slane %v420_v32, 7  ;;  %685 = vst [vmem:[#allocation2 + $0x48] sm:$0xf] %v684_v50  ;;  %264 = vst [vmem:[#allocation2 + $0x5c] sm:$0x1] %v263_v51  ;;  %v432_v6 = vshll.u32 %v7983_v19, 16  ;;  %6991 = vmatprep.subr.bf16.mxu0 %v7997_v57 }
  0x5e   : > { %v437_v55 = vshrl.u32 %v7992_v29, 16  ;;  %v2829_v41 = vrot.slane %v2828_v42, 4  ;;  %v440_v60 = vshll.u32 %v7992_v29, 16  ;;  %v216_v61 = vsel %vm7706_vm5, 0, %v215_v22  ;;  %v7454_v12 = vld [vmem:[%s9520_s1 + $0x80] sm:$0xff]  }
  0x5f   : > { %v955_v46 = vrot.slane %v954_v49, 4  ;;  %v8013_v20 = vld [vmem:[#allocation2 + $0x40] sm:$0xf]  ;;  %v8015_v0 = vld [vmem:[#allocation2 + $0x44] sm:$0x1]  ;;  %v425_v3 = vor.u32 %v423_v36, %v422_v54  ;;  %v427_v11 = vrot.slane %v422_v54, 4  ;;  %6799 = vmatprep.subr.bf16.mxu1 %v7454_v12 }
  0x60   : > { %v771_v2 = vld [vmem:[#allocation2 + $0x40] sm:$0xf]  ;;  %217 = vst [vmem:[#allocation2 + $0x60] sm:$0x1] %v216_v61  ;;  %v2831_v4 = vshll.u32 %v8013_v20, 16  ;;  %v2835_v27 = vshrl.u32 %v8013_v20, 16 }
  0x61   : > { %v2841_v7 = vshll.u32 %v8015_v0, 16  ;;  %v813_v62 = vld [vmem:[#allocation2 + $0x44] sm:$0x1]  ;;  %v957_v8 = vshll.u32 %v771_v2, 16  ;;  %v961_v9 = vshrl.u32 %v771_v2, 16  ;;  %v426_v34 = vsel %vm7745_vm10, %v418_v31, %v425_v3 }
  0x62   : > { %v967_v10 = vshll.u32 %v813_v62, 16  ;;  %v2833_v13 = vrot.slane %v2831_v4, 5  ;;  %v2837_v14 = vrot.slane %v2835_v27, 4  ;;  %686 = vst [vmem:[#allocation2 + $0x4c] sm:$0xf] %v426_v34  ;;  %v688_v23 = vsel %vm7706_vm5, %v427_v11, %v687_v58 }
  0x63   : > { %v2843_v15 = vrot.slane %v2841_v7, 5  ;;  %v959_v17 = vrot.slane %v957_v8, 5  ;;  %v963_v19 = vrot.slane %v961_v9, 4  ;;  %v431_v24 = vrot.slane %v429_v47, 7  ;;  %689 = vst [vmem:[#allocation2 + $0x50] sm:$0x1] %v688_v23 }
  0x64   : > { %v969_v21 = vrot.slane %v967_v10, 5  ;;  %v2834_v25 = vsel %vm7725_vm8, %v2829_v41, %v2833_v13  ;;  %v2838_v26 = vor.u32 %v2837_v14, %v2833_v13  ;;  %v2692_v22 = vld [vmem:[#allocation2 + $0x48] sm:$0xf]  ;;  %v439_v35 = vrot.slane %v437_v55, 7  ;;  %v690_v49 = vld [vmem:[#allocation2 + $0x54] sm:$0xf] }
  0x65   : > { %v960_v29 = vsel %vm7725_vm8, %v955_v46, %v959_v17  ;;  %v772_v59 = vld [vmem:[#allocation2 + $0x48] sm:$0xf]  ;;  %v964_v45 = vor.u32 %v963_v19, %v959_v17  ;;  %v2846_v30 = vshrl.u32 %v2692_v22, 16  ;;  %v2849_v31 = vshll.u32 %v2692_v22, 16  ;;  %v694_v61 = vld [vmem:[#allocation2 + $0x5c] sm:$0x1] }
  0x66   : > { %v972_v32 = vshrl.u32 %v772_v59, 16  ;;  %v2839_v36 = vrot.slane %v2838_v26, 4  ;;  %v975_v39 = vshll.u32 %v772_v59, 16  ;;  %v434_v40 = vor.u32 %v432_v6, %v431_v24  ;;  %v306_v34 = vld [vmem:[%s7699_s18 + $0x38] sm:$0xf] }
  0x67   : > { %v435_v42 = vrot.slane %v431_v24, 4  ;;  %v965_v50 = vrot.slane %v964_v45, 4  ;;  %v2848_v51 = vrot.slane %v2846_v30, 4  ;;  %v2851_v54 = vrot.slane %v2849_v31, 5 }
  0x68   : > { %v974_v47 = vrot.slane %v972_v32, 4  ;;  %v2844_v41 = vsel %vm7725_vm8, %v2839_v36, %v2843_v15  ;;  %v977_v46 = vrot.slane %v975_v39, 5  ;;  %v442_v58 = vor.u32 %v440_v60, %v439_v35  ;;  %v265_v60 = vld [vmem:[#allocation2 + $0x68] sm:$0x1] }
  0x69   : > { %v444_v55 = vrot.slane %v439_v35, 4  ;;  %v6112_v2 = vcombine.low %v2834_v25, %v2844_v41  ;;  %v970_v3 = vsel %vm7725_vm8, %v965_v50, %v969_v21  ;;  %v8035_v4 = vld [vmem:[#allocation2 + $0x4c] sm:$0xf]  ;;  %v2852_v6 = vor.u32 %v2851_v54, %v2848_v51  ;;  %v8050_v25 = vld [vmem:[%s7699_s18 + $0x3c] sm:$0xf] }
  0x6a   : > { %v773_v27 = vld [vmem:[#allocation2 + $0x4c] sm:$0xf]  ;;  %v691_v7 = vsel %vm7757_vm11, %v434_v40, %v690_v49  ;;  %v5953_v62 = vcombine.low %v960_v29, %v970_v3  ;;  %v2855_v8 = vshll.u32 %v8035_v4, 16  ;;  %v2859_v9 = vshrl.u32 %v8035_v4, 16  ;;  %v8042_v11 = vld [vmem:[#allocation2 + $0x50] sm:$0x1] }
  0x6b   : > { %v978_v10 = vor.u32 %v977_v46, %v974_v47  ;;  %692 = vst [vmem:[#allocation2 + $0x54] sm:$0xf] %v691_v7  ;;  %6919 = vmatprep.mubr.bf16.mxu0 %v6112_v2  ;;  %v2853_v12 = vrot.slane %v2852_v6, 4  ;;  %v814_v13 = vld [vmem:[#allocation2 + $0x50] sm:$0x1]  ;;  %v981_v14 = vshll.u32 %v773_v27, 16  ;;  %v443_v15 = vsel %vm7745_vm10, %v435_v42, %v442_v58 }
  0x6c   : > { %v695_v17 = vsel %vm7706_vm5, %v444_v55, %v694_v61  ;;  %6728 = vmatmul.mubr.bf16.gmra.mrb[8].mxu1 %v5953_v62  ;;  %v2857_v19 = vrot.slane %v2855_v8, 5  ;;  %v2861_v21 = vrot.slane %v2859_v9, 4  ;;  %v2865_v23 = vshll.u32 %v8042_v11, 16  ;;  %693 = vst [vmem:[#allocation2 + $0x58] sm:$0xf] %v443_v15 }
  0x6d   : > { %v979_v24 = vrot.slane %v978_v10, 4  ;;  %696 = vst [vmem:[#allocation2 + $0x5c] sm:$0x1] %v695_v17  ;;  %v983_v26 = vrot.slane %v981_v14, 5  ;;  %v985_v29 = vshrl.u32 %v773_v27, 16  ;;  %v991_v22 = vshll.u32 %v814_v13, 16 }
  0x6e   : > { %v266_v59 = vsel %vm7714_vm7, 0, %v265_v60  ;;  %v8054_v35 = vld [vmem:[#allocation2 + $0xc] sm:$0xe]  ;;  %v2862_v45 = vor.u32 %v2861_v21, %v2857_v19  ;;  %v2867_v30 = vrot.slane %v2865_v23, 5  ;;  %v446_v31 = vshrl.u32 %v306_v34, 16 }
  0x6f   : > { %267 = vst [vmem:[#allocation2 + $0x68] sm:$0x1] %v266_v59  ;;  %v2858_v32 = vsel %vm7725_vm8, %v2853_v12, %v2857_v19  ;;  %v987_v36 = vrot.slane %v985_v29, 4  ;;  %v993_v39 = vrot.slane %v991_v22, 5  ;;  %v449_v40 = vshll.u32 %v306_v34, 16 }
  0x70   : > { %v2863_v42 = vrot.slane %v2862_v45, 4  ;;  %v8058_v49 = vrot.slane %v446_v31, 7  ;;  %v454_v50 = vshrl.u32 %v8050_v25, 16  ;;  %v457_v51 = vshll.u32 %v8050_v25, 16  ;;  %v697_v45 = vld [vmem:[#allocation2 + $0x60] sm:$0xf] }
  0x71   : > { %v984_v54 = vsel %vm7725_vm8, %v979_v24, %v983_v26  ;;  %v988_v47 = vor.u32 %v987_v36, %v983_v26  ;;  %v6132_v58 = vrot.slane %v8054_v35, 9  ;;  %v3497_v55 = vrot.slane %v7796_v44, 5 }
  0x72   : > { %v2695_v41 = vld [vmem:[#allocation2 + $0x54] sm:$0xf]  ;;  %v2868_v61 = vsel %vm7725_vm8, %v2863_v42, %v2867_v30  ;;  %v451_v10 = vor.u32 %v449_v40, %v8058_v49  ;;  %v452_v36 = vrot.slane %v8058_v49, 4 }
  0x73   : > { %v774_v46 = vld [vmem:[#allocation2 + $0x54] sm:$0xf]  ;;  %v2870_v2 = vshrl.u32 %v2695_v41, 16  ;;  %v2873_v3 = vshll.u32 %v2695_v41, 16  ;;  %v6113_v27 = vcombine.low %v2858_v32, %v2868_v61  ;;  %v989_v7 = vrot.slane %v988_v47, 4 }
  0x74   : > { %v996_v6 = vshrl.u32 %v774_v46, 16  ;;  %v8068_v62 = vld [vmem:[#allocation2 + $0x58] sm:$0xf]  ;;  %v8070_v8 = vld [vmem:[#allocation2 + $0x5c] sm:$0x1]  ;;  %v999_v9 = vshll.u32 %v774_v46, 16 }
  0x75   : > { %v2872_v60 = vrot.slane %v2870_v2, 4  ;;  %v2875_v34 = vrot.slane %v2873_v3, 5  ;;  %v2879_v12 = vshll.u32 %v8068_v62, 16  ;;  %v2883_v44 = vshrl.u32 %v8068_v62, 16  ;;  %v775_v13 = vld [vmem:[#allocation2 + $0x58] sm:$0xf]  ;;  %6920 = vmatmul.mubr.bf16.gmra.mrb[8].mxu0 %v6113_v27 }
  0x76   : > { %v994_v14 = vsel %vm7725_vm8, %v989_v7, %v993_v39  ;;  %v2889_v15 = vshll.u32 %v8070_v8, 16  ;;  %v815_v17 = vld [vmem:[#allocation2 + $0x5c] sm:$0x1]  ;;  %v998_v19 = vrot.slane %v996_v6, 4  ;;  %v1001_v21 = vrot.slane %v999_v9, 5 }
  0x77   : > { %v5954_v23 = vcombine.low %v984_v54, %v994_v14  ;;  %v2876_v24 = vor.u32 %v2875_v34, %v2872_v60  ;;  %v2881_v25 = vrot.slane %v2879_v12, 5  ;;  %v2885_v26 = vrot.slane %v2883_v44, 4  ;;  %v218_v39 = vld [vmem:[#allocation2 + $0x6c] sm:$0x1]  ;;  %v268_v41 = vld [vmem:[#allocation2 + $0x74] sm:$0x1] }
  0x78   : > { %v2891_v29 = vrot.slane %v2889_v15, 5  ;;  %v1002_v22 = vor.u32 %v1001_v21, %v998_v19  ;;  %v1005_v59 = vshll.u32 %v775_v13, 16  ;;  %v1009_v35 = vshrl.u32 %v775_v13, 16  ;;  %v308_v46 = vld [vmem:[%s7699_s18 + $0x40] sm:$0xf] }
  0x79   : > { %6731 = vmatprep.mubr.bf16.mxu1 %v5954_v23  ;;  %v2877_v30 = vrot.slane %v2876_v24, 4  ;;  %v2886_v31 = vor.u32 %v2885_v26, %v2881_v25  ;;  %v1015_v32 = vshll.u32 %v815_v17, 16  ;;  %v456_v47 = vrot.slane %v454_v50, 7  ;;  %v701_v27 = vld [vmem:[#allocation2 + $0x68] sm:$0x1] }
  0x7a   : > { %v1003_v40 = vrot.slane %v1002_v22, 4  ;;  %v1007_v42 = vrot.slane %v1005_v59, 5  ;;  %v1011_v54 = vrot.slane %v1009_v35, 4  ;;  %v698_v6 = vsel %vm7757_vm11, %v451_v10, %v697_v45  ;;  %v309_v7 = vld [vmem:[%s7699_s18 + $0x44] sm:$0xf] }
  0x7b   : > { %v2882_v61 = vsel %vm7725_vm8, %v2877_v30, %v2881_v25  ;;  %v2887_v2 = vrot.slane %v2886_v31, 4  ;;  %v1017_v3 = vrot.slane %v1015_v32, 5  ;;  %v459_v60 = vor.u32 %v457_v51, %v456_v47  ;;  %699 = vst [vmem:[#allocation2 + $0x60] sm:$0xf] %v698_v6  ;;  %v3432_v50 = vld [vmem:[#allocation2 + $0x18] sm:$0xe] }
  0x7c   : > { %v1008_v49 = vsel %vm7725_vm8, %v1003_v40, %v1007_v42  ;;  %v1012_v9 = vor.u32 %v1011_v54, %v1007_v42  ;;  %v461_v34 = vrot.slane %v456_v47, 4  ;;  %v221_v12 = vld [vmem:[#allocation2 + $0x78] sm:$0x1]  ;;  %v8091_v13 = vsel %vm7909_vm14, %v6132_v58, %v3497_v55  ;;  %v271_v15 = vld [vmem:[#allocation2 + $0x80] sm:$0x1] }
  0x7d   : > { %v2892_v44 = vsel %vm7725_vm8, %v2887_v2, %v2891_v29  ;;  %v3499_v10 = vrot.slane %v3497_v55, 4  ;;  %v219_v14 = vsel %vm7706_vm5, 0, %v218_v39  ;;  %v460_v51 = vsel %vm7745_vm10, %v452_v36, %v459_v60  ;;  %v8100_v23 = vld [vmem:[%s7699_s18 + $0x48] sm:$0xf]  ;;  %v8119_v32 = vld [vmem:[%s7699_s18 + $0x4c] sm:$0xf] }
  0x7e   : > { %v6114_v17 = vcombine.low %v2882_v61, %v2892_v44  ;;  %v1013_v19 = vrot.slane %v1012_v9, 4  ;;  %v702_v21 = vsel %vm7706_vm5, %v461_v34, %v701_v27  ;;  %220 = vst [vmem:[#allocation2 + $0x6c] sm:$0x1] %v219_v14  ;;  %700 = vst [vmem:[#allocation2 + $0x64] sm:$0xf] %v460_v51  ;;  %v269_v55 = vsel %vm7714_vm7, 0, %v268_v41 }
  0x7f   : > { %703 = vst [vmem:[#allocation2 + $0x68] sm:$0x1] %v702_v21  ;;  %v8106_v58 = vsel %vm7909_vm14, %v3499_v10, %v3500_v48  ;;  %v463_v24 = vshrl.u32 %v308_v46, 16  ;;  %v466_v25 = vshll.u32 %v308_v46, 16  ;;  %270 = vst [vmem:[#allocation2 + $0x74] sm:$0x1] %v269_v55 }
  0x80   : > { %6923 = vmatprep.mubr.bf16.mxu0 %v6114_v17  ;;  %v1018_v26 = vsel %vm7725_vm8, %v1013_v19, %v1017_v3  ;;  %v6164_v29 = vcombine.low %v8091_v13, %v8106_v58  ;;  %v471_v22 = vshrl.u32 %v309_v7, 16  ;;  %v6133_v35 = vrot.slane %v3432_v50, 9 }
  0x81   : > { %v5955_v52 = vcombine.low %v1008_v49, %v1018_v26  ;;  %v465_v59 = vrot.slane %v463_v24, 7  ;;  %v222_v48 = vsel %vm7706_vm5, 0, %v221_v12  ;;  %v474_v30 = vshll.u32 %v309_v7, 16 }
  0x82   : > { %v473_v45 = vrot.slane %v471_v22, 7  ;;  %223 = vst [vmem:[#allocation2 + $0x78] sm:$0x1] %v222_v48  ;;  %v272_v31 = vsel %vm7714_vm7, 0, %v271_v15  ;;  %v480_v36 = vshrl.u32 %v8100_v23, 16  ;;  %v8126_v47 = vsel %vm7909_vm14, %v6133_v35, %v3504_v53 }
  0x83   : > { %6732 = vmatmul.mubr.bf16.gmra.mrb[12].mxu1 %v5955_v52  ;;  %v2698_v39 = vld [vmem:[#allocation2 + $0x60] sm:$0xf]  ;;  %v468_v42 = vor.u32 %v466_v25, %v465_v59  ;;  %v469_v54 = vrot.slane %v465_v59, 4  ;;  %273 = vst [vmem:[#allocation2 + $0x80] sm:$0x1] %v272_v31  ;;  %v483_v41 = vshll.u32 %v8100_v23, 16  ;;  %v6165_v7 = vcombine.low %v8126_v47, %v7932_v63 }
  0x84   : > { %v776_v40 = vld [vmem:[#allocation2 + $0x60] sm:$0xf]  ;;  %v2894_v46 = vshrl.u32 %v2698_v39, 16  ;;  %v2897_v61 = vshll.u32 %v2698_v39, 16  ;;  %v478_v6 = vrot.slane %v473_v45, 4  ;;  %v8131_v49 = vrot.slane %v480_v36, 7 }
  0x85   : > { %v1020_v2 = vshrl.u32 %v776_v40, 16  ;;  %v1023_v3 = vshll.u32 %v776_v40, 16  ;;  %v704_v27 = vld [vmem:[#allocation2 + $0x6c] sm:$0xf]  ;;  %v488_v16 = vshrl.u32 %v8119_v32, 16  ;;  %v476_v50 = vor.u32 %v474_v30, %v473_v45 }
  0x86   : > { %v8134_v9 = vld [vmem:[#allocation2 + $0x64] sm:$0xf]  ;;  %v8136_v53 = vld [vmem:[#allocation2 + $0x68] sm:$0x1]  ;;  %v2896_v60 = vrot.slane %v2894_v46, 4  ;;  %v2899_v34 = vrot.slane %v2897_v61, 5  ;;  %v705_v12 = vsel %vm7757_vm11, %v468_v42, %v704_v27 }
  0x87   : > { %v2903_v44 = vshll.u32 %v8134_v9, 16  ;;  %v2907_v10 = vshrl.u32 %v8134_v9, 16  ;;  %v2913_v14 = vshll.u32 %v8136_v53, 16  ;;  %v777_v15 = vld [vmem:[#allocation2 + $0x64] sm:$0xf]  ;;  %v1022_v17 = vrot.slane %v1020_v2, 4 }
  0x88   : > { %706 = vst [vmem:[#allocation2 + $0x6c] sm:$0xf] %v705_v12  ;;  %v2900_v19 = vor.u32 %v2899_v34, %v2896_v60  ;;  %v816_v51 = vld [vmem:[#allocation2 + $0x68] sm:$0x1]  ;;  %v1025_v21 = vrot.slane %v1023_v3, 5  ;;  %v1029_v23 = vshll.u32 %v777_v15, 16  ;;  %v477_v36 = vsel %vm7745_vm10, %v469_v54, %v476_v50 }
  0x89   : > { %v1033_v55 = vshrl.u32 %v777_v15, 16  ;;  %v2905_v24 = vrot.slane %v2903_v44, 5  ;;  %v2909_v25 = vrot.slane %v2907_v10, 4  ;;  %v2915_v26 = vrot.slane %v2913_v14, 5  ;;  %v708_v52 = vld [vmem:[#allocation2 + $0x74] sm:$0x1] }
  0x8a   : > { %v1039_v22 = vshll.u32 %v816_v51, 16  ;;  %v2901_v59 = vrot.slane %v2900_v19, 4  ;;  %v1026_v35 = vor.u32 %v1025_v21, %v1022_v17  ;;  %v1031_v48 = vrot.slane %v1029_v23, 5  ;;  %v711_v40 = vld [vmem:[#allocation2 + $0x78] sm:$0xf] }
  0x8b   : > { %v1035_v45 = vrot.slane %v1033_v55, 4  ;;  %v2910_v30 = vor.u32 %v2909_v25, %v2905_v24  ;;  %v709_v39 = vsel %vm7706_vm5, %v478_v6, %v708_v52  ;;  %v3433_v42 = vld [vmem:[#allocation2 + $0x24] sm:$0xe]  ;;  %707 = vst [vmem:[#allocation2 + $0x70] sm:$0xf] %v477_v36  ;;  %v485_v3 = vor.u32 %v483_v41, %v8131_v49 }
  0x8c   : > { %v1041_v31 = vrot.slane %v1039_v22, 5  ;;  %v2906_v46 = vsel %vm7725_vm8, %v2901_v59, %v2905_v24  ;;  %v1027_v61 = vrot.slane %v1026_v35, 4  ;;  %710 = vst [vmem:[#allocation2 + $0x74] sm:$0x1] %v709_v39  ;;  %v486_v60 = vrot.slane %v8131_v49, 4 }
  0x8d   : > { %v1036_v2 = vor.u32 %v1035_v45, %v1031_v48  ;;  %v2911_v27 = vrot.slane %v2910_v30, 4  ;;  %v490_v34 = vrot.slane %v488_v16, 7  ;;  %v491_v54 = vshll.u32 %v8119_v32, 16  ;;  %v224_v14 = vld [vmem:[#allocation2 + $0x84] sm:$0x1] }
  0x8e   : > { %v1032_v6 = vsel %vm7725_vm8, %v1027_v61, %v1031_v48  ;;  %v712_v44 = vsel %vm7757_vm11, %v485_v3, %v711_v40  ;;  %v6134_v10 = vrot.slane %v3433_v42, 9  ;;  %v274_v15 = vld [vmem:[#allocation2 + $0x8c] sm:$0x1]  ;;  %v715_v32 = vld [vmem:[#allocation2 + $0x80] sm:$0x1]  ;;  %v3514_v30 = vrot.slane %v7888_v5, 5 }
  0x8f   : > { %v1037_v50 = vrot.slane %v1036_v2, 4  ;;  %v778_v12 = vld [vmem:[#allocation2 + $0x6c] sm:$0xf]  ;;  %v2916_v41 = vsel %vm7725_vm8, %v2911_v27, %v2915_v26  ;;  %v493_v17 = vor.u32 %v491_v54, %v490_v34  ;;  %713 = vst [vmem:[#allocation2 + $0x78] sm:$0xf] %v712_v44  ;;  %v495_v21 = vrot.slane %v490_v34, 4 }
  0x90   : > { %v1044_v49 = vshrl.u32 %v778_v12, 16  ;;  %v1047_v16 = vshll.u32 %v778_v12, 16  ;;  %v6115_v19 = vcombine.low %v2906_v46, %v2916_v41  ;;  %v7536_v23 = vld [vmem:[#allocation2 + $0x28] sm:$0xf]  ;;  %v312_v24 = vld [vmem:[%s7699_s18 + $0x50] sm:$0xf] }
  0x91   : > { %v1042_v51 = vsel %vm7725_vm8, %v1037_v50, %v1041_v31  ;;  %v3511_v55 = vrot.slane %v7536_v23, 5  ;;  %v494_v26 = vsel %vm7745_vm10, %v486_v60, %v493_v17  ;;  %v313_v59 = vld [vmem:[%s7699_s18 + $0x54] sm:$0xf]  ;;  %v716_v35 = vsel %vm7706_vm5, %v495_v21, %v715_v32  ;;  %v8178_v27 = vld [vmem:[#allocation2 + $0x30] sm:$0xe] }
  0x92   : > { %v5956_v25 = vcombine.low %v1032_v6, %v1042_v51  ;;  %v1046_v22 = vrot.slane %v1044_v49, 4  ;;  %v1049_v52 = vrot.slane %v1047_v16, 5  ;;  %6924 = vmatmul.mubr.bf16.gmra.mrb[12].mxu0 %v6115_v19  ;;  %714 = vst [vmem:[#allocation2 + $0x7c] sm:$0xf] %v494_v26  ;;  %v779_v31 = vld [vmem:[#allocation2 + $0x70] sm:$0xf] }
  0x93   : > { %v3512_v48 = vsel %vm7909_vm14, %v6134_v10, %v3511_v55  ;;  %v3513_v45 = vrot.slane %v3511_v55, 4  ;;  %6959 = vmatprep.mubr.bf16.mxu0 %v6164_v29  ;;  %v817_v36 = vld [vmem:[#allocation2 + $0x74] sm:$0x1]  ;;  %717 = vst [vmem:[#allocation2 + $0x80] sm:$0x1] %v716_v35  ;;  %v225_v40 = vsel %vm7706_vm5, 0, %v224_v14 }
  0x94   : > { %6735 = vmatprep.mubr.bf16.mxu1 %v5956_v25  ;;  %v1050_v39 = vor.u32 %v1049_v52, %v1046_v22  ;;  %v275_v42 = vsel %vm7714_vm7, 0, %v274_v15  ;;  %v1053_v46 = vshll.u32 %v779_v31, 16  ;;  %v1057_v61 = vshrl.u32 %v779_v31, 16  ;;  %226 = vst [vmem:[#allocation2 + $0x84] sm:$0x1] %v225_v40  ;;  %v7447_v15 = vld [vmem:[%s9520_s1 + $0x188] sm:$0xff]  }
  0x95   : > { %v1063_v2 = vshll.u32 %v817_v36, 16  ;;  %v3515_v5 = vsel %vm7909_vm14, %v3513_v45, %v3514_v30  ;;  %276 = vst [vmem:[#allocation2 + $0x8c] sm:$0x1] %v275_v42  ;;  %v497_v29 = vshrl.u32 %v312_v24, 16  ;;  %v500_v3 = vshll.u32 %v312_v24, 16 }
  0x96   : > { %v1051_v13 = vrot.slane %v1050_v39, 4  ;;  %v6166_v58 = vcombine.low %v3512_v48, %v3515_v5  ;;  %v1055_v60 = vrot.slane %v1053_v46, 5  ;;  %v1059_v34 = vrot.slane %v1057_v61, 4  ;;  %v780_v6 = vld [vmem:[#allocation2 + $0x78] sm:$0xf]  ;;  %v7449_v48 = vld [vmem:[%s9520_s1 + $0x190] sm:$0xff]  }
  0x97   : > { %v1065_v54 = vrot.slane %v1063_v2, 5  ;;  %v505_v50 = vshrl.u32 %v313_v59, 16  ;;  %v1068_v12 = vshrl.u32 %v780_v6, 16  ;;  %v1071_v44 = vshll.u32 %v780_v6, 16  ;;  %v227_v26 = vld [vmem:[#allocation2 + $0x90] sm:$0x1] }
  0x98   : > { %v499_v10 = vrot.slane %v497_v29, 7  ;;  %v508_v14 = vshll.u32 %v313_v59, 16  ;;  %v1056_v41 = vsel %vm7725_vm8, %v1051_v13, %v1055_v60  ;;  %v1060_v49 = vor.u32 %v1059_v34, %v1055_v60  ;;  %v277_v59 = vld [vmem:[#allocation2 + $0x98] sm:$0x1]  ;;  %v8199_v42 = vld [vmem:[%s7699_s18 + $0x5c] sm:$0xf] }
  0x99   : > { %v507_v16 = vrot.slane %v505_v50, 7  ;;  %v6135_v17 = vrot.slane %v8178_v27, 9  ;;  %v781_v32 = vld [vmem:[#allocation2 + $0x7c] sm:$0xf]  ;;  %v1070_v19 = vrot.slane %v1068_v12, 4  ;;  %v1073_v51 = vrot.slane %v1071_v44, 5 }
  0x9a   : > { %v502_v21 = vor.u32 %v500_v3, %v499_v10  ;;  %v503_v23 = vrot.slane %v499_v10, 4  ;;  %v1061_v55 = vrot.slane %v1060_v49, 4  ;;  %6960 = vmatmul.mubr.bf16.vlgmr.msra.gmra.mrb[0].mxu0 %v6165_v7  ;;  %v818_v24 = vld [vmem:[#allocation2 + $0x80] sm:$0x1]  ;;  %v1077_v25 = vshll.u32 %v781_v32, 16 }
  0x9b   : > { %v1081_v22 = vshrl.u32 %v781_v32, 16  ;;  %v510_v52 = vor.u32 %v508_v14, %v507_v16  ;;  %v314_v35 = vld [vmem:[%s7699_s18 + $0x58] sm:$0xf]  ;;  %6992 = vmatpush3.bf16.msra.mxu0 %v7997_v57  ;;  %v1074_v45 = vor.u32 %v1073_v51, %v1070_v19  ;;  %v1087_v30 = vshll.u32 %v818_v24, 16  ;;  %6963 = vmatprep.mubr.bf16.mxu0 %v6166_v58  ;;  %v718_v63 = vld [vmem:[#allocation2 + $0x84] sm:$0xf] }
  0x9c   : > { %v512_v31 = vrot.slane %v507_v16, 4  ;;  %v722_v47 = vld [vmem:[#allocation2 + $0x8c] sm:$0x1]  ;;  %v1066_v7 = vsel %vm7725_vm8, %v1061_v55, %v1065_v54  ;;  %v1079_v36 = vrot.slane %v1077_v25, 5  ;;  %6993 = vmatprep.subr.bf16.mxu0 %v7447_v15  ;;  %v3435_v46 = vld [vmem:[#allocation2 + $0x3c] sm:$0xe]  ;;  %v719_v5 = vsel %vm7757_vm11, %v502_v21, %v718_v63 }
  0x9d   : > { %v1083_v39 = vrot.slane %v1081_v22, 4  ;;  %v511_v40 = vsel %vm7745_vm10, %v503_v23, %v510_v52  ;;  %v5957_v61 = vcombine.low %v1056_v41, %v1066_v7  ;;  %v1075_v57 = vrot.slane %v1074_v45, 4  ;;  %720 = vst [vmem:[#allocation2 + $0x84] sm:$0xf] %v719_v5  ;;  %v230_v6 = vld [vmem:[#allocation2 + $0x9c] sm:$0x1] }
  0x9e   : > { %v1089_v2 = vrot.slane %v1087_v30, 5  ;;  %721 = vst [vmem:[#allocation2 + $0x88] sm:$0xf] %v511_v40  ;;  %v723_v58 = vsel %vm7706_vm5, %v512_v31, %v722_v47  ;;  %v3518_v29 = vrot.slane %v7952_v18, 5  ;;  %v3521_v3 = vrot.slane %v7947_v43, 5  ;;  %v7451_v14 = vld [vmem:[%s9520_s1 + $0x198] sm:$0xff]  }
  0x9f   : > { %v1084_v13 = vor.u32 %v1083_v39, %v1079_v36  ;;  %6736 = vmatmul.mubr.bf16.gmra.mrb[16].mxu1 %v5957_v61  ;;  %v1080_v27 = vsel %vm7725_vm8, %v1075_v57, %v1079_v36  ;;  %724 = vst [vmem:[#allocation2 + $0x8c] sm:$0x1] %v723_v58  ;;  %6994 = vmatpush3.bf16.msra.mxu0 %v7447_v15  ;;  %v228_v60 = vsel %vm7706_vm5, 0, %v227_v26  ;;  %v278_v34 = vsel %vm7714_vm7, 0, %v277_v59  ;;  %v280_v44 = vld [vmem:[#allocation2 + $0xa4] sm:$0x1] }
  0xa0   : > { %v514_v54 = vshrl.u32 %v314_v35, 16  ;;  %v3519_v18 = vsel %vm7909_vm14, %v6135_v17, %v3518_v29  ;;  %v3520_v43 = vrot.slane %v3518_v29, 4  ;;  %229 = vst [vmem:[#allocation2 + $0x90] sm:$0x1] %v228_v60  ;;  %279 = vst [vmem:[#allocation2 + $0x98] sm:$0x1] %v278_v34  ;;  %6995 = vmatprep.subr.bf16.mxu0 %v7449_v48 }
  0xa1   : > { %v1085_v50 = vrot.slane %v1084_v13, 4  ;;  %v517_v12 = vshll.u32 %v314_v35, 16  ;;  %v8216_v10 = vld [vmem:[%s7699_s18 + $0x60] sm:$0xf]  ;;  %v522_v41 = vshrl.u32 %v8199_v42, 16  ;;  %v525_v49 = vshll.u32 %v8199_v42, 16 }
  0xa2   : > { %v516_v15 = vrot.slane %v514_v54, 7  ;;  %v6136_v16 = vrot.slane %v3435_v46, 9  ;;  %v3522_v32 = vsel %vm7909_vm14, %v3520_v43, %v3521_v3  ;;  %v3525_v19 = vrot.slane %v8013_v20, 5  ;;  %v7455_v20 = vld [vmem:[%s9520_s1 + $0x1a0] sm:$0xff]  }
  0xa3   : > { %v1090_v17 = vsel %vm7725_vm8, %v1085_v50, %v1089_v2  ;;  %v3528_v51 = vrot.slane %v8015_v0, 5  ;;  %v6167_v23 = vcombine.low %v3519_v18, %v3522_v32  ;;  %6996 = vmatpush3.bf16.msra.mxu0 %v7449_v48  ;;  %v524_v22 = vrot.slane %v522_v41, 7  ;;  %v317_v30 = vld [vmem:[%s7699_s18 + $0x64] sm:$0xf]  ;;  %v7459_v2 = vld [vmem:[%s9520_s1 + $0x1a8] sm:$0xff]  }
  0xa4   : > { %v5958_v21 = vcombine.low %v1080_v27, %v1090_v17  ;;  %v519_v55 = vor.u32 %v517_v12, %v516_v15  ;;  %v520_v24 = vrot.slane %v516_v15, 4  ;;  %v3526_v52 = vsel %vm7909_vm14, %v6136_v16, %v3525_v19  ;;  %6997 = vmatprep.subr.bf16.mxu0 %v7451_v14  ;;  %v8238_v0 = vld [vmem:[#allocation2 + $0x84] sm:$0xf]  ;;  %v3436_v27 = vld [vmem:[#allocation2 + $0x48] sm:$0xe] }
  0xa5   : > { %v8229_v25 = vld [vmem:[#allocation2 + $0x88] sm:$0xf]  ;;  %v3527_v26 = vrot.slane %v3525_v19, 4  ;;  %v231_v59 = vsel %vm7706_vm5, 0, %v230_v6  ;;  %6964 = vmatmul.mubr.bf16.gmra.mrb[4].mxu0 %v6167_v23  ;;  %v281_v45 = vsel %vm7714_vm7, 0, %v280_v44  ;;  %v531_v31 = vshrl.u32 %v8216_v10, 16 }
  0xa6   : > { %6739 = vmatprep.mubr.bf16.mxu1 %v5958_v21  ;;  %v1101_v35 = vshll.u32 %v8229_v25, 16  ;;  %v1105_v48 = vshrl.u32 %v8229_v25, 16  ;;  %232 = vst [vmem:[#allocation2 + $0x9c] sm:$0x1] %v231_v59  ;;  %v819_v63 = vld [vmem:[#allocation2 + $0x8c] sm:$0x1]  ;;  %v527_v36 = vor.u32 %v525_v49, %v524_v22 }
  0xa7   : > { %v1092_v47 = vshrl.u32 %v8238_v0, 16  ;;  %v1095_v7 = vshll.u32 %v8238_v0, 16  ;;  %v529_v39 = vrot.slane %v524_v22, 4  ;;  %282 = vst [vmem:[#allocation2 + $0xa4] sm:$0x1] %v281_v45  ;;  %v1111_v46 = vshll.u32 %v819_v63, 16  ;;  %6998 = vmatpush3.bf16.msra.mxu0 %v7451_v14 }
  0xa8   : > { %v1103_v40 = vrot.slane %v1101_v35, 5  ;;  %v1107_v42 = vrot.slane %v1105_v48, 4  ;;  %v725_v61 = vld [vmem:[#allocation2 + $0x90] sm:$0xf]  ;;  %v3529_v57 = vsel %vm7909_vm14, %v3527_v26, %v3528_v51  ;;  %v528_v58 = vsel %vm7745_vm10, %v520_v24, %v527_v36  ;;  %v729_v3 = vld [vmem:[#allocation2 + $0x98] sm:$0x1]  ;;  %6999 = vmatprep.subr.bf16.mxu0 %v7455_v20 }
  0xa9   : > { %v1094_v5 = vrot.slane %v1092_v47, 4  ;;  %v1097_v13 = vrot.slane %v1095_v7, 5  ;;  %v726_v29 = vsel %vm7757_vm11, %v519_v55, %v725_v61  ;;  %v1113_v34 = vrot.slane %v1111_v46, 5  ;;  %728 = vst [vmem:[#allocation2 + $0x94] sm:$0xf] %v528_v58 }
  0xaa   : > { %v1108_v60 = vor.u32 %v1107_v42, %v1103_v40  ;;  %727 = vst [vmem:[#allocation2 + $0x90] sm:$0xf] %v726_v29  ;;  %v730_v54 = vsel %vm7706_vm5, %v529_v39, %v729_v3  ;;  %v6168_v6 = vcombine.low %v3526_v52, %v3529_v57  ;;  %v533_v18 = vrot.slane %v531_v31, 7  ;;  %v233_v44 = vld [vmem:[#allocation2 + $0xa8] sm:$0x1]  ;;  %v7467_v42 = vld [vmem:[%s9520_s1 + $0x1b8] sm:$0xff]  }
  0xab   : > { %v1098_v50 = vor.u32 %v1097_v13, %v1094_v5  ;;  %731 = vst [vmem:[#allocation2 + $0x98] sm:$0x1] %v730_v54  ;;  %v534_v43 = vshll.u32 %v8216_v10, 16  ;;  %v539_v12 = vshrl.u32 %v317_v30, 16  ;;  %v283_v14 = vld [vmem:[#allocation2 + $0xb0] sm:$0x1]  ;;  %7000 = vmatpush3.bf16.msra.mxu0 %v7455_v20 }
  0xac   : > { %v1109_v15 = vrot.slane %v1108_v60, 4  ;;  %6967 = vmatprep.mubr.bf16.mxu0 %v6168_v6  ;;  %v542_v41 = vshll.u32 %v317_v30, 16  ;;  %v6137_v49 = vrot.slane %v3436_v27, 9  ;;  %v3532_v16 = vrot.slane %v8035_v4, 5  ;;  %v318_v17 = vld [vmem:[%s7699_s18 + $0x68] sm:$0xf]  ;;  %7001 = vmatprep.subr.bf16.mxu0 %v7459_v2 }
  0xad   : > { %v1099_v32 = vrot.slane %v1098_v50, 4  ;;  %v536_v19 = vor.u32 %v534_v43, %v533_v18  ;;  %v537_v51 = vrot.slane %v533_v18, 4  ;;  %v541_v21 = vrot.slane %v539_v12, 7  ;;  %v732_v23 = vld [vmem:[#allocation2 + $0x9c] sm:$0xf]  ;;  %v7463_v10 = vld [vmem:[%s9520_s1 + $0x1b0] sm:$0xff]  }
  0xae   : > { %v1114_v55 = vsel %vm7725_vm8, %v1109_v15, %v1113_v34  ;;  %v736_v24 = vld [vmem:[#allocation2 + $0xa4] sm:$0x1]  ;;  %v3533_v22 = vsel %vm7909_vm14, %v6137_v49, %v3532_v16  ;;  %v3534_v4 = vrot.slane %v3532_v16, 4  ;;  %v3535_v52 = vrot.slane %v8042_v11, 5  ;;  %v8271_v26 = vld [vmem:[%s7699_s18 + $0x6c] sm:$0xf] }
  0xaf   : > { %v1104_v59 = vsel %vm7725_vm8, %v1099_v32, %v1103_v40  ;;  %v544_v20 = vor.u32 %v542_v41, %v541_v21  ;;  %v546_v35 = vrot.slane %v541_v21, 4  ;;  %v733_v48 = vsel %vm7757_vm11, %v536_v19, %v732_v23  ;;  %7002 = vmatpush3.bf16.msra.mxu0 %v7459_v2  ;;  %v3437_v27 = vld [vmem:[#allocation2 + $0x54] sm:$0xe]  ;;  %v236_v50 = vld [vmem:[#allocation2 + $0xb4] sm:$0x1] }
  0xb0   : > { %v5959_v45 = vcombine.low %v1104_v59, %v1114_v55  ;;  %734 = vst [vmem:[#allocation2 + $0x9c] sm:$0xf] %v733_v48  ;;  %v3536_v30 = vsel %vm7909_vm14, %v3534_v4, %v3535_v52  ;;  %v234_v31 = vsel %vm7706_vm5, 0, %v233_v44  ;;  %v284_v11 = vsel %vm7714_vm7, 0, %v283_v14  ;;  %v8285_v47 = vld [vmem:[#allocation2 + $0x94] sm:$0xf]  ;;  %7003 = vmatprep.subr.bf16.mxu0 %v7463_v10 }
  0xb1   : > { %v8283_v63 = vld [vmem:[#allocation2 + $0x90] sm:$0xf]  ;;  %v545_v7 = vsel %vm7745_vm10, %v537_v51, %v544_v20  ;;  %v737_v36 = vsel %vm7706_vm5, %v546_v35, %v736_v24  ;;  %v6169_v39 = vcombine.low %v3533_v22, %v3536_v30  ;;  %235 = vst [vmem:[#allocation2 + $0xa8] sm:$0x1] %v234_v31  ;;  %285 = vst [vmem:[#allocation2 + $0xb0] sm:$0x1] %v284_v11 }
  0xb2   : > { %v548_v40 = vshrl.u32 %v318_v17, 16  ;;  %6740 = vmatmul.mubr.bf16.gmra.mrb[20].mxu1 %v5959_v45  ;;  %v820_v46 = vld [vmem:[#allocation2 + $0x98] sm:$0x1]  ;;  %v1116_v61 = vshrl.u32 %v8283_v63, 16  ;;  %v1119_v57 = vshll.u32 %v8283_v63, 16  ;;  %v1125_v2 = vshll.u32 %v8285_v47, 16 }
  0xb3   : > { %v1129_v5 = vshrl.u32 %v8285_v47, 16  ;;  %735 = vst [vmem:[#allocation2 + $0xa0] sm:$0xf] %v545_v7  ;;  %738 = vst [vmem:[#allocation2 + $0xa4] sm:$0x1] %v737_v36  ;;  %v1135_v13 = vshll.u32 %v820_v46, 16  ;;  %6968 = vmatmul.mubr.bf16.gmra.mrb[8].mxu0 %v6169_v39 }
  0xb4   : > { %v550_v58 = vrot.slane %v548_v40, 7  ;;  %v551_v29 = vshll.u32 %v318_v17, 16  ;;  %v556_v3 = vshrl.u32 %v8271_v26, 16  ;;  %v1118_v60 = vrot.slane %v1116_v61, 4  ;;  %7004 = vmatpush3.bf16.msra.mxu0 %v7463_v10  ;;  %v8302_v14 = vld [vmem:[%s9520_s1 + $0x1c0] sm:$0xff]  }
  0xb5   : > { %v1121_v34 = vrot.slane %v1119_v57, 5  ;;  %v1127_v54 = vrot.slane %v1125_v2, 5  ;;  %v1131_v6 = vrot.slane %v1129_v5, 4  ;;  %v1137_v18 = vrot.slane %v1135_v13, 5  ;;  %7005 = vmatprep.subr.bf16.mxu0 %v7467_v42  ;;  %v286_v4 = vld [vmem:[#allocation2 + $0xbc] sm:$0x1] }
  0xb6   : > { %v553_v43 = vor.u32 %v551_v29, %v550_v58  ;;  %v554_v12 = vrot.slane %v550_v58, 4  ;;  %v558_v44 = vrot.slane %v556_v3, 7  ;;  %v559_v49 = vshll.u32 %v8271_v26, 16  ;;  %v320_v31 = vld [vmem:[%s7699_s18 + $0x70] sm:$0xf] }
  0xb7   : > { %v1122_v15 = vor.u32 %v1121_v34, %v1118_v60  ;;  %v1132_v41 = vor.u32 %v1131_v6, %v1127_v54  ;;  %v6138_v16 = vrot.slane %v3437_v27, 9  ;;  %v8305_v17 = vld [vmem:[#allocation2 + $0x9c] sm:$0xf]  ;;  %v3539_v19 = vrot.slane %v8068_v62, 5  ;;  %v321_v11 = vld [vmem:[%s7699_s18 + $0x74] sm:$0xf] }
  0xb8   : > { %v563_v32 = vrot.slane %v558_v44, 4  ;;  %v3542_v51 = vrot.slane %v8070_v8, 5  ;;  %v237_v21 = vsel %vm7706_vm5, 0, %v236_v50  ;;  %v1140_v55 = vshrl.u32 %v8305_v17, 16  ;;  %v739_v22 = vld [vmem:[#allocation2 + $0xa8] sm:$0xf]  ;;  %7006 = vmatpush3.bf16.msra.mxu0 %v7467_v42 }
  0xb9   : > { %v1123_v23 = vrot.slane %v1122_v15, 4  ;;  %v1133_v10 = vrot.slane %v1132_v41, 4  ;;  %v1143_v24 = vshll.u32 %v8305_v17, 16  ;;  %238 = vst [vmem:[#allocation2 + $0xb4] sm:$0x1] %v237_v21  ;;  %v561_v26 = vor.u32 %v559_v49, %v558_v44  ;;  %7039 = vmatprep.subr.bf16.mxu0 %v8302_v14 }
  0xba   : > { %v8313_v52 = vld [vmem:[#allocation2 + $0xa0] sm:$0xf]  ;;  %v821_v62 = vld [vmem:[#allocation2 + $0xa4] sm:$0x1]  ;;  %v740_v8 = vsel %vm7757_vm11, %v553_v43, %v739_v22  ;;  %v743_v59 = vld [vmem:[#allocation2 + $0xb0] sm:$0x1]  ;;  %v3540_v20 = vsel %vm7909_vm14, %v6138_v16, %v3539_v19 }
  0xbb   : > { %v1128_v35 = vsel %vm7725_vm8, %v1123_v23, %v1127_v54  ;;  %v1138_v48 = vsel %vm7725_vm8, %v1133_v10, %v1137_v18  ;;  %v1142_v45 = vrot.slane %v1140_v55, 4  ;;  %v1145_v30 = vrot.slane %v1143_v24, 5  ;;  %741 = vst [vmem:[#allocation2 + $0xa8] sm:$0xf] %v740_v8  ;;  %v3438_v42 = vld [vmem:[#allocation2 + $0x60] sm:$0xe] }
  0xbc   : > { %v5960_v7 = vcombine.low %v1128_v35, %v1138_v48  ;;  %v1149_v36 = vshll.u32 %v8313_v52, 16  ;;  %v1153_v39 = vshrl.u32 %v8313_v52, 16  ;;  %v1159_v40 = vshll.u32 %v821_v62, 16  ;;  %v8332_v5 = vld [vmem:[#allocation2 + $0x6c] sm:$0xe] }
  0xbd   : > { %v1146_v46 = vor.u32 %v1145_v30, %v1142_v45  ;;  %v562_v61 = vsel %vm7745_vm10, %v554_v12, %v561_v26  ;;  %v744_v57 = vsel %vm7706_vm5, %v563_v32, %v743_v59  ;;  %v3541_v2 = vrot.slane %v3539_v19, 4  ;;  %v2702_v21 = vld [vmem:[#allocation2 + $0x70] sm:$0xf] }
  0xbe   : > { %6743 = vmatprep.mubr.bf16.mxu1 %v5960_v7  ;;  %v1151_v13 = vrot.slane %v1149_v36, 5  ;;  %v1155_v58 = vrot.slane %v1153_v39, 4  ;;  %v1161_v29 = vrot.slane %v1159_v40, 5  ;;  %742 = vst [vmem:[#allocation2 + $0xac] sm:$0xf] %v562_v61  ;;  %v287_v3 = vsel %vm7714_vm7, 0, %v286_v4 }
  0xbf   : > { %745 = vst [vmem:[#allocation2 + $0xb0] sm:$0x1] %v744_v57  ;;  %v1147_v27 = vrot.slane %v1146_v46, 4  ;;  %v3543_v60 = vsel %vm7909_vm14, %v3541_v2, %v3542_v51  ;;  %288 = vst [vmem:[#allocation2 + $0xbc] sm:$0x1] %v287_v3  ;;  %v565_v34 = vshrl.u32 %v320_v31, 16 }
  0xc0   : > { %v568_v54 = vshll.u32 %v320_v31, 16  ;;  %v1156_v6 = vor.u32 %v1155_v58, %v1151_v13  ;;  %v6170_v50 = vcombine.low %v3540_v20, %v3543_v60  ;;  %v573_v18 = vshrl.u32 %v321_v11, 16  ;;  %v746_v12 = vld [vmem:[#allocation2 + $0xb4] sm:$0xf]  ;;  %v3440_v61 = vld [vmem:[#allocation2 + $0x78] sm:$0xe] }
  0xc1   : > { %v576_v43 = vshll.u32 %v321_v11, 16  ;;  %v1152_v44 = vsel %vm7725_vm8, %v1147_v27, %v1151_v13  ;;  %v567_v15 = vrot.slane %v565_v34, 7  ;;  %v6139_v41 = vrot.slane %v3438_v42, 9  ;;  %v2703_v4 = vld [vmem:[#allocation2 + $0x74] sm:$0x1] }
  0xc2   : > { %v3546_v49 = vrot.slane %v8134_v9, 5  ;;  %v1157_v16 = vrot.slane %v1156_v6, 4  ;;  %v8341_v32 = vld [vmem:[#allocation2 + $0xa8] sm:$0xf]  ;;  %6971 = vmatprep.mubr.bf16.mxu0 %v6170_v50  ;;  %v575_v19 = vrot.slane %v573_v18, 7  ;;  %v3549_v51 = vrot.slane %v8136_v53, 5 }
  0xc3   : > { %v6140_v23 = vrot.slane %v8332_v5, 9  ;;  %v1164_v10 = vshrl.u32 %v8341_v32, 16  ;;  %v1167_v55 = vshll.u32 %v8341_v32, 16  ;;  %v570_v24 = vor.u32 %v568_v54, %v567_v15  ;;  %v8361_v13 = vld [vmem:[#allocation2 + $0x7c] sm:$0xf] }
  0xc4   : > { %v571_v22 = vrot.slane %v567_v15, 4  ;;  %v1162_v9 = vsel %vm7725_vm8, %v1157_v16, %v1161_v29  ;;  %v578_v62 = vor.u32 %v576_v43, %v575_v19  ;;  %v580_v26 = vrot.slane %v575_v19, 4  ;;  %v8369_v50 = vld [vmem:[#allocation2 + $0x80] sm:$0x1]  ;;  %v2708_v15 = vld [vmem:[#allocation2 + $0x88] sm:$0xf] }
  0xc5   : > { %v3547_v8 = vsel %vm7909_vm14, %v6139_v41, %v3546_v49  ;;  %v5961_v59 = vcombine.low %v1152_v44, %v1162_v9  ;;  %v8351_v53 = vld [vmem:[#allocation2 + $0xac] sm:$0xf]  ;;  %v1166_v35 = vrot.slane %v1164_v10, 4  ;;  %v1169_v48 = vrot.slane %v1167_v55, 5  ;;  %v3441_v41 = vld [vmem:[#allocation2 + $0x84] sm:$0xe] }
  0xc6   : > { %v822_v20 = vld [vmem:[#allocation2 + $0xb0] sm:$0x1]  ;;  %v747_v45 = vsel %vm7757_vm11, %v570_v24, %v746_v12  ;;  %v1173_v30 = vshll.u32 %v8351_v53, 16  ;;  %v1177_v31 = vshrl.u32 %v8351_v53, 16  ;;  %v579_v7 = vsel %vm7745_vm10, %v571_v22, %v578_v62  ;;  %v750_v36 = vld [vmem:[#allocation2 + $0xbc] sm:$0x1] }
  0xc7   : > { %v1183_v11 = vshll.u32 %v822_v20, 16  ;;  %748 = vst [vmem:[#allocation2 + $0xb4] sm:$0xf] %v747_v45  ;;  %6744 = vmatmul.mubr.bf16.gmra.mrb[24].mxu1 %v5961_v59  ;;  %v1170_v39 = vor.u32 %v1169_v48, %v1166_v35  ;;  %749 = vst [vmem:[#allocation2 + $0xb8] sm:$0xf] %v579_v7  ;;  %v751_v40 = vsel %vm7706_vm5, %v580_v26, %v750_v36  ;;  %v3548_v42 = vrot.slane %v3546_v49, 4 }
  0xc8   : > { %v3553_v46 = vrot.slane %v2702_v21, 5  ;;  %v1175_v57 = vrot.slane %v1173_v30, 5  ;;  %v1179_v2 = vrot.slane %v1177_v31, 4  ;;  %752 = vst [vmem:[#allocation2 + $0xbc] sm:$0x1] %v751_v40  ;;  %v3556_v5 = vrot.slane %v2703_v4, 5 }
  0xc9   : > { %v1171_v58 = vrot.slane %v1170_v39, 4  ;;  %v3550_v29 = vsel %vm7909_vm14, %v3548_v42, %v3549_v51  ;;  %v1185_v34 = vrot.slane %v1183_v11, 5  ;;  %v6141_v44 = vrot.slane %v3440_v61, 9  ;;  %v8375_v16 = vld [vmem:[#allocation2] sm:$0xf] }
  0xca   : > { %v3554_v3 = vsel %vm7909_vm14, %v6140_v23, %v3553_v46  ;;  %v3555_v27 = vrot.slane %v3553_v46, 4  ;;  %v1180_v60 = vor.u32 %v1179_v2, %v1175_v57  ;;  %v6171_v54 = vcombine.low %v3547_v8, %v3550_v29  ;;  %v8377_v19 = vld [vmem:[#allocation2 + $0x4] sm:$0xf]  ;;  %v2709_v23 = vld [vmem:[#allocation2 + $0x8c] sm:$0x1] }
  0xcb   : > { %v1176_v18 = vsel %vm7725_vm8, %v1171_v58, %v1175_v57  ;;  %v5972_v51 = vcombine.low %v8375_v16, %v8377_v19  ;;  %v3560_v21 = vrot.slane %v8361_v13, 5  ;;  %v3442_v10 = vld [vmem:[#allocation2 + $0x90] sm:$0xe]  ;;  %v3563_v9 = vrot.slane %v8369_v50, 5  ;;  %v2711_v35 = vld [vmem:[#allocation2 + $0x94] sm:$0xf] }
  0xcc   : > { %v3557_v6 = vsel %vm7909_vm14, %v3555_v27, %v3556_v5  ;;  %v1181_v43 = vrot.slane %v1180_v60, 4  ;;  %6972 = vmatmul.mubr.bf16.gmra.mrb[12].mxu0 %v6171_v54  ;;  %v6142_v20 = vrot.slane %v3441_v41, 9  ;;  %v2712_v48 = vld [vmem:[#allocation2 + $0x98] sm:$0x1]  ;;  %v2714_v7 = vld [vmem:[#allocation2 + $0xa0] sm:$0xf] }
  0xcd   : > { %v6172_v12 = vcombine.low %v3554_v3, %v3557_v6  ;;  %v3561_v11 = vsel %vm7909_vm14, %v6141_v44, %v3560_v21  ;;  %v3443_v36 = vld [vmem:[#allocation2 + $0x9c] sm:$0xe]  ;;  %v3562_v42 = vrot.slane %v3560_v21, 4  ;;  %v3567_v46 = vrot.slane %v2708_v15, 5  ;;  %v2715_v58 = vld [vmem:[#allocation2 + $0xa4] sm:$0x1] }
  0xce   : > { %v8373_v49 = vld [vmem:[#allocation2 + $0xb4] sm:$0xf]  ;;  %v1186_v55 = vsel %vm7725_vm8, %v1181_v43, %v1185_v34  ;;  %v8384_v24 = vld [vmem:[#allocation2 + $0xb8] sm:$0xf]  ;;  %v3570_v2 = vrot.slane %v2709_v23, 5  ;;  %v6143_v5 = vrot.slane %v3442_v10, 9 }
  0xcf   : > { %v1188_v22 = vshrl.u32 %v8373_v49, 16  ;;  %v1191_v4 = vshll.u32 %v8373_v49, 16  ;;  %6975 = vmatprep.mubr.bf16.mxu0 %v6172_v12  ;;  %v5962_v62 = vcombine.low %v1176_v18, %v1186_v55  ;;  %v823_v26 = vld [vmem:[#allocation2 + $0xbc] sm:$0x1]  ;;  %v1197_v8 = vshll.u32 %v8384_v24, 16 }
  0xd0   : > { %v1201_v59 = vshrl.u32 %v8384_v24, 16  ;;  %v1207_v31 = vshll.u32 %v823_v26, 16  ;;  %v3564_v3 = vsel %vm7909_vm14, %v3562_v42, %v3563_v9  ;;  %v3568_v27 = vsel %vm7909_vm14, %v6142_v20, %v3567_v46  ;;  %v2717_v34 = vld [vmem:[#allocation2 + $0xac] sm:$0xf]  ;;  %v3444_v12 = vld [vmem:[#allocation2 + $0xa8] sm:$0xe] }
  0xd1   : > { %v1190_v45 = vrot.slane %v1188_v22, 4  ;;  %v1193_v30 = vrot.slane %v1191_v4, 5  ;;  %6747 = vmatprep.mubr.bf16.mxu1 %v5962_v62  ;;  %v1199_v39 = vrot.slane %v1197_v8, 5  ;;  %v3569_v60 = vrot.slane %v3567_v46, 4  ;;  %v2718_v23 = vld [vmem:[#allocation2 + $0xb0] sm:$0x1] }
  0xd2   : > { %v1203_v40 = vrot.slane %v1201_v59, 4  ;;  %v1209_v57 = vrot.slane %v1207_v31, 5  ;;  %v6173_v6 = vcombine.low %v3561_v11, %v3564_v3  ;;  %v3574_v18 = vrot.slane %v2711_v35, 5  ;;  %v2720_v10 = vld [vmem:[#allocation2 + $0xb8] sm:$0xf] }
  0xd3   : > { %v1194_v61 = vor.u32 %v1193_v30, %v1190_v45  ;;  %v3577_v43 = vrot.slane %v2712_v48, 5  ;;  %v3571_v15 = vsel %vm7909_vm14, %v3569_v60, %v3570_v2  ;;  %v6144_v41 = vrot.slane %v3443_v36, 9  ;;  %v3445_v55 = vld [vmem:[#allocation2 + $0xb4] sm:$0xe]  ;;  %v239_v26 = vld [vmem:[#allocation2 + $0xc0] sm:$0x1] }
  0xd4   : > { %v1204_v29 = vor.u32 %v1203_v40, %v1199_v39  ;;  %v3581_v21 = vrot.slane %v2714_v7, 5  ;;  %6976 = vmatmul.mubr.bf16.gmra.mrb[16].mxu0 %v6173_v6  ;;  %v6174_v4 = vcombine.low %v3568_v27, %v3571_v15  ;;  %v3575_v9 = vsel %vm7909_vm14, %v6143_v5, %v3574_v18  ;;  %v289_v8 = vld [vmem:[#allocation2 + $0xc8] sm:$0x1]  ;;  %v322_v45 = vld [vmem:[%s7699_s18 + $0x78] sm:$0xf] }
  0xd5   : > { %v1195_v54 = vrot.slane %v1194_v61, 4  ;;  %v3576_v62 = vrot.slane %v3574_v18, 4  ;;  %v3584_v48 = vrot.slane %v2715_v58, 5  ;;  %v3588_v11 = vrot.slane %v2717_v34, 5  ;;  %v2721_v7 = vld [vmem:[#allocation2 + $0xbc] sm:$0x1] }
  0xd6   : > { %v1205_v44 = vrot.slane %v1204_v29, 4  ;;  %v3582_v20 = vsel %vm7909_vm14, %v6144_v41, %v3581_v21  ;;  %v3583_v35 = vrot.slane %v3581_v21, 4  ;;  %6979 = vmatprep.mubr.bf16.mxu0 %v6174_v4  ;;  %v323_v36 = vld [vmem:[%s7699_s18 + $0x7c] sm:$0xf]  ;;  %v6145_v42 = vrot.slane %v3444_v12, 9 }
  0xd7   : > { %v1200_v22 = vsel %vm7725_vm8, %v1195_v54, %v1199_v39  ;;  %v3578_v31 = vsel %vm7909_vm14, %v3576_v62, %v3577_v43  ;;  %v3591_v61 = vrot.slane %v2718_v23, 5  ;;  %v3595_v2 = vrot.slane %v2720_v10, 5  ;;  %v7539_v18 = vld [vmem:[#allocation2 + $0xc] sm:$0xf]  ;;  %v8420_v43 = vld [vmem:[#allocation2 + $0x10] sm:$0xf] }
  0xd8   : > { %v1210_v59 = vsel %vm7725_vm8, %v1205_v44, %v1209_v57  ;;  %v6175_v39 = vcombine.low %v3575_v9, %v3578_v31  ;;  %v3585_v40 = vsel %vm7909_vm14, %v3583_v35, %v3584_v48  ;;  %v6146_v57 = vrot.slane %v3445_v55, 9  ;;  %v7541_v12 = vld [vmem:[#allocation2 + $0x18] sm:$0xf]  ;;  %v8423_v44 = vld [vmem:[#allocation2 + $0x1c] sm:$0xf]  ;;  %v7458_v23 = vld [vmem:[%s9520_s1 + $0x88] sm:$0xff]  }
  0xd9   : > { %v5963_v30 = vcombine.low %v1200_v22, %v1210_v59  ;;  %v6176_v46 = vcombine.low %v3582_v20, %v3585_v40  ;;  %v3590_v5 = vrot.slane %v3588_v11, 4  ;;  %v3598_v58 = vrot.slane %v2721_v7, 5 }
  0xda   : > { %v240_v29 = vsel %vm7706_vm5, 0, %v239_v26  ;;  %v290_v3 = vsel %vm7714_vm7, 0, %v289_v8  ;;  %v3597_v27 = vrot.slane %v3595_v2, 4  ;;  %v582_v60 = vshrl.u32 %v322_v45, 16  ;;  %v7543_v8 = vld [vmem:[%s9520_s1 + $0x80] sm:$0xff]  }
  0xdb   : > { %6748 = vmatmul.mubr.bf16.gmra.mrb[28].mxu1 %v5963_v30  ;;  %241 = vst [vmem:[#allocation2 + $0xc0] sm:$0x1] %v240_v29  ;;  %291 = vst [vmem:[#allocation2 + $0xc8] sm:$0x1] %v290_v3  ;;  %v585_v34 = vshll.u32 %v322_v45, 16  ;;  %v590_v54 = vshrl.u32 %v323_v36, 16  ;;  %v5973_v16 = vcombine.low %v7539_v18, %v8420_v43  ;;  %v5974_v33 = vcombine.low %v7541_v12, %v8423_v44 }
  0xdc   : > { %6767 = vmatprep.mubr.bf16.mxu1 %v5972_v51  ;;  %v593_v6 = vshll.u32 %v323_v36, 16  ;;  %6980 = vmatmul.mubr.bf16.gmra.mrb[20].mxu0 %v6175_v39  ;;  %v584_v51 = vrot.slane %v582_v60, 7  ;;  %v3589_v15 = vsel %vm7909_vm14, %v6145_v42, %v3588_v11  ;;  %v3592_v41 = vsel %vm7909_vm14, %v3590_v5, %v3591_v61  ;;  %v7462_v45 = vld [vmem:[%s9520_s1 + $0x90] sm:$0xff]   ;;  %v8449_v11 = vld [vmem:[#allocation2 + $0x28] sm:$0xf]  ;;  %v7471_v5 = vld [vmem:[%s9520_s1 + $0xa0] sm:$0xff]  }
  0xdd   : > { %6983 = vmatprep.mubr.bf16.mxu0 %v6176_v46  ;;  %v592_v21 = vrot.slane %v590_v54, 7  ;;  %v3596_v10 = vsel %vm7909_vm14, %v6146_v57, %v3595_v2  ;;  %v3599_v55 = vsel %vm7909_vm14, %v3597_v27, %v3598_v58  ;;  %v6177_v26 = vcombine.low %v3589_v15, %v3592_v41  ;;  %v7546_v36 = vld [vmem:[#allocation2 + $0x30] sm:$0xf]  ;;  %v8452_v39 = vld [vmem:[#allocation2 + $0x34] sm:$0xf]  ;;  %v7477_v15 = vld [vmem:[%s9520_s1 + $0xa8] sm:$0xff]  }
  0xde   : > { %v587_v22 = vor.u32 %v585_v34, %v584_v51  ;;  %v588_v4 = vrot.slane %v584_v51, 4  ;;  %v6178_v59 = vcombine.low %v3596_v10, %v3599_v55  ;;  %v5975_v7 = vcombine.low %v7545_v56, %v8449_v11  ;;  %v7548_v3 = vld [vmem:[#allocation2 + $0x3c] sm:$0xf]  ;;  %v8463_v27 = vld [vmem:[#allocation2 + $0x40] sm:$0xf]  ;;  %v8483_v55 = vld [vmem:[%s9520_s1 + $0xb0] sm:$0xff]  }
  0xdf   : > { %v595_v9 = vor.u32 %v593_v6, %v592_v21  ;;  %v597_v62 = vrot.slane %v592_v21, 4  ;;  %v5976_v40 = vcombine.low %v7546_v36, %v8452_v39  ;;  %v2951_v1 = vshll.u32 %v8361_v13, 16  ;;  %v7550_v6 = vld [vmem:[#allocation2 + $0x48] sm:$0xf]  ;;  %v8468_v18 = vld [vmem:[#allocation2 + $0x4c] sm:$0xf] }
  0xe0   : > { %v2955_v42 = vshrl.u32 %v8361_v13, 16  ;;  %v5977_v60 = vcombine.low %v7548_v3, %v8463_v27  ;;  %v2961_v21 = vshll.u32 %v8369_v50, 16  ;;  %v1806_v10 = vld [vmem:[#allocation2] sm:$0xe]  ;;  %v1866_v50 = vrot.slane %v8420_v43, 5 }
  0xe1   : > { %v596_v20 = vsel %vm7745_vm10, %v588_v4, %v595_v9  ;;  %v8466_v13 = vrot.slane %v2951_v1, 5  ;;  %v1807_v4 = vld [vmem:[#allocation2 + $0xc] sm:$0xe]  ;;  %v8486_v9 = vld [vmem:[#allocation2 + $0x18] sm:$0xe] }
  0xe2   : > { %v753_v35 = vld [vmem:[#allocation2 + $0xc0] sm:$0xf]  ;;  %v757_v48 = vld [vmem:[#allocation2 + $0xc8] sm:$0x1]  ;;  %756 = vst [vmem:[#allocation2 + $0xc4] sm:$0xf] %v596_v20 }
  0xe3   : > { %6768 = vmatmul.mubr.bf16.vlgmr.msra.gmra.mrb[0].mxu1 %v5973_v16  ;;  %v754_v30 = vsel %vm7757_vm11, %v587_v22, %v753_v35  ;;  %v758_v31 = vsel %vm7706_vm5, %v597_v62, %v757_v48  ;;  %9551 = vst [vmem:[#allocation4_spill] sm:$0xff] %v8466_v13  ;;  %v2957_v54 = vrot.slane %v2955_v42, 4  ;;  %v5978_v16 = vcombine.low %v7550_v6, %v8468_v18  ;;  %v7554_v48 = vld [vmem:[#allocation2 + $0x54] sm:$0xf]  ;;  %v7556_v43 = vld [vmem:[#allocation2 + $0x60] sm:$0xf] }
  0xe4   : > { %6800 = vmatpush3.bf16.msra.mxu1 %v7543_v8  ;;  %6771 = vmatprep.mubr.bf16.mxu1 %v5974_v33  ;;  %755 = vst [vmem:[#allocation2 + $0xc0] sm:$0xf] %v754_v30  ;;  %759 = vst [vmem:[#allocation2 + $0xc8] sm:$0x1] %v758_v31  ;;  %v7469_v33 = vld [vmem:[#allocation2 + $0x18] sm:$0xff]   ;;  %v1859_v22 = vrot.slane %v8377_v19, 5 }
  0xe5   : > { %6801 = vmatprep.subr.bf16.mxu1 %v7458_v23  ;;  %6984 = vmatmul.mubr.bf16.gmra.mrb[24].mxu0 %v6177_v26  ;;  %v1873_v62 = vrot.slane %v8423_v44, 5  ;;  %v8490_v26 = vld [vmem:[#allocation2 + $0x8] sm:$0x1]  ;;  %v8496_v35 = vrot.slane %v2961_v21, 5  ;;  %v8498_v19 = vld [vmem:[#allocation2 + $0x58] sm:$0xf] }
  0xe6   : > { %6987 = vmatprep.mubr.bf16.mxu0 %v6178_v59  ;;  %v1862_v8 = vrot.slane %v8490_v26, 5  ;;  %v8493_v59 = vld [vmem:[#allocation2 + $0x14] sm:$0x1]  ;;  %v8503_v31 = vld [vmem:[#allocation2 + $0x64] sm:$0xf]  ;;  %v1880_v42 = vrot.slane %v8449_v11, 5 }
  0xe7   : > { %v1869_v20 = vrot.slane %v8493_v59, 5  ;;  %9552 = vst [vmem:[#allocation5_spill] sm:$0xff] %v8496_v35  ;;  %v5980_v44 = vcombine.low %v7556_v43, %v8503_v31  ;;  %v8506_v56 = vld [vmem:[#allocation2 + $0x6c] sm:$0xf]  ;;  %v1809_v1 = vld [vmem:[#allocation2 + $0x24] sm:$0xe] }
  0xe8   : > { %6802 = vmatpush3.bf16.msra.mxu1 %v7458_v23  ;;  %v2958_v23 = vor.u32 %v2957_v54, %v8466_v13  ;;  %v8524_v3 = vld [vmem:[#allocation2 + $0x7c] sm:$0xf]  ;;  %v1875_v54 = vrot.slane %v1873_v62, 4  ;;  %v8531_v6 = vld [vmem:[#allocation2 + $0x30] sm:$0xe]  ;;  %v1887_v43 = vrot.slane %v8452_v39, 5 }
  0xe9   : > { %6803 = vmatprep.subr.bf16.mxu1 %v7462_v45  ;;  %v2723_v46 = vld [vmem:[#allocation2 + $0xc4] sm:$0xf]  ;;  %v6000_v39 = vrot.slane %v8531_v6, 9  ;;  %v4317_v6 = vld [vmem:[#allocation2 + $0x1c] sm:$0xf] }
  0xea   : > { %v3602_v2 = vrot.slane %v2723_v46, 5  ;;  %v8501_v30 = vrot.slane %v2958_v23, 4  ;;  %v7479_v46 = vld [vmem:[%s9520_s1 + $0x1c8] sm:$0xff]   ;;  %v7478_v26 = vld [vmem:[#allocation2 + $0x3c] sm:$0xff]  }
  0xeb   : > { %6772 = vmatmul.mubr.bf16.gmra.mrb[4].mxu1 %v5975_v7  ;;  %v2724_v61 = vld [vmem:[#allocation2 + $0xc8] sm:$0x1]  ;;  %v3446_v57 = vld [vmem:[#allocation2 + $0xc0] sm:$0xe]  ;;  %v8508_v7 = vld [vmem:[#allocation2 + $0x70] sm:$0xf] }
  0xec   : > { %6775 = vmatprep.mubr.bf16.mxu1 %v5976_v40  ;;  %6804 = vmatpush3.bf16.msra.mxu1 %v7462_v45  ;;  %v6147_v58 = vrot.slane %v3446_v57, 9  ;;  %v3605_v29 = vrot.slane %v2724_v61, 5  ;;  %v3604_v34 = vrot.slane %v3602_v2, 4  ;;  %v5979_v45 = vcombine.low %v7554_v48, %v8498_v19  ;;  %9553 = vst [vmem:[#allocation6_spill] sm:$0xff] %v8501_v30  ;;  %v7472_v40 = vld [vmem:[#allocation2 + $0x24] sm:$0xff]   ;;  %v8519_v61 = vld [vmem:[%s9520_s1 + $0xb8] sm:$0xff]  }
  0xed   : > { %6805 = vmatprep.subr.bf16.mxu1 %v7466_v28  ;;  %v5981_v36 = vcombine.low %v8506_v56, %v8508_v7  ;;  %v5996_v57 = vrot.slane %v1806_v10, 9  ;;  %v1882_v10 = vrot.slane %v1880_v42, 4  ;;  %v7567_v21 = vld [vmem:[#allocation2 + $0x5c] sm:$0x1] }
  0xee   : > { %v3603_v51 = vsel %vm7909_vm14, %v6147_v58, %v3602_v2  ;;  %v3606_v12 = vsel %vm7909_vm14, %v3604_v34, %v3605_v29  ;;  %v1861_v2 = vrot.slane %v1859_v22, 4  ;;  %v5998_v58 = vrot.slane %v8486_v9, 9  ;;  %v8522_v29 = vld [vmem:[#allocation2 + $0x78] sm:$0xf] }
  0xef   : > { %v6179_v41 = vcombine.low %v3603_v51, %v3606_v12  ;;  %v5982_v11 = vcombine.low %v8522_v29, %v8524_v3  ;;  %v1868_v34 = vrot.slane %v1866_v50, 4  ;;  %v7562_v12 = vld [vmem:[#allocation2 + $0x20] sm:$0x1]  ;;  %v8546_v48 = vsel %vm7909_vm14, %v5996_v57, %v1859_v22  ;;  %v8624_v29 = vld [vmem:[#allocation2 + $0x60] sm:$0xe] }
  0xf0   : > { %6806 = vmatpush3.bf16.msra.mxu1 %v7466_v28  ;;  %v7475_v28 = vld [vmem:[#allocation2 + $0x30] sm:$0xff]   ;;  %v8565_v22 = vsel %vm7909_vm14, %v5998_v58, %v1873_v62  ;;  %v1911_v51 = vrot.slane %v7567_v21, 5 }
  0xf1   : > { %6807 = vmatprep.subr.bf16.mxu1 %v7471_v5  ;;  %6988 = vmatmul.mubr.bf16.gmra.mrb[28].mxu0 %v6179_v41  ;;  %v8537_v41 = vld [vmem:[#allocation2 + $0x3c] sm:$0xe]  ;;  %v8580_v62 = vsel %vm7909_vm14, %v1868_v34, %v1869_v20  ;;  %v1901_v20 = vrot.slane %v8468_v18, 5  ;;  %v4320_v18 = vld [vmem:[#allocation2 + $0x28] sm:$0xf] }
  0xf2   : > { %7007 = vmatprep.mubr.bf16.mxu0 %v7469_v33  ;;  %v1876_v33 = vrot.slane %v7562_v12, 5  ;;  %v6001_v57 = vrot.slane %v8537_v41, 9  ;;  %v7481_v12 = vld [vmem:[#allocation2 + $0x48] sm:$0xff]  }
  0xf3   : > { %6776 = vmatmul.mubr.bf16.gmra.mrb[8].mxu1 %v5977_v60  ;;  %v5983_v60 = vcombine.low %v8238_v0, %v8229_v25  ;;  %v1812_v41 = vld [vmem:[#allocation2 + $0x48] sm:$0xe]  ;;  %v4324_v0 = vld [vmem:[#allocation2 + $0x38] sm:$0x1] }
  0xf4   : > { %6779 = vmatprep.mubr.bf16.mxu1 %v5978_v16  ;;  %6808 = vmatpush3.bf16.msra.mxu1 %v7471_v5  ;;  %v5997_v5 = vrot.slane %v1807_v4, 9  ;;  %v5984_v16 = vcombine.low %v8283_v63, %v8285_v47  ;;  %v7563_v4 = vld [vmem:[#allocation2 + $0x2c] sm:$0x1]  ;;  %v6002_v56 = vrot.slane %v1812_v41, 9  ;;  %v4398_v41 = vshll.u32 %v4320_v18, 16 }
  0xf5   : > { %6809 = vmatprep.subr.bf16.mxu1 %v7477_v15  ;;  %v1883_v9 = vrot.slane %v7563_v4, 5  ;;  %v1908_v4 = vrot.slane %v8498_v19, 5  ;;  %v7566_v19 = vld [vmem:[#allocation2 + $0x50] sm:$0x1] }
  0xf6   : > { %v1904_v23 = vrot.slane %v7566_v19, 5  ;;  %v7487_v19 = vld [vmem:[#allocation2 + $0x60] sm:$0xff]   ;;  %v7490_v47 = vld [vmem:[#allocation2 + $0x6c] sm:$0xff]  }
  0xf7   : > { %v8595_v59 = vsel %vm7909_vm14, %v1882_v10, %v1883_v9  ;;  %v1813_v9 = vld [vmem:[#allocation2 + $0x54] sm:$0xe] }
  0xf8   : > { %6810 = vmatpush3.bf16.msra.mxu1 %v7477_v15  ;;  %v5999_v15 = vrot.slane %v1809_v1, 9  ;;  %v7485_v1 = vld [vmem:[%s9520_s1 + $0x1d0] sm:$0xff]  }
  0xf9   : > { %6811 = vmatprep.subr.bf16.mxu1 %v8483_v55  ;;  %7008 = vmatmul.mubr.bf16.vlgmr.msra.gmra.mrb[0].mxu0 %v7472_v40  ;;  %v4316_v40 = vld [vmem:[#allocation2 + $0x18] sm:$0xf] }
  0xfa   : > { %7040 = vmatpush3.bf16.msra.mxu0 %v8302_v14  ;;  %7011 = vmatprep.mubr.bf16.mxu0 %v7475_v28  ;;  %v8561_v14 = vld [vmem:[%s9520_s1 + $0xc0] sm:$0xff]   ;;  %v8588_v58 = vsel %vm7909_vm14, %v5999_v15, %v1880_v42  ;;  %v4368_v34 = vshll.u32 %v4316_v40, 16 }
  0xfb   : > { %6780 = vmatmul.mubr.bf16.gmra.mrb[12].mxu1 %v5979_v45  ;;  %v8550_v45 = vsel %vm7909_vm14, %v5997_v5, %v1866_v50  ;;  %7041 = vmatprep.subr.bf16.mxu0 %v7479_v46  ;;  %v7564_v50 = vld [vmem:[#allocation2 + $0x38] sm:$0x1]  ;;  %v8584_v5 = vsel %vm7909_vm14, %v1875_v54, %v1876_v33  ;;  %v1889_v54 = vrot.slane %v1887_v43, 4  ;;  %v7565_v33 = vld [vmem:[#allocation2 + $0x44] sm:$0x1] }
  0xfc   : > { %6783 = vmatprep.mubr.bf16.mxu1 %v5980_v44  ;;  %v1894_v44 = vrot.slane %v8463_v27, 5  ;;  %6812 = vmatpush3.bf16.msra.mxu1 %v8483_v55  ;;  %v1890_v28 = vrot.slane %v7564_v50, 5  ;;  %v8574_v55 = vsel %vm7909_vm14, %v1861_v2, %v1862_v8  ;;  %v7491_v8 = vld [vmem:[%s9520_s1 + $0x1d8] sm:$0xff]   ;;  %v4365_v2 = vshrl.u32 %v4316_v40, 16  ;;  %v4319_v50 = vld [vmem:[#allocation2 + $0x24] sm:$0xf] }
  0xfd   : > { %6813 = vmatprep.subr.bf16.mxu1 %v8519_v61  ;;  %v1897_v15 = vrot.slane %v7565_v33, 5  ;;  %v4378_v40 = vshrl.u32 %v4317_v6, 16  ;;  %v8616_v33 = vsel %vm7909_vm14, %v6000_v39, %v1887_v43  ;;  %v4370_v10 = vrot.slane %v4368_v34, 5  ;;  %v7484_v34 = vld [vmem:[#allocation2 + $0x54] sm:$0xff]  }
  0xfe   : > { %7042 = vmatpush3.bf16.msra.mxu0 %v7479_v46  ;;  %v1896_v42 = vrot.slane %v1894_v44, 4  ;;  %v4374_v46 = vshll.u32 %v4317_v6, 16  ;;  %v4367_v6 = vrot.slane %v4365_v2, 4  ;;  %v6003_v43 = vrot.slane %v1813_v9, 9 }
  0xff   : > { %7043 = vmatprep.subr.bf16.mxu0 %v7485_v1  ;;  %v1910_v39 = vrot.slane %v1908_v4, 4  ;;  %v4402_v2 = vshrl.u32 %v4320_v18, 16  ;;  %v4380_v21 = vrot.slane %v4378_v40, 4  ;;  %v8644_v18 = vsel %vm7909_vm14, %v6002_v56, %v1901_v20 }
 0x100   : > { %6814 = vmatpush3.bf16.msra.mxu1 %v8519_v61  ;;  %v7495_v61 = vld [vmem:[%s9520_s1 + $0x1e0] sm:$0xff]   ;;  %v8636_v9 = vrot.slane %v4374_v46, 5  ;;  %v4371_v27 = vor.u32 %v4370_v10, %v4367_v6  ;;  %v8663_v40 = vrot.slane %v4398_v41, 5  ;;  %v4322_v6 = vld [vmem:[#allocation2 + $0x30] sm:$0xf] }
 0x101   : > { %6847 = vmatprep.subr.bf16.mxu1 %v8561_v14  ;;  %7012 = vmatmul.mubr.bf16.gmra.mrb[4].mxu0 %v7478_v26  ;;  %v4392_v26 = vshll.u32 %v4319_v50, 16  ;;  %v4404_v56 = vrot.slane %v4402_v2, 4  ;;  %v4413_v2 = vshrl.u32 %v4322_v6, 16 }
 0x102   : > { %7015 = vmatprep.mubr.bf16.mxu0 %v7481_v12  ;;  %7044 = vmatpush3.bf16.msra.mxu0 %v7485_v1  ;;  %v8628_v1 = vsel %vm7909_vm14, %v1889_v54, %v1890_v28  ;;  %v8634_v12 = vsel %vm7909_vm14, %v6001_v57, %v1894_v44  ;;  %v1915_v28 = vrot.slane %v8503_v31, 5  ;;  %v4318_v54 = vld [vmem:[#allocation2 + $0x20] sm:$0x1]  ;;  %v7499_v44 = vld [vmem:[%s9520_s1 + $0x1e8] sm:$0xff]   ;;  %v6004_v31 = vrot.slane %v8624_v29, 9 }
 0x103   : > { %6784 = vmatmul.mubr.bf16.gmra.mrb[16].mxu1 %v5981_v36  ;;  %v1903_v36 = vrot.slane %v1901_v20, 4  ;;  %7045 = vmatprep.subr.bf16.mxu0 %v7491_v8  ;;  %v8660_v20 = vsel %vm7909_vm14, %v1910_v39, %v1911_v51  ;;  %v4394_v46 = vrot.slane %v4392_v26, 5  ;;  %v4381_v51 = vor.u32 %v4380_v21, %v8636_v9  ;;  %v7568_v39 = vld [vmem:[#allocation2 + $0x68] sm:$0x1]  ;;  %v7492_v21 = vld [vmem:[#allocation2 + $0x78] sm:$0xff]  }
 0x104   : > { %6787 = vmatprep.mubr.bf16.mxu1 %v5982_v11  ;;  %v4389_v11 = vshrl.u32 %v4319_v50, 16  ;;  %v8640_v50 = vsel %vm7909_vm14, %v1896_v42, %v1897_v15  ;;  %v8656_v42 = vsel %vm7909_vm14, %v6003_v43, %v1908_v4  ;;  %v1815_v15 = vld [vmem:[#allocation2 + $0x6c] sm:$0xe]  ;;  %v4384_v4 = vshll.u32 %v4318_v54, 16 }
 0x105   : > { %v8652_v57 = vsel %vm7909_vm14, %v1903_v36, %v1904_v23  ;;  %v1922_v36 = vrot.slane %v8508_v7, 5  ;;  %v1917_v43 = vrot.slane %v1915_v28, 4  ;;  %v1918_v29 = vrot.slane %v7568_v39, 5 }
 0x106   : > { %7046 = vmatpush3.bf16.msra.mxu0 %v7491_v8  ;;  %v4321_v8 = vld [vmem:[#allocation2 + $0x2c] sm:$0x1]  ;;  %v4391_v10 = vrot.slane %v4389_v11, 4  ;;  %v8675_v11 = vrot.slane %v4371_v27, 4  ;;  %v6005_v25 = vrot.slane %v1815_v15, 9  ;;  %v4405_v41 = vor.u32 %v4404_v56, %v8663_v40 }
 0x107   : > { %7047 = vmatprep.subr.bf16.mxu0 %v7495_v61  ;;  %v4408_v63 = vshll.u32 %v4321_v8, 16  ;;  %v4386_v54 = vrot.slane %v4384_v4, 5  ;;  %v1924_v27 = vrot.slane %v1922_v36, 4  ;;  %v7569_v15 = vld [vmem:[#allocation2 + $0x74] sm:$0x1]  ;;  %v7507_v8 = vld [vmem:[%s9520_s1 + $0x1f8] sm:$0xff]   ;;  %v8692_v7 = vsel %vm7909_vm14, %v6004_v31, %v1915_v28 }
 0x108   : > { %v4395_v26 = vor.u32 %v4394_v46, %v4391_v10  ;;  %v1925_v39 = vrot.slane %v7569_v15, 5  ;;  %v8696_v10 = vsel %vm7909_vm14, %v1917_v43, %v1918_v29  ;;  %v4377_v46 = vsel %vm7725_vm8, %v8675_v11, %v8636_v9  ;;  %v4326_v4 = vld [vmem:[#allocation2 + $0x40] sm:$0xf] }
 0x109   : > { %7016 = vmatmul.mubr.bf16.gmra.mrb[8].mxu0 %v7484_v34  ;;  %v4416_v34 = vshll.u32 %v4322_v6, 16  ;;  %v8704_v56 = vsel %vm7909_vm14, %v6005_v25, %v1922_v36  ;;  %v4410_v6 = vrot.slane %v4408_v63, 5  ;;  %v1929_v28 = vrot.slane %v8524_v3, 5 }
 0x10a   : > { %7019 = vmatprep.mubr.bf16.mxu0 %v7487_v19  ;;  %7048 = vmatpush3.bf16.msra.mxu0 %v7495_v61  ;;  %v4323_v61 = vld [vmem:[#allocation2 + $0x34] sm:$0xf]  ;;  %v4382_v19 = vrot.slane %v4381_v51, 4  ;;  %v4325_v51 = vld [vmem:[#allocation2 + $0x3c] sm:$0xf]  ;;  %v4396_v43 = vrot.slane %v4395_v26, 4  ;;  %v9554_v9 = vcombine.low %v8305_v17, %v8313_v52  ;;  %v8717_v63 = vsel %vm7909_vm14, %v1924_v27, %v1925_v39 }
 0x10b   : > { %6788 = vmatmul.mubr.bf16.gmra.mrb[20].mxu1 %v5983_v60  ;;  %7049 = vmatprep.subr.bf16.mxu0 %v7499_v44  ;;  %v1816_v60 = vld [vmem:[#allocation2 + $0x78] sm:$0xe]  ;;  %v4422_v31 = vshll.u32 %v4323_v61, 16  ;;  %v4426_v15 = vshrl.u32 %v4323_v61, 16  ;;  %v4406_v29 = vrot.slane %v4405_v41, 4  ;;  %v4415_v23 = vrot.slane %v4413_v2, 4 }
 0x10c   : > { %6791 = vmatprep.mubr.bf16.mxu1 %v5984_v16  ;;  %v7503_v16 = vld [vmem:[%s9520_s1 + $0x1f0] sm:$0xff]   ;;  %v4418_v13 = vrot.slane %v4416_v34, 5  ;;  %v4437_v36 = vshrl.u32 %v4325_v51, 16  ;;  %v4440_v11 = vshll.u32 %v4325_v51, 16  ;;  %v4446_v25 = vshll.u32 %v4326_v4, 16  ;;  %9556 = vst [vmem:[#allocation7_spill] sm:$0xff] %v8717_v63 }
 0x10d   : > { %v4450_v30 = vshrl.u32 %v4326_v4, 16  ;;  %v4387_v3 = vsel %vm7725_vm8, %v4382_v19, %v4386_v54  ;;  %v8722_v17 = vld [vmem:[%s9520_s1 + $0x200] sm:$0xff]   ;;  %v6006_v52 = vrot.slane %v1816_v60, 9  ;;  %v4432_v2 = vshll.u32 %v4324_v0, 16  ;;  %v4328_v27 = vld [vmem:[#allocation2 + $0x48] sm:$0xf] }
 0x10e   : > { %7050 = vmatpush3.bf16.msra.mxu0 %v7499_v44  ;;  %v9555_v44 = vcombine.low %v8341_v32, %v8351_v53  ;;  %v7570_v26 = vld [vmem:[#allocation2 + $0x80] sm:$0x1]  ;;  %v1817_v61 = vld [vmem:[#allocation2 + $0x84] sm:$0xe]  ;;  %v1931_v32 = vrot.slane %v1929_v28, 4  ;;  %v8724_v53 = vrot.slane %v4422_v31, 5  ;;  %v4401_v19 = vsel %vm7725_vm8, %v4396_v43, %v8663_v40 }
 0x10f   : > { %7051 = vmatprep.subr.bf16.mxu0 %v7503_v16  ;;  %v1932_v41 = vrot.slane %v7570_v26, 5  ;;  %v4411_v60 = vsel %vm7725_vm8, %v4406_v29, %v4410_v6  ;;  %v4419_v54 = vor.u32 %v4418_v13, %v4415_v23  ;;  %v8733_v39 = vrot.slane %v4446_v25, 5  ;;  %v7494_v4 = vld [vmem:[#allocation2 + $0x84] sm:$0xff]   ;;  %v7496_v43 = vld [vmem:[#allocation2 + $0x90] sm:$0xff]   ;;  %v8802_v34 = vld [vmem:[#allocation2 + $0x5c] sm:$0x1] }
 0x110   : > { %v4452_v51 = vrot.slane %v4450_v30, 4  ;;  %v8735_v0 = vcombine.low %v4377_v46, %v4387_v3  ;;  %v4327_v40 = vld [vmem:[#allocation2 + $0x44] sm:$0x1]  ;;  %v8741_v13 = vsel %vm7909_vm14, %v6006_v52, %v1929_v28  ;;  %v8747_v30 = vld [vmem:[#allocation2 + $0x4c] sm:$0xf]  ;;  %v4461_v46 = vshrl.u32 %v4328_v27, 16 }
 0x111   : > { %7020 = vmatmul.mubr.bf16.gmra.mrb[12].mxu0 %v7490_v47  ;;  %v4428_v47 = vrot.slane %v4426_v15, 4  ;;  %v6007_v15 = vrot.slane %v1817_v61, 9  ;;  %v8745_v23 = vsel %vm7909_vm14, %v1931_v32, %v1932_v41  ;;  %9557 = vst [vmem:[#allocation8_spill] sm:$0xff] %v8747_v30  ;;  %v4464_v6 = vshll.u32 %v4328_v27, 16  ;;  %v4331_v28 = vld [vmem:[#allocation2 + $0x54] sm:$0xf] }
 0x112   : > { %7023 = vmatprep.mubr.bf16.mxu0 %v7492_v21  ;;  %7052 = vmatpush3.bf16.msra.mxu0 %v7503_v16  ;;  %v4439_v21 = vrot.slane %v4437_v36, 4  ;;  %v4442_v16 = vrot.slane %v4440_v11, 5  ;;  %v8749_v29 = vcombine.low %v4401_v19, %v4411_v60  ;;  %v8753_v11 = vrot.slane %v4432_v2, 5  ;;  %v8761_v32 = vld [vmem:[#allocation2 + $0x58] sm:$0xf] }
 0x113   : > { %6792 = vmatmul.mubr.bf16.gmra.mrb[24].mxu1 %v9554_v9  ;;  %7053 = vmatprep.subr.bf16.mxu0 %v7507_v8  ;;  %v7571_v9 = vld [vmem:[#allocation2 + $0x88] sm:$0xf]  ;;  %v4429_v36 = vor.u32 %v4428_v47, %v8724_v53  ;;  %v9558_v3 = vcombine.low %v8373_v49, %v8384_v24  ;;  %v8758_v52 = vrot.slane %v4419_v54, 4  ;;  %v4453_v41 = vor.u32 %v4452_v51, %v8733_v39  ;;  %v8770_v49 = vld [vmem:[#allocation2 + $0x90] sm:$0xe] }
 0x114   : > { %6795 = vmatprep.mubr.bf16.mxu1 %v9555_v44  ;;  %v1936_v44 = vrot.slane %v7571_v9, 5  ;;  %v4443_v26 = vor.u32 %v4442_v16, %v4439_v21  ;;  %v4456_v61 = vshll.u32 %v4327_v40, 16  ;;  %9559 = vst [vmem:[#allocation9_spill] sm:$0xff] %v8761_v32  ;;  %v9560_v47 = vcombine.low %v8546_v48, %v8574_v55  ;;  %v8776_v48 = vld [vmem:[#allocation2 + $0x94] sm:$0xf]  ;;  %v7497_v9 = vld [vmem:[%s9520_s1 + $0xc8] sm:$0xff]  }
 0x115   : > { %v4470_v24 = vshll.u32 %v8747_v30, 16  ;;  %v4474_v60 = vshrl.u32 %v8747_v30, 16  ;;  %v4463_v54 = vrot.slane %v4461_v46, 4  ;;  %v4466_v27 = vrot.slane %v4464_v6, 5 }
 0x116   : > { %7054 = vmatpush3.bf16.msra.mxu0 %v7507_v8  ;;  %v7572_v8 = vld [vmem:[#allocation2 + $0x8c] sm:$0x1]  ;;  %v8768_v2 = vsel %vm7909_vm14, %v6007_v15, %v1936_v44  ;;  %v1938_v19 = vrot.slane %v1936_v44, 4  ;;  %v4485_v21 = vshrl.u32 %v4331_v28, 16  ;;  %v4488_v16 = vshll.u32 %v4331_v28, 16  ;;  %v7498_v44 = vld [vmem:[#allocation2 + $0x9c] sm:$0xff]  }
 0x117   : > { %7087 = vmatprep.subr.bf16.mxu0 %v8722_v17  ;;  %v1939_v25 = vrot.slane %v7572_v8, 5  ;;  %v8774_v51 = vrot.slane %v4429_v36, 4  ;;  %v1943_v55 = vrot.slane %v8776_v48, 5  ;;  %v4498_v15 = vshrl.u32 %v8761_v32, 16  ;;  %v8785_v36 = vld [vmem:[#allocation2 + $0x50] sm:$0x1] }
 0x118   : > { %v4444_v40 = vrot.slane %v4443_v26, 4  ;;  %v4458_v46 = vrot.slane %v4456_v61, 5  ;;  %v6008_v6 = vrot.slane %v8770_v49, 9  ;;  %v8787_v8 = vld [vmem:[#allocation2 + $0x9c] sm:$0xe]  ;;  %v4425_v28 = vsel %vm7725_vm8, %v8758_v52, %v8724_v53  ;;  %v7500_v61 = vld [vmem:[#allocation2 + $0xa8] sm:$0xff]  }
 0x119   : > { %7024 = vmatmul.mubr.bf16.gmra.mrb[16].mxu0 %v7494_v4  ;;  %v4494_v4 = vshll.u32 %v8761_v32, 16  ;;  %v4476_v26 = vrot.slane %v4474_v60, 4  ;;  %v4467_v48 = vor.u32 %v4466_v27, %v4463_v54  ;;  %v8799_v49 = vld [vmem:[#allocation2 + $0xa0] sm:$0xf]  ;;  %v4487_v35 = vrot.slane %v4485_v21, 4 }
 0x11a   : > { %7027 = vmatprep.mubr.bf16.mxu0 %v7496_v43  ;;  %v4454_v43 = vrot.slane %v4453_v41, 4  ;;  %v4334_v41 = vld [vmem:[#allocation2 + $0x60] sm:$0xf]  ;;  %v1950_v31 = vrot.slane %v8799_v49, 5  ;;  %v4490_v32 = vrot.slane %v4488_v16, 5  ;;  %v1945_v30 = vrot.slane %v1943_v55, 4 }
 0x11b   : > { %6796 = vmatmul.mubr.bf16.gmra.mrb[28].mxu1 %v9558_v3  ;;  %v8795_v3 = vsel %vm7909_vm14, %v1938_v19, %v1939_v25  ;;  %v7575_v53 = vld [vmem:[#allocation2 + $0x98] sm:$0x1]  ;;  %v8804_v63 = vrot.slane %v4494_v4, 5  ;;  %v4500_v25 = vrot.slane %v4498_v15, 4  ;;  %v8806_v19 = vld [vmem:[#allocation2 + $0x64] sm:$0xf]  ;;  %v4435_v60 = vsel %vm7725_vm8, %v8774_v51, %v8753_v11 }
 0x11c   : > { %6815 = vmatprep.mubr.bf16.mxu1 %v9560_v47  ;;  %v8797_v47 = vrot.slane %v4470_v24, 5  ;;  %v1946_v52 = vrot.slane %v7575_v53, 5  ;;  %9561 = vst [vmem:[#allocation10_spill] sm:$0xff] %v8806_v19  ;;  %v9562_v24 = vcombine.low %v8550_v45, %v8580_v62  ;;  %v4449_v54 = vsel %vm7725_vm8, %v4444_v40, %v8733_v39  ;;  %v7501_v39 = vld [vmem:[%s9520_s1 + $0xd0] sm:$0xff]  }
 0x11d   : > { %v4509_v27 = vshrl.u32 %v4334_v41, 16  ;;  %v4512_v21 = vshll.u32 %v4334_v41, 16  ;;  %v9563_v16 = vcombine.low %v8565_v22, %v8584_v5  ;;  %v4459_v45 = vsel %vm7725_vm8, %v4454_v43, %v4458_v46  ;;  %v7576_v22 = vld [vmem:[#allocation2 + $0xa4] sm:$0x1] }
 0x11e   : > { %v4477_v62 = vor.u32 %v4476_v26, %v8797_v47  ;;  %v4480_v4 = vshll.u32 %v8785_v36, 16  ;;  %v6009_v11 = vrot.slane %v8787_v8, 9  ;;  %v1952_v51 = vrot.slane %v1950_v31, 4  ;;  %v7505_v26 = vld [vmem:[%s9520_s1 + $0xd8] sm:$0xff]  }
 0x11f   : > { %v1953_v5 = vrot.slane %v7576_v22, 5  ;;  %v4491_v15 = vor.u32 %v4490_v32, %v4487_v35  ;;  %v4501_v40 = vor.u32 %v4500_v25, %v8804_v63  ;;  %v4504_v43 = vshll.u32 %v8802_v34, 16  ;;  %v1820_v35 = vld [vmem:[#allocation2 + $0xa8] sm:$0xe] }
 0x120   : > { %v4518_v46 = vshll.u32 %v8806_v19, 16  ;;  %v4522_v8 = vshrl.u32 %v8806_v19, 16  ;;  %v4511_v32 = vrot.slane %v4509_v27, 4  ;;  %v8847_v49 = vsel %vm7909_vm14, %v6008_v6, %v1943_v55  ;;  %v7577_v27 = vld [vmem:[#allocation2 + $0xac] sm:$0xf] }
 0x121   : > { %7028 = vmatmul.mubr.bf16.gmra.mrb[20].mxu0 %v7498_v44  ;;  %v7502_v44 = vld [vmem:[#allocation2 + $0xb4] sm:$0xff]   ;;  %v4478_v53 = vrot.slane %v4477_v62, 4  ;;  %v4482_v25 = vrot.slane %v4480_v4, 5  ;;  %v4492_v22 = vrot.slane %v4491_v15, 4  ;;  %v4506_v41 = vrot.slane %v4504_v43, 5 }
 0x122   : > { %7031 = vmatprep.mubr.bf16.mxu0 %v7500_v61  ;;  %v4514_v61 = vrot.slane %v4512_v21, 5  ;;  %v1957_v21 = vrot.slane %v7577_v27, 5  ;;  %v8857_v55 = vrot.slane %v4518_v46, 5  ;;  %v4524_v6 = vrot.slane %v4522_v8, 4  ;;  %v1821_v4 = vld [vmem:[#allocation2 + $0xb4] sm:$0xe] }
 0x123   : > { %6816 = vmatmul.mubr.bf16.vlgmr.msra.gmra.mrb[0].mxu1 %v9562_v24  ;;  %v8849_v24 = vcombine.low %v4449_v54, %v4459_v45  ;;  %v9565_v54 = vcombine.low %v8588_v58, %v8595_v59  ;;  %v8872_v45 = vsel %vm7909_vm14, %v1952_v51, %v1953_v5  ;;  %v4337_v15 = vld [vmem:[#allocation2 + $0x6c] sm:$0xf]  ;;  %v9568_v58 = vcombine.low %v8616_v33, %v8628_v1  ;;  %v7508_v59 = vld [vmem:[%s9520_s1 + $0xe0] sm:$0xff]   ;;  %v8888_v43 = vld [vmem:[#allocation2 + $0x70] sm:$0xf] }
 0x124   : > { %6848 = vmatpush3.bf16.msra.mxu1 %v8561_v14  ;;  %6819 = vmatprep.mubr.bf16.mxu1 %v9563_v16  ;;  %v8830_v14 = vrot.slane %v4467_v48, 4  ;;  %v8843_v48 = vcombine.low %v4425_v28, %v4435_v60  ;;  %v8853_v16 = vsel %vm7909_vm14, %v1945_v30, %v1946_v52  ;;  %v7504_v28 = vld [vmem:[#allocation2 + $0xc0] sm:$0xff]   ;;  %v4502_v60 = vrot.slane %v4501_v40, 4  ;;  %9567 = vst [vmem:[#allocation13_spill] sm:$0xff] %v8872_v45 }
 0x125   : > { %6849 = vmatprep.subr.bf16.mxu1 %v7497_v9  ;;  %v8868_v52 = vsel %vm7909_vm14, %v6009_v11, %v1950_v31  ;;  %v4515_v62 = vor.u32 %v4514_v61, %v4511_v32  ;;  %v4483_v31 = vsel %vm7725_vm8, %v4478_v53, %v4482_v25  ;;  %v4497_v33 = vsel %vm7725_vm8, %v4492_v22, %v8804_v63  ;;  %v4340_v61 = vld [vmem:[#allocation2 + $0x78] sm:$0xf]  ;;  %v7506_v53 = vld [vmem:[#allocation2 + $0xcc] sm:$0xff]  }
 0x126   : > { %v4473_v30 = vsel %vm7725_vm8, %v8830_v14, %v8797_v47  ;;  %9566 = vst [vmem:[#allocation12_spill] sm:$0xff] %v8868_v52  ;;  %v6010_v47 = vrot.slane %v1820_v35, 9  ;;  %v7578_v14 = vld [vmem:[#allocation2 + $0xb8] sm:$0xf]  ;;  %v1959_v1 = vrot.slane %v1957_v21, 4  ;;  %9569 = vst [vmem:[#allocation14_spill] sm:$0xff] %v8888_v43  ;;  %v4507_v46 = vsel %vm7725_vm8, %v4502_v60, %v4506_v41 }
 0x127   : > { %v1964_v51 = vrot.slane %v7578_v14, 5  ;;  %v4525_v8 = vor.u32 %v4524_v6, %v8857_v55  ;;  %v4533_v35 = vshrl.u32 %v4337_v15, 16  ;;  %v4536_v32 = vshll.u32 %v4337_v15, 16  ;;  %v7510_v41 = vld [vmem:[%s9520_s1 + $0xe8] sm:$0xff]   ;;  %v7580_v15 = vld [vmem:[#allocation2 + $0xbc] sm:$0x1] }
 0x128   : > { %6850 = vmatpush3.bf16.msra.mxu1 %v7497_v9  ;;  %v8855_v9 = vld [vmem:[#allocation2 + $0x68] sm:$0x1]  ;;  %v8895_v25 = vcombine.low %v4473_v30, %v4483_v31  ;;  %v8899_v22 = vrot.slane %v4515_v62, 4  ;;  %v6011_v27 = vrot.slane %v1821_v4, 9  ;;  %v8908_v60 = vsel %vm7909_vm14, %v6010_v47, %v1957_v21 }
 0x129   : > { %6851 = vmatprep.subr.bf16.mxu1 %v7501_v39  ;;  %9564 = vst [vmem:[#allocation11_spill] sm:$0xff] %v8855_v9  ;;  %v4528_v11 = vshll.u32 %v8855_v9, 16  ;;  %7032 = vmatmul.mubr.bf16.gmra.mrb[24].mxu0 %v7502_v44  ;;  %v8893_v44 = vld [vmem:[#allocation2 + $0x74] sm:$0x1]  ;;  %v1966_v30 = vrot.slane %v1964_v51, 4  ;;  %v8912_v62 = vcombine.low %v4497_v33, %v4507_v46  ;;  %v4546_v31 = vshrl.u32 %v8888_v43, 16 }
 0x12a   : > { %7035 = vmatprep.mubr.bf16.mxu0 %v7504_v28  ;;  %9570 = vst [vmem:[#allocation15_spill] sm:$0xff] %v8893_v44  ;;  %v8901_v28 = vld [vmem:[#allocation2 + $0x7c] sm:$0xf]  ;;  %v8920_v14 = vrot.slane %v4525_v8, 4  ;;  %v8922_v21 = vrot.slane %v4533_v35, 4  ;;  %v4538_v47 = vrot.slane %v4536_v32, 5  ;;  %v9573_v33 = vcombine.low %v8634_v12, %v8640_v50 }
 0x12b   : > { %6820 = vmatmul.mubr.bf16.gmra.mrb[4].mxu1 %v9565_v54  ;;  %9571 = vst [vmem:[#allocation16_spill] sm:$0xff] %v8901_v28  ;;  %v4343_v54 = vld [vmem:[#allocation2 + $0x84] sm:$0xf]  ;;  %v8910_v6 = vrot.slane %v4528_v11, 5  ;;  %v4552_v11 = vshll.u32 %v8893_v44, 16  ;;  %v8939_v46 = vsel %vm7909_vm14, %v6011_v27, %v1964_v51  ;;  %v4557_v8 = vshrl.u32 %v4340_v61, 16 }
 0x12c   : > { %6823 = vmatprep.mubr.bf16.mxu1 %v9568_v58  ;;  %6852 = vmatpush3.bf16.msra.mxu1 %v7501_v39  ;;  %v7579_v39 = vld [vmem:[#allocation2 + $0xb0] sm:$0x1]  ;;  %v1967_v58 = vrot.slane %v7580_v15, 5  ;;  %v4560_v35 = vshll.u32 %v4340_v61, 16  ;;  %v8941_v15 = vld [vmem:[#allocation2 + $0x94] sm:$0xf]  ;;  %v9575_v12 = vcombine.low %v8644_v18, %v8652_v57  ;;  %v4539_v18 = vor.u32 %v4538_v47, %v8922_v21 }
 0x12d   : > { %6853 = vmatprep.subr.bf16.mxu1 %v7505_v26  ;;  %v1960_v40 = vrot.slane %v7579_v39, 5  ;;  %v8925_v39 = vld [vmem:[#allocation2 + $0x88] sm:$0xf]  ;;  %v4346_v32 = vld [vmem:[#allocation2 + $0x90] sm:$0xf]  ;;  %9574 = vst [vmem:[#allocation18_spill] sm:$0xff] %v8941_v15 }
 0x12e   : > { %9572 = vst [vmem:[#allocation17_spill] sm:$0xff] %v8925_v39  ;;  %v4566_v50 = vshll.u32 %v8901_v28, 16  ;;  %v4581_v63 = vshrl.u32 %v4343_v54, 16  ;;  %v4584_v5 = vshll.u32 %v4343_v54, 16  ;;  %v4548_v27 = vrot.slane %v4546_v31, 4  ;;  %v7511_v44 = vld [vmem:[%s9520_s1 + $0x208] sm:$0xff]  }
 0x12f   : > { %v8916_v4 = vsel %vm7909_vm14, %v1959_v1, %v1960_v40  ;;  %v7512_v1 = vld [vmem:[%s9520_s1 + $0xf0] sm:$0xff]   ;;  %v4590_v61 = vshll.u32 %v8925_v39, 16  ;;  %v4594_v40 = vshrl.u32 %v8925_v39, 16  ;;  %v8954_v57 = vrot.slane %v4552_v11, 5  ;;  %v8959_v54 = vld [vmem:[#allocation2 + $0x80] sm:$0x1] }
 0x130   : > { %6854 = vmatpush3.bf16.msra.mxu1 %v7505_v26  ;;  %v4542_v26 = vshll.u32 %v8888_v43, 16  ;;  %v4562_v31 = vrot.slane %v4560_v35, 5  ;;  %v4614_v45 = vshll.u32 %v8941_v15, 16  ;;  %v4618_v39 = vshrl.u32 %v8941_v15, 16  ;;  %v8967_v11 = vld [vmem:[#allocation2 + $0x8c] sm:$0x1] }
 0x131   : > { %6855 = vmatprep.subr.bf16.mxu1 %v7508_v59  ;;  %7036 = vmatmul.mubr.bf16.gmra.mrb[28].mxu0 %v7506_v53  ;;  %v7514_v53 = vld [vmem:[%s9520_s1 + $0xf8] sm:$0xff]   ;;  %v8965_v21 = vrot.slane %v4566_v50, 5  ;;  %v4586_v52 = vrot.slane %v4584_v5, 5  ;;  %v8977_v15 = vrot.slane %v4590_v61, 5  ;;  %v9576_v5 = vcombine.low %v8656_v42, %v8660_v20  ;;  %v4352_v61 = vld [vmem:[#allocation2 + $0xa8] sm:$0xf] }
 0x132   : > { %v8948_v51 = vrot.slane %v4542_v26, 5  ;;  %7055 = vmatprep.mubr.bf16.mxu0 %v8735_v0  ;;  %v4559_v26 = vrot.slane %v4557_v8, 4  ;;  %v8963_v0 = vld [vmem:[#allocation2 + $0xa0] sm:$0xf]  ;;  %v8974_v8 = vsel %vm7909_vm14, %v1966_v30, %v1967_v58  ;;  %v8984_v19 = vrot.slane %v4614_v45, 5 }
 0x133   : > { %6824 = vmatmul.mubr.bf16.gmra.mrb[8].mxu1 %v9573_v33  ;;  %v4570_v33 = vshrl.u32 %v8901_v28, 16  ;;  %v4349_v28 = vld [vmem:[#allocation2 + $0x9c] sm:$0xf]  ;;  %v4620_v38 = vrot.slane %v4618_v39, 4  ;;  %v4638_v30 = vshll.u32 %v8963_v0, 16  ;;  %v4642_v58 = vshrl.u32 %v8963_v0, 16 }
 0x134   : > { %6827 = vmatprep.mubr.bf16.mxu1 %v9575_v12  ;;  %6856 = vmatpush3.bf16.msra.mxu1 %v7508_v59  ;;  %v4605_v59 = vshrl.u32 %v4346_v32, 16  ;;  %v4608_v12 = vshll.u32 %v4346_v32, 16  ;;  %v4583_v32 = vrot.slane %v4581_v63, 4  ;;  %v4549_v35 = vor.u32 %v4548_v27, %v8948_v51  ;;  %v8982_v63 = vld [vmem:[#allocation2 + $0x98] sm:$0x1]  ;;  %v7513_v39 = vld [vmem:[%s9520_s1 + $0x210] sm:$0xff]  }
 0x135   : > { %6857 = vmatprep.subr.bf16.mxu1 %v7510_v41  ;;  %v4572_v47 = vrot.slane %v4570_v33, 4  ;;  %v4629_v43 = vshrl.u32 %v4349_v28, 16  ;;  %v4632_v9 = vshll.u32 %v4349_v28, 16  ;;  %v4531_v42 = vsel %vm7725_vm8, %v8920_v14, %v8910_v6 }
 0x136   : > { %v4607_v50 = vrot.slane %v4605_v59, 4  ;;  %v4610_v33 = vrot.slane %v4608_v12, 5  ;;  %v8995_v20 = vrot.slane %v4539_v18, 4  ;;  %v4563_v28 = vor.u32 %v4562_v31, %v4559_v26 }
 0x137   : > { %v4576_v45 = vshll.u32 %v8959_v54, 16  ;;  %v4600_v27 = vshll.u32 %v8967_v11, 16  ;;  %v9007_v18 = vrot.slane %v4549_v35, 4  ;;  %v4631_v59 = vrot.slane %v4629_v43, 4 }
 0x138   : > { %6858 = vmatpush3.bf16.msra.mxu1 %v7510_v41  ;;  %v4596_v41 = vrot.slane %v4594_v40, 4  ;;  %v9577_v40 = vcombine.low %v8692_v7, %v8696_v10  ;;  %v4573_v7 = vor.u32 %v4572_v47, %v8965_v21  ;;  %v4587_v10 = vor.u32 %v4586_v52, %v4583_v32  ;;  %v9011_v52 = vld [vmem:[#allocation2 + $0xa4] sm:$0x1] }
 0x139   : > { %6859 = vmatprep.subr.bf16.mxu1 %v7512_v1  ;;  %7056 = vmatmul.mubr.bf16.vlgmr.msra.gmra.mrb[0].mxu0 %v8749_v29  ;;  %v4624_v29 = vshll.u32 %v8982_v63, 16  ;;  %v4634_v12 = vrot.slane %v4632_v9, 5  ;;  %v4611_v26 = vor.u32 %v4610_v33, %v4607_v50  ;;  %v4621_v31 = vor.u32 %v4620_v38, %v8984_v19  ;;  %v9020_v9 = vld [vmem:[%s9520_s1 + $0x100] sm:$0xff]  }
 0x13a   : > { %7088 = vmatpush3.bf16.msra.mxu0 %v8722_v17  ;;  %7059 = vmatprep.mubr.bf16.mxu0 %v8843_v48  ;;  %v9013_v47 = vrot.slane %v4638_v30, 5  ;;  %v4644_v32 = vrot.slane %v4642_v58, 4  ;;  %v4564_v17 = vrot.slane %v4563_v28, 4  ;;  %v4578_v48 = vrot.slane %v4576_v45, 5  ;;  %v9578_v28 = vld [vmem:[#allocation7_spill] sm:$0xff] }
 0x13b   : > { %6828 = vmatmul.mubr.bf16.gmra.mrb[12].mxu1 %v9576_v5  ;;  %7089 = vmatprep.subr.bf16.mxu0 %v7511_v44  ;;  %v4653_v35 = vshrl.u32 %v4352_v61, 16  ;;  %v4656_v5 = vshll.u32 %v4352_v61, 16  ;;  %v4588_v38 = vrot.slane %v4587_v10, 4  ;;  %v4602_v50 = vrot.slane %v4600_v27, 5 }
 0x13c   : > { %6831 = vmatprep.mubr.bf16.mxu1 %v9577_v40  ;;  %6860 = vmatpush3.bf16.msra.mxu1 %v7512_v1  ;;  %v4597_v1 = vor.u32 %v4596_v41, %v8977_v15  ;;  %v9015_v41 = vld [vmem:[#allocation2 + $0xac] sm:$0xf]  ;;  %v4574_v40 = vrot.slane %v4573_v7, 4  ;;  %v4635_v33 = vor.u32 %v4634_v12, %v4631_v59  ;;  %v4648_v30 = vshll.u32 %v9011_v52, 16  ;;  %v7515_v7 = vld [vmem:[%s9520_s1 + $0x218] sm:$0xff]  }
 0x13d   : > { %6861 = vmatprep.subr.bf16.mxu1 %v7514_v53  ;;  %v4666_v58 = vshrl.u32 %v9015_v41, 16  ;;  %v9579_v45 = vcombine.low %v8704_v56, %v9578_v28  ;;  %v4612_v10 = vrot.slane %v4611_v26, 4  ;;  %v4626_v27 = vrot.slane %v4624_v29, 5  ;;  %v9044_v12 = vld [vmem:[#allocation2 + $0xb0] sm:$0x1] }
 0x13e   : > { %v4598_v43 = vrot.slane %v4597_v1, 4  ;;  %7090 = vmatpush3.bf16.msra.mxu0 %v7511_v44  ;;  %v4622_v1 = vrot.slane %v4621_v31, 4  ;;  %v4645_v44 = vor.u32 %v4644_v32, %v9013_v47  ;;  %v9580_v61 = vcombine.low %v8741_v13, %v8745_v23 }
 0x13f   : > { %7091 = vmatprep.subr.bf16.mxu0 %v7513_v39  ;;  %v4545_v56 = vsel %vm7725_vm8, %v8995_v20, %v8948_v51  ;;  %v4555_v59 = vsel %vm7725_vm8, %v9007_v18, %v8954_v57  ;;  %v4655_v26 = vrot.slane %v4653_v35, 4  ;;  %v4658_v29 = vrot.slane %v4656_v5, 5  ;;  %v7518_v20 = vld [vmem:[%s9520_s1 + $0x220] sm:$0xff]   ;;  %v4355_v18 = vld [vmem:[#allocation2 + $0xb4] sm:$0xf] }
 0x140   : > { %6862 = vmatpush3.bf16.msra.mxu1 %v7514_v53  ;;  %v4662_v53 = vshll.u32 %v9015_v41, 16  ;;  %v4569_v13 = vsel %vm7725_vm8, %v4564_v17, %v8965_v21  ;;  %v4579_v23 = vsel %vm7725_vm8, %v4574_v40, %v4578_v48  ;;  %v4593_v51 = vsel %vm7725_vm8, %v4588_v38, %v8977_v15 }
 0x141   : > { %7135 = vmatprep.subr.bf16.mxu1 %v9020_v9  ;;  %7060 = vmatmul.mubr.bf16.gmra.mrb[4].mxu0 %v8849_v24  ;;  %v4603_v57 = vsel %vm7725_vm8, %v4598_v43, %v4602_v50  ;;  %v9060_v24 = vld [vmem:[#allocation2 + $0xb8] sm:$0xf]  ;;  %v9063_v21 = vrot.slane %v4635_v33, 4  ;;  %v9065_v31 = vrot.slane %v4648_v30, 5  ;;  %v4668_v15 = vrot.slane %v4666_v58, 4 }
 0x142   : > { %7063 = vmatprep.mubr.bf16.mxu0 %v8895_v25  ;;  %7092 = vmatpush3.bf16.msra.mxu0 %v7513_v39  ;;  %v9067_v32 = vrot.slane %v4662_v53, 5  ;;  %v4617_v17 = vsel %vm7725_vm8, %v4612_v10, %v8984_v19  ;;  %v4627_v48 = vsel %vm7725_vm8, %v4622_v1, %v4626_v27  ;;  %v9074_v35 = vrot.slane %v4645_v44, 4  ;;  %v5074_v53 = vld [vmem:[#allocation2 + $0x48] sm:$0xe]  ;;  %v9117_v1 = vld [vmem:[#allocation2 + $0xbc] sm:$0x1] }
 0x143   : > { %6832 = vmatmul.mubr.bf16.gmra.mrb[16].mxu1 %v9579_v45  ;;  %7093 = vmatprep.subr.bf16.mxu0 %v7515_v7  ;;  %v4672_v25 = vshll.u32 %v9044_v12, 16  ;;  %v6042_v39 = vcombine.low %v8908_v60, %v8916_v4  ;;  %v4659_v5 = vor.u32 %v4658_v29, %v4655_v26  ;;  %v4677_v40 = vshrl.u32 %v4355_v18, 16  ;;  %v5075_v45 = vld [vmem:[#allocation2 + $0x54] sm:$0xe]  ;;  %v9584_v26 = vld [vmem:[#allocation8_spill] sm:$0xff] }
 0x144   : > { %6835 = vmatprep.mubr.bf16.mxu1 %v9580_v61  ;;  %v4680_v38 = vshll.u32 %v4355_v18, 16  ;;  %v9581_v19 = vsel %vm7725_vm8, %v8899_v22, %v8857_v55  ;;  %v6043_v50 = vcombine.low %v8939_v46, %v8974_v8  ;;  %v9091_v33 = vcombine.low %v4545_v56, %v4555_v59  ;;  %v5076_v56 = vld [vmem:[#allocation2 + $0x60] sm:$0xe]  ;;  %v5080_v46 = vld [vmem:[#allocation2 + $0x90] sm:$0xe] }
 0x145   : > { %v6250_v43 = vcombine.low %v9581_v19, %v4531_v42  ;;  %v4686_v30 = vshll.u32 %v9060_v24, 16  ;;  %v9094_v58 = vcombine.low %v4569_v13, %v4579_v23  ;;  %v9096_v28 = vcombine.low %v4593_v51, %v4603_v57  ;;  %v9585_v51 = vld [vmem:[#allocation9_spill] sm:$0xff] }
 0x146   : > { %7094 = vmatpush3.bf16.msra.mxu0 %v7515_v7  ;;  %v9098_v6 = vcombine.low %v4617_v17, %v4627_v48  ;;  %v4669_v14 = vor.u32 %v4668_v15, %v9067_v32  ;;  %v9582_v55 = vcombine.low %v8768_v2, %v8795_v3  ;;  %v4641_v22 = vsel %vm7725_vm8, %v9063_v21, %v9013_v47  ;;  %v7521_v7 = vld [vmem:[%s9520_s1 + $0x228] sm:$0xff]  }
 0x147   : > { %7095 = vmatprep.subr.bf16.mxu0 %v7518_v20  ;;  %v4651_v42 = vsel %vm7725_vm8, %v9074_v35, %v9065_v31  ;;  %v9115_v10 = vrot.slane %v4672_v25, 5  ;;  %v4690_v2 = vshrl.u32 %v9060_v24, 16  ;;  %v9583_v3 = vcombine.low %v8847_v49, %v8853_v16  ;;  %v5077_v21 = vld [vmem:[#allocation2 + $0x6c] sm:$0xe]  ;;  %v7524_v31 = vld [vmem:[%s9520_s1 + $0x230] sm:$0xff]  }
 0x148   : > { %v9123_v47 = vrot.slane %v4659_v5, 4  ;;  %v9125_v27 = vrot.slane %v4677_v40, 4  ;;  %v9127_v44 = vrot.slane %v4680_v38, 5  ;;  %v6272_v61 = vrot.slane %v5074_v53, 9  ;;  %v9588_v5 = vld [vmem:[#allocation11_spill] sm:$0xff] }
 0x149   : > { %7064 = vmatmul.mubr.bf16.gmra.mrb[8].mxu0 %v8912_v62  ;;  %v9130_v59 = vrot.slane %v4686_v30, 5  ;;  %v5164_v29 = vrot.slane %v9584_v26, 5  ;;  %v5167_v13 = vrot.slane %v8785_v36, 5  ;;  %v6273_v23 = vrot.slane %v5075_v45, 9  ;;  %v4358_v38 = vld [vmem:[#allocation2 + $0xc0] sm:$0xf] }
 0x14a   : > { %7067 = vmatprep.mubr.bf16.mxu0 %v6250_v43  ;;  %7096 = vmatpush3.bf16.msra.mxu0 %v7518_v20  ;;  %v9134_v49 = vrot.slane %v4669_v14, 4  ;;  %v4696_v16 = vshll.u32 %v9117_v1, 16  ;;  %v5171_v57 = vrot.slane %v9585_v51, 5  ;;  %v5174_v18 = vrot.slane %v8802_v34, 5  ;;  %v9587_v34 = vld [vmem:[#allocation10_spill] sm:$0xff]  ;;  %v9590_v14 = vld [vmem:[#allocation15_spill] sm:$0xff] }
 0x14b   : > { %6836 = vmatmul.mubr.bf16.gmra.mrb[20].mxu1 %v9582_v55  ;;  %7097 = vmatprep.subr.bf16.mxu0 %v7521_v7  ;;  %v9139_v62 = vrot.slane %v4690_v2, 4  ;;  %v9146_v15 = vsel %vm7909_vm14, %v6272_v61, %v5164_v29  ;;  %v5166_v20 = vrot.slane %v5164_v29, 4  ;;  %v6274_v17 = vrot.slane %v5076_v56, 9  ;;  %v9589_v30 = vld [vmem:[#allocation14_spill] sm:$0xff]  ;;  %v9591_v56 = vld [vmem:[#allocation12_spill] sm:$0xff]  ;;  %v9592_v26 = vld [vmem:[#allocation13_spill] sm:$0xff] }
 0x14c   : > { %6839 = vmatprep.mubr.bf16.mxu1 %v9583_v3  ;;  %v9150_v48 = vsel %vm7909_vm14, %v6273_v23, %v5171_v57  ;;  %v5173_v35 = vrot.slane %v5171_v57, 4  ;;  %v5178_v25 = vrot.slane %v9587_v34, 5  ;;  %v5181_v40 = vrot.slane %v9588_v5, 5  ;;  %v7527_v23 = vld [vmem:[%s9520_s1 + $0x238] sm:$0xff]  }
 0x14d   : > { %v9156_v19 = vsel %vm7909_vm14, %v5166_v20, %v5167_v13  ;;  %v6275_v43 = vrot.slane %v5077_v21, 9  ;;  %v5185_v53 = vrot.slane %v9589_v30, 5  ;;  %v5188_v45 = vrot.slane %v9590_v14, 5  ;;  %v9595_v14 = vld [vmem:[#allocation5_spill] sm:$0xff] }
 0x14e   : > { %7098 = vmatpush3.bf16.msra.mxu0 %v7521_v7  ;;  %v6304_v55 = vcombine.low %v9146_v15, %v9156_v19  ;;  %v9164_v2 = vsel %vm7909_vm14, %v5173_v35, %v5174_v18  ;;  %v9168_v3 = vsel %vm7909_vm14, %v6274_v17, %v5178_v25  ;;  %v5180_v61 = vrot.slane %v5178_v25, 4  ;;  %v9175_v7 = vld [vmem:[#allocation2 + $0xc4] sm:$0xf]  ;;  %v5078_v17 = vld [vmem:[#allocation2 + $0x78] sm:$0xe]  ;;  %v7533_v19 = vld [vmem:[#allocation2 + $0xa8] sm:$0xff]  }
 0x14f   : > { %v9593_v29 = vcombine.low %v9591_v56, %v9592_v26  ;;  %v9173_v13 = vcombine.low %v4641_v22, %v4651_v42  ;;  %7099 = vmatprep.subr.bf16.mxu0 %v7524_v31  ;;  %v6305_v51 = vcombine.low %v9150_v48, %v9164_v2  ;;  %v9184_v57 = vsel %vm7909_vm14, %v6275_v43, %v5185_v53  ;;  %v2710_v15 = vld [vmem:[#allocation2 + $0x90] sm:$0xf]  ;;  %v7600_v48 = vld [vmem:[#allocation2 + $0x94] sm:$0xf] }
 0x150   : > { %v5187_v18 = vrot.slane %v5185_v53, 4  ;;  %v4665_v22 = vsel %vm7725_vm8, %v9123_v47, %v9067_v32  ;;  %v4701_v42 = vshrl.u32 %v4358_v38, 16  ;;  %v4704_v21 = vshll.u32 %v4358_v38, 16  ;;  %v2704_v32 = vld [vmem:[#allocation2 + $0x78] sm:$0xf]  ;;  %v7516_v38 = vld [vmem:[#allocation2 + $0xc] sm:$0xff]  }
 0x151   : > { %v9195_v20 = vsel %vm7909_vm14, %v5180_v61, %v5181_v40  ;;  %7068 = vmatmul.mubr.bf16.gmra.mrb[12].mxu0 %v9091_v33  ;;  %v4683_v35 = vor.u32 %v9127_v44, %v9125_v27  ;;  %v9200_v34 = vrot.slane %v4696_v16, 5  ;;  %v4693_v33 = vor.u32 %v9139_v62, %v9130_v59  ;;  %v5079_v44 = vld [vmem:[#allocation2 + $0x84] sm:$0xe] }
 0x152   : > { %v6306_v60 = vcombine.low %v9168_v3, %v9195_v20  ;;  %v9206_v4 = vsel %vm7909_vm14, %v5187_v18, %v5188_v45  ;;  %7071 = vmatprep.mubr.bf16.mxu0 %v9094_v58  ;;  %7100 = vmatpush3.bf16.msra.mxu0 %v7524_v31  ;;  %v4710_v47 = vshll.u32 %v9175_v7, 16  ;;  %v4714_v16 = vshrl.u32 %v9175_v7, 16  ;;  %v9594_v58 = vld [vmem:[#allocation16_spill] sm:$0xff]  ;;  %v4361_v31 = vld [vmem:[#allocation2 + $0xcc] sm:$0xf]  ;;  %v9596_v45 = vld [vmem:[#allocation6_spill] sm:$0xff] }
 0x153   : > { %6840 = vmatmul.mubr.bf16.gmra.mrb[24].mxu1 %v9593_v29  ;;  %v6307_v27 = vcombine.low %v9184_v57, %v9206_v4  ;;  %7101 = vmatprep.subr.bf16.mxu0 %v7527_v23  ;;  %v6276_v25 = vrot.slane %v5078_v17, 9  ;;  %v5192_v5 = vrot.slane %v9594_v58, 5  ;;  %v5195_v40 = vrot.slane %v8959_v54, 5  ;;  %v9231_v54 = vld [vmem:[#allocation2 + $0xd0] sm:$0xf] }
 0x154   : > { %6843 = vmatprep.mubr.bf16.mxu1 %v6042_v39  ;;  %v4675_v39 = vsel %vm7725_vm8, %v9134_v49, %v9115_v10  ;;  %v4703_v10 = vrot.slane %v4701_v42, 4  ;;  %v4706_v49 = vrot.slane %v4704_v21, 5  ;;  %v2942_v43 = vshrl.u32 %v2704_v32, 16  ;;  %v9236_v21 = vld [vmem:[#allocation2 + $0xc8] sm:$0x1] }
 0x155   : > { %v2945_v62 = vshll.u32 %v2704_v32, 16  ;;  %v9223_v30 = vsel %vm7909_vm14, %v6276_v25, %v5192_v5  ;;  %v5194_v53 = vrot.slane %v5192_v5, 4  ;;  %v2964_v61 = vsel %vm7725_vm8, %v9596_v45, %v9595_v14  ;;  %v7519_v14 = vld [vmem:[#allocation2 + $0x24] sm:$0xff]   ;;  %v7603_v57 = vld [vmem:[#allocation2 + $0x98] sm:$0x1] }
 0x156   : > { %v6277_v56 = vrot.slane %v5079_v44, 9  ;;  %v6256_v26 = vcombine.low %v4665_v22, %v4675_v39  ;;  %v9229_v29 = vrot.slane %v4710_v47, 5  ;;  %7102 = vmatpush3.bf16.msra.mxu0 %v7527_v23  ;;  %v2944_v18 = vrot.slane %v2942_v43, 4  ;;  %v9597_v44 = vld [vmem:[#allocation17_spill] sm:$0xff] }
 0x157   : > { %v2947_v42 = vrot.slane %v2945_v62, 5  ;;  %v4716_v17 = vrot.slane %v4714_v16, 4  ;;  %v9240_v32 = vsel %vm7909_vm14, %v5194_v53, %v5195_v40  ;;  %v5199_v22 = vrot.slane %v9597_v44, 5 }
 0x158   : > { %v5202_v39 = vrot.slane %v8967_v11, 5  ;;  %v4707_v47 = vor.u32 %v4706_v49, %v4703_v10  ;;  %v4725_v23 = vshrl.u32 %v4361_v31, 16  ;;  %v6308_v25 = vcombine.low %v9223_v30, %v9240_v32  ;;  %v7517_v49 = vld [vmem:[#allocation2 + $0x18] sm:$0xff]   ;;  %v7604_v32 = vld [vmem:[#allocation2 + $0xa4] sm:$0x1] }
 0x159   : > { %v2948_v58 = vor.u32 %v2947_v42, %v2944_v18  ;;  %7072 = vmatmul.mubr.bf16.gmra.mrb[16].mxu0 %v9096_v28  ;;  %v4728_v8 = vshll.u32 %v4361_v31, 16  ;;  %v9250_v16 = vsel %vm7909_vm14, %v6277_v56, %v5199_v22  ;;  %v5201_v5 = vrot.slane %v5199_v22, 4  ;;  %v9598_v31 = vld [vmem:[#allocation18_spill] sm:$0xff] }
 0x15a   : > { %7075 = vmatprep.mubr.bf16.mxu0 %v9098_v6  ;;  %v4684_v11 = vrot.slane %v4683_v35, 4  ;;  %v4720_v40 = vshll.u32 %v9236_v21, 16  ;;  %v4717_v43 = vor.u32 %v4716_v17, %v9229_v29  ;;  %v6278_v62 = vrot.slane %v5080_v46, 9  ;;  %v9599_v6 = vld [vmem:[#allocation4_spill] sm:$0xff] }
 0x15b   : > { %6844 = vmatmul.mubr.bf16.gmra.mrb[28].mxu1 %v6043_v50  ;;  %v4734_v50 = vshll.u32 %v9231_v54, 16  ;;  %v2949_v10 = vrot.slane %v2948_v58, 4  ;;  %v9258_v28 = vsel %vm7909_vm14, %v5201_v5, %v5202_v39  ;;  %v5206_v53 = vrot.slane %v9598_v31, 5  ;;  %v5081_v31 = vld [vmem:[#allocation2 + $0x9c] sm:$0xe] }
 0x15c   : > { %6863 = vmatprep.mubr.bf16.mxu1 %v7516_v38  ;;  %v4738_v38 = vshrl.u32 %v9231_v54, 16  ;;  %v4694_v45 = vrot.slane %v4693_v33, 4  ;;  %v4708_v56 = vrot.slane %v4707_v47, 4  ;;  %v6309_v18 = vcombine.low %v9250_v16, %v9258_v28 }
 0x15d   : > { %v2954_v35 = vsel %vm7725_vm8, %v2949_v10, %v9599_v6  ;;  %v4727_v42 = vrot.slane %v4725_v23, 4  ;;  %v4730_v44 = vrot.slane %v4728_v8, 5  ;;  %v9266_v17 = vrot.slane %v4734_v50, 5  ;;  %v9275_v10 = vld [vmem:[#allocation2 + $0xd4] sm:$0x1] }
 0x15e   : > { %v9268_v22 = vcombine.low %v2954_v35, %v2964_v61  ;;  %v4740_v39 = vrot.slane %v4738_v38, 4  ;;  %v9272_v58 = vsel %vm7909_vm14, %v6278_v62, %v5206_v53  ;;  %v5208_v33 = vrot.slane %v5206_v53, 4  ;;  %v5070_v38 = vld [vmem:[#allocation2 + $0x18] sm:$0xe] }
 0x15f   : > { %v5209_v47 = vrot.slane %v8982_v63, 5  ;;  %v4718_v46 = vrot.slane %v4717_v43, 4  ;;  %v4722_v5 = vrot.slane %v4720_v40, 5  ;;  %v4689_v61 = vsel %vm7725_vm8, %v4684_v11, %v9130_v59  ;;  %v7582_v63 = vld [vmem:[%s9520_s1 + $0x108] sm:$0xff]  }
 0x160   : > { %v4713_v8 = vsel %vm7725_vm8, %v4708_v56, %v9229_v29  ;;  %v4731_v50 = vor.u32 %v4730_v44, %v4727_v42  ;;  %v4741_v11 = vor.u32 %v4740_v39, %v9266_v17  ;;  %v4744_v40 = vshll.u32 %v9275_v10, 16 }
 0x161   : > { %v9283_v23 = vsel %vm7909_vm14, %v5208_v33, %v5209_v47  ;;  %7076 = vmatmul.mubr.bf16.gmra.mrb[20].mxu0 %v9173_v13  ;;  %v7520_v13 = vld [vmem:[#allocation2 + $0x30] sm:$0xff]   ;;  %v4723_v43 = vsel %vm7725_vm8, %v4718_v46, %v4722_v5  ;;  %v5213_v53 = vrot.slane %v8963_v0, 5  ;;  %v5216_v29 = vrot.slane %v9011_v52, 5  ;;  %v5082_v33 = vld [vmem:[#allocation2 + $0xa8] sm:$0xe] }
 0x162   : > { %v6310_v59 = vcombine.low %v9272_v58, %v9283_v23  ;;  %7079 = vmatprep.mubr.bf16.mxu0 %v6256_v26  ;;  %v7584_v26 = vld [vmem:[%s9520_s1 + $0x110] sm:$0xff]   ;;  %v6268_v56 = vrot.slane %v5070_v38, 9  ;;  %v6258_v42 = vcombine.low %v4713_v8, %v4723_v43  ;;  %v4732_v44 = vrot.slane %v4731_v50, 4  ;;  %v7585_v47 = vld [vmem:[#allocation2 + $0x20] sm:$0x1]  ;;  %v7523_v43 = vld [vmem:[#allocation2 + $0x48] sm:$0xff]  }
 0x163   : > { %6864 = vmatmul.mubr.bf16.vlgmr.msra.gmra.mrb[0].mxu1 %v7517_v49  ;;  %v6279_v49 = vrot.slane %v5081_v31, 9  ;;  %v5215_v35 = vrot.slane %v5213_v53, 4  ;;  %v4742_v39 = vrot.slane %v4741_v11, 4  ;;  %v4746_v0 = vrot.slane %v4744_v40, 5 }
 0x164   : > { %7143 = vmatpush3.bf16.msra.mxu1 %v9020_v9  ;;  %6867 = vmatprep.mubr.bf16.mxu1 %v7519_v14  ;;  %v4699_v9 = vsel %vm7725_vm8, %v4694_v45, %v9200_v34  ;;  %v7583_v34 = vld [vmem:[#allocation2 + $0x1c] sm:$0xf]  ;;  %v5139_v46 = vrot.slane %v7585_v47, 5  ;;  %v6280_v8 = vrot.slane %v5082_v33, 9  ;;  %v5220_v50 = vrot.slane %v9015_v41, 5 }
 0x165   : > { %7136 = vmatprep.subr.bf16.mxu1 %v7582_v63  ;;  %v5136_v62 = vrot.slane %v7583_v34, 5  ;;  %v7522_v14 = vld [vmem:[#allocation2 + $0x3c] sm:$0xff]   ;;  %v6257_v45 = vcombine.low %v4689_v61, %v4699_v9  ;;  %v9308_v6 = vsel %vm7909_vm14, %v6279_v49, %v5213_v53  ;;  %v9312_v5 = vsel %vm7909_vm14, %v5215_v35, %v5216_v29  ;;  %v5071_v49 = vld [vmem:[#allocation2 + $0x24] sm:$0xe]  ;;  %v7588_v53 = vld [vmem:[#allocation2 + $0x34] sm:$0xf] }
 0x166   : > { %v6311_v31 = vcombine.low %v9308_v6, %v9312_v5  ;;  %v7586_v61 = vld [vmem:[%s9520_s1 + $0x118] sm:$0xff]   ;;  %v4737_v11 = vsel %vm7725_vm8, %v4732_v44, %v9266_v17  ;;  %v4747_v40 = vsel %vm7725_vm8, %v4742_v39, %v4746_v0  ;;  %v5150_v41 = vrot.slane %v7588_v53, 5  ;;  %v7590_v39 = vld [vmem:[#allocation2 + $0x2c] sm:$0x1]  ;;  %v7526_v53 = vld [vmem:[#allocation2 + $0x60] sm:$0xff]  }
 0x167   : > { %v5138_v52 = vrot.slane %v5136_v62, 4  ;;  %v5137_v38 = vsel %vm7909_vm14, %v6268_v56, %v5136_v62  ;;  %v9332_v29 = vsel %vm7909_vm14, %v6280_v8, %v5220_v50  ;;  %v5222_v17 = vrot.slane %v5220_v50, 4 }
 0x168   : > { %7144 = vmatpush3.bf16.msra.mxu1 %v7582_v63  ;;  %v7587_v63 = vld [vmem:[#allocation2 + $0x28] sm:$0xf]  ;;  %v6259_v35 = vcombine.low %v4737_v11, %v4747_v40  ;;  %v6269_v62 = vrot.slane %v5071_v49, 9  ;;  %v5146_v0 = vrot.slane %v7590_v39, 5  ;;  %v5227_v8 = vrot.slane %v9060_v24, 5 }
 0x169   : > { %7137 = vmatprep.subr.bf16.mxu1 %v7584_v26  ;;  %7080 = vmatmul.mubr.bf16.gmra.mrb[24].mxu0 %v6257_v45  ;;  %v5143_v9 = vrot.slane %v7587_v63, 5  ;;  %v5140_v34 = vsel %vm7909_vm14, %v5138_v52, %v5139_v46  ;;  %v5072_v45 = vld [vmem:[#allocation2 + $0x30] sm:$0xe]  ;;  %v5152_v46 = vrot.slane %v5150_v41, 4  ;;  %v5230_v50 = vrot.slane %v9117_v1, 5  ;;  %v7592_v11 = vld [vmem:[%s9520_s1 + $0x128] sm:$0xff]  }
 0x16a   : > { %7083 = vmatprep.mubr.bf16.mxu0 %v6258_v42  ;;  %v6300_v44 = vcombine.low %v5137_v38, %v5140_v34  ;;  %v6270_v47 = vrot.slane %v5072_v45, 9  ;;  %v5229_v38 = vrot.slane %v5227_v8, 4  ;;  %v7593_v1 = vld [vmem:[#allocation2 + $0x40] sm:$0xf]  ;;  %v7528_v45 = vld [vmem:[#allocation2 + $0x6c] sm:$0xff]   ;;  %v2999_v2 = vshll.u32 %v7600_v48, 16 }
 0x16b   : > { %6868 = vmatmul.mubr.bf16.gmra.mrb[4].mxu1 %v7520_v13  ;;  %v5223_v13 = vrot.slane %v9044_v12, 5  ;;  %v7589_v12 = vld [vmem:[%s9520_s1 + $0x120] sm:$0xff]   ;;  %v5145_v56 = vrot.slane %v5143_v9, 4  ;;  %v5144_v49 = vsel %vm7909_vm14, %v6269_v62, %v5143_v9  ;;  %v7594_v62 = vld [vmem:[%s9520_s1 + $0x130] sm:$0xff]   ;;  %v3009_v4 = vshll.u32 %v7603_v57, 16 }
 0x16c   : > { %6871 = vmatprep.mubr.bf16.mxu1 %v7522_v14  ;;  %7145 = vmatpush3.bf16.msra.mxu1 %v7584_v26  ;;  %v5083_v14 = vld [vmem:[#allocation2 + $0xb4] sm:$0xe]  ;;  %v5084_v34 = vld [vmem:[#allocation2 + $0xc0] sm:$0xe] }
 0x16d   : > { %7138 = vmatprep.subr.bf16.mxu1 %v7586_v61  ;;  %v7525_v26 = vld [vmem:[#allocation2 + $0x54] sm:$0xff]   ;;  %v9339_v42 = vsel %vm7909_vm14, %v5222_v17, %v5223_v13  ;;  %v6281_v52 = vrot.slane %v5083_v14, 9  ;;  %v5147_v24 = vsel %vm7909_vm14, %v5145_v56, %v5146_v0  ;;  %v5073_v13 = vld [vmem:[#allocation2 + $0x3c] sm:$0xe]  ;;  %v5151_v17 = vsel %vm7909_vm14, %v6270_v47, %v5150_v41  ;;  %v7595_v0 = vld [vmem:[#allocation2 + $0x44] sm:$0x1] }
 0x16e   : > { %v6312_v33 = vcombine.low %v9332_v29, %v9339_v42  ;;  %v6282_v41 = vrot.slane %v5084_v34, 9  ;;  %v5234_v56 = vrot.slane %v9175_v7, 5  ;;  %v5237_v47 = vrot.slane %v9236_v21, 5  ;;  %v7596_v7 = vld [vmem:[%s9520_s1 + $0x138] sm:$0xff]  }
 0x16f   : > { %v9350_v40 = vsel %vm7909_vm14, %v6281_v52, %v5227_v8  ;;  %v5160_v52 = vrot.slane %v7595_v0, 5  ;;  %v5244_v34 = vrot.slane %v9275_v10, 5  ;;  %v7531_v10 = vld [vmem:[#allocation2 + $0x90] sm:$0xff]  }
 0x170   : > { %7146 = vmatpush3.bf16.msra.mxu1 %v7586_v61  ;;  %v7591_v61 = vld [vmem:[#allocation2 + $0x38] sm:$0x1] }
 0x171   : > { %7139 = vmatprep.subr.bf16.mxu1 %v7589_v12  ;;  %v5153_v63 = vrot.slane %v7591_v61, 5  ;;  %7084 = vmatmul.mubr.bf16.gmra.mrb[28].mxu0 %v6259_v35  ;;  %v6301_v35 = vcombine.low %v5144_v49, %v5147_v24  ;;  %v5236_v61 = vrot.slane %v5234_v56, 4  ;;  %v7529_v49 = vld [vmem:[#allocation2 + $0x78] sm:$0xff]   ;;  %v2701_v24 = vld [vmem:[#allocation2 + $0x6c] sm:$0xf] }
 0x172   : > { %7103 = vmatprep.mubr.bf16.mxu0 %v6300_v44 }
 0x173   : > { %6872 = vmatmul.mubr.bf16.gmra.mrb[8].mxu1 %v7523_v43  ;;  %v5157_v43 = vrot.slane %v7593_v1, 5  ;;  %v5154_v14 = vsel %vm7909_vm14, %v5152_v46, %v5153_v63  ;;  %v9373_v46 = vsel %vm7909_vm14, %v6282_v41, %v5234_v56  ;;  %v5085_v63 = vld [vmem:[#allocation2 + $0xcc] sm:$0xe]  ;;  %v9380_v8 = vsel %vm7909_vm14, %v5236_v61, %v5237_v47  ;;  %v7530_v1 = vld [vmem:[#allocation2 + $0x84] sm:$0xff]   ;;  %v7598_v61 = vld [vmem:[#allocation2 + $0x74] sm:$0x1] }
 0x174   : > { %6875 = vmatprep.mubr.bf16.mxu1 %v7525_v26  ;;  %7147 = vmatpush3.bf16.msra.mxu1 %v7589_v12  ;;  %v9362_v26 = vsel %vm7909_vm14, %v5229_v38, %v5230_v50  ;;  %v6271_v12 = vrot.slane %v5073_v13, 9  ;;  %v6302_v44 = vcombine.low %v5151_v17, %v5154_v14  ;;  %v6283_v38 = vrot.slane %v5085_v63, 9  ;;  %v2707_v47 = vld [vmem:[#allocation2 + $0x84] sm:$0xf] }
 0x175   : > { %7140 = vmatprep.subr.bf16.mxu1 %v7592_v11  ;;  %v6313_v9 = vcombine.low %v9350_v40, %v9362_v26  ;;  %v5159_v39 = vrot.slane %v5157_v43, 4  ;;  %v5241_v13 = vrot.slane %v9231_v54, 5  ;;  %v2918_v14 = vshrl.u32 %v2701_v24, 16 }
 0x176   : > { %v5158_v21 = vsel %vm7909_vm14, %v6271_v12, %v5157_v43  ;;  %v2937_v36 = vshll.u32 %v7598_v61, 16 }
 0x177   : > { %v5161_v50 = vsel %vm7909_vm14, %v5159_v39, %v5160_v52  ;;  %v9392_v17 = vsel %vm7909_vm14, %v6283_v38, %v5241_v13  ;;  %v5243_v43 = vrot.slane %v5241_v13, 4  ;;  %v2920_v56 = vrot.slane %v2918_v14, 4  ;;  %v7532_v52 = vld [vmem:[#allocation2 + $0x9c] sm:$0xff]   ;;  %v7599_v38 = vld [vmem:[#allocation2 + $0x88] sm:$0xf]  ;;  %v7534_v14 = vld [vmem:[#allocation2 + $0xb4] sm:$0xff]  }
 0x178   : > { %7148 = vmatpush3.bf16.msra.mxu1 %v7592_v11  ;;  %v6314_v11 = vcombine.low %v9373_v46, %v9380_v8 }
 0x179   : > { %7141 = vmatprep.subr.bf16.mxu1 %v7594_v62  ;;  %7104 = vmatmul.mubr.bf16.vlgmr.msra.gmra.mrb[0].mxu0 %v6301_v35  ;;  %v7597_v35 = vld [vmem:[#allocation2 + $0x70] sm:$0xf]  ;;  %v9396_v41 = vsel %vm7909_vm14, %v5243_v43, %v5244_v34  ;;  %v2713_v43 = vld [vmem:[#allocation2 + $0x9c] sm:$0xf] }
 0x17a   : > { %7107 = vmatprep.mubr.bf16.mxu0 %v6302_v44  ;;  %v2927_v12 = vshll.u32 %v7597_v35, 16  ;;  %v6315_v54 = vcombine.low %v9392_v17, %v9396_v41 }
 0x17b   : > { %6876 = vmatmul.mubr.bf16.gmra.mrb[12].mxu1 %v7526_v53  ;;  %v6303_v53 = vcombine.low %v5158_v21, %v5161_v50  ;;  %v2966_v21 = vshrl.u32 %v2707_v47, 16  ;;  %v2969_v50 = vshll.u32 %v2707_v47, 16 }
 0x17c   : > { %6879 = vmatprep.mubr.bf16.mxu1 %v7528_v45  ;;  %7149 = vmatpush3.bf16.msra.mxu1 %v7594_v62  ;;  %v2921_v45 = vshll.u32 %v2701_v24, 16  ;;  %v2931_v62 = vshrl.u32 %v7597_v35, 16  ;;  %v2929_v39 = vrot.slane %v2927_v12, 5  ;;  %v2979_v24 = vshrl.u32 %v7599_v38, 16 }
 0x17d   : > { %7142 = vmatprep.subr.bf16.mxu1 %v7596_v7  ;;  %v2968_v34 = vrot.slane %v2966_v21, 4  ;;  %v2990_v12 = vshrl.u32 %v2710_v15, 16  ;;  %v9419_v21 = vrot.slane %v2999_v2, 5 }
 0x17e   : > { %v2923_v44 = vrot.slane %v2921_v45, 5  ;;  %v2933_v0 = vrot.slane %v2931_v62, 4  ;;  %v2981_v35 = vrot.slane %v2979_v24, 4  ;;  %v2993_v62 = vshll.u32 %v2710_v15, 16  ;;  %v7535_v15 = vld [vmem:[#allocation2 + $0xc0] sm:$0xff]  }
 0x180   : > { %7150 = vmatpush3.bf16.msra.mxu1 %v7596_v7  ;;  %v2924_v63 = vor.u32 %v2923_v44, %v2920_v56  ;;  %v2934_v7 = vor.u32 %v2933_v0, %v2929_v39  ;;  %v3017_v56 = vshll.u32 %v2713_v43, 16  ;;  %v7601_v44 = vld [vmem:[#allocation2 + $0xa0] sm:$0xf] }
 0x181   : > { %7108 = vmatmul.mubr.bf16.gmra.mrb[4].mxu0 %v6303_v53  ;;  %v2971_v53 = vrot.slane %v2969_v50, 5  ;;  %v3023_v3 = vshll.u32 %v7601_v44, 16  ;;  %v3027_v20 = vshrl.u32 %v7601_v44, 16  ;;  %v3011_v44 = vrot.slane %v3009_v4, 5 }
 0x182   : > { %7111 = vmatprep.mubr.bf16.mxu0 %v6304_v55  ;;  %v2939_v55 = vrot.slane %v2937_v36, 5  ;;  %v2925_v13 = vrot.slane %v2924_v63, 4  ;;  %v2992_v63 = vrot.slane %v2990_v12, 4 }
 0x183   : > { %6880 = vmatmul.mubr.bf16.gmra.mrb[16].mxu1 %v7529_v49  ;;  %v2975_v49 = vshll.u32 %v7599_v38, 16  ;;  %v2972_v61 = vor.u32 %v2971_v53, %v2968_v34  ;;  %v3019_v38 = vrot.slane %v3017_v56, 5  ;;  %v3029_v24 = vrot.slane %v3027_v20, 4 }
 0x184   : > { %6883 = vmatprep.mubr.bf16.mxu1 %v7530_v1  ;;  %v2935_v1 = vrot.slane %v2934_v7, 4  ;;  %v2995_v7 = vrot.slane %v2993_v62, 5  ;;  %v7605_v62 = vld [vmem:[#allocation2 + $0xac] sm:$0xf] }
 0x185   : > { %v9409_v45 = vrot.slane %v2975_v49, 5  ;;  %v9424_v49 = vrot.slane %v3023_v3, 5  ;;  %v3051_v2 = vshrl.u32 %v7605_v62, 16 }
 0x186   : > { %v2940_v0 = vsel %vm7725_vm8, %v2935_v1, %v2939_v55  ;;  %v2996_v34 = vor.u32 %v2995_v7, %v2992_v63 }
 0x187   : > { %v2982_v36 = vor.u32 %v2981_v35, %v9409_v45  ;;  %v3030_v30 = vor.u32 %v3029_v24, %v9424_v49 }
 0x188   : > { %v2997_v56 = vrot.slane %v2996_v34, 4 }
 0x189   : > { %7112 = vmatmul.mubr.bf16.gmra.mrb[8].mxu0 %v6305_v51  ;;  %v3003_v51 = vshrl.u32 %v7600_v48, 16  ;;  %v2983_v1 = vrot.slane %v2982_v36, 4  ;;  %v3047_v48 = vshll.u32 %v7605_v62, 16 }
 0x18a   : > { %7115 = vmatprep.mubr.bf16.mxu0 %v6306_v60  ;;  %v2930_v60 = vsel %vm7725_vm8, %v2925_v13, %v2929_v39  ;;  %v2973_v13 = vrot.slane %v2972_v61, 4  ;;  %v3031_v61 = vrot.slane %v3030_v30, 4 }
 0x18b   : > { %6884 = vmatmul.mubr.bf16.gmra.mrb[20].mxu1 %v7531_v10  ;;  %v3014_v10 = vshrl.u32 %v2713_v43, 16  ;;  %v3005_v50 = vrot.slane %v3003_v51, 4 }
 0x18c   : > { %6887 = vmatprep.mubr.bf16.mxu1 %v7532_v52  ;;  %v7602_v52 = vld [vmem:[#allocation2 + $0x8c] sm:$0x1]  ;;  %v2978_v51 = vsel %vm7725_vm8, %v2973_v13, %v9409_v45 }
 0x18d   : > { %v2985_v47 = vshll.u32 %v7602_v52, 16  ;;  %v3016_v39 = vrot.slane %v3014_v10, 4  ;;  %v3006_v53 = vor.u32 %v3005_v50, %v9419_v21  ;;  %v3049_v50 = vrot.slane %v3047_v48, 5 }
 0x18f   : > { %v2987_v55 = vrot.slane %v2985_v47, 5  ;;  %v3020_v43 = vor.u32 %v3019_v38, %v3016_v39  ;;  %v3007_v47 = vrot.slane %v3006_v53, 4  ;;  %v3053_v39 = vrot.slane %v3051_v2, 4 }
 0x191   : > { %7116 = vmatmul.mubr.bf16.gmra.mrb[12].mxu0 %v6307_v27  ;;  %v2716_v27 = vld [vmem:[#allocation2 + $0xa8] sm:$0xf]  ;;  %v2988_v10 = vsel %vm7725_vm8, %v2983_v1, %v2987_v55  ;;  %v3021_v45 = vrot.slane %v3020_v43, 4  ;;  %v3012_v58 = vsel %vm7725_vm8, %v3007_v47, %v3011_v44  ;;  %v3054_v13 = vor.u32 %v3053_v39, %v3049_v50  ;;  %v7607_v1 = vld [vmem:[#allocation2 + $0xb0] sm:$0x1] }
 0x192   : > { %7119 = vmatprep.mubr.bf16.mxu0 %v6308_v25  ;;  %v3033_v25 = vshll.u32 %v7604_v32, 16  ;;  %v3038_v35 = vshrl.u32 %v2716_v27, 16  ;;  %v3041_v12 = vshll.u32 %v2716_v27, 16  ;;  %v6118_v38 = vcombine.low %v2978_v51, %v2988_v10 }
 0x193   : > { %6888 = vmatmul.mubr.bf16.gmra.mrb[24].mxu1 %v7533_v19  ;;  %v6116_v19 = vcombine.low %v2930_v60, %v2940_v0  ;;  %v7606_v60 = vld [vmem:[#allocation2 + $0xb8] sm:$0xf]  ;;  %v3026_v23 = vsel %vm7725_vm8, %v3021_v45, %v9424_v49  ;;  %v3057_v34 = vshll.u32 %v7607_v1, 16 }
 0x194   : > { %6891 = vmatprep.mubr.bf16.mxu1 %v7534_v14  ;;  %v2719_v14 = vld [vmem:[#allocation2 + $0xb4] sm:$0xf]  ;;  %v3071_v0 = vshll.u32 %v7606_v60, 16  ;;  %v3075_v52 = vshrl.u32 %v7606_v60, 16  ;;  %v3035_v36 = vrot.slane %v3033_v25, 5  ;;  %v3040_v63 = vrot.slane %v3038_v35, 4 }
 0x195   : > { %v3062_v3 = vshrl.u32 %v2719_v14, 16  ;;  %v3065_v20 = vshll.u32 %v2719_v14, 16  ;;  %v3043_v7 = vrot.slane %v3041_v12, 5  ;;  %v3055_v35 = vrot.slane %v3054_v13, 4 }
 0x196   : > { %v3077_v24 = vrot.slane %v3075_v52, 4  ;;  %v3059_v12 = vrot.slane %v3057_v34, 5 }
 0x197   : > { %v3064_v16 = vrot.slane %v3062_v3, 4  ;;  %v3067_v28 = vrot.slane %v3065_v20, 5  ;;  %v3044_v55 = vor.u32 %v3043_v7, %v3040_v63 }
 0x198   : > { %v3060_v29 = vsel %vm7725_vm8, %v3055_v35, %v3059_v12 }
 0x199   : > { %7120 = vmatmul.mubr.bf16.gmra.mrb[16].mxu0 %v6309_v18  ;;  %v3073_v18 = vrot.slane %v3071_v0, 5  ;;  %v3068_v49 = vor.u32 %v3067_v28, %v3064_v16  ;;  %v3045_v14 = vrot.slane %v3044_v55, 4 }
 0x19a   : > { %7123 = vmatprep.mubr.bf16.mxu0 %v6310_v59  ;;  %v3036_v59 = vsel %vm7725_vm8, %v3031_v61, %v3035_v36 }
 0x19b   : > { %6892 = vmatmul.mubr.bf16.gmra.mrb[28].mxu1 %v7535_v15  ;;  %v2722_v15 = vld [vmem:[#allocation2 + $0xc0] sm:$0xf]  ;;  %v3078_v43 = vor.u32 %v3077_v24, %v3073_v18  ;;  %v6120_v25 = vcombine.low %v3026_v23, %v3036_v59  ;;  %v3069_v10 = vrot.slane %v3068_v49, 4 }
 0x19c   : > { %6927 = vmatprep.mubr.bf16.mxu1 %v6116_v19  ;;  %v3002_v19 = vsel %vm7725_vm8, %v2997_v56, %v9419_v21  ;;  %v3086_v57 = vshrl.u32 %v2722_v15, 16  ;;  %v3089_v4 = vshll.u32 %v2722_v15, 16  ;;  %v7608_v21 = vld [vmem:[#allocation2 + $0xc4] sm:$0xf]  ;;  %v7610_v56 = vld [vmem:[#allocation2 + $0xc8] sm:$0x1] }
 0x19d   : > { %v3095_v27 = vshll.u32 %v7608_v21, 16  ;;  %v3099_v53 = vshrl.u32 %v7608_v21, 16  ;;  %v6119_v32 = vcombine.low %v3002_v19, %v3012_v58  ;;  %v3079_v6 = vrot.slane %v3078_v43, 4 }
 0x19e   : > { %v3088_v62 = vrot.slane %v3086_v57, 4  ;;  %v3091_v48 = vrot.slane %v3089_v4, 5  ;;  %v3105_v44 = vshll.u32 %v7610_v56, 16  ;;  %v3074_v3 = vsel %vm7725_vm8, %v3069_v10, %v3073_v18 }
 0x19f   : > { %v3097_v2 = vrot.slane %v3095_v27, 5  ;;  %v3101_v51 = vrot.slane %v3099_v53, 4 }
 0x1a0   : > { %v3092_v42 = vor.u32 %v3091_v48, %v3088_v62  ;;  %v3107_v45 = vrot.slane %v3105_v44, 5 }
 0x1a1   : > { %7124 = vmatmul.mubr.bf16.gmra.mrb[20].mxu0 %v6311_v31  ;;  %v3050_v31 = vsel %vm7725_vm8, %v3045_v14, %v3049_v50 }
 0x1a2   : > { %7127 = vmatprep.mubr.bf16.mxu0 %v6312_v33  ;;  %v3102_v33 = vor.u32 %v3101_v51, %v3097_v2  ;;  %v6121_v60 = vcombine.low %v3050_v31, %v3060_v29  ;;  %v3093_v52 = vrot.slane %v3092_v42, 4 }
 0x1a3   : > { %6928 = vmatmul.mubr.bf16.vlgmr.msra.gmra.mrb[16].mxu1 %v9268_v22  ;;  %v7609_v22 = vld [vmem:[#allocation2 + $0xbc] sm:$0x1] }
 0x1a4   : > { %6931 = vmatprep.mubr.bf16.mxu1 %v6118_v38  ;;  %v3081_v30 = vshll.u32 %v7609_v22, 16  ;;  %v3103_v47 = vrot.slane %v3102_v33, 4  ;;  %v3098_v40 = vsel %vm7725_vm8, %v3093_v52, %v3097_v2 }
 0x1a6   : > { %v3083_v5 = vrot.slane %v3081_v30, 5  ;;  %v3108_v26 = vsel %vm7725_vm8, %v3103_v47, %v3107_v45 }
 0x1a8   : > { %v3084_v20 = vsel %vm7725_vm8, %v3079_v6, %v3083_v5 }
 0x1a9   : > { %7128 = vmatmul.mubr.bf16.gmra.mrb[24].mxu0 %v6313_v9  ;;  %v6122_v0 = vcombine.low %v3074_v3, %v3084_v20  ;;  %v6123_v9 = vcombine.low %v3098_v40, %v3108_v26 }
 0x1aa   : > { %7131 = vmatprep.mubr.bf16.mxu0 %v6314_v11 }
 0x1ab   : > { %6932 = vmatmul.mubr.bf16.gmra.mrb[20].mxu1 %v6119_v32 }
 0x1ac   : > { %6935 = vmatprep.mubr.bf16.mxu1 %v6120_v25 }
 0x1b1   : > { %7132 = vmatmul.mubr.bf16.gmra.mrb[28].mxu0 %v6315_v54 }
 0x1b3   : > { %6936 = vmatmul.mubr.bf16.gmra.mrb[24].mxu1 %v6121_v60 }
 0x1b4   : > { %6939 = vmatprep.mubr.bf16.mxu1 %v6122_v0 }
 0x1bb   : > { %6940 = vmatmul.mubr.bf16.gmra.mrb[28].mxu1 %v6123_v9 }
 0x236   : > { %v6865_v46 = vpop.f32.mrb[0].mxu1 }
 0x237   : > { %v2518_v8 = vpop.f32.mrb[1].mxu1 }
 0x238   : > { %v6866_v11 = vpop.f32.mrb[2].mxu1 }
 0x239   : > { %v2521_v61 = vpop.f32.mrb[3].mxu1 }
 0x23e   : > { %v6869_v36 = vpop.f32.mrb[4].mxu1 }
 0x23f   : > { %v2534_v63 = vpop.f32.mrb[5].mxu1 }
 0x240   : > { %v6870_v7 = vpop.f32.mrb[6].mxu1 }
 0x241   : > { %v2537_v50 = vpop.f32.mrb[7].mxu1 }
 0x246   : > { %v6873_v39 = vpop.f32.mrb[8].mxu1 }
 0x247   : > { %v2550_v38 = vpop.f32.mrb[9].mxu1 }
 0x248   : > { %v6874_v16 = vpop.f32.mrb[10].mxu1 }
 0x249   : > { %v2553_v37 = vpop.f32.mrb[11].mxu1 }
 0x24c   : > { %v7105_v41 = vpop.f32.mrb[0].mxu0 }
 0x24d   : > { %v7151_v24 = vadd.f32 %v7105_v41, %v6865_v46  ;;  %v5409_v15 = vpop.f32.mrb[1].mxu0 }
 0x24e   : > { %v9477_v28 = vpop.f32.mrb[12].mxu1  ;;  %v7152_v19 = vadd.f32 %v5409_v15, %v2518_v8  ;;  %v7106_v58 = vpop.f32.mrb[2].mxu0 }
 0x24f   : > { %v9479_v18 = vpop.f32.mrb[13].mxu1  ;;  %v7153_v23 = vadd.f32 %v7106_v58, %v6866_v11  ;;  %v5412_v59 = vpop.f32.mrb[3].mxu0  ;;  %v5768_v21 = vmul.f32 %v7151_v24, %v7151_v24 }
 0x250   : > { %v9481_v17 = vpop.f32.mrb[14].mxu1  ;;  %v7154_v55 = vadd.f32 %v5412_v59, %v2521_v61  ;;  %v5766_v1 = vmul.f32 %v7152_v19, %v7152_v19 }
 0x251   : > { %v9483_v54 = vpop.f32.mrb[15].mxu1  ;;  %v6400_v13 = vpack.c.bf16 %v7153_v23, %v7151_v24  ;;  %v5769_v30 = vmul.f32 %v7153_v23, %v7153_v23 }
 0x252   : > { %v6395_v34 = vpack.c.bf16 %v7154_v55, %v7152_v19  ;;  %v5728_v57 = vadd.f32 %v7154_v55, %v7152_v19  ;;  %v5767_v4 = vmul.f32 %v7154_v55, %v7154_v55 }
 0x253   : > { %6472 = vst [vmem:[%s9490_s14 + $0x8] sm:$0xff] %v6400_v13  }
 0x254   : > { %6396 = vst [vmem:[%s9490_s14] sm:$0xff] %v6395_v34   ;;  %v5729_v27 = vadd.f32 %v7151_v24, %v5728_v57  ;;  %v5798_v53 = vadd.f32 %v5767_v4, %v5766_v1  ;;  %v7109_v49 = vpop.f32.mrb[4].mxu0 }
 0x255   : > { %v7155_v43 = vadd.f32 %v7109_v49, %v6869_v36  ;;  %v5425_v22 = vpop.f32.mrb[5].mxu0 }
 0x256   : > { %v5799_v32 = vadd.f32 %v5798_v53, %v5768_v21  ;;  %v7156_v25 = vadd.f32 %v5425_v22, %v2534_v63  ;;  %v5730_v14 = vadd.f32 %v7153_v23, %v5729_v27  ;;  %v7110_v35 = vpop.f32.mrb[6].mxu0 }
 0x257   : > { %v7157_v12 = vadd.f32 %v7110_v35, %v6870_v7  ;;  %v5428_v62 = vpop.f32.mrb[7].mxu0  ;;  %v5772_v33 = vmul.f32 %v7155_v43, %v7155_v43 }
 0x258   : > { %v5731_v48 = vadd.f32 %v7156_v25, %v5730_v14  ;;  %v5770_v2 = vmul.f32 %v7156_v25, %v7156_v25  ;;  %v5800_v51 = vadd.f32 %v5799_v32, %v5769_v30  ;;  %v7158_v10 = vadd.f32 %v5428_v62, %v2537_v50 }
 0x259   : > { %v6410_v6 = vpack.c.bf16 %v7157_v12, %v7155_v43  ;;  %v5773_v0 = vmul.f32 %v7157_v12, %v7157_v12 }
 0x25a   : > { %v5801_v5 = vadd.f32 %v5800_v51, %v5770_v2  ;;  %v6405_v31 = vpack.c.bf16 %v7158_v10, %v7156_v25  ;;  %v5732_v29 = vadd.f32 %v7158_v10, %v5731_v48  ;;  %v5771_v42 = vmul.f32 %v7158_v10, %v7158_v10 }
 0x25b   : > { %6474 = vst [vmem:[%s9490_s14 + $0x18] sm:$0xff] %v6410_v6  }
 0x25c   : > { %6473 = vst [vmem:[%s9490_s14 + $0x10] sm:$0xff] %v6405_v31   ;;  %v5733_v56 = vadd.f32 %v7155_v43, %v5732_v29  ;;  %v5802_v44 = vadd.f32 %v5801_v5, %v5771_v42  ;;  %v7113_v3 = vpop.f32.mrb[8].mxu0 }
 0x25d   : > { %v7159_v20 = vadd.f32 %v7113_v3, %v6873_v39  ;;  %v5441_v60 = vpop.f32.mrb[9].mxu0 }
 0x25e   : > { %v5803_v52 = vadd.f32 %v5802_v44, %v5772_v33  ;;  %v7160_v47 = vadd.f32 %v5441_v60, %v2550_v38  ;;  %v5734_v45 = vadd.f32 %v7157_v12, %v5733_v56  ;;  %v7114_v40 = vpop.f32.mrb[10].mxu0 }
 0x25f   : > { %v7161_v26 = vadd.f32 %v7114_v40, %v6874_v16  ;;  %v5444_v9 = vpop.f32.mrb[11].mxu0  ;;  %v5776_v39 = vmul.f32 %v7159_v20, %v7159_v20 }
 0x260   : > { %v5735_v46 = vadd.f32 %v7160_v47, %v5734_v45  ;;  %v5774_v8 = vmul.f32 %v7160_v47, %v7160_v47  ;;  %v5804_v11 = vadd.f32 %v5803_v52, %v5773_v0  ;;  %v7162_v61 = vadd.f32 %v5444_v9, %v2553_v37 }
 0x261   : > { %v6420_v36 = vpack.c.bf16 %v7161_v26, %v7159_v20  ;;  %v5777_v16 = vmul.f32 %v7161_v26, %v7161_v26 }
 0x262   : > { %v5805_v63 = vadd.f32 %v5804_v11, %v5774_v8  ;;  %v6415_v7 = vpack.c.bf16 %v7162_v61, %v7160_v47  ;;  %v5736_v50 = vadd.f32 %v7162_v61, %v5735_v46  ;;  %v5775_v41 = vmul.f32 %v7162_v61, %v7162_v61 }
 0x263   : > { %6476 = vst [vmem:[%s9490_s14 + $0x28] sm:$0xff] %v6420_v36  }
 0x264   : > { %6475 = vst [vmem:[%s9490_s14 + $0x20] sm:$0xff] %v6415_v7   ;;  %v5737_v24 = vadd.f32 %v7159_v20, %v5736_v50  ;;  %v5806_v15 = vadd.f32 %v5805_v63, %v5775_v41  ;;  %v7117_v38 = vpop.f32.mrb[12].mxu0 }
 0x265   : > { %v7163_v19 = vadd.f32 %v7117_v38, %v9477_v28  ;;  %v5457_v58 = vpop.f32.mrb[13].mxu0 }
 0x266   : > { %v5807_v23 = vadd.f32 %v5806_v15, %v5776_v39  ;;  %v7164_v59 = vadd.f32 %v5457_v58, %v9479_v18  ;;  %v5738_v37 = vadd.f32 %v7161_v26, %v5737_v24  ;;  %v7118_v55 = vpop.f32.mrb[14].mxu0 }
 0x267   : > { %v7165_v13 = vadd.f32 %v7118_v55, %v9481_v17  ;;  %v5460_v1 = vpop.f32.mrb[15].mxu0  ;;  %v5780_v22 = vmul.f32 %v7163_v19, %v7163_v19 }
 0x268   : > { %v5739_v34 = vadd.f32 %v7164_v59, %v5738_v37  ;;  %v5778_v57 = vmul.f32 %v7164_v59, %v7164_v59  ;;  %v5808_v4 = vadd.f32 %v5807_v23, %v5777_v16  ;;  %v7166_v21 = vadd.f32 %v5460_v1, %v9483_v54 }
 0x269   : > { %v6430_v27 = vpack.c.bf16 %v7165_v13, %v7163_v19  ;;  %v5781_v14 = vmul.f32 %v7165_v13, %v7165_v13 }
 0x26a   : > { %v5809_v53 = vadd.f32 %v5808_v4, %v5778_v57  ;;  %v6425_v28 = vpack.c.bf16 %v7166_v21, %v7164_v59  ;;  %v5740_v49 = vadd.f32 %v7166_v21, %v5739_v34  ;;  %v5779_v43 = vmul.f32 %v7166_v21, %v7166_v21 }
 0x26b   : > { %6478 = vst [vmem:[%s9490_s14 + $0x38] sm:$0xff] %v6430_v27  }
 0x26c   : > { %6477 = vst [vmem:[%s9490_s14 + $0x30] sm:$0xff] %v6425_v28   ;;  %v5741_v18 = vadd.f32 %v7163_v19, %v5740_v49  ;;  %v5810_v30 = vadd.f32 %v5809_v53, %v5779_v43  ;;  %v7121_v32 = vpop.f32.mrb[16].mxu0 }
 0x26d   : > { %v5473_v25 = vpop.f32.mrb[17].mxu0 }
 0x26e   : > { %v5811_v17 = vadd.f32 %v5810_v30, %v5780_v22  ;;  %v5742_v35 = vadd.f32 %v7165_v13, %v5741_v18  ;;  %v7122_v12 = vpop.f32.mrb[18].mxu0 }
 0x26f   : > { %v5476_v62 = vpop.f32.mrb[19].mxu0 }
 0x270   : > { %v5812_v48 = vadd.f32 %v5811_v17, %v5781_v14 }
 0x274   : > { %v7125_v5 = vpop.f32.mrb[20].mxu0 }
 0x275   : > { %v5489_v42 = vpop.f32.mrb[21].mxu0 }
 0x276   : > { %v6929_v2 = vpop.f32.mrb[16].mxu1  ;;  %v7126_v3 = vpop.f32.mrb[22].mxu0 }
 0x277   : > { %v7167_v54 = vadd.f32 %v7121_v32, %v6929_v2  ;;  %v3336_v51 = vpop.f32.mrb[17].mxu1  ;;  %v5492_v60 = vpop.f32.mrb[23].mxu0 }
 0x278   : > { %v7168_v10 = vadd.f32 %v5473_v25, %v3336_v51  ;;  %v6930_v6 = vpop.f32.mrb[18].mxu1 }
 0x279   : > { %v7169_v31 = vadd.f32 %v7122_v12, %v6930_v6  ;;  %v3339_v29 = vpop.f32.mrb[19].mxu1  ;;  %v5784_v40 = vmul.f32 %v7167_v54, %v7167_v54 }
 0x27a   : > { %v5743_v33 = vadd.f32 %v7168_v10, %v5742_v35  ;;  %v5782_v56 = vmul.f32 %v7168_v10, %v7168_v10  ;;  %v7170_v44 = vadd.f32 %v5476_v62, %v3339_v29 }
 0x27b   : > { %v6440_v20 = vpack.c.bf16 %v7169_v31, %v7167_v54  ;;  %v5785_v61 = vmul.f32 %v7169_v31, %v7169_v31 }
 0x27c   : > { %v5813_v0 = vadd.f32 %v5812_v48, %v5782_v56  ;;  %v6435_v52 = vpack.c.bf16 %v7170_v44, %v7168_v10  ;;  %v5744_v47 = vadd.f32 %v7170_v44, %v5743_v33  ;;  %v5783_v45 = vmul.f32 %v7170_v44, %v7170_v44  ;;  %v7129_v41 = vpop.f32.mrb[24].mxu0 }
 0x27d   : > { %6480 = vst [vmem:[%s9490_s14 + $0x48] sm:$0xff] %v6440_v20   ;;  %v5505_v15 = vpop.f32.mrb[25].mxu0 }
 0x27e   : > { %6479 = vst [vmem:[%s9490_s14 + $0x40] sm:$0xff] %v6435_v52   ;;  %v5745_v26 = vadd.f32 %v7167_v54, %v5744_v47  ;;  %v5814_v9 = vadd.f32 %v5813_v0, %v5783_v45  ;;  %v6933_v46 = vpop.f32.mrb[20].mxu1  ;;  %v7130_v23 = vpop.f32.mrb[26].mxu0 }
 0x27f   : > { %v7171_v8 = vadd.f32 %v7125_v5, %v6933_v46  ;;  %v3352_v11 = vpop.f32.mrb[21].mxu1  ;;  %v5508_v37 = vpop.f32.mrb[27].mxu0 }
 0x280   : > { %v5815_v36 = vadd.f32 %v5814_v9, %v5784_v40  ;;  %v7172_v63 = vadd.f32 %v5489_v42, %v3352_v11  ;;  %v5746_v7 = vadd.f32 %v7169_v31, %v5745_v26  ;;  %v6934_v50 = vpop.f32.mrb[22].mxu1 }
 0x281   : > { %v7173_v39 = vadd.f32 %v7126_v3, %v6934_v50  ;;  %v3355_v24 = vpop.f32.mrb[23].mxu1  ;;  %v5788_v57 = vmul.f32 %v7171_v8, %v7171_v8 }
 0x282   : > { %v5747_v38 = vadd.f32 %v7172_v63, %v5746_v7  ;;  %v5786_v19 = vmul.f32 %v7172_v63, %v7172_v63  ;;  %v5816_v58 = vadd.f32 %v5815_v36, %v5785_v61  ;;  %v7174_v16 = vadd.f32 %v5492_v60, %v3355_v24 }
 0x283   : > { %v6450_v59 = vpack.c.bf16 %v7173_v39, %v7171_v8  ;;  %v5789_v49 = vmul.f32 %v7173_v39, %v7173_v39 }
 0x284   : > { %v5817_v55 = vadd.f32 %v5816_v58, %v5786_v19  ;;  %v6445_v13 = vpack.c.bf16 %v7174_v16, %v7172_v63  ;;  %v5748_v1 = vadd.f32 %v7174_v16, %v5747_v38  ;;  %v5787_v34 = vmul.f32 %v7174_v16, %v7174_v16  ;;  %v7133_v32 = vpop.f32.mrb[28].mxu0 }
 0x285   : > { %6482 = vst [vmem:[%s9490_s14 + $0x58] sm:$0xff] %v6450_v59   ;;  %v5521_v17 = vpop.f32.mrb[29].mxu0 }
 0x286   : > { %6481 = vst [vmem:[%s9490_s14 + $0x50] sm:$0xff] %v6445_v13   ;;  %v5749_v4 = vadd.f32 %v7171_v8, %v5748_v1  ;;  %v5818_v21 = vadd.f32 %v5817_v55, %v5787_v34  ;;  %v6937_v27 = vpop.f32.mrb[24].mxu1  ;;  %v7134_v2 = vpop.f32.mrb[30].mxu0 }
 0x287   : > { %v7175_v53 = vadd.f32 %v7129_v41, %v6937_v27  ;;  %v3368_v28 = vpop.f32.mrb[25].mxu1  ;;  %v5524_v51 = vpop.f32.mrb[31].mxu0 }
 0x288   : > { %v5819_v43 = vadd.f32 %v5818_v21, %v5788_v57  ;;  %v7176_v22 = vadd.f32 %v5505_v15, %v3368_v28  ;;  %v5750_v18 = vadd.f32 %v7173_v39, %v5749_v4  ;;  %v6938_v30 = vpop.f32.mrb[26].mxu1 }
 0x289   : > { %v7177_v25 = vadd.f32 %v7130_v23, %v6938_v30  ;;  %v3371_v14 = vpop.f32.mrb[27].mxu1  ;;  %v5792_v29 = vmul.f32 %v7175_v53, %v7175_v53 }
 0x28a   : > { %v5751_v35 = vadd.f32 %v7176_v22, %v5750_v18  ;;  %v5790_v12 = vmul.f32 %v7176_v22, %v7176_v22  ;;  %v5820_v62 = vadd.f32 %v5819_v43, %v5789_v49  ;;  %v7178_v48 = vadd.f32 %v5508_v37, %v3371_v14 }
 0x28b   : > { %v6460_v54 = vpack.c.bf16 %v7177_v25, %v7175_v53  ;;  %v5793_v20 = vmul.f32 %v7177_v25, %v7177_v25 }
 0x28c   : > { %v5821_v10 = vadd.f32 %v5820_v62, %v5790_v12  ;;  %v6455_v6 = vpack.c.bf16 %v7178_v48, %v7176_v22  ;;  %v5752_v5 = vadd.f32 %v7178_v48, %v5751_v35  ;;  %v5791_v31 = vmul.f32 %v7178_v48, %v7178_v48 }
 0x28d   : > { %6484 = vst [vmem:[%s9490_s14 + $0x68] sm:$0xff] %v6460_v54  }
 0x28e   : > { %6483 = vst [vmem:[%s9490_s14 + $0x60] sm:$0xff] %v6455_v6   ;;  %v5753_v42 = vadd.f32 %v7175_v53, %v5752_v5  ;;  %v5822_v33 = vadd.f32 %v5821_v10, %v5791_v31  ;;  %v6941_v56 = vpop.f32.mrb[28].mxu1 }
 0x28f   : > { %v7179_v44 = vadd.f32 %v7133_v32, %v6941_v56  ;;  %v3384_v3 = vpop.f32.mrb[29].mxu1 }
 0x290   : > { %v5823_v60 = vadd.f32 %v5822_v33, %v5792_v29  ;;  %v7180_v0 = vadd.f32 %v5521_v17, %v3384_v3  ;;  %v5754_v52 = vadd.f32 %v7177_v25, %v5753_v42  ;;  %v6942_v47 = vpop.f32.mrb[30].mxu1 }
 0x291   : > { %v7181_v45 = vadd.f32 %v7134_v2, %v6942_v47  ;;  %v3387_v40 = vpop.f32.mrb[31].mxu1  ;;  %v5796_v50 = vmul.f32 %v7179_v44, %v7179_v44 }
 0x292   : > { %v5755_v26 = vadd.f32 %v7180_v0, %v5754_v52  ;;  %v5794_v9 = vmul.f32 %v7180_v0, %v7180_v0  ;;  %v5824_v46 = vadd.f32 %v5823_v60, %v5793_v20  ;;  %v7182_v8 = vadd.f32 %v5524_v51, %v3387_v40 }
 0x293   : > { %v6470_v11 = vpack.c.bf16 %v7181_v45, %v7179_v44  ;;  %v5797_v24 = vmul.f32 %v7181_v45, %v7181_v45 }
 0x294   : > { %v5825_v61 = vadd.f32 %v5824_v46, %v5794_v9  ;;  %v6465_v36 = vpack.c.bf16 %v7182_v8, %v7180_v0  ;;  %v5756_v63 = vadd.f32 %v7182_v8, %v5755_v26  ;;  %v5795_v7 = vmul.f32 %v7182_v8, %v7182_v8 }
 0x295   : > { %6486 = vst [vmem:[%s9490_s14 + $0x78] sm:$0xff] %v6470_v11  }
 0x296   : > { %6485 = vst [vmem:[%s9490_s14 + $0x70] sm:$0xff] %v6465_v36   ;;  %v5757_v41 = vadd.f32 %v7179_v44, %v5756_v63  ;;  %v5826_v39 = vadd.f32 %v5825_v61, %v5795_v7 }
 0x298   : > { %v5758_v15 = vadd.f32 %v7181_v45, %v5757_v41  ;;  %v5827_v38 = vadd.f32 %v5826_v39, %v5796_v50 }
 0x29a   : > { %v5759_v19 = vrot.slane %v5758_v15, 4  ;;  %v5828_v58 = vadd.f32 %v5827_v38, %v5797_v24 }
 0x29c   : > { %v5760_v16 = vadd.f32 %v5759_v19, %v5758_v15  ;;  %v5829_v23 = vrot.slane %v5828_v58, 4 }
 0x29e   : > { %v5761_v59 = vrot.slane %v5760_v16, 2  ;;  %v5830_v37 = vadd.f32 %v5829_v23, %v5828_v58 }
 0x2a0   : > { %v5762_v55 = vadd.f32 %v5761_v59, %v5760_v16  ;;  %v5831_v13 = vrot.slane %v5830_v37, 2 }
 0x2a2   : > { %v5763_v1 = vrot.slane %v5762_v55, 1  ;;  %v5832_v34 = vadd.f32 %v5831_v13, %v5830_v37 }
 0x2a4   : > { %v5764_v57 = vadd.f32 %v5763_v1, %v5762_v55  ;;  %v5833_v4 = vrot.slane %v5832_v34, 1 }
 0x2a6   : > { %5765 = vst [vmem:[%s181_s17] sm:$0x1] %v5764_v57  ;;  %v5834_v21 = vadd.f32 %v5833_v4, %v5832_v34 }
 0x2a8   : > { %5835 = vst [vmem:[%s181_s17 + $0x1] sm:$0x1] %v5834_v21 }
 0x2a9 PF: > { %s14_s12 = sadd.s32 1, %s7617_s12  }
 0x2aa   : > { %p11_p4 = scmp.ge.s32.totalorder %s14_s12, 4  }
 0x2ac   :  { %13 = sbr.rel (!%p11_p4) target bundleno = 1 (0x1), region = 81 }

// kernel: residual_block.4
= control target key start
LH: loop header
LB: loop body
LE: loop exit
PB: predicated region body
PF: predicated region fallthrough
CT: control target
= control target key end

     0   :  { %s8203_s23 = smov 0   ;;  %s10164_s0 = inlined_call_operand.vmem [shape: bf16[2,16,16,128], index: 0, kind: input, shape index: {}]   ;;  %s10165_s1 = inlined_call_operand.vmem [shape: bf16[9,128,128], index: 1, kind: input, shape index: {}]   ;;  %s10166_s2 = inlined_call_operand.vmem [shape: f32[1,128], index: 2, kind: input, shape index: {}]   ;;  %s10167_s3 = inlined_call_operand.vmem [shape: f32[1,128], index: 3, kind: input, shape index: {}]   ;;  %s10168_s4 = inlined_call_operand.<no memory space> [shape: f32[1,1], index: 4, kind: input, shape index: {}]   ;;  %s10169_s5 = inlined_call_operand.vmem [shape: bf16[2,16,16,128], index: 5, kind: output, shape index: {0}]   ;;  %s10170_s6 = inlined_call_operand.vmem [shape: f32[2,2,128], index: 6, kind: output, shape index: {1}]  }
   0x1   :  { %12 = sst [smem:[#allocation3]] %s10168_s4 }
   0x2 LB: > { %s6308_s24 = sadd.s32 4294967295, %s8162_s23   ;;  %p6312_p0 = scmp.ge.s32.totalorder %s8162_s23, 1  ;;  %s8162_s23 = sphi %s8203_s23, %s18_s23  }
   0x3   : > { %p216_p1 = scmp.lt.s32.totalorder %s8162_s23, 3 }
   0x5   : > { %p217_p2 = pnand %p6312_p0, %p216_p1 }
   0x7   : > { %220 = sbr.rel (%p217_p2) target bundleno = 726 (0x2d6), region = 40 }
   0xe   : > { %v7947_v0 = vld [vmem:[%s10165_s1 + $0x40] sm:$0xff]   ;;  %v8164_v2 = vmov 0   ;;  %v7949_v3 = vld [vmem:[%s10165_s1 + $0x48] sm:$0xff]   ;;  %v7951_v5 = vld [vmem:[%s10165_s1 + $0x50] sm:$0xff]   ;;  %p250_p3 = scmp.lt.s32.totalorder %s6308_s24, 1  ;;  %vm513_vm1 = vcmask 1040384  }
   0xf   : > { %v7948_v1 = vld [vmem:[%s10165_s1 + $0x100] sm:$0xff]   ;;  %505 = vst [vmem:[#allocation2] sm:$0xf] %v8164_v2  ;;  %506 = vst [vmem:[#allocation2 + $0x4] sm:$0xf] %v8164_v2  ;;  %7234 = vmatprep.subr.bf16.mxu1 %v7947_v0  ;;  %v7950_v4 = vld [vmem:[%s10165_s1 + $0x108] sm:$0xff]  }
  0x10   : > { %507 = vst [vmem:[#allocation2 + $0x8] sm:$0x1] %v8164_v2  ;;  %509 = vst [vmem:[#allocation2 + $0xcc] sm:$0xf] %v8164_v2  ;;  %7426 = vmatprep.subr.bf16.mxu0 %v7948_v1  ;;  %7235 = vmatpush3.bf16.msra.mxu1 %v7947_v0  ;;  %v7952_v6 = vld [vmem:[%s10165_s1 + $0x110] sm:$0xff]   ;;  %v7953_v7 = vld [vmem:[%s10165_s1 + $0x58] sm:$0xff]  }
  0x11   : > { %510 = vst [vmem:[#allocation2 + $0xd0] sm:$0xf] %v8164_v2  ;;  %511 = vst [vmem:[#allocation2 + $0xd4] sm:$0x1] %v8164_v2  ;;  %7427 = vmatpush3.bf16.msra.mxu0 %v7948_v1  ;;  %7236 = vmatprep.subr.bf16.mxu1 %v7949_v3  ;;  %s10245_s24 = smov (!%p250_p3, %s6308_s24), 1  ;;  %v7954_v8 = vld [vmem:[%s10165_s1 + $0x118] sm:$0xff]  }
  0x12   : > { %7428 = vmatprep.subr.bf16.mxu0 %v7950_v4  ;;  %v7955_v9 = vld [vmem:[%s10165_s1 + $0x60] sm:$0xff]   ;;  %s6778_s18 = sshll.u32 %s10245_s24, 7  ;;  %v7957_v11 = vld [vmem:[%s10165_s1 + $0x68] sm:$0xff]   ;;  %vm1210_vm0 = vsmask.f32 3328  ;;  %v7959_v22 = vld [vmem:[%s10165_s1 + $0x70] sm:$0xff]  }
  0x13   : > { %v7956_v10 = vld [vmem:[%s10165_s1 + $0x120] sm:$0xff]   ;;  %s8252_s4 = scalar_lea.vmem %s10164_s0, %s6778_s18  ;;  %v7958_v15 = vld [vmem:[%s10165_s1 + $0x128] sm:$0xff]   ;;  %vm1211_vm2 = vsmask.f32 7440  ;;  %v7960_v23 = vld [vmem:[%s10165_s1 + $0x130] sm:$0xff]   ;;  %s8274_s13 = sld [smem:[#allocation3]] }
  0x14   : > { %7237 = vmatpush3.bf16.msra.mxu1 %v7949_v3  ;;  %v6845_v21 = vld [vmem:[%s8252_s4] sm:$0xff]   ;;  %vm8278_vm3 = vmor %vm1210_vm0, %vm1211_vm2  ;;  %vm514_vm4 = vsmask.f32 256  ;;  %v516_v36 = vld [vmem:[#allocation2 + $0xc] sm:$0x1]  ;;  %vm1032_vm9 = vcmask 1043456   ;;  %s10135_s9 = scalar_lea.vmem %s10169_s5, %s6778_s18 }
  0x15   : > { %7429 = vmatpush3.bf16.msra.mxu0 %v7950_v4  ;;  %7238 = vmatprep.subr.bf16.mxu1 %v7951_v5  ;;  %v6846_v26 = vunpack.c.l.bf16 %v6845_v21  ;;  %v6847_v27 = vunpack.c.h.bf16 %v6845_v21  ;;  %v8267_v28 = vld [vmem:[%s10166_s2] ss:$0 sm:$0xff]  ;;  %v566_v37 = vld [vmem:[#allocation2 + $0x14] sm:$0x1]  ;;  %v7961_v38 = vld [vmem:[%s10165_s1 + $0x78] sm:$0xff]   ;;  %s6317_s18 = sshll.u32 %s10245_s24, 1 }
  0x16   : > { %7430 = vmatprep.subr.bf16.mxu0 %v7952_v6  ;;  %v1146_v12 = vld [vmem:[#allocation2] sm:$0xf]  ;;  %v1147_v13 = vld [vmem:[#allocation2 + $0x4] sm:$0xf]  ;;  %vm8289_vm5 = vmand %vm513_vm1, %vm514_vm4  ;;  %vm564_vm6 = vsmask.f32 7938  ;;  %s263_s12 = scalar_lea.vmem %s10170_s6, %s6317_s18 }
  0x17   : > { %v1194_v14 = vld [vmem:[#allocation2 + $0x8] sm:$0x1]  ;;  %v1214_v16 = vshrl.u32 %v1146_v12, 16  ;;  %v1217_v17 = vshll.u32 %v1146_v12, 16  ;;  %v1223_v18 = vshll.u32 %v1147_v13, 16  ;;  %v1227_v19 = vshrl.u32 %v1147_v13, 16  ;;  %vm8299_vm7 = vmand %vm513_vm1, %vm564_vm6 }
  0x18   : > { %7239 = vmatpush3.bf16.msra.mxu1 %v7951_v5  ;;  %v1233_v20 = vshll.u32 %v1194_v14, 16  ;;  %v8272_v31 = vld [vmem:[%s10167_s3] ss:$0 sm:$0xff]  ;;  %v336_v34 = vmul.f32 %v6846_v26, %v8267_v28  ;;  %v337_v35 = vmul.f32 %v6847_v27, %v8267_v28  ;;  %v517_v45 = vsel %vm8289_vm5, 0, %v516_v36  ;;  %v7962_v47 = vld [vmem:[%s10165_s1 + $0x138] sm:$0xff]   ;;  %v6988_v50 = vld [vmem:[%s8252_s4 + $0x8] sm:$0xff]  }
  0x19   : > { %7431 = vmatpush3.bf16.msra.mxu0 %v7952_v6  ;;  %7240 = vmatprep.subr.bf16.mxu1 %v7953_v7  ;;  %v1216_v24 = vrot.slane %v1214_v16, 4  ;;  %v1219_v25 = vrot.slane %v1217_v17, 5  ;;  %v1225_v29 = vrot.slane %v1223_v18, 5  ;;  %v1229_v30 = vrot.slane %v1227_v19, 4  ;;  %518 = vst [vmem:[#allocation2 + $0xc] sm:$0x1] %v517_v45  ;;  %vm8360_vm15 = vmand %vm1032_vm9, %vm564_vm6 }
  0x1a   : > { %7432 = vmatprep.subr.bf16.mxu0 %v7954_v8  ;;  %v1235_v40 = vrot.slane %v1233_v20, 5  ;;  %v375_v43 = vadd.f32 %v8272_v31, %v336_v34  ;;  %v376_v44 = vadd.f32 %v8272_v31, %v337_v35  ;;  %vm710_vm8 = vsmask.f32 4368  ;;  %v519_v53 = vld [vmem:[#allocation2 + $0x18] sm:$0x1]  ;;  %v6989_v63 = vld [vmem:[%s8252_s4 + $0x10] sm:$0xff]  }
  0x1b   : > { %v1220_v33 = vor.u32 %v1219_v25, %v1216_v24  ;;  %v1230_v39 = vor.u32 %v1229_v30, %v1225_v29  ;;  %v567_v49 = vsel %vm8299_vm7, 0, %v566_v37  ;;  %v6850_v52 = vunpack.c.l.bf16 %v6988_v50  ;;  %v569_v54 = vld [vmem:[#allocation2 + $0x20] sm:$0x1]  ;;  %v522_v0 = vld [vmem:[#allocation2 + $0x24] sm:$0x1]  ;;  %vm8353_vm14 = vmor %vm514_vm4, %vm710_vm8 }
  0x1c   : > { %7241 = vmatpush3.bf16.msra.mxu1 %v7953_v7  ;;  %vm408_vm10 = vcmp.gt.f32.partialorder %v375_v43, 0.0  ;;  %vm409_vm11 = vcmp.gt.f32.partialorder %v376_v44, 0.0  ;;  %568 = vst [vmem:[#allocation2 + $0x14] sm:$0x1] %v567_v49  ;;  %v8314_v56 = vstv %s8274_s13  ;;  %v6851_v57 = vunpack.c.h.bf16 %v6988_v50  ;;  %v572_v1 = vld [vmem:[#allocation2 + $0x2c] sm:$0x1] }
  0x1d   : > { %7433 = vmatpush3.bf16.msra.mxu0 %v7954_v8  ;;  %7242 = vmatprep.subr.bf16.mxu1 %v7955_v9  ;;  %v1221_v42 = vrot.slane %v1220_v33, 4  ;;  %v1231_v48 = vrot.slane %v1230_v39, 4  ;;  %v520_v58 = vsel %vm8289_vm5, 0, %v519_v53  ;;  %v441_v60 = vmul.f32 %v8314_v56, %v375_v43  ;;  %v8325_v2 = vld [vmem:[%s10165_s1] sm:$0xff]   ;;  %v8007_v41 = vld [vmem:[%s10165_s1 + $0xa8] sm:$0xff]  }
  0x1e   : > { %7434 = vmatprep.subr.bf16.mxu0 %v7956_v10  ;;  %v442_v61 = vmul.f32 %v8314_v56, %v376_v44  ;;  %v338_v62 = vmul.f32 %v6850_v52, %v8267_v28  ;;  %521 = vst [vmem:[#allocation2 + $0x18] sm:$0x1] %v520_v58  ;;  %v339_v3 = vmul.f32 %v6851_v57, %v8267_v28  ;;  %v570_v4 = vsel %vm8299_vm7, 0, %v569_v54 }
  0x1f   : > { %v1226_v51 = vsel %vm8278_vm3, %v1221_v42, %v1225_v29  ;;  %v1236_v55 = vsel %vm8278_vm3, %v1231_v48, %v1235_v40  ;;  %v6854_v5 = vunpack.c.l.bf16 %v6989_v63  ;;  %v6855_v6 = vunpack.c.h.bf16 %v6989_v63  ;;  %571 = vst [vmem:[#allocation2 + $0x20] sm:$0x1] %v570_v4 }
  0x20   : > { %7243 = vmatpush3.bf16.msra.mxu1 %v7955_v9  ;;  %v6368_v59 = vcombine.low %v1226_v51, %v1236_v55  ;;  %v473_v7 = vsel %vm408_vm10, %v375_v43, %v441_v60  ;;  %v474_v8 = vsel %vm409_vm11, %v376_v44, %v442_v61  ;;  %v8335_v9 = vld [vmem:[%s10165_s1 + $0x140] sm:$0xff]   ;;  %v378_v14 = vadd.f32 %v8272_v31, %v339_v3  ;;  %v1034_v33 = vld [vmem:[#allocation2 + $0xc] sm:$0xf] }
  0x21   : > { %7435 = vmatpush3.bf16.msra.mxu0 %v7956_v10  ;;  %7244 = vmatprep.subr.bf16.mxu1 %v7957_v11  ;;  %v377_v10 = vadd.f32 %v8272_v31, %v338_v62  ;;  %v6780_v12 = vpack.c.bf16 %v473_v7, %v473_v7  ;;  %v6781_v13 = vpack.c.bf16 %v474_v8, %v474_v8  ;;  %v573_v18 = vsel %vm8299_vm7, 0, %v572_v1 }
  0x22   : > { %7436 = vmatprep.subr.bf16.mxu0 %v7958_v15  ;;  %7250 = vmatprep.mubr.bf16.mxu1 %v6368_v59  ;;  %v341_v17 = vmul.f32 %v6855_v6, %v8267_v28  ;;  %574 = vst [vmem:[#allocation2 + $0x2c] sm:$0x1] %v573_v18  ;;  %vm411_vm13 = vcmp.gt.f32.partialorder %v378_v14, 0.0  ;;  %v444_v24 = vmul.f32 %v8314_v56, %v378_v14 }
  0x23   : > { %vm410_vm12 = vcmp.gt.f32.partialorder %v377_v10, 0.0  ;;  %v443_v16 = vmul.f32 %v8314_v56, %v377_v10  ;;  %v713_v19 = vshrl.u32 %v6780_v12, 16  ;;  %v716_v20 = vshll.u32 %v6780_v12, 16  ;;  %v1038_v37 = vld [vmem:[#allocation2 + $0x14] sm:$0x1] }
  0x24   : > { %7245 = vmatpush3.bf16.msra.mxu1 %v7957_v11  ;;  %v523_v11 = vsel %vm8289_vm5, 0, %v522_v0  ;;  %v721_v21 = vshrl.u32 %v6781_v13, 16  ;;  %v380_v35 = vadd.f32 %v8272_v31, %v341_v17 }
  0x25   : > { %7437 = vmatpush3.bf16.msra.mxu0 %v7958_v15  ;;  %7246 = vmatprep.subr.bf16.mxu1 %v7959_v22  ;;  %v340_v15 = vmul.f32 %v6854_v5, %v8267_v28  ;;  %524 = vst [vmem:[#allocation2 + $0x24] sm:$0x1] %v523_v11  ;;  %v475_v25 = vsel %vm410_vm12, %v377_v10, %v443_v16  ;;  %v715_v29 = vrot.slane %v713_v19, 7  ;;  %v1041_v59 = vld [vmem:[#allocation2 + $0x18] sm:$0xf]  ;;  %v8379_v11 = vld [vmem:[%s8252_s4 + $0x20] sm:$0xff]  }
  0x26   : > { %7438 = vmatprep.subr.bf16.mxu0 %v7960_v23  ;;  %v723_v30 = vrot.slane %v721_v21, 7  ;;  %v6782_v34 = vpack.c.bf16 %v475_v25, %v475_v25  ;;  %vm413_vm1 = vcmp.gt.f32.partialorder %v380_v35, 0.0  ;;  %v446_v53 = vmul.f32 %v8314_v56, %v380_v35  ;;  %v1045_v5 = vld [vmem:[#allocation2 + $0x20] sm:$0x1] }
  0x27   : > { %v379_v26 = vadd.f32 %v8272_v31, %v340_v15  ;;  %v718_v42 = vor.u32 %v716_v20, %v715_v29  ;;  %v719_v43 = vrot.slane %v715_v29, 4 }
  0x28   : > { %7247 = vmatpush3.bf16.msra.mxu1 %v7959_v22  ;;  %v724_v22 = vshll.u32 %v6781_v13, 16  ;;  %v728_v45 = vrot.slane %v723_v30, 4  ;;  %v730_v48 = vshrl.u32 %v6782_v34, 16  ;;  %v733_v49 = vshll.u32 %v6782_v34, 16 }
  0x29   : > { %7439 = vmatpush3.bf16.msra.mxu0 %v7960_v23  ;;  %7248 = vmatprep.subr.bf16.mxu1 %v7961_v38  ;;  %v6990_v23 = vld [vmem:[%s8252_s4 + $0x18] sm:$0xff]   ;;  %vm412_vm0 = vcmp.gt.f32.partialorder %v379_v26, 0.0  ;;  %v445_v39 = vmul.f32 %v8314_v56, %v379_v26  ;;  %v1035_v51 = vsel %vm8360_vm15, %v718_v42, %v1034_v33  ;;  %v478_v60 = vsel %vm413_vm1, %v380_v35, %v446_v53 }
  0x2a   : > { %7440 = vmatprep.subr.bf16.mxu0 %v7962_v47  ;;  %v6858_v40 = vunpack.c.l.bf16 %v6990_v23  ;;  %v726_v44 = vor.u32 %v724_v22, %v723_v30  ;;  %v1039_v52 = vsel %vm8289_vm5, %v728_v45, %v1038_v37  ;;  %1036 = vst [vmem:[#allocation2 + $0xc] sm:$0xf] %v1035_v51  ;;  %v732_v54 = vrot.slane %v730_v48, 7 }
  0x2b   : > { %1040 = vst [vmem:[#allocation2 + $0x14] sm:$0x1] %v1039_v52  ;;  %v477_v58 = vsel %vm412_vm0, %v379_v26, %v445_v39  ;;  %v6859_v62 = vunpack.c.h.bf16 %v6990_v23  ;;  %v6785_v4 = vpack.c.bf16 %v478_v60, %v478_v60  ;;  %v6862_v33 = vunpack.c.l.bf16 %v8379_v11 }
  0x2c   : > { %7249 = vmatpush3.bf16.msra.mxu1 %v7961_v38  ;;  %v476_v38 = vsel %vm411_vm13, %v378_v14, %v444_v24  ;;  %v727_v50 = vsel %vm8353_vm14, %v719_v43, %v726_v44  ;;  %v6784_v61 = vpack.c.bf16 %v477_v58, %v477_v58  ;;  %v342_v63 = vmul.f32 %v6858_v40, %v8267_v28  ;;  %v1048_v22 = vld [vmem:[#allocation2 + $0x24] sm:$0xf] }
  0x2d   : > { %7441 = vmatpush3.bf16.msra.mxu0 %v7962_v47  ;;  %7282 = vmatprep.subr.bf16.mxu1 %v8325_v2  ;;  %v6783_v47 = vpack.c.bf16 %v476_v38, %v476_v38  ;;  %1037 = vst [vmem:[#allocation2 + $0x10] sm:$0xf] %v727_v50  ;;  %v735_v0 = vor.u32 %v733_v49, %v732_v54  ;;  %v736_v1 = vrot.slane %v732_v54, 4  ;;  %v755_v15 = vshrl.u32 %v6785_v4, 16 }
  0x2e   : > { %7474 = vmatprep.subr.bf16.mxu0 %v8335_v9  ;;  %v747_v6 = vshrl.u32 %v6784_v61, 16  ;;  %v750_v7 = vshll.u32 %v6784_v61, 16  ;;  %v343_v8 = vmul.f32 %v6859_v62, %v8267_v28  ;;  %v8376_v10 = vadd.f32 %v8272_v31, %v342_v63 }
  0x2f   : > { %v738_v55 = vshrl.u32 %v6783_v47, 16  ;;  %v741_v57 = vshll.u32 %v6783_v47, 16  ;;  %v1042_v14 = vsel %vm8360_vm15, %v735_v0, %v1041_v59  ;;  %v758_v17 = vshll.u32 %v6785_v4, 16 }
  0x30   : > { %1043 = vst [vmem:[#allocation2 + $0x18] sm:$0xf] %v1042_v14  ;;  %v8383_v16 = vrot.slane %v747_v6, 7  ;;  %v8386_v18 = vadd.f32 %v8272_v31, %v343_v8  ;;  %v8392_v21 = vrot.slane %v755_v15, 7  ;;  %v8397_v29 = vmul.f32 %v8314_v56, %v8376_v10 }
  0x31   : > { %v740_v3 = vrot.slane %v738_v55, 7  ;;  %v1148_v23 = vld [vmem:[#allocation2 + $0xc] sm:$0xf]  ;;  %v6863_v47 = vunpack.c.h.bf16 %v8379_v11  ;;  %vm414_vm2 = vcmp.gt.f32.partialorder %v8376_v10, 0.0  ;;  %vm2240_vm1 = vcmask 1042432  }
  0x32   : > { %v1195_v25 = vld [vmem:[#allocation2 + $0x14] sm:$0x1]  ;;  %v752_v26 = vor.u32 %v750_v7, %v8383_v16  ;;  %v8401_v30 = vmul.f32 %v8314_v56, %v8386_v18  ;;  %v1238_v34 = vshrl.u32 %v1148_v23, 16  ;;  %v1241_v35 = vshll.u32 %v1148_v23, 16  ;;  %v3063_v39 = vld [vmem:[#allocation2 + $0xc] sm:$0xf] }
  0x33   : > { %v743_v12 = vor.u32 %v741_v57, %v740_v3  ;;  %v745_v13 = vrot.slane %v740_v3, 4  ;;  %v1257_v40 = vshll.u32 %v1195_v25, 16  ;;  %v8404_v43 = vld [vmem:[#allocation2 + $0x14] sm:$0x1]  ;;  %v8407_v44 = vor.u32 %v758_v17, %v8392_v21 }
  0x34   : > { %v1149_v24 = vld [vmem:[#allocation2 + $0x10] sm:$0xf]  ;;  %v1049_v45 = vsel %vm8360_vm15, %v752_v26, %v1048_v22  ;;  %v1240_v48 = vrot.slane %v1238_v34, 4  ;;  %v1243_v49 = vrot.slane %v1241_v35, 5  ;;  %v3112_v53 = vshrl.u32 %v3063_v39, 16  ;;  %v7966_v35 = vld [vmem:[%s10165_s1 + $0x8] sm:$0xff]  }
  0x35   : > { %v744_v19 = vsel %vm8353_vm14, %v736_v1, %v743_v12  ;;  %v1046_v20 = vsel %vm8289_vm5, %v745_v13, %v1045_v5  ;;  %v1247_v37 = vshll.u32 %v1149_v24, 16  ;;  %v1251_v38 = vshrl.u32 %v1149_v24, 16  ;;  %v3064_v42 = vld [vmem:[#allocation2 + $0x10] sm:$0xf]  ;;  %1050 = vst [vmem:[#allocation2 + $0x24] sm:$0xf] %v1049_v45 }
  0x36   : > { %1044 = vst [vmem:[#allocation2 + $0x1c] sm:$0xf] %v744_v19  ;;  %1047 = vst [vmem:[#allocation2 + $0x20] sm:$0x1] %v1046_v20  ;;  %v1259_v52 = vrot.slane %v1257_v40, 5  ;;  %v3115_v54 = vshll.u32 %v3063_v39, 16  ;;  %v1244_v57 = vor.u32 %v1243_v49, %v1240_v48 }
  0x37   : > { %v1249_v50 = vrot.slane %v1247_v37, 5  ;;  %v1253_v51 = vrot.slane %v1251_v38, 4  ;;  %v3121_v55 = vshll.u32 %v3064_v42, 16  ;;  %v3125_v59 = vshrl.u32 %v3064_v42, 16  ;;  %v3066_v61 = vld [vmem:[#allocation2 + $0x18] sm:$0xf] }
  0x38   : > { %v3131_v60 = vshll.u32 %v8404_v43, 16  ;;  %v3114_v62 = vrot.slane %v3112_v53, 4  ;;  %v3117_v63 = vrot.slane %v3115_v54, 5  ;;  %v3886_v1 = vrot.slane %v8404_v43, 5  ;;  %v1150_v34 = vld [vmem:[#allocation2 + $0x18] sm:$0xf] }
  0x39   : > { %v1254_v58 = vor.u32 %v1253_v51, %v1249_v50  ;;  %v3123_v0 = vrot.slane %v3121_v55, 5  ;;  %v1245_v3 = vrot.slane %v1244_v57, 4  ;;  %v3127_v5 = vrot.slane %v3125_v59, 4 }
  0x3a   : > { %v3133_v6 = vrot.slane %v3131_v60, 5  ;;  %v3118_v8 = vor.u32 %v3117_v63, %v3114_v62  ;;  %v3136_v13 = vshrl.u32 %v3066_v61, 16  ;;  %v3139_v14 = vshll.u32 %v3066_v61, 16  ;;  %v1052_v61 = vld [vmem:[#allocation2 + $0x2c] sm:$0x1]  ;;  %v7969_v63 = vld [vmem:[%s10165_s1 + $0x10] sm:$0xff]  }
  0x3b   : > { %v1255_v4 = vrot.slane %v1254_v58, 4  ;;  %v1250_v17 = vsel %vm8278_vm3, %v1245_v3, %v1249_v50  ;;  %v3128_v20 = vor.u32 %v3127_v5, %v3123_v0  ;;  %v1262_v55 = vshrl.u32 %v1150_v34, 16 }
  0x3c   : > { %v3119_v24 = vrot.slane %v3118_v8, 4  ;;  %v3138_v25 = vrot.slane %v3136_v13, 4  ;;  %v3141_v26 = vrot.slane %v3139_v14, 5  ;;  %v1265_v60 = vshll.u32 %v1150_v34, 16  ;;  %v1152_v62 = vld [vmem:[#allocation2 + $0x24] sm:$0xf] }
  0x3d   : > { %v8414_v7 = vld [vmem:[#allocation2 + $0x1c] sm:$0xf]  ;;  %v8416_v12 = vld [vmem:[#allocation2 + $0x20] sm:$0x1]  ;;  %v1260_v19 = vsel %vm8278_vm3, %v1255_v4, %v1259_v52  ;;  %v3129_v37 = vrot.slane %v3128_v20, 4  ;;  %v1264_v3 = vrot.slane %v1262_v55, 4 }
  0x3e   : > { %v3145_v15 = vshll.u32 %v8414_v7, 16  ;;  %v3149_v22 = vshrl.u32 %v8414_v7, 16  ;;  %v6369_v23 = vcombine.low %v1250_v17, %v1260_v19  ;;  %v3155_v40 = vshll.u32 %v8416_v12, 16  ;;  %v1151_v50 = vld [vmem:[#allocation2 + $0x1c] sm:$0xf] }
  0x3f   : > { %v3124_v42 = vsel %vm8278_vm3, %v3119_v24, %v3123_v0  ;;  %v3142_v45 = vor.u32 %v3141_v26, %v3138_v25  ;;  %v3890_v48 = vrot.slane %v8414_v7, 5  ;;  %v3893_v49 = vrot.slane %v8416_v12, 5  ;;  %v1196_v51 = vld [vmem:[#allocation2 + $0x20] sm:$0x1]  ;;  %v3069_v20 = vld [vmem:[#allocation2 + $0x24] sm:$0xf] }
  0x40   : > { %v3147_v38 = vrot.slane %v3145_v15, 5  ;;  %v3151_v39 = vrot.slane %v3149_v22, 4  ;;  %7251 = vmatmul.mubr.bf16.vlgmr.msra.gmra.mrb[0].mxu1 %v6369_v23  ;;  %v3134_v52 = vsel %vm8278_vm3, %v3129_v37, %v3133_v6  ;;  %v3157_v54 = vrot.slane %v3155_v40, 5  ;;  %v7965_v23 = vld [vmem:[%s10165_s1 + $0x148] sm:$0xff]   ;;  %v7972_v26 = vld [vmem:[%s10165_s1 + $0x18] sm:$0xff]  }
  0x41   : > { %7283 = vmatpush3.bf16.msra.mxu1 %v8325_v2  ;;  %v6528_v57 = vcombine.low %v3124_v42, %v3134_v52  ;;  %v3143_v58 = vrot.slane %v3142_v45, 4  ;;  %v8438_v59 = vrot.slane %v3890_v48, 4  ;;  %v1271_v2 = vshll.u32 %v1151_v50, 16 }
  0x42   : > { %v3152_v53 = vor.u32 %v3151_v39, %v3147_v38  ;;  %7284 = vmatprep.subr.bf16.mxu1 %v7966_v35  ;;  %v1275_v4 = vshrl.u32 %v1151_v50, 16  ;;  %v1267_v6 = vrot.slane %v1265_v60, 5  ;;  %v1281_v8 = vshll.u32 %v1196_v51, 16  ;;  %v575_v39 = vld [vmem:[#allocation2 + $0x38] sm:$0x1] }
  0x43   : > { %7442 = vmatprep.mubr.bf16.mxu0 %v6528_v57  ;;  %v3148_v5 = vsel %vm8278_vm3, %v3143_v58, %v3147_v38  ;;  %v753_v13 = vrot.slane %v8383_v16, 4  ;;  %v1273_v15 = vrot.slane %v1271_v2, 5  ;;  %v762_v19 = vrot.slane %v8392_v21, 4  ;;  %v525_v38 = vld [vmem:[#allocation2 + $0x30] sm:$0x1] }
  0x44   : > { %v3153_v0 = vrot.slane %v3152_v53, 4  ;;  %v1277_v17 = vrot.slane %v1275_v4, 4  ;;  %v1268_v24 = vor.u32 %v1267_v6, %v1264_v3  ;;  %v1283_v25 = vrot.slane %v1281_v8, 5  ;;  %v7967_v53 = vld [vmem:[%s10165_s1 + $0x150] sm:$0xff]   ;;  %v7968_v4 = vld [vmem:[%s10165_s1 + $0x158] sm:$0xff]  }
  0x45   : > { %7285 = vmatpush3.bf16.msra.mxu1 %v7966_v35  ;;  %v761_v16 = vsel %vm8353_vm14, %v753_v13, %v8407_v44  ;;  %v1053_v21 = vsel %vm8289_vm5, %v762_v19, %v1052_v61  ;;  %v1286_v35 = vshrl.u32 %v1152_v62, 16  ;;  %v1289_v37 = vshll.u32 %v1152_v62, 16  ;;  %v528_v44 = vld [vmem:[#allocation2 + $0x3c] sm:$0x1] }
  0x46   : > { %v3158_v14 = vsel %vm8278_vm3, %v3153_v0, %v3157_v54  ;;  %7286 = vmatprep.subr.bf16.mxu1 %v7969_v63  ;;  %v1278_v34 = vor.u32 %v1277_v17, %v1273_v15  ;;  %1051 = vst [vmem:[#allocation2 + $0x28] sm:$0xf] %v761_v16  ;;  %v1269_v40 = vrot.slane %v1268_v24, 4  ;;  %1054 = vst [vmem:[#allocation2 + $0x2c] sm:$0x1] %v1053_v21  ;;  %v3160_v42 = vshrl.u32 %v3069_v20, 16 }
  0x47   : > { %v6529_v22 = vcombine.low %v3148_v5, %v3158_v14  ;;  %v3163_v45 = vshll.u32 %v3069_v20, 16  ;;  %vm415_vm4 = vcmp.gt.f32.partialorder %v8386_v18, 0.0  ;;  %v1288_v51 = vrot.slane %v1286_v35, 4 }
  0x48   : > { %v1279_v50 = vrot.slane %v1278_v34, 4  ;;  %v1291_v52 = vrot.slane %v1289_v37, 5  ;;  %v479_v54 = vsel %vm414_vm2, %v8376_v10, %v8397_v29  ;;  %v1274_v55 = vsel %vm8278_vm3, %v1269_v40, %v1273_v15  ;;  %v8480_v29 = vld [vmem:[%s8252_s4 + $0x28] sm:$0xff]  }
  0x49   : > { %7443 = vmatmul.mubr.bf16.vlgmr.msra.gmra.mrb[0].mxu0 %v6529_v22  ;;  %7287 = vmatpush3.bf16.msra.mxu1 %v7969_v63  ;;  %v3162_v57 = vrot.slane %v3160_v42, 4  ;;  %v480_v58 = vsel %vm415_vm4, %v8386_v18, %v8401_v30  ;;  %v526_v62 = vsel %vm8289_vm5, 0, %v525_v38  ;;  %v576_v10 = vsel %vm8299_vm7, 0, %v575_v39  ;;  %v7975_v63 = vld [vmem:[%s10165_s1 + $0x20] sm:$0xff]  }
  0x4a   : > { %7475 = vmatpush3.bf16.msra.mxu0 %v8335_v9  ;;  %v3165_v9 = vrot.slane %v3163_v45, 5  ;;  %7288 = vmatprep.subr.bf16.mxu1 %v7972_v26  ;;  %v1284_v60 = vsel %vm8278_vm3, %v1279_v50, %v1283_v25  ;;  %v1292_v61 = vor.u32 %v1291_v52, %v1288_v51  ;;  %527 = vst [vmem:[#allocation2 + $0x30] sm:$0x1] %v526_v62  ;;  %577 = vst [vmem:[#allocation2 + $0x38] sm:$0x1] %v576_v10  ;;  %v7970_v39 = vld [vmem:[%s10165_s1 + $0x160] sm:$0xff]  }
  0x4b   : > { %7476 = vmatprep.subr.bf16.mxu0 %v7965_v23  ;;  %v6370_v0 = vcombine.low %v1274_v55, %v1284_v60  ;;  %v6786_v18 = vpack.c.bf16 %v479_v54, %v479_v54  ;;  %v8485_v30 = vpack.c.bf16 %v480_v58, %v480_v58  ;;  %v344_v5 = vmul.f32 %v6862_v33, %v8267_v28 }
  0x4c   : > { %v3166_v3 = vor.u32 %v3165_v9, %v3162_v57  ;;  %v8487_v2 = vrot.slane %v1292_v61, 4  ;;  %v345_v6 = vmul.f32 %v6863_v47, %v8267_v28  ;;  %v529_v8 = vsel %vm8289_vm5, 0, %v528_v44  ;;  %v578_v61 = vld [vmem:[#allocation2 + $0x44] sm:$0x1] }
  0x4d   : > { %7289 = vmatpush3.bf16.msra.mxu1 %v7972_v26  ;;  %7254 = vmatprep.mubr.bf16.mxu1 %v6370_v0  ;;  %v1153_v13 = vld [vmem:[#allocation2 + $0x28] sm:$0xf]  ;;  %v764_v17 = vshrl.u32 %v6786_v18, 16  ;;  %530 = vst [vmem:[#allocation2 + $0x3c] sm:$0x1] %v529_v8  ;;  %v6866_v19 = vunpack.c.l.bf16 %v8480_v29  ;;  %v6867_v33 = vunpack.c.h.bf16 %v8480_v29  ;;  %v767_v38 = vshll.u32 %v6786_v18, 16 }
  0x4e   : > { %7477 = vmatpush3.bf16.msra.mxu0 %v7965_v23  ;;  %v3070_v14 = vld [vmem:[#allocation2 + $0x28] sm:$0xf]  ;;  %v8500_v15 = vrot.slane %v3166_v3, 4  ;;  %v1197_v20 = vld [vmem:[#allocation2 + $0x2c] sm:$0x1]  ;;  %v1295_v22 = vshll.u32 %v1153_v13, 16  ;;  %v383_v23 = vadd.f32 %v8272_v31, %v344_v5  ;;  %v384_v24 = vadd.f32 %v8272_v31, %v345_v6  ;;  %7290 = vmatprep.subr.bf16.mxu1 %v7975_v63 }
  0x4f   : > { %7478 = vmatprep.subr.bf16.mxu0 %v7967_v53  ;;  %v1299_v11 = vshrl.u32 %v1153_v13, 16  ;;  %v3071_v47 = vld [vmem:[#allocation2 + $0x2c] sm:$0x1]  ;;  %v1305_v25 = vshll.u32 %v1197_v20, 16  ;;  %v3169_v16 = vshll.u32 %v3070_v14, 16  ;;  %v3173_v26 = vshrl.u32 %v3070_v14, 16 }
  0x50   : > { %v3179_v34 = vshll.u32 %v3071_v47, 16  ;;  %v1297_v21 = vrot.slane %v1295_v22, 5  ;;  %v766_v37 = vrot.slane %v764_v17, 7  ;;  %v772_v58 = vshrl.u32 %v8485_v30, 16  ;;  %v7971_v8 = vld [vmem:[%s10165_s1 + $0x168] sm:$0xff]   ;;  %v7973_v22 = vld [vmem:[%s10165_s1 + $0x170] sm:$0xff]  }
  0x51   : > { %v1301_v35 = vrot.slane %v1299_v11, 4  ;;  %7291 = vmatpush3.bf16.msra.mxu1 %v7975_v63  ;;  %v1307_v40 = vrot.slane %v1305_v25, 5  ;;  %v3171_v42 = vrot.slane %v3169_v16, 5  ;;  %v3175_v45 = vrot.slane %v3173_v26, 4  ;;  %v1055_v55 = vld [vmem:[#allocation2 + $0x30] sm:$0xf] }
  0x52   : > { %7479 = vmatpush3.bf16.msra.mxu0 %v7967_v53  ;;  %v3181_v44 = vrot.slane %v3179_v34, 5  ;;  %v1298_v50 = vsel %vm8278_vm3, %v8487_v2, %v1297_v21  ;;  %v769_v52 = vor.u32 %v767_v38, %v766_v37  ;;  %v770_v54 = vrot.slane %v766_v37, 4  ;;  %v7977_v53 = vld [vmem:[%s10165_s1 + $0x28] sm:$0xff]   ;;  %v1059_v29 = vld [vmem:[#allocation2 + $0x38] sm:$0x1] }
  0x53   : > { %7480 = vmatprep.subr.bf16.mxu0 %v7968_v4  ;;  %v1302_v51 = vor.u32 %v1301_v35, %v1297_v21  ;;  %v3172_v57 = vsel %vm8278_vm3, %v8500_v15, %v3171_v42  ;;  %v3176_v9 = vor.u32 %v3175_v45, %v3171_v42  ;;  %v775_v60 = vshll.u32 %v8485_v30, 16  ;;  %7292 = vmatprep.subr.bf16.mxu1 %v7977_v53  ;;  %v531_v2 = vld [vmem:[#allocation2 + $0x48] sm:$0x1]  ;;  %v581_v20 = vld [vmem:[#allocation2 + $0x50] sm:$0x1] }
  0x54   : > { %v1056_v10 = vsel %vm8360_vm15, %v769_v52, %v1055_v55  ;;  %vm416_vm6 = vcmp.gt.f32.partialorder %v383_v23, 0.0  ;;  %vm417_vm8 = vcmp.gt.f32.partialorder %v384_v24, 0.0  ;;  %v774_v0 = vrot.slane %v772_v58, 7  ;;  %v8558_v58 = vld [vmem:[%s8252_s4 + $0x30] sm:$0xff]  }
  0x55   : > { %v1303_v62 = vrot.slane %v1302_v51, 4  ;;  %v3177_v63 = vrot.slane %v3176_v9, 4  ;;  %1057 = vst [vmem:[#allocation2 + $0x30] sm:$0xf] %v1056_v10  ;;  %v449_v3 = vmul.f32 %v8314_v56, %v383_v23  ;;  %v450_v18 = vmul.f32 %v8314_v56, %v384_v24  ;;  %7293 = vmatpush3.bf16.msra.mxu1 %v7977_v53 }
  0x56   : > { %7481 = vmatpush3.bf16.msra.mxu0 %v7968_v4  ;;  %v579_v5 = vsel %vm8299_vm7, 0, %v578_v61  ;;  %v346_v4 = vmul.f32 %v6866_v19, %v8267_v28  ;;  %v347_v6 = vmul.f32 %v6867_v33, %v8267_v28  ;;  %v777_v15 = vor.u32 %v775_v60, %v774_v0 }
  0x57   : > { %7482 = vmatprep.subr.bf16.mxu0 %v7970_v39  ;;  %v1308_v30 = vsel %vm8278_vm3, %v1303_v62, %v1307_v40  ;;  %v3182_v14 = vsel %vm8278_vm3, %v3177_v63, %v3181_v44  ;;  %v779_v17 = vrot.slane %v774_v0, 4  ;;  %580 = vst [vmem:[#allocation2 + $0x44] sm:$0x1] %v579_v5  ;;  %v481_v19 = vsel %vm416_vm6, %v383_v23, %v449_v3 }
  0x58   : > { %v6371_v13 = vcombine.low %v1298_v50, %v1308_v30  ;;  %v6530_v11 = vcombine.low %v3172_v57, %v3182_v14  ;;  %v482_v28 = vsel %vm417_vm8, %v384_v24, %v450_v18  ;;  %v385_v33 = vadd.f32 %v8272_v31, %v346_v4 }
  0x59   : > { %v778_v47 = vsel %vm8353_vm14, %v770_v54, %v777_v15  ;;  %v1060_v25 = vsel %vm8289_vm5, %v779_v17, %v1059_v29  ;;  %v6788_v16 = vpack.c.bf16 %v481_v19, %v481_v19  ;;  %v6789_v26 = vpack.c.bf16 %v482_v28, %v482_v28  ;;  %v7974_v54 = vld [vmem:[%s10165_s1 + $0x178] sm:$0xff]   ;;  %v7976_v29 = vld [vmem:[%s10165_s1 + $0x180] sm:$0xff]  }
  0x5a   : > { %7483 = vmatpush3.bf16.msra.mxu0 %v7970_v39  ;;  %7255 = vmatmul.mubr.bf16.gmra.mrb[4].mxu1 %v6371_v13  ;;  %1058 = vst [vmem:[#allocation2 + $0x34] sm:$0xf] %v778_v47  ;;  %1061 = vst [vmem:[#allocation2 + $0x38] sm:$0x1] %v1060_v25  ;;  %v386_v34 = vadd.f32 %v8272_v31, %v347_v6  ;;  %vm418_vm9 = vcmp.gt.f32.partialorder %v385_v33, 0.0  ;;  %v451_v23 = vmul.f32 %v8314_v56, %v385_v33  ;;  %vm2241_vm2 = vcmask 1046532  }
  0x5b   : > { %7446 = vmatprep.mubr.bf16.mxu0 %v6530_v11  ;;  %v532_v24 = vsel %vm8289_vm5, 0, %v531_v2  ;;  %7484 = vmatprep.subr.bf16.mxu0 %v7971_v8  ;;  %v781_v21 = vshrl.u32 %v6788_v16, 16  ;;  %v784_v35 = vshll.u32 %v6788_v16, 16  ;;  %v789_v37 = vshrl.u32 %v6789_v26, 16  ;;  %v1062_v2 = vld [vmem:[#allocation2 + $0x3c] sm:$0xf]  ;;  %vm8674_vm4 = vmor %vm2240_vm1, %vm2241_vm2 }
  0x5c   : > { %v792_v38 = vshll.u32 %v6789_v26, 16  ;;  %533 = vst [vmem:[#allocation2 + $0x48] sm:$0x1] %v532_v24  ;;  %v3072_v39 = vld [vmem:[#allocation2 + $0x30] sm:$0xf]  ;;  %vm419_vm10 = vcmp.gt.f32.partialorder %v386_v34, 0.0  ;;  %v452_v42 = vmul.f32 %v8314_v56, %v386_v34  ;;  %v483_v45 = vsel %vm418_vm9, %v385_v33, %v451_v23 }
  0x5d   : > { %v1154_v40 = vld [vmem:[#allocation2 + $0x30] sm:$0xf]  ;;  %v582_v31 = vsel %vm8299_vm7, 0, %v581_v20  ;;  %v3184_v44 = vshrl.u32 %v3072_v39, 16  ;;  %v3187_v50 = vshll.u32 %v3072_v39, 16  ;;  %v783_v55 = vrot.slane %v781_v21, 7 }
  0x5e   : > { %7485 = vmatpush3.bf16.msra.mxu0 %v7971_v8  ;;  %v1310_v51 = vshrl.u32 %v1154_v40, 16  ;;  %v1313_v52 = vshll.u32 %v1154_v40, 16  ;;  %583 = vst [vmem:[#allocation2 + $0x50] sm:$0x1] %v582_v31  ;;  %v791_v53 = vrot.slane %v789_v37, 7  ;;  %v484_v57 = vsel %vm419_vm10, %v386_v34, %v452_v42 }
  0x5f   : > { %7486 = vmatprep.subr.bf16.mxu0 %v7973_v22  ;;  %v8555_v9 = vpack.c.bf16 %v483_v45, %v483_v45  ;;  %v3186_v60 = vrot.slane %v3184_v44, 4  ;;  %v3189_v61 = vrot.slane %v3187_v50, 5  ;;  %v786_v63 = vor.u32 %v784_v35, %v783_v55  ;;  %v1066_v16 = vld [vmem:[#allocation2 + $0x44] sm:$0x1]  ;;  %v534_v24 = vld [vmem:[#allocation2 + $0x54] sm:$0x1] }
  0x60   : > { %v1312_v62 = vrot.slane %v1310_v51, 4  ;;  %v1315_v10 = vrot.slane %v1313_v52, 5  ;;  %v787_v0 = vrot.slane %v783_v55, 4  ;;  %v794_v3 = vor.u32 %v792_v38, %v791_v53  ;;  %v584_v39 = vld [vmem:[#allocation2 + $0x5c] sm:$0x1] }
  0x61   : > { %v796_v18 = vrot.slane %v791_v53, 4  ;;  %v3073_v30 = vld [vmem:[#allocation2 + $0x34] sm:$0xf]  ;;  %v3074_v5 = vld [vmem:[#allocation2 + $0x38] sm:$0x1]  ;;  %v3190_v4 = vor.u32 %v3189_v61, %v3186_v60  ;;  %v6791_v13 = vpack.c.bf16 %v484_v57, %v484_v57  ;;  %v6870_v14 = vunpack.c.l.bf16 %v8558_v58 }
  0x62   : > { %7487 = vmatpush3.bf16.msra.mxu0 %v7973_v22  ;;  %v1155_v6 = vld [vmem:[#allocation2 + $0x34] sm:$0xf]  ;;  %v1316_v8 = vor.u32 %v1315_v10, %v1312_v62  ;;  %v3193_v15 = vshll.u32 %v3073_v30, 16  ;;  %v3197_v17 = vshrl.u32 %v3073_v30, 16  ;;  %v3203_v20 = vshll.u32 %v3074_v5, 16  ;;  %v8599_v30 = vld [vmem:[%s8252_s4 + $0x38] sm:$0xff]  }
  0x63   : > { %7488 = vmatprep.subr.bf16.mxu0 %v7974_v54  ;;  %v1198_v11 = vld [vmem:[#allocation2 + $0x38] sm:$0x1]  ;;  %v1319_v19 = vshll.u32 %v1155_v6, 16  ;;  %v3191_v28 = vrot.slane %v3190_v4, 4  ;;  %v1323_v47 = vshrl.u32 %v1155_v6, 16  ;;  %v795_v37 = vsel %vm8353_vm14, %v787_v0, %v794_v3 }
  0x64   : > { %v1317_v33 = vrot.slane %v1316_v8, 4  ;;  %v1329_v25 = vshll.u32 %v1198_v11, 16  ;;  %v3195_v22 = vrot.slane %v3193_v15, 5  ;;  %v3199_v26 = vrot.slane %v3197_v17, 4  ;;  %1065 = vst [vmem:[#allocation2 + $0x40] sm:$0xf] %v795_v37 }
  0x65   : > { %v3205_v34 = vrot.slane %v3203_v20, 5  ;;  %v1321_v23 = vrot.slane %v1319_v19, 5  ;;  %v1325_v21 = vrot.slane %v1323_v47, 4  ;;  %v1063_v38 = vsel %vm8360_vm15, %v786_v63, %v1062_v2  ;;  %v8580_v57 = vld [vmem:[%s10166_s2] ss:$0 sm:$0xff] }
  0x66   : > { %7489 = vmatpush3.bf16.msra.mxu0 %v7974_v54  ;;  %v1331_v35 = vrot.slane %v1329_v25, 5  ;;  %v3196_v40 = vsel %vm8278_vm3, %v3191_v28, %v3195_v22  ;;  %v3200_v42 = vor.u32 %v3199_v26, %v3195_v22  ;;  %1064 = vst [vmem:[#allocation2 + $0x3c] sm:$0xf] %v1063_v38  ;;  %v1067_v31 = vsel %vm8289_vm5, %v796_v18, %v1066_v16  ;;  %v1073_v0 = vld [vmem:[#allocation2 + $0x50] sm:$0x1] }
  0x67   : > { %7522 = vmatprep.subr.bf16.mxu0 %v7976_v29  ;;  %v1322_v45 = vsel %vm8278_vm3, %v1317_v33, %v1321_v23  ;;  %v1326_v44 = vor.u32 %v1325_v21, %v1321_v23  ;;  %1068 = vst [vmem:[#allocation2 + $0x44] sm:$0x1] %v1067_v31  ;;  %v798_v50 = vshrl.u32 %v8555_v9, 16  ;;  %v801_v51 = vshll.u32 %v8555_v9, 16  ;;  %v1069_v29 = vld [vmem:[#allocation2 + $0x48] sm:$0xf] }
  0x68   : > { %v806_v52 = vshrl.u32 %v6791_v13, 16  ;;  %v3201_v54 = vrot.slane %v3200_v42, 4  ;;  %v809_v55 = vshll.u32 %v6791_v13, 16  ;;  %v6871_v53 = vunpack.c.h.bf16 %v8558_v58  ;;  %v8591_v3 = vld [vmem:[%s10167_s3] ss:$0 sm:$0xff] }
  0x69   : > { %v348_v60 = vmul.f32 %v8580_v57, %v6870_v14  ;;  %v1327_v61 = vrot.slane %v1326_v44, 4  ;;  %v800_v62 = vrot.slane %v798_v50, 7  ;;  %v535_v9 = vsel %vm8289_vm5, 0, %v534_v24  ;;  %v7979_v44 = vld [vmem:[%s10165_s1 + $0x30] sm:$0xff]  }
  0x6a   : > { %v808_v10 = vrot.slane %v806_v52, 7  ;;  %v3206_v63 = vsel %vm8278_vm3, %v3201_v54, %v3205_v34  ;;  %v349_v58 = vmul.f32 %v8580_v57, %v6871_v53  ;;  %536 = vst [vmem:[#allocation2 + $0x54] sm:$0x1] %v535_v9  ;;  %v585_v2 = vsel %vm8299_vm7, 0, %v584_v39  ;;  %7294 = vmatprep.subr.bf16.mxu1 %v7979_v44 }
  0x6b   : > { %v8594_v18 = vadd.f32 %v8591_v3, %v348_v60  ;;  %v6531_v5 = vcombine.low %v3196_v40, %v3206_v63  ;;  %v1332_v4 = vsel %vm8278_vm3, %v1327_v61, %v1331_v35  ;;  %v803_v6 = vor.u32 %v801_v51, %v800_v62  ;;  %586 = vst [vmem:[#allocation2 + $0x5c] sm:$0x1] %v585_v2  ;;  %v1157_v11 = vld [vmem:[#allocation2 + $0x40] sm:$0xf] }
  0x6c   : > { %v804_v8 = vrot.slane %v800_v62, 4  ;;  %v6372_v13 = vcombine.low %v1322_v45, %v1332_v4  ;;  %v811_v14 = vor.u32 %v809_v55, %v808_v10  ;;  %v813_v15 = vrot.slane %v808_v10, 4  ;;  %v3076_v21 = vld [vmem:[#allocation2 + $0x40] sm:$0xf]  ;;  %7295 = vmatpush3.bf16.msra.mxu1 %v7979_v44 }
  0x6d   : > { %v8604_v17 = vadd.f32 %v8591_v3, %v349_v58  ;;  %7447 = vmatmul.mubr.bf16.gmra.mrb[4].mxu0 %v6531_v5  ;;  %v1156_v20 = vld [vmem:[#allocation2 + $0x3c] sm:$0xf]  ;;  %v1070_v28 = vsel %vm8360_vm15, %v803_v6, %v1069_v29  ;;  %v453_v33 = vmul.f32 %v8314_v56, %v8594_v18  ;;  %v6874_v47 = vunpack.c.l.bf16 %v8599_v30 }
  0x6e   : > { %v3075_v19 = vld [vmem:[#allocation2 + $0x3c] sm:$0xf]  ;;  %v6875_v25 = vunpack.c.h.bf16 %v8599_v30  ;;  %7258 = vmatprep.mubr.bf16.mxu1 %v6372_v13  ;;  %v1199_v16 = vld [vmem:[#allocation2 + $0x44] sm:$0x1]  ;;  %v1334_v22 = vshrl.u32 %v1156_v20, 16  ;;  %v1337_v26 = vshll.u32 %v1156_v20, 16  ;;  %v812_v38 = vsel %vm8353_vm14, %v804_v8, %v811_v14 }
  0x6f   : > { %v1343_v34 = vshll.u32 %v1157_v11, 16  ;;  %v1347_v23 = vshrl.u32 %v1157_v11, 16  ;;  %1071 = vst [vmem:[#allocation2 + $0x48] sm:$0xf] %v1070_v28  ;;  %v1353_v24 = vshll.u32 %v1199_v16, 16  ;;  %v3208_v37 = vshrl.u32 %v3075_v19, 16 }
  0x70   : > { %v3077_v35 = vld [vmem:[#allocation2 + $0x44] sm:$0x1]  ;;  %v1074_v39 = vsel %vm8289_vm5, %v813_v15, %v1073_v0  ;;  %v1336_v40 = vrot.slane %v1334_v22, 4  ;;  %v1339_v42 = vrot.slane %v1337_v26, 5  ;;  %1072 = vst [vmem:[#allocation2 + $0x4c] sm:$0xf] %v812_v38  ;;  %v454_v4 = vmul.f32 %v8314_v56, %v8604_v17 }
  0x71   : > { %v1345_v45 = vrot.slane %v1343_v34, 5  ;;  %v1349_v31 = vrot.slane %v1347_v23, 4  ;;  %1075 = vst [vmem:[#allocation2 + $0x50] sm:$0x1] %v1074_v39  ;;  %v1355_v50 = vrot.slane %v1353_v24, 5  ;;  %v3210_v51 = vrot.slane %v3208_v37, 4 }
  0x72   : > { %v3211_v52 = vshll.u32 %v3075_v19, 16  ;;  %v3217_v54 = vshll.u32 %v3076_v21, 16  ;;  %v1340_v55 = vor.u32 %v1339_v42, %v1336_v40  ;;  %v3221_v60 = vshrl.u32 %v3076_v21, 16 }
  0x73   : > { %v1350_v53 = vor.u32 %v1349_v31, %v1345_v45  ;;  %v3227_v61 = vshll.u32 %v3077_v35, 16  ;;  %vm420_vm11 = vcmp.gt.f32.partialorder %v8594_v18, 0.0  ;;  %vm421_vm12 = vcmp.gt.f32.partialorder %v8604_v17, 0.0 }
  0x74   : > { %v3213_v62 = vrot.slane %v3211_v52, 5  ;;  %v3219_v10 = vrot.slane %v3217_v54, 5  ;;  %v1341_v29 = vrot.slane %v1340_v55, 4  ;;  %v3223_v63 = vrot.slane %v3221_v60, 4 }
  0x75   : > { %v1351_v9 = vrot.slane %v1350_v53, 4  ;;  %v3229_v0 = vrot.slane %v3227_v61, 5  ;;  %v485_v6 = vsel %vm420_vm11, %v8594_v18, %v453_v33  ;;  %v350_v8 = vmul.f32 %v8580_v57, %v6874_v47 }
  0x76   : > { %v3214_v58 = vor.u32 %v3213_v62, %v3210_v51  ;;  %v3078_v2 = vld [vmem:[#allocation2 + $0x48] sm:$0xf]  ;;  %v1346_v13 = vsel %vm8278_vm3, %v1341_v29, %v1345_v45  ;;  %v3224_v15 = vor.u32 %v3223_v63, %v3219_v10  ;;  %v486_v26 = vsel %vm421_vm12, %v8604_v17, %v454_v4 }
  0x77   : > { %v1158_v5 = vld [vmem:[#allocation2 + $0x48] sm:$0xf]  ;;  %v1356_v14 = vsel %vm8278_vm3, %v1351_v9, %v1355_v50  ;;  %v3232_v20 = vshrl.u32 %v3078_v2, 16  ;;  %v3079_v28 = vld [vmem:[#allocation2 + $0x4c] sm:$0xf]  ;;  %v3235_v22 = vshll.u32 %v3078_v2, 16  ;;  %v6792_v61 = vpack.c.bf16 %v485_v6, %v485_v6 }
  0x78   : > { %v6373_v11 = vcombine.low %v1346_v13, %v1356_v14  ;;  %v3215_v19 = vrot.slane %v3214_v58, 4  ;;  %v3080_v16 = vld [vmem:[#allocation2 + $0x50] sm:$0x1]  ;;  %v3225_v18 = vrot.slane %v3224_v15, 4  ;;  %v3241_v47 = vshll.u32 %v3079_v28, 16 }
  0x79   : > { %v3234_v33 = vrot.slane %v3232_v20, 4  ;;  %v3245_v34 = vshrl.u32 %v3079_v28, 16  ;;  %v1159_v23 = vld [vmem:[#allocation2 + $0x4c] sm:$0xf]  ;;  %v3237_v21 = vrot.slane %v3235_v22, 5  ;;  %v3251_v35 = vshll.u32 %v3080_v16, 16 }
  0x7a   : > { %7259 = vmatmul.mubr.bf16.gmra.mrb[8].mxu1 %v6373_v11  ;;  %v3220_v24 = vsel %vm8278_vm3, %v3215_v19, %v3219_v10  ;;  %v1200_v37 = vld [vmem:[#allocation2 + $0x50] sm:$0x1]  ;;  %v1358_v38 = vshrl.u32 %v1158_v5, 16  ;;  %v3230_v39 = vsel %vm8278_vm3, %v3225_v18, %v3229_v0  ;;  %v3243_v40 = vrot.slane %v3241_v47, 5  ;;  %v537_v0 = vld [vmem:[#allocation2 + $0x60] sm:$0x1] }
  0x7b   : > { %v3247_v42 = vrot.slane %v3245_v34, 4  ;;  %v1361_v45 = vshll.u32 %v1158_v5, 16  ;;  %v6532_v17 = vcombine.low %v3220_v24, %v3230_v39  ;;  %v3238_v31 = vor.u32 %v3237_v21, %v3234_v33  ;;  %v1076_v6 = vld [vmem:[#allocation2 + $0x54] sm:$0xf]  ;;  %v1080_v16 = vld [vmem:[#allocation2 + $0x5c] sm:$0x1] }
  0x7c   : > { %v3253_v44 = vrot.slane %v3251_v35, 5  ;;  %v1360_v50 = vrot.slane %v1358_v38, 4  ;;  %v1367_v54 = vshll.u32 %v1159_v23, 16  ;;  %v1371_v55 = vshrl.u32 %v1159_v23, 16  ;;  %v6995_v23 = vld [vmem:[%s8252_s4 + $0x40] sm:$0xff]  }
  0x7d   : > { %v3248_v51 = vor.u32 %v3247_v42, %v3243_v40  ;;  %v1363_v52 = vrot.slane %v1361_v45, 5  ;;  %7450 = vmatprep.mubr.bf16.mxu0 %v6532_v17  ;;  %v3239_v53 = vrot.slane %v3238_v31, 4  ;;  %v1377_v60 = vshll.u32 %v1200_v37, 16  ;;  %v540_v24 = vld [vmem:[#allocation2 + $0x6c] sm:$0x1] }
  0x7e   : > { %v6793_v62 = vpack.c.bf16 %v486_v26, %v486_v26  ;;  %v1369_v9 = vrot.slane %v1367_v54, 5  ;;  %v1373_v63 = vrot.slane %v1371_v55, 4  ;;  %v815_v5 = vshrl.u32 %v6792_v61, 16  ;;  %v587_v26 = vld [vmem:[#allocation2 + $0x68] sm:$0x1] }
  0x7f   : > { %v3249_v10 = vrot.slane %v3248_v51, 4  ;;  %v1364_v29 = vor.u32 %v1363_v52, %v1360_v50  ;;  %v3244_v58 = vsel %vm8278_vm3, %v3239_v53, %v3243_v40  ;;  %v1379_v2 = vrot.slane %v1377_v60, 5  ;;  %v590_v38 = vld [vmem:[#allocation2 + $0x74] sm:$0x1]  ;;  %v3817_v17 = vld [vmem:[#allocation2 + $0xc] sm:$0xe] }
  0x80   : > { %v818_v4 = vshll.u32 %v6792_v61, 16  ;;  %v1374_v15 = vor.u32 %v1373_v63, %v1369_v9  ;;  %v823_v20 = vshrl.u32 %v6793_v62, 16  ;;  %v817_v19 = vrot.slane %v815_v5, 7  ;;  %v8664_v60 = vld [vmem:[#allocation2 + $0x18] sm:$0xe] }
  0x81   : > { %v3254_v13 = vsel %vm8278_vm3, %v3249_v10, %v3253_v44  ;;  %v1365_v14 = vrot.slane %v1364_v29, 4  ;;  %v826_v28 = vshll.u32 %v6793_v62, 16  ;;  %v351_v22 = vmul.f32 %v8580_v57, %v6875_v25  ;;  %v7981_v29 = vld [vmem:[%s10165_s1 + $0x38] sm:$0xff]   ;;  %v8096_v27 = vld [vmem:[#allocation2 + $0x48] sm:$0xf] }
  0x82   : > { %v6533_v11 = vcombine.low %v3244_v58, %v3254_v13  ;;  %v1375_v33 = vrot.slane %v1374_v15, 4  ;;  %v825_v47 = vrot.slane %v823_v20, 7  ;;  %v389_v34 = vadd.f32 %v8591_v3, %v350_v8  ;;  %v8069_v13 = vld [vmem:[#allocation2 + $0x10] sm:$0xf]  ;;  %7296 = vmatprep.subr.bf16.mxu1 %v7981_v29 }
  0x83   : > { %v1370_v18 = vsel %vm8278_vm3, %v1365_v14, %v1369_v9  ;;  %v820_v21 = vor.u32 %v818_v4, %v817_v19  ;;  %v821_v35 = vrot.slane %v817_v19, 4  ;;  %v390_v37 = vadd.f32 %v8591_v3, %v351_v22  ;;  %7297 = vmatpush3.bf16.msra.mxu1 %v7981_v29 }
  0x84   : > { %7451 = vmatmul.mubr.bf16.gmra.mrb[8].mxu0 %v6533_v11  ;;  %v538_v30 = vsel %vm8289_vm5, 0, %v537_v0  ;;  %v1380_v25 = vsel %vm8278_vm3, %v1375_v33, %v1379_v2  ;;  %v828_v39 = vor.u32 %v826_v28, %v825_v47  ;;  %v830_v40 = vrot.slane %v825_v47, 4 }
  0x85   : > { %vm422_vm13 = vcmp.gt.f32.partialorder %v389_v34, 0.0  ;;  %539 = vst [vmem:[#allocation2 + $0x60] sm:$0x1] %v538_v30  ;;  %v6374_v42 = vcombine.low %v1370_v18, %v1380_v25  ;;  %v1077_v8 = vsel %vm8360_vm15, %v820_v21, %v1076_v6  ;;  %vm423_vm0 = vcmp.gt.f32.partialorder %v390_v37, 0.0 }
  0x86   : > { %v455_v45 = vmul.f32 %v8314_v56, %v389_v34  ;;  %v829_v31 = vsel %vm8353_vm14, %v821_v35, %v828_v39  ;;  %1078 = vst [vmem:[#allocation2 + $0x54] sm:$0xf] %v1077_v8  ;;  %v1081_v44 = vsel %vm8289_vm5, %v830_v40, %v1080_v16  ;;  %v456_v50 = vmul.f32 %v8314_v56, %v390_v37 }
  0x87   : > { %v588_v51 = vsel %vm8299_vm7, 0, %v587_v26  ;;  %7262 = vmatprep.mubr.bf16.mxu1 %v6374_v42  ;;  %1079 = vst [vmem:[#allocation2 + $0x58] sm:$0xf] %v829_v31  ;;  %1082 = vst [vmem:[#allocation2 + $0x5c] sm:$0x1] %v1081_v44  ;;  %v6878_v54 = vunpack.c.l.bf16 %v6995_v23  ;;  %v6879_v55 = vunpack.c.h.bf16 %v6995_v23  ;;  %v541_v53 = vsel %vm8289_vm5, 0, %v540_v24 }
  0x88   : > { %v487_v52 = vsel %vm422_vm13, %v389_v34, %v455_v45  ;;  %589 = vst [vmem:[#allocation2 + $0x68] sm:$0x1] %v588_v51  ;;  %v488_v61 = vsel %vm423_vm0, %v390_v37, %v456_v50  ;;  %542 = vst [vmem:[#allocation2 + $0x6c] sm:$0x1] %v541_v53  ;;  %v591_v10 = vsel %vm8299_vm7, 0, %v590_v38  ;;  %v6552_v4 = vrot.slane %v3817_v17, 9 }
  0x89   : > { %v6794_v62 = vpack.c.bf16 %v487_v52, %v487_v52  ;;  %v6795_v9 = vpack.c.bf16 %v488_v61, %v488_v61  ;;  %v352_v63 = vmul.f32 %v8580_v57, %v6878_v54  ;;  %v353_v0 = vmul.f32 %v8580_v57, %v6879_v55  ;;  %592 = vst [vmem:[#allocation2 + $0x74] sm:$0x1] %v591_v10 }
  0x8a   : > { %v3883_v14 = vrot.slane %v8069_v13, 5  ;;  %v6553_v22 = vrot.slane %v8664_v60, 9 }
  0x8b   : > { %v832_v58 = vshrl.u32 %v6794_v62, 16  ;;  %v835_v2 = vshll.u32 %v6794_v62, 16  ;;  %v840_v15 = vshrl.u32 %v6795_v9, 16  ;;  %v843_v20 = vshll.u32 %v6795_v9, 16  ;;  %v7985_v62 = vld [vmem:[%s10165_s1 + $0x80] sm:$0xff]  }
  0x8c   : > { %v8679_v6 = vadd.f32 %v8591_v3, %v352_v63  ;;  %v8682_v11 = vadd.f32 %v8591_v3, %v353_v0  ;;  %v8686_v28 = vsel %vm8674_vm4, %v6552_v4, %v3883_v14  ;;  %v3885_v16 = vrot.slane %v3883_v14, 4  ;;  %7330 = vmatprep.subr.bf16.mxu1 %v7985_v62 }
  0x8d   : > { %v834_v19 = vrot.slane %v832_v58, 7  ;;  %v1160_v26 = vld [vmem:[#allocation2 + $0x54] sm:$0xf]  ;;  %v842_v33 = vrot.slane %v840_v15, 7 }
  0x8e   : > { %v3081_v18 = vld [vmem:[#allocation2 + $0x54] sm:$0xf]  ;;  %vm424_vm6 = vcmp.gt.f32.partialorder %v8679_v6, 0.0  ;;  %v457_v47 = vmul.f32 %v8314_v56, %v8679_v6  ;;  %v458_v34 = vmul.f32 %v8314_v56, %v8682_v11  ;;  %v1161_v23 = vld [vmem:[#allocation2 + $0x58] sm:$0xf]  ;;  %v1382_v21 = vshrl.u32 %v1160_v26, 16 }
  0x8f   : > { %v1201_v24 = vld [vmem:[#allocation2 + $0x5c] sm:$0x1]  ;;  %v1385_v35 = vshll.u32 %v1160_v26, 16  ;;  %v837_v37 = vor.u32 %v835_v2, %v834_v19  ;;  %v8698_v30 = vsel %vm8674_vm4, %v3885_v16, %v3886_v1  ;;  %v1391_v38 = vshll.u32 %v1161_v23, 16  ;;  %v3082_v40 = vld [vmem:[#allocation2 + $0x58] sm:$0xf] }
  0x90   : > { %v1395_v25 = vshrl.u32 %v1161_v23, 16  ;;  %v1401_v39 = vshll.u32 %v1201_v24, 16  ;;  %v3256_v42 = vshrl.u32 %v3081_v18, 16  ;;  %v1384_v8 = vrot.slane %v1382_v21, 4  ;;  %v3083_v17 = vld [vmem:[#allocation2 + $0x5c] sm:$0x1] }
  0x91   : > { %v1387_v45 = vrot.slane %v1385_v35, 5  ;;  %v3259_v31 = vshll.u32 %v3081_v18, 16  ;;  %v3265_v44 = vshll.u32 %v3082_v40, 16  ;;  %v1393_v50 = vrot.slane %v1391_v38, 5  ;;  %v1083_v1 = vld [vmem:[#allocation2 + $0x60] sm:$0xf] }
  0x92   : > { %v1397_v51 = vrot.slane %v1395_v25, 4  ;;  %v1403_v52 = vrot.slane %v1401_v39, 5  ;;  %v3258_v54 = vrot.slane %v3256_v42, 4  ;;  %v3269_v61 = vshrl.u32 %v3082_v40, 16  ;;  %v1087_v0 = vld [vmem:[#allocation2 + $0x68] sm:$0x1] }
  0x93   : > { %v1388_v55 = vor.u32 %v1387_v45, %v1384_v8  ;;  %v3261_v43 = vrot.slane %v3259_v31, 5  ;;  %v3267_v53 = vrot.slane %v3265_v44, 5  ;;  %v3275_v29 = vshll.u32 %v3083_v17, 16  ;;  %v6996_v35 = vld [vmem:[%s8252_s4 + $0x48] sm:$0xff]   ;;  %v543_v40 = vld [vmem:[#allocation2 + $0x78] sm:$0x1] }
  0x94   : > { %v1398_v10 = vor.u32 %v1397_v51, %v1393_v50  ;;  %v838_v9 = vrot.slane %v834_v19, 4  ;;  %v845_v63 = vor.u32 %v843_v20, %v842_v33  ;;  %v3271_v4 = vrot.slane %v3269_v61, 4  ;;  %v8724_v42 = vld [vmem:[%s8252_s4 + $0x50] sm:$0xff]   ;;  %v8727_v8 = vld [vmem:[%s8252_s4 + $0x58] sm:$0xff]  }
  0x95   : > { %v1389_v58 = vrot.slane %v1388_v55, 4  ;;  %v3262_v2 = vor.u32 %v3261_v43, %v3258_v54  ;;  %v847_v13 = vrot.slane %v842_v33, 4  ;;  %v3277_v15 = vrot.slane %v3275_v29, 5 }
  0x96   : > { %v1399_v14 = vrot.slane %v1398_v10, 4  ;;  %v846_v16 = vsel %vm8353_vm14, %v838_v9, %v845_v63  ;;  %v1084_v26 = vsel %vm8360_vm15, %v837_v37, %v1083_v1  ;;  %v3272_v20 = vor.u32 %v3271_v4, %v3267_v53 }
  0x97   : > { %v1394_v18 = vsel %vm8278_vm3, %v1389_v58, %v1393_v50  ;;  %v3263_v19 = vrot.slane %v3262_v2, 4  ;;  %1085 = vst [vmem:[#allocation2 + $0x60] sm:$0xf] %v1084_v26  ;;  %1086 = vst [vmem:[#allocation2 + $0x64] sm:$0xf] %v846_v16  ;;  %v1088_v33 = vsel %vm8289_vm5, %v847_v13, %v1087_v0  ;;  %vm425_vm8 = vcmp.gt.f32.partialorder %v8682_v11, 0.0 }
  0x98   : > { %v1404_v23 = vsel %vm8278_vm3, %v1399_v14, %v1403_v52  ;;  %1089 = vst [vmem:[#allocation2 + $0x68] sm:$0x1] %v1088_v33  ;;  %v489_v24 = vsel %vm424_vm6, %v8679_v6, %v457_v47  ;;  %v6584_v21 = vcombine.low %v8686_v28, %v8698_v30  ;;  %v3273_v25 = vrot.slane %v3272_v20, 4 }
  0x99   : > { %v6375_v37 = vcombine.low %v1394_v18, %v1404_v23  ;;  %v3268_v38 = vsel %vm8278_vm3, %v3263_v19, %v3267_v53  ;;  %v490_v39 = vsel %vm425_vm8, %v8682_v11, %v458_v34  ;;  %v6796_v45 = vpack.c.bf16 %v489_v24, %v489_v24 }
  0x9a   : > { %v8729_v17 = vpack.c.bf16 %v490_v39, %v490_v39  ;;  %v8737_v6 = vsel %vm8674_vm4, %v6553_v22, %v3890_v48  ;;  %v8744_v11 = vsel %vm8674_vm4, %v8438_v59, %v3893_v49  ;;  %v3278_v47 = vsel %vm8278_vm3, %v3273_v25, %v3277_v15 }
  0x9b   : > { %7263 = vmatmul.mubr.bf16.gmra.mrb[12].mxu1 %v6375_v37  ;;  %v6585_v7 = vcombine.low %v8737_v6, %v8744_v11  ;;  %v6882_v34 = vunpack.c.l.bf16 %v6996_v35  ;;  %v6883_v60 = vunpack.c.h.bf16 %v6996_v35  ;;  %v6534_v31 = vcombine.low %v3268_v38, %v3278_v47  ;;  %v1090_v38 = vld [vmem:[#allocation2 + $0x6c] sm:$0xf]  ;;  %v7980_v6 = vld [vmem:[%s10165_s1 + $0x190] sm:$0xff]  }
  0x9c   : > { %v849_v44 = vshrl.u32 %v6796_v45, 16  ;;  %v852_v48 = vshll.u32 %v6796_v45, 16  ;;  %v857_v22 = vshrl.u32 %v8729_v17, 16  ;;  %v860_v12 = vshll.u32 %v8729_v17, 16 }
  0x9d   : > { %v354_v50 = vmul.f32 %v8580_v57, %v6882_v34  ;;  %v355_v49 = vmul.f32 %v8580_v57, %v6883_v60  ;;  %v544_v59 = vsel %vm8289_vm5, 0, %v543_v40  ;;  %7454 = vmatprep.mubr.bf16.mxu0 %v6534_v31  ;;  %v6886_v55 = vunpack.c.l.bf16 %v8724_v42  ;;  %v1094_v31 = vld [vmem:[#allocation2 + $0x74] sm:$0x1] }
  0x9e   : > { %v3084_v51 = vld [vmem:[#allocation2 + $0x60] sm:$0xf]  ;;  %v8756_v52 = vld [vmem:[#allocation2 + $0x64] sm:$0xf]  ;;  %545 = vst [vmem:[#allocation2 + $0x78] sm:$0x1] %v544_v59  ;;  %v6887_v43 = vunpack.c.h.bf16 %v8724_v42  ;;  %v6890_v53 = vunpack.c.l.bf16 %v8727_v8  ;;  %v6891_v61 = vunpack.c.h.bf16 %v8727_v8 }
  0x9f   : > { %v1162_v54 = vld [vmem:[#allocation2 + $0x60] sm:$0xf]  ;;  %v8762_v1 = vld [vmem:[#allocation2 + $0x68] sm:$0x1]  ;;  %v3280_v62 = vshrl.u32 %v3084_v51, 16  ;;  %v3283_v10 = vshll.u32 %v3084_v51, 16  ;;  %v393_v4 = vadd.f32 %v8591_v3, %v354_v50  ;;  %v394_v13 = vadd.f32 %v8591_v3, %v355_v49 }
  0xa0   : > { %v3289_v29 = vshll.u32 %v8756_v52, 16  ;;  %v3293_v9 = vshrl.u32 %v8756_v52, 16  ;;  %v3299_v63 = vshll.u32 %v8762_v1, 16  ;;  %v1163_v0 = vld [vmem:[#allocation2 + $0x64] sm:$0xf]  ;;  %v1406_v2 = vshrl.u32 %v1162_v54, 16 }
  0xa1   : > { %v1202_v58 = vld [vmem:[#allocation2 + $0x68] sm:$0x1]  ;;  %v3282_v14 = vrot.slane %v3280_v62, 4  ;;  %v3285_v15 = vrot.slane %v3283_v10, 5  ;;  %v1409_v20 = vshll.u32 %v1162_v54, 16  ;;  %v1415_v33 = vshll.u32 %v1163_v0, 16 }
  0xa2   : > { %v3291_v16 = vrot.slane %v3289_v29, 5  ;;  %v3295_v26 = vrot.slane %v3293_v9, 4  ;;  %v3301_v18 = vrot.slane %v3299_v63, 5  ;;  %v1408_v19 = vrot.slane %v1406_v2, 4  ;;  %v593_v50 = vld [vmem:[#allocation2 + $0x80] sm:$0x1] }
  0xa3   : > { %v3286_v23 = vor.u32 %v3285_v15, %v3282_v14  ;;  %v1419_v35 = vshrl.u32 %v1163_v0, 16  ;;  %v1425_v37 = vshll.u32 %v1202_v58, 16  ;;  %v1411_v25 = vrot.slane %v1409_v20, 5  ;;  %v546_v62 = vld [vmem:[#allocation2 + $0x84] sm:$0x1] }
  0xa4   : > { %v3296_v24 = vor.u32 %v3295_v26, %v3291_v16  ;;  %v1417_v39 = vrot.slane %v1415_v33, 5  ;;  %v851_v40 = vrot.slane %v849_v44, 7  ;;  %v859_v45 = vrot.slane %v857_v22, 7  ;;  %v596_v22 = vld [vmem:[#allocation2 + $0x8c] sm:$0x1] }
  0xa5   : > { %v3287_v17 = vrot.slane %v3286_v23, 4  ;;  %v1421_v34 = vrot.slane %v1419_v35, 4  ;;  %v1427_v60 = vrot.slane %v1425_v37, 5  ;;  %v1412_v49 = vor.u32 %v1411_v25, %v1408_v19  ;;  %v8779_v14 = vld [vmem:[#allocation2 + $0x24] sm:$0xe] }
  0xa6   : > { %v3297_v47 = vrot.slane %v3296_v24, 4  ;;  %v854_v59 = vor.u32 %v852_v48, %v851_v40  ;;  %v855_v51 = vrot.slane %v851_v40, 4  ;;  %v862_v54 = vor.u32 %v860_v12, %v859_v45  ;;  %v8781_v15 = vld [vmem:[#allocation2 + $0x30] sm:$0xe]  ;;  %v8812_v25 = vld [vmem:[#allocation2 + $0x2c] sm:$0x1] }
  0xa7   : > { %v3292_v10 = vsel %vm8278_vm3, %v3287_v17, %v3291_v16  ;;  %v1422_v9 = vor.u32 %v1421_v34, %v1417_v39  ;;  %v864_v44 = vrot.slane %v859_v45, 4  ;;  %v1413_v0 = vrot.slane %v1412_v49, 4 }
  0xa8   : > { %v3302_v29 = vsel %vm8278_vm3, %v3297_v47, %v3301_v18  ;;  %v863_v58 = vsel %vm8353_vm14, %v855_v51, %v862_v54  ;;  %v1091_v48 = vsel %vm8360_vm15, %v854_v59, %v1090_v38  ;;  %vm426_vm9 = vcmp.gt.f32.partialorder %v393_v4, 0.0 }
  0xa9   : > { %v6535_v63 = vcombine.low %v3292_v10, %v3302_v29  ;;  %v1423_v2 = vrot.slane %v1422_v9, 4  ;;  %1092 = vst [vmem:[#allocation2 + $0x6c] sm:$0xf] %v1091_v48  ;;  %1093 = vst [vmem:[#allocation2 + $0x70] sm:$0xf] %v863_v58  ;;  %v1095_v12 = vsel %vm8289_vm5, %v864_v44, %v1094_v31  ;;  %vm427_vm10 = vcmp.gt.f32.partialorder %v394_v13, 0.0 }
  0xaa   : > { %v1418_v16 = vsel %vm8278_vm3, %v1413_v0, %v1417_v39  ;;  %1096 = vst [vmem:[#allocation2 + $0x74] sm:$0x1] %v1095_v12  ;;  %v459_v26 = vmul.f32 %v8314_v56, %v393_v4  ;;  %v460_v18 = vmul.f32 %v8314_v56, %v394_v13  ;;  %v594_v19 = vsel %vm8299_vm7, 0, %v593_v50  ;;  %v7978_v39 = vld [vmem:[%s10165_s1 + $0x188] sm:$0xff]   ;;  %v8072_v48 = vld [vmem:[%s10165_s1 + $0x180] sm:$0xff]  }
  0xab   : > { %7455 = vmatmul.mubr.bf16.gmra.mrb[12].mxu0 %v6535_v63  ;;  %v1428_v20 = vsel %vm8278_vm3, %v1423_v2, %v1427_v60  ;;  %595 = vst [vmem:[#allocation2 + $0x80] sm:$0x1] %v594_v19  ;;  %v356_v33 = vmul.f32 %v8580_v57, %v6886_v55  ;;  %v357_v23 = vmul.f32 %v8580_v57, %v6887_v43  ;;  %v547_v24 = vsel %vm8289_vm5, 0, %v546_v62  ;;  %v8809_v43 = vld [vmem:[#allocation2 + $0x28] sm:$0xf] }
  0xac   : > { %7490 = vmatprep.mubr.bf16.mxu0 %v6584_v21  ;;  %v6376_v35 = vcombine.low %v1418_v16, %v1428_v20  ;;  %v491_v37 = vsel %vm426_vm9, %v393_v4, %v459_v26  ;;  %v492_v38 = vsel %vm427_vm10, %v394_v13, %v460_v18  ;;  %548 = vst [vmem:[#allocation2 + $0x84] sm:$0x1] %v547_v24  ;;  %v597_v28 = vsel %vm8299_vm7, 0, %v596_v22  ;;  %v1097_v2 = vld [vmem:[#allocation2 + $0x78] sm:$0xf] }
  0xad   : > { %v6798_v30 = vpack.c.bf16 %v491_v37, %v491_v37  ;;  %v6799_v21 = vpack.c.bf16 %v492_v38, %v492_v38  ;;  %v395_v55 = vadd.f32 %v8591_v3, %v356_v33  ;;  %v396_v42 = vadd.f32 %v8591_v3, %v357_v23  ;;  %598 = vst [vmem:[#allocation2 + $0x8c] sm:$0x1] %v597_v28 }
  0xae   : > { %7266 = vmatprep.mubr.bf16.mxu1 %v6376_v35  ;;  %v6554_v57 = vrot.slane %v8779_v14, 9  ;;  %v3897_v4 = vrot.slane %v8809_v43, 5  ;;  %v3900_v13 = vrot.slane %v8812_v25, 5  ;;  %v6555_v40 = vrot.slane %v8781_v15, 9  ;;  %v8861_v43 = vld [vmem:[%s10166_s2] ss:$0 sm:$0xff] }
  0xaf   : > { %v866_v45 = vshrl.u32 %v6798_v30, 16  ;;  %v869_v3 = vshll.u32 %v6798_v30, 16  ;;  %v874_v17 = vshrl.u32 %v6799_v21, 16  ;;  %v877_v47 = vshll.u32 %v6799_v21, 16  ;;  %v7986_v25 = vld [vmem:[%s10165_s1 + $0x1a0] sm:$0xff]  }
  0xb0   : > { %v1164_v34 = vld [vmem:[#allocation2 + $0x6c] sm:$0xf]  ;;  %v1165_v60 = vld [vmem:[#allocation2 + $0x70] sm:$0xf]  ;;  %vm428_vm11 = vcmp.gt.f32.partialorder %v395_v55, 0.0  ;;  %vm429_vm12 = vcmp.gt.f32.partialorder %v396_v42, 0.0  ;;  %v461_v31 = vmul.f32 %v8314_v56, %v395_v55  ;;  %v462_v50 = vmul.f32 %v8314_v56, %v396_v42 }
  0xb1   : > { %v1203_v49 = vld [vmem:[#allocation2 + $0x74] sm:$0x1]  ;;  %v1430_v59 = vshrl.u32 %v1164_v34, 16  ;;  %v1433_v51 = vshll.u32 %v1164_v34, 16  ;;  %v1439_v54 = vshll.u32 %v1165_v60, 16  ;;  %v1443_v62 = vshrl.u32 %v1165_v60, 16 }
  0xb2   : > { %v1449_v10 = vshll.u32 %v1203_v49, 16  ;;  %v868_v29 = vrot.slane %v866_v45, 7  ;;  %v876_v9 = vrot.slane %v874_v17, 7  ;;  %v493_v44 = vsel %vm428_vm11, %v395_v55, %v461_v31  ;;  %v1101_v18 = vld [vmem:[#allocation2 + $0x80] sm:$0x1] }
  0xb3   : > { %7491 = vmatmul.mubr.bf16.vlgmr.msra.gmra.mrb[0].mxu0 %v6585_v7  ;;  %v1432_v22 = vrot.slane %v1430_v59, 4  ;;  %v1435_v63 = vrot.slane %v1433_v51, 5  ;;  %v1441_v0 = vrot.slane %v1439_v54, 5  ;;  %v1445_v58 = vrot.slane %v1443_v62, 4  ;;  %v1104_v34 = vld [vmem:[#allocation2 + $0x84] sm:$0xf] }
  0xb4   : > { %7523 = vmatpush3.bf16.msra.mxu0 %v8072_v48  ;;  %v1451_v12 = vrot.slane %v1449_v10, 5  ;;  %v871_v14 = vor.u32 %v869_v3, %v868_v29  ;;  %v872_v16 = vrot.slane %v868_v29, 4  ;;  %v879_v26 = vor.u32 %v877_v47, %v876_v9  ;;  %v7982_v3 = vld [vmem:[%s10165_s1 + $0x198] sm:$0xff]   ;;  %v1108_v60 = vld [vmem:[#allocation2 + $0x8c] sm:$0x1] }
  0xb5   : > { %7524 = vmatprep.subr.bf16.mxu0 %v7978_v39  ;;  %v1436_v11 = vor.u32 %v1435_v63, %v1432_v22  ;;  %v1446_v7 = vor.u32 %v1445_v58, %v1441_v0  ;;  %v881_v19 = vrot.slane %v876_v9, 4  ;;  %v494_v20 = vsel %vm429_vm12, %v396_v42, %v462_v50  ;;  %v8074_v51 = vld [vmem:[#allocation2 + $0x38] sm:$0x1] }
  0xb6   : > { %v880_v33 = vsel %vm8353_vm14, %v872_v16, %v879_v26  ;;  %v1098_v23 = vsel %vm8360_vm15, %v871_v14, %v1097_v2  ;;  %v6800_v24 = vpack.c.bf16 %v493_v44, %v493_v44  ;;  %v6801_v35 = vpack.c.bf16 %v494_v20, %v494_v20 }
  0xb7   : > { %v1437_v37 = vrot.slane %v1436_v11, 4  ;;  %v1447_v38 = vrot.slane %v1446_v7, 4  ;;  %1099 = vst [vmem:[#allocation2 + $0x78] sm:$0xf] %v1098_v23  ;;  %1100 = vst [vmem:[#allocation2 + $0x7c] sm:$0xf] %v880_v33  ;;  %v1102_v28 = vsel %vm8289_vm5, %v881_v19, %v1101_v18  ;;  %v3898_v30 = vsel %vm8674_vm4, %v6554_v57, %v3897_v4 }
  0xb8   : > { %7525 = vmatpush3.bf16.msra.mxu0 %v7978_v39  ;;  %1103 = vst [vmem:[#allocation2 + $0x80] sm:$0x1] %v1102_v28  ;;  %v883_v21 = vshrl.u32 %v6800_v24, 16  ;;  %v886_v55 = vshll.u32 %v6800_v24, 16  ;;  %v891_v42 = vshrl.u32 %v6801_v35, 16  ;;  %v894_v45 = vshll.u32 %v6801_v35, 16 }
  0xb9   : > { %7526 = vmatprep.subr.bf16.mxu0 %v7980_v6  ;;  %v1442_v17 = vsel %vm8278_vm3, %v1437_v37, %v1441_v0  ;;  %v1452_v47 = vsel %vm8278_vm3, %v1447_v38, %v1451_v12  ;;  %v3899_v57 = vrot.slane %v3897_v4, 4  ;;  %v8073_v39 = vld [vmem:[#allocation2 + $0x34] sm:$0xf]  ;;  %v3907_v54 = vrot.slane %v8074_v51, 5  ;;  %v599_v33 = vld [vmem:[#allocation2 + $0x98] sm:$0x1] }
  0xba   : > { %v3904_v31 = vrot.slane %v8073_v39, 5  ;;  %v6377_v50 = vcombine.low %v1442_v17, %v1452_v47  ;;  %v885_v49 = vrot.slane %v883_v21, 7  ;;  %v893_v59 = vrot.slane %v891_v42, 7  ;;  %v6999_v23 = vld [vmem:[%s8252_s4 + $0x60] sm:$0xff]   ;;  %v7990_v24 = vld [vmem:[%s10165_s1 + $0x1a8] sm:$0xff]  }
  0xbb   : > { %v3901_v62 = vsel %vm8674_vm4, %v3899_v57, %v3900_v13  ;;  %v358_v4 = vmul.f32 %v8861_v43, %v6890_v53  ;;  %v359_v63 = vmul.f32 %v8861_v43, %v6891_v61  ;;  %v8877_v53 = vld [vmem:[%s10167_s3] ss:$0 sm:$0xff]  ;;  %v549_v61 = vld [vmem:[#allocation2 + $0x90] sm:$0x1]  ;;  %v6894_v39 = vunpack.c.l.bf16 %v6999_v23 }
  0xbc   : > { %v3905_v10 = vsel %vm8674_vm4, %v6555_v40, %v3904_v31  ;;  %v3906_v29 = vrot.slane %v3904_v31, 4  ;;  %7527 = vmatpush3.bf16.msra.mxu0 %v7980_v6  ;;  %7267 = vmatmul.mubr.bf16.gmra.mrb[16].mxu1 %v6377_v50  ;;  %v888_v15 = vor.u32 %v886_v55, %v885_v49  ;;  %v889_v13 = vrot.slane %v885_v49, 4  ;;  %v7994_v50 = vld [vmem:[%s10165_s1 + $0x1b0] sm:$0xff]  }
  0xbd   : > { %v896_v9 = vor.u32 %v894_v45, %v893_v59  ;;  %v898_v40 = vrot.slane %v893_v59, 4  ;;  %7528 = vmatprep.subr.bf16.mxu0 %v7982_v3  ;;  %v6586_v44 = vcombine.low %v3898_v30, %v3901_v62  ;;  %v397_v0 = vadd.f32 %v8877_v53, %v358_v4  ;;  %v552_v30 = vld [vmem:[#allocation2 + $0x9c] sm:$0x1]  ;;  %v8894_v45 = vld [vmem:[%s8252_s4 + $0x68] sm:$0xff]  }
  0xbe   : > { %v3908_v22 = vsel %vm8674_vm4, %v3906_v29, %v3907_v54  ;;  %v1166_v58 = vld [vmem:[#allocation2 + $0x78] sm:$0xf]  ;;  %v1167_v48 = vld [vmem:[#allocation2 + $0x7c] sm:$0xf]  ;;  %v1105_v12 = vsel %vm8360_vm15, %v888_v15, %v1104_v34  ;;  %v398_v19 = vadd.f32 %v8877_v53, %v359_v63  ;;  %v550_v47 = vsel %vm8289_vm5, 0, %v549_v61 }
  0xbf   : > { %v897_v2 = vsel %vm8353_vm14, %v889_v13, %v896_v9  ;;  %v1109_v8 = vsel %vm8289_vm5, %v898_v40, %v1108_v60  ;;  %v6587_v14 = vcombine.low %v3905_v10, %v3908_v22  ;;  %v1204_v16 = vld [vmem:[#allocation2 + $0x80] sm:$0x1]  ;;  %v1454_v26 = vshrl.u32 %v1166_v58, 16  ;;  %1106 = vst [vmem:[#allocation2 + $0x84] sm:$0xf] %v1105_v12  ;;  %7494 = vmatprep.mubr.bf16.mxu0 %v6586_v44 }
  0xc0   : > { %v1457_v18 = vshll.u32 %v1166_v58, 16  ;;  %v1463_v6 = vshll.u32 %v1167_v48, 16  ;;  %v1467_v11 = vshrl.u32 %v1167_v48, 16  ;;  %1107 = vst [vmem:[#allocation2 + $0x88] sm:$0xf] %v897_v2  ;;  %7529 = vmatpush3.bf16.msra.mxu0 %v7982_v3  ;;  %v1473_v7 = vshll.u32 %v1204_v16, 16 }
  0xc1   : > { %1110 = vst [vmem:[#allocation2 + $0x8c] sm:$0x1] %v1109_v8  ;;  %7495 = vmatmul.mubr.bf16.gmra.mrb[4].mxu0 %v6587_v14  ;;  %vm430_vm13 = vcmp.gt.f32.partialorder %v397_v0, 0.0  ;;  %v463_v20 = vmul.f32 %v8314_v56, %v397_v0  ;;  %7530 = vmatprep.subr.bf16.mxu0 %v7986_v25  ;;  %v1456_v35 = vrot.slane %v1454_v26, 4  ;;  %vm431_vm0 = vcmp.gt.f32.partialorder %v398_v19, 0.0  ;;  %v7998_v2 = vld [vmem:[%s10165_s1 + $0x1b8] sm:$0xff]  }
  0xc2   : > { %v1459_v37 = vrot.slane %v1457_v18, 5  ;;  %v1465_v38 = vrot.slane %v1463_v6, 5  ;;  %v1469_v28 = vrot.slane %v1467_v11, 4  ;;  %v1475_v21 = vrot.slane %v1473_v7, 5  ;;  %551 = vst [vmem:[#allocation2 + $0x90] sm:$0x1] %v550_v47 }
  0xc3   : > { %v464_v55 = vmul.f32 %v8314_v56, %v398_v19  ;;  %v495_v42 = vsel %vm430_vm13, %v397_v0, %v463_v20  ;;  %v600_v34 = vsel %vm8299_vm7, 0, %v599_v33  ;;  %v6895_v31 = vunpack.c.h.bf16 %v6999_v23  ;;  %v602_v16 = vld [vmem:[#allocation2 + $0xa4] sm:$0x1]  ;;  %v3821_v23 = vld [vmem:[#allocation2 + $0x3c] sm:$0xe] }
  0xc4   : > { %v1460_v3 = vor.u32 %v1459_v37, %v1456_v35  ;;  %v1470_v17 = vor.u32 %v1469_v28, %v1465_v38  ;;  %7531 = vmatpush3.bf16.msra.mxu0 %v7986_v25  ;;  %601 = vst [vmem:[#allocation2 + $0x98] sm:$0x1] %v600_v34  ;;  %v6802_v57 = vpack.c.bf16 %v495_v42, %v495_v42  ;;  %v553_v54 = vsel %vm8289_vm5, 0, %v552_v30  ;;  %v8931_v30 = vld [vmem:[%s10165_s1 + $0x1c0] sm:$0xff]  }
  0xc5   : > { %v496_v60 = vsel %vm431_vm0, %v398_v19, %v464_v55  ;;  %7532 = vmatprep.subr.bf16.mxu0 %v7990_v24  ;;  %v360_v4 = vmul.f32 %v8861_v43, %v6894_v39  ;;  %v361_v25 = vmul.f32 %v8861_v43, %v6895_v31  ;;  %554 = vst [vmem:[#allocation2 + $0x9c] sm:$0x1] %v553_v54  ;;  %v6898_v15 = vunpack.c.l.bf16 %v8894_v45 }
  0xc6   : > { %v1461_v49 = vrot.slane %v1460_v3, 4  ;;  %v1471_v59 = vrot.slane %v1470_v17, 4  ;;  %v6803_v51 = vpack.c.bf16 %v496_v60, %v496_v60  ;;  %v8905_v62 = vld [vmem:[#allocation2 + $0x84] sm:$0xf]  ;;  %v6899_v13 = vunpack.c.h.bf16 %v8894_v45  ;;  %v3822_v17 = vld [vmem:[#allocation2 + $0x48] sm:$0xe] }
  0xc7   : > { %v8907_v10 = vld [vmem:[#allocation2 + $0x88] sm:$0xf]  ;;  %v1478_v44 = vshrl.u32 %v8905_v62, 16  ;;  %v1481_v22 = vshll.u32 %v8905_v62, 16  ;;  %v900_v14 = vshrl.u32 %v6802_v57, 16  ;;  %v903_v61 = vshll.u32 %v6802_v57, 16 }
  0xc8   : > { %v1205_v29 = vld [vmem:[#allocation2 + $0x8c] sm:$0x1]  ;;  %v1466_v9 = vsel %vm8278_vm3, %v1461_v49, %v1465_v38  ;;  %v1476_v40 = vsel %vm8278_vm3, %v1471_v59, %v1475_v21  ;;  %7533 = vmatpush3.bf16.msra.mxu0 %v7990_v24  ;;  %v1487_v0 = vshll.u32 %v8907_v10, 16  ;;  %v1491_v58 = vshrl.u32 %v8907_v10, 16 }
  0xc9   : > { %v6378_v63 = vcombine.low %v1466_v9, %v1476_v40  ;;  %v1497_v48 = vshll.u32 %v1205_v29, 16  ;;  %7534 = vmatprep.subr.bf16.mxu0 %v7994_v50  ;;  %v1480_v12 = vrot.slane %v1478_v44, 4  ;;  %v1483_v8 = vrot.slane %v1481_v22, 5  ;;  %v1111_v37 = vld [vmem:[#allocation2 + $0x90] sm:$0xf] }
  0xca   : > { %v1489_v26 = vrot.slane %v1487_v0, 5  ;;  %v1493_v18 = vrot.slane %v1491_v58, 4  ;;  %v908_v11 = vshrl.u32 %v6803_v51, 16  ;;  %v902_v19 = vrot.slane %v900_v14, 7  ;;  %v8077_v9 = vld [vmem:[#allocation2 + $0x40] sm:$0xf] }
  0xcb   : > { %7270 = vmatprep.mubr.bf16.mxu1 %v6378_v63  ;;  %v1499_v6 = vrot.slane %v1497_v48, 5  ;;  %v1484_v7 = vor.u32 %v1483_v8, %v1480_v12  ;;  %v911_v20 = vshll.u32 %v6803_v51, 16  ;;  %v399_v33 = vadd.f32 %v8877_v53, %v360_v4  ;;  %v1115_v3 = vld [vmem:[#allocation2 + $0x98] sm:$0x1]  ;;  %v8078_v63 = vld [vmem:[#allocation2 + $0x44] sm:$0x1] }
  0xcc   : > { %7535 = vmatpush3.bf16.msra.mxu0 %v7994_v50  ;;  %v1494_v24 = vor.u32 %v1493_v18, %v1489_v26  ;;  %v910_v35 = vrot.slane %v908_v11, 7  ;;  %v400_v38 = vadd.f32 %v8877_v53, %v361_v25  ;;  %v603_v28 = vsel %vm8299_vm7, 0, %v602_v16  ;;  %v8079_v12 = vld [vmem:[#allocation2 + $0x4c] sm:$0xf]  ;;  %v8080_v14 = vld [vmem:[#allocation2 + $0x50] sm:$0x1] }
  0xcd   : > { %7536 = vmatprep.subr.bf16.mxu0 %v7998_v2  ;;  %v1485_v21 = vrot.slane %v1484_v7, 4  ;;  %v905_v55 = vor.u32 %v903_v61, %v902_v19  ;;  %v906_v42 = vrot.slane %v902_v19, 4  ;;  %vm432_vm1 = vcmp.gt.f32.partialorder %v399_v33, 0.0  ;;  %604 = vst [vmem:[#allocation2 + $0xa4] sm:$0x1] %v603_v28 }
  0xce   : > { %v1495_v47 = vrot.slane %v1494_v24, 4  ;;  %v913_v34 = vor.u32 %v911_v20, %v910_v35  ;;  %v915_v60 = vrot.slane %v910_v35, 4  ;;  %vm433_vm2 = vcmp.gt.f32.partialorder %v400_v38, 0.0  ;;  %v555_v16 = vld [vmem:[#allocation2 + $0xa8] sm:$0x1] }
  0xcf   : > { %v1490_v57 = vsel %vm8278_vm3, %v1485_v21, %v1489_v26  ;;  %v1112_v39 = vsel %vm8360_vm15, %v905_v55, %v1111_v37  ;;  %v465_v31 = vmul.f32 %v8314_v56, %v399_v33  ;;  %v466_v50 = vmul.f32 %v8314_v56, %v400_v38  ;;  %v605_v7 = vld [vmem:[#allocation2 + $0xb0] sm:$0x1]  ;;  %v1118_v21 = vld [vmem:[#allocation2 + $0x9c] sm:$0xf] }
  0xd0   : > { %7537 = vmatpush3.bf16.msra.mxu0 %v7998_v2  ;;  %v1500_v49 = vsel %vm8278_vm3, %v1495_v47, %v1499_v6  ;;  %v914_v59 = vsel %vm8353_vm14, %v906_v42, %v913_v34  ;;  %1113 = vst [vmem:[#allocation2 + $0x90] sm:$0xf] %v1112_v39  ;;  %v1116_v51 = vsel %vm8289_vm5, %v915_v60, %v1115_v3  ;;  %v6556_v54 = vrot.slane %v3821_v23, 9 }
  0xd1   : > { %7570 = vmatprep.subr.bf16.mxu0 %v8931_v30  ;;  %v6379_v29 = vcombine.low %v1490_v57, %v1500_v49  ;;  %1114 = vst [vmem:[#allocation2 + $0x94] sm:$0xf] %v914_v59  ;;  %1117 = vst [vmem:[#allocation2 + $0x98] sm:$0x1] %v1116_v51  ;;  %v497_v4 = vsel %vm432_vm1, %v399_v33, %v465_v31  ;;  %v498_v25 = vsel %vm433_vm2, %v400_v38, %v466_v50 }
  0xd2   : > { %v3911_v40 = vrot.slane %v8077_v9, 5  ;;  %v6804_v44 = vpack.c.bf16 %v497_v4, %v497_v4  ;;  %v6805_v22 = vpack.c.bf16 %v498_v25, %v498_v25  ;;  %v3914_v0 = vrot.slane %v8078_v63, 5  ;;  %v7001_v4 = vld [vmem:[%s8252_s4 + $0x70] sm:$0xff]  }
  0xd3   : > { %v6557_v58 = vrot.slane %v3822_v17, 9  ;;  %7271 = vmatmul.mubr.bf16.gmra.mrb[20].mxu1 %v6379_v29  ;;  %v3918_v8 = vrot.slane %v8079_v12, 5  ;;  %v3921_v61 = vrot.slane %v8080_v14, 5  ;;  %v362_v23 = vmul.f32 %v8861_v43, %v6898_v15 }
  0xd4   : > { %v3912_v48 = vsel %vm8674_vm4, %v6556_v54, %v3911_v40  ;;  %v3913_v2 = vrot.slane %v3911_v40, 4  ;;  %v917_v26 = vshrl.u32 %v6804_v44, 16  ;;  %v920_v18 = vshll.u32 %v6804_v44, 16  ;;  %v1122_v49 = vld [vmem:[#allocation2 + $0xa4] sm:$0x1] }
  0xd5   : > { %v925_v6 = vshrl.u32 %v6805_v22, 16  ;;  %v928_v11 = vshll.u32 %v6805_v22, 16  ;;  %v3919_v20 = vsel %vm8674_vm4, %v6557_v58, %v3918_v8  ;;  %v3920_v33 = vrot.slane %v3918_v8, 4 }
  0xd6   : > { %v3915_v19 = vsel %vm8674_vm4, %v3913_v2, %v3914_v0  ;;  %v919_v24 = vrot.slane %v917_v26, 7  ;;  %v363_v38 = vmul.f32 %v8861_v43, %v6899_v13  ;;  %v401_v42 = vadd.f32 %v8877_v53, %v362_v23  ;;  %v608_v26 = vld [vmem:[#allocation2 + $0xbc] sm:$0x1] }
  0xd7   : > { %v927_v35 = vrot.slane %v925_v6, 7  ;;  %v6588_v37 = vcombine.low %v3912_v48, %v3915_v19  ;;  %v8960_v28 = vld [vmem:[#allocation2 + $0x90] sm:$0xf]  ;;  %v3922_v55 = vsel %vm8674_vm4, %v3920_v33, %v3921_v61  ;;  %v556_v3 = vsel %vm8289_vm5, 0, %v555_v16  ;;  %v558_v48 = vld [vmem:[#allocation2 + $0xb4] sm:$0x1] }
  0xd8   : > { %v606_v15 = vsel %vm8299_vm7, 0, %v605_v7  ;;  %v8969_v17 = vld [vmem:[#allocation2 + $0x94] sm:$0xf]  ;;  %v1206_v47 = vld [vmem:[#allocation2 + $0x98] sm:$0x1]  ;;  %v1502_v45 = vshrl.u32 %v8960_v28, 16  ;;  %v922_v34 = vor.u32 %v920_v18, %v919_v24  ;;  %v6589_v0 = vcombine.low %v3919_v20, %v3922_v55 }
  0xd9   : > { %v1505_v13 = vshll.u32 %v8960_v28, 16  ;;  %v930_v60 = vor.u32 %v928_v11, %v927_v35  ;;  %7498 = vmatprep.mubr.bf16.mxu0 %v6588_v37  ;;  %557 = vst [vmem:[#allocation2 + $0xa8] sm:$0x1] %v556_v3  ;;  %607 = vst [vmem:[#allocation2 + $0xb0] sm:$0x1] %v606_v15  ;;  %v1511_v57 = vshll.u32 %v8969_v17, 16  ;;  %v402_v58 = vadd.f32 %v8877_v53, %v363_v38 }
  0xda   : > { %v1515_v39 = vshrl.u32 %v8969_v17, 16  ;;  %v1521_v31 = vshll.u32 %v1206_v47, 16  ;;  %v923_v50 = vrot.slane %v919_v24, 4  ;;  %v1504_v59 = vrot.slane %v1502_v45, 4  ;;  %7499 = vmatmul.mubr.bf16.gmra.mrb[8].mxu0 %v6589_v0 }
  0xdb   : > { %v1507_v51 = vrot.slane %v1505_v13, 5  ;;  %v932_v54 = vrot.slane %v927_v35, 4  ;;  %v1119_v29 = vsel %vm8360_vm15, %v922_v34, %v1118_v21  ;;  %v1513_v25 = vrot.slane %v1511_v57, 5 }
  0xdc   : > { %v1517_v9 = vrot.slane %v1515_v39, 4  ;;  %v1523_v40 = vrot.slane %v1521_v31, 5  ;;  %v931_v44 = vsel %vm8353_vm14, %v923_v50, %v930_v60  ;;  %1120 = vst [vmem:[#allocation2 + $0x9c] sm:$0xf] %v1119_v29  ;;  %vm434_vm6 = vcmp.gt.f32.partialorder %v401_v42, 0.0 }
  0xdd   : > { %v1508_v22 = vor.u32 %v1507_v51, %v1504_v59  ;;  %1121 = vst [vmem:[#allocation2 + $0xa0] sm:$0xf] %v931_v44  ;;  %v1123_v63 = vsel %vm8289_vm5, %v932_v54, %v1122_v49  ;;  %v467_v12 = vmul.f32 %v8314_v56, %v401_v42  ;;  %v6902_v8 = vunpack.c.l.bf16 %v7001_v4 }
  0xde   : > { %v1518_v2 = vor.u32 %v1517_v9, %v1513_v25  ;;  %1124 = vst [vmem:[#allocation2 + $0xa4] sm:$0x1] %v1123_v63  ;;  %vm435_vm8 = vcmp.gt.f32.partialorder %v402_v58, 0.0  ;;  %v468_v61 = vmul.f32 %v8314_v56, %v402_v58  ;;  %v6903_v16 = vunpack.c.h.bf16 %v7001_v4 }
  0xdf   : > { %v1509_v14 = vrot.slane %v1508_v22, 4  ;;  %v499_v6 = vsel %vm434_vm6, %v401_v42, %v467_v12  ;;  %v364_v11 = vmul.f32 %v8861_v43, %v6902_v8  ;;  %v559_v7 = vsel %vm8289_vm5, 0, %v558_v48  ;;  %v3823_v48 = vld [vmem:[#allocation2 + $0x54] sm:$0xe] }
  0xe0   : > { %v1519_v18 = vrot.slane %v1518_v2, 4  ;;  %v500_v20 = vsel %vm435_vm8, %v402_v58, %v468_v61  ;;  %v6806_v33 = vpack.c.bf16 %v499_v6, %v499_v6  ;;  %v365_v23 = vmul.f32 %v8861_v43, %v6903_v16  ;;  %560 = vst [vmem:[#allocation2 + $0xb4] sm:$0x1] %v559_v7  ;;  %v1125_v29 = vld [vmem:[#allocation2 + $0xa8] sm:$0xf] }
  0xe1   : > { %v1514_v19 = vsel %vm8278_vm3, %v1509_v14, %v1513_v25  ;;  %v6807_v35 = vpack.c.bf16 %v500_v20, %v500_v20  ;;  %v403_v37 = vadd.f32 %v8877_v53, %v364_v11  ;;  %v609_v38 = vsel %vm8299_vm7, 0, %v608_v26  ;;  %v1129_v44 = vld [vmem:[#allocation2 + $0xb0] sm:$0x1]  ;;  %v8081_v7 = vld [vmem:[#allocation2 + $0x58] sm:$0xf] }
  0xe2   : > { %v1524_v24 = vsel %vm8278_vm3, %v1519_v18, %v1523_v40  ;;  %v934_v42 = vshrl.u32 %v6806_v33, 16  ;;  %v937_v3 = vshll.u32 %v6806_v33, 16  ;;  %v404_v15 = vadd.f32 %v8877_v53, %v365_v23  ;;  %610 = vst [vmem:[#allocation2 + $0xbc] sm:$0x1] %v609_v38  ;;  %v3824_v20 = vld [vmem:[#allocation2 + $0x60] sm:$0xe] }
  0xe3   : > { %v6380_v21 = vcombine.low %v1514_v19, %v1524_v24  ;;  %v8996_v55 = vld [vmem:[#allocation2 + $0x9c] sm:$0xf]  ;;  %v942_v34 = vshrl.u32 %v6807_v35, 16  ;;  %v945_v60 = vshll.u32 %v6807_v35, 16  ;;  %vm436_vm9 = vcmp.gt.f32.partialorder %v403_v37, 0.0 }
  0xe4   : > { %v8999_v47 = vld [vmem:[#allocation2 + $0xa0] sm:$0xf]  ;;  %v1526_v45 = vshrl.u32 %v8996_v55, 16  ;;  %v1529_v13 = vshll.u32 %v8996_v55, 16  ;;  %v936_v50 = vrot.slane %v934_v42, 7  ;;  %vm437_vm10 = vcmp.gt.f32.partialorder %v404_v15, 0.0 }
  0xe5   : > { %7274 = vmatprep.mubr.bf16.mxu1 %v6380_v21  ;;  %v1207_v57 = vld [vmem:[#allocation2 + $0xa4] sm:$0x1]  ;;  %v1535_v39 = vshll.u32 %v8999_v47, 16  ;;  %v1539_v31 = vshrl.u32 %v8999_v47, 16  ;;  %v944_v54 = vrot.slane %v942_v34, 7  ;;  %v469_v8 = vmul.f32 %v8314_v56, %v403_v37 }
  0xe6   : > { %v1528_v49 = vrot.slane %v1526_v45, 4  ;;  %v1531_v59 = vrot.slane %v1529_v13, 5  ;;  %v1545_v51 = vshll.u32 %v1207_v57, 16  ;;  %v939_v9 = vor.u32 %v937_v3, %v936_v50  ;;  %v8082_v35 = vld [vmem:[#allocation2 + $0x5c] sm:$0x1] }
  0xe7   : > { %v1537_v4 = vrot.slane %v1535_v39, 5  ;;  %v1541_v25 = vrot.slane %v1539_v31, 4  ;;  %v940_v40 = vrot.slane %v936_v50, 4  ;;  %v947_v0 = vor.u32 %v945_v60, %v944_v54 }
  0xe8   : > { %v1532_v22 = vor.u32 %v1531_v59, %v1528_v49  ;;  %v1547_v63 = vrot.slane %v1545_v51, 5  ;;  %v949_v58 = vrot.slane %v944_v54, 4  ;;  %v1126_v12 = vsel %vm8360_vm15, %v939_v9, %v1125_v29  ;;  %v1132_v49 = vld [vmem:[#allocation2 + $0xb4] sm:$0xf] }
  0xe9   : > { %v1542_v2 = vor.u32 %v1541_v25, %v1537_v4  ;;  %v948_v61 = vsel %vm8353_vm14, %v940_v40, %v947_v0  ;;  %1127 = vst [vmem:[#allocation2 + $0xa8] sm:$0xf] %v1126_v12  ;;  %v470_v26 = vmul.f32 %v8314_v56, %v404_v15  ;;  %v501_v6 = vsel %vm436_vm9, %v403_v37, %v469_v8  ;;  %v3089_v12 = vld [vmem:[#allocation2 + $0x74] sm:$0x1] }
  0xea   : > { %v1533_v14 = vrot.slane %v1532_v22, 4  ;;  %v1130_v16 = vsel %vm8289_vm5, %v949_v58, %v1129_v44  ;;  %1128 = vst [vmem:[#allocation2 + $0xac] sm:$0xf] %v948_v61  ;;  %v6558_v11 = vrot.slane %v3823_v48, 9  ;;  %v3925_v19 = vrot.slane %v8081_v7, 5 }
  0xeb   : > { %v1543_v18 = vrot.slane %v1542_v2, 4  ;;  %1131 = vst [vmem:[#allocation2 + $0xb0] sm:$0x1] %v1130_v16  ;;  %v502_v23 = vsel %vm437_vm10, %v404_v15, %v470_v26  ;;  %v6808_v24 = vpack.c.bf16 %v501_v6, %v501_v6  ;;  %v3928_v38 = vrot.slane %v8082_v35, 5  ;;  %v3825_v26 = vld [vmem:[#allocation2 + $0x6c] sm:$0xe] }
  0xec   : > { %v1538_v33 = vsel %vm8278_vm3, %v1533_v14, %v1537_v4  ;;  %v6809_v42 = vpack.c.bf16 %v502_v23, %v502_v23  ;;  %v3926_v3 = vsel %vm8674_vm4, %v6558_v11, %v3925_v19  ;;  %v3927_v37 = vrot.slane %v3925_v19, 4 }
  0xed   : > { %v1548_v21 = vsel %vm8278_vm3, %v1543_v18, %v1547_v63  ;;  %v951_v13 = vshrl.u32 %v6808_v24, 16  ;;  %v954_v34 = vshll.u32 %v6808_v24, 16  ;;  %v6559_v60 = vrot.slane %v3824_v20, 9  ;;  %v3088_v63 = vld [vmem:[#allocation2 + $0x70] sm:$0xf] }
  0xee   : > { %v6381_v45 = vcombine.low %v1538_v33, %v1548_v21  ;;  %v959_v57 = vshrl.u32 %v6809_v42, 16  ;;  %v3929_v39 = vsel %vm8674_vm4, %v3927_v37, %v3928_v38  ;;  %v3932_v15 = vrot.slane %v8756_v52, 5 }
  0xef   : > { %v953_v31 = vrot.slane %v951_v13, 7  ;;  %v962_v50 = vshll.u32 %v6809_v42, 16  ;;  %v6590_v59 = vcombine.low %v3926_v3, %v3929_v39  ;;  %v3935_v4 = vrot.slane %v8762_v1, 5  ;;  %v1136_v1 = vld [vmem:[#allocation2 + $0xbc] sm:$0x1] }
  0xf0   : > { %7275 = vmatmul.mubr.bf16.gmra.mrb[24].mxu1 %v6381_v45  ;;  %v9024_v51 = vld [vmem:[#allocation2 + $0xa8] sm:$0xf]  ;;  %v961_v54 = vrot.slane %v959_v57, 7  ;;  %v3934_v29 = vrot.slane %v3932_v15, 4  ;;  %v3933_v52 = vsel %vm8674_vm4, %v6559_v60, %v3932_v15  ;;  %v6560_v38 = vrot.slane %v3825_v26, 9 }
  0xf1   : > { %v9027_v25 = vld [vmem:[#allocation2 + $0xac] sm:$0xf]  ;;  %v1550_v40 = vshrl.u32 %v9024_v51, 16  ;;  %v1553_v44 = vshll.u32 %v9024_v51, 16  ;;  %v956_v22 = vor.u32 %v954_v34, %v953_v31  ;;  %7502 = vmatprep.mubr.bf16.mxu0 %v6590_v59  ;;  %v957_v2 = vrot.slane %v953_v31, 4 }
  0xf2   : > { %v1208_v9 = vld [vmem:[#allocation2 + $0xb0] sm:$0x1]  ;;  %v1559_v0 = vshll.u32 %v9027_v25, 16  ;;  %v1563_v58 = vshrl.u32 %v9027_v25, 16  ;;  %v964_v61 = vor.u32 %v962_v50, %v961_v54  ;;  %v966_v16 = vrot.slane %v961_v54, 4 }
  0xf3   : > { %v1569_v48 = vshll.u32 %v1208_v9, 16  ;;  %v1552_v8 = vrot.slane %v1550_v40, 4  ;;  %v1555_v14 = vrot.slane %v1553_v44, 5  ;;  %v1133_v7 = vsel %vm8360_vm15, %v956_v22, %v1132_v49  ;;  %v3826_v42 = vld [vmem:[#allocation2 + $0x78] sm:$0xe] }
  0xf4   : > { %v1561_v18 = vrot.slane %v1559_v0, 5  ;;  %v1565_v6 = vrot.slane %v1563_v58, 4  ;;  %v965_v20 = vsel %vm8353_vm14, %v957_v2, %v964_v61  ;;  %1134 = vst [vmem:[#allocation2 + $0xb4] sm:$0xf] %v1133_v7  ;;  %v1137_v33 = vsel %vm8289_vm5, %v966_v16, %v1136_v1  ;;  %v9043_v45 = vld [vmem:[#allocation2 + $0x7c] sm:$0xf] }
  0xf5   : > { %v1571_v11 = vrot.slane %v1569_v48, 5  ;;  %v1556_v19 = vor.u32 %v1555_v14, %v1552_v8  ;;  %v3936_v23 = vsel %vm8674_vm4, %v3934_v29, %v3935_v4  ;;  %1135 = vst [vmem:[#allocation2 + $0xb8] sm:$0xf] %v965_v20  ;;  %1138 = vst [vmem:[#allocation2 + $0xbc] sm:$0x1] %v1137_v33  ;;  %v3939_v21 = vrot.slane %v3088_v63, 5 }
  0xf6   : > { %v1566_v24 = vor.u32 %v1565_v6, %v1561_v18  ;;  %v6591_v35 = vcombine.low %v3933_v52, %v3936_v23  ;;  %v3942_v37 = vrot.slane %v3089_v12, 5  ;;  %v9047_v57 = vld [vmem:[#allocation2 + $0x80] sm:$0x1]  ;;  %v6561_v15 = vrot.slane %v3826_v42, 9  ;;  %v3827_v31 = vld [vmem:[#allocation2 + $0x84] sm:$0xe] }
  0xf7   : > { %v1557_v3 = vrot.slane %v1556_v19, 4  ;;  %v3940_v34 = vsel %vm8674_vm4, %v6560_v38, %v3939_v21  ;;  %v3941_v60 = vrot.slane %v3939_v21, 4  ;;  %v3946_v59 = vrot.slane %v9043_v45, 5  ;;  %v3094_v9 = vld [vmem:[#allocation2 + $0x88] sm:$0xf] }
  0xf8   : > { %v1567_v13 = vrot.slane %v1566_v24, 4  ;;  %7503 = vmatmul.mubr.bf16.gmra.mrb[12].mxu0 %v6591_v35  ;;  %v3949_v4 = vrot.slane %v9047_v57, 5  ;;  %v3095_v22 = vld [vmem:[#allocation2 + $0x8c] sm:$0x1]  ;;  %v6562_v52 = vrot.slane %v3827_v31, 9  ;;  %v3953_v7 = vrot.slane %v3094_v9, 5 }
  0xf9   : > { %v1562_v39 = vsel %vm8278_vm3, %v1557_v3, %v1561_v18  ;;  %v3943_v49 = vsel %vm8674_vm4, %v3941_v60, %v3942_v37  ;;  %v3948_v44 = vrot.slane %v3946_v59, 4  ;;  %v3947_v2 = vsel %vm8674_vm4, %v6561_v15, %v3946_v59  ;;  %v3097_v1 = vld [vmem:[#allocation2 + $0x94] sm:$0xf]  ;;  %v3098_v12 = vld [vmem:[#allocation2 + $0x98] sm:$0x1] }
  0xfa   : > { %v1572_v50 = vsel %vm8278_vm3, %v1567_v13, %v1571_v11  ;;  %v6592_v29 = vcombine.low %v3940_v34, %v3943_v49  ;;  %v3828_v8 = vld [vmem:[#allocation2 + $0x90] sm:$0xe]  ;;  %v3829_v26 = vld [vmem:[#allocation2 + $0x9c] sm:$0xe]  ;;  %v3100_v19 = vld [vmem:[#allocation2 + $0xa0] sm:$0xf]  ;;  %v3954_v38 = vsel %vm8674_vm4, %v6562_v52, %v3953_v7 }
  0xfb   : > { %v6382_v54 = vcombine.low %v1562_v39, %v1572_v50  ;;  %v9057_v40 = vld [vmem:[#allocation2 + $0xb4] sm:$0xf]  ;;  %v3950_v11 = vsel %vm8674_vm4, %v3948_v44, %v3949_v4  ;;  %v3955_v21 = vrot.slane %v3953_v7, 4  ;;  %v3956_v42 = vrot.slane %v3095_v22, 5  ;;  %v3101_v60 = vld [vmem:[#allocation2 + $0xa4] sm:$0x1] }
  0xfc   : > { %v9059_v63 = vld [vmem:[#allocation2 + $0xb8] sm:$0xf]  ;;  %v1209_v0 = vld [vmem:[#allocation2 + $0xbc] sm:$0x1]  ;;  %v1574_v58 = vshrl.u32 %v9057_v40, 16  ;;  %v1577_v48 = vshll.u32 %v9057_v40, 16  ;;  %7506 = vmatprep.mubr.bf16.mxu0 %v6592_v29  ;;  %v6593_v24 = vcombine.low %v3947_v2, %v3950_v11 }
  0xfd   : > { %7278 = vmatprep.mubr.bf16.mxu1 %v6382_v54  ;;  %v1583_v14 = vshll.u32 %v9059_v63, 16  ;;  %v1587_v61 = vshrl.u32 %v9059_v63, 16  ;;  %v1593_v16 = vshll.u32 %v1209_v0, 16  ;;  %v6563_v37 = vrot.slane %v3828_v8, 9  ;;  %v3103_v49 = vld [vmem:[#allocation2 + $0xac] sm:$0xf] }
  0xfe   : > { %v1576_v18 = vrot.slane %v1574_v58, 4  ;;  %v1579_v6 = vrot.slane %v1577_v48, 5  ;;  %v3960_v13 = vrot.slane %v3097_v1, 5  ;;  %v3963_v34 = vrot.slane %v3098_v12, 5  ;;  %v3830_v9 = vld [vmem:[#allocation2 + $0xa8] sm:$0xe] }
  0xff   : > { %v1585_v20 = vrot.slane %v1583_v14, 5  ;;  %v1589_v33 = vrot.slane %v1587_v61, 4  ;;  %v1595_v23 = vrot.slane %v1593_v16, 5  ;;  %v3957_v15 = vsel %vm8674_vm4, %v3955_v21, %v3956_v42  ;;  %v3104_v58 = vld [vmem:[#allocation2 + $0xb0] sm:$0x1] }
 0x100   : > { %v1580_v35 = vor.u32 %v1579_v6, %v1576_v18  ;;  %7507 = vmatmul.mubr.bf16.gmra.mrb[16].mxu0 %v6593_v24  ;;  %v6564_v31 = vrot.slane %v3829_v26, 9  ;;  %v3967_v50 = vrot.slane %v3100_v19, 5  ;;  %v6594_v54 = vcombine.low %v3954_v38, %v3957_v15  ;;  %v3831_v48 = vld [vmem:[#allocation2 + $0xb4] sm:$0xe]  ;;  %v8083_v1 = vld [vmem:[#allocation2] sm:$0xf] }
 0x101   : > { %v1590_v3 = vor.u32 %v1589_v33, %v1585_v20  ;;  %v3961_v29 = vsel %vm8674_vm4, %v6563_v37, %v3960_v13  ;;  %v3962_v4 = vrot.slane %v3960_v13, 4  ;;  %v3970_v0 = vrot.slane %v3101_v60, 5  ;;  %v9081_v12 = vld [vmem:[#allocation2 + $0x4] sm:$0xf]  ;;  %v3106_v16 = vld [vmem:[#allocation2 + $0xb8] sm:$0xf] }
 0x102   : > { %v1581_v39 = vrot.slane %v1580_v35, 4  ;;  %v3968_v22 = vsel %vm8674_vm4, %v6564_v31, %v3967_v50  ;;  %v3969_v52 = vrot.slane %v3967_v50, 4  ;;  %v6392_v8 = vcombine.low %v8083_v1, %v9081_v12  ;;  %7510 = vmatprep.mubr.bf16.mxu0 %v6594_v54  ;;  %v3107_v26 = vld [vmem:[#allocation2 + $0xbc] sm:$0x1]  ;;  %v611_v35 = vld [vmem:[#allocation2 + $0xc8] sm:$0x1] }
 0x103   : > { %v1591_v59 = vrot.slane %v1590_v3, 4  ;;  %v3964_v14 = vsel %vm8674_vm4, %v3962_v4, %v3963_v34  ;;  %v3974_v61 = vrot.slane %v3103_v49, 5  ;;  %v6565_v7 = vrot.slane %v3830_v9, 9  ;;  %v7002_v19 = vld [vmem:[%s8252_s4 + $0x78] sm:$0xff]   ;;  %v9101_v54 = vld [vmem:[#allocation2 + $0x10] sm:$0xf] }
 0x104   : > { %v1586_v44 = vsel %vm8278_vm3, %v1581_v39, %v1585_v20  ;;  %v6595_v6 = vcombine.low %v3961_v29, %v3964_v14  ;;  %v3971_v11 = vsel %vm8674_vm4, %v3969_v52, %v3970_v0  ;;  %v561_v20 = vld [vmem:[#allocation2 + $0xc0] sm:$0x1]  ;;  %v3977_v24 = vrot.slane %v3104_v58, 5  ;;  %v8087_v4 = vld [vmem:[#allocation2 + $0x18] sm:$0xf]  ;;  %v7993_v14 = vld [vmem:[%s10165_s1 + $0x90] sm:$0xff]  }
 0x105   : > { %v1596_v2 = vsel %vm8278_vm3, %v1591_v59, %v1595_v23  ;;  %v6596_v33 = vcombine.low %v3968_v22, %v3971_v11  ;;  %v3976_v23 = vrot.slane %v3974_v61, 4  ;;  %v6566_v38 = vrot.slane %v3831_v48, 9  ;;  %v8085_v59 = vld [vmem:[#allocation2 + $0xc] sm:$0xf]  ;;  %v9106_v9 = vld [vmem:[#allocation2 + $0x1c] sm:$0xf] }
 0x106   : > { %v6383_v18 = vcombine.low %v1586_v44, %v1596_v2  ;;  %v3981_v21 = vrot.slane %v3106_v16, 5  ;;  %v3984_v42 = vrot.slane %v3107_v26, 5  ;;  %v6906_v3 = vunpack.c.l.bf16 %v7002_v19  ;;  %v8089_v1 = vld [vmem:[%s10165_s1 + $0x80] sm:$0xff]  }
 0x107   : > { %v6907_v37 = vunpack.c.h.bf16 %v7002_v19  ;;  %v562_v13 = vsel %vm8289_vm5, 0, %v561_v20  ;;  %v3975_v34 = vsel %vm8674_vm4, %v6565_v7, %v3974_v61  ;;  %v612_v39 = vsel %vm8299_vm7, 0, %v611_v35  ;;  %v8090_v26 = vld [vmem:[#allocation2 + $0x24] sm:$0xf]  ;;  %v8092_v20 = vld [vmem:[#allocation2 + $0x30] sm:$0xf] }
 0x108   : > { %7279 = vmatmul.mubr.bf16.gmra.mrb[28].mxu1 %v6383_v18  ;;  %7511 = vmatmul.mubr.bf16.gmra.mrb[20].mxu0 %v6595_v6  ;;  %v3983_v60 = vrot.slane %v3981_v21, 4  ;;  %563 = vst [vmem:[#allocation2 + $0xc0] sm:$0x1] %v562_v13  ;;  %v3978_v15 = vsel %vm8674_vm4, %v3976_v23, %v3977_v24  ;;  %v3982_v31 = vsel %vm8674_vm4, %v6566_v38, %v3981_v21  ;;  %613 = vst [vmem:[#allocation2 + $0xc8] sm:$0x1] %v612_v39  ;;  %v7997_v24 = vld [vmem:[%s10165_s1 + $0x98] sm:$0xff]  }
 0x109   : > { %7298 = vmatprep.mubr.bf16.mxu1 %v6392_v8  ;;  %7514 = vmatprep.mubr.bf16.mxu0 %v6596_v33  ;;  %v366_v50 = vmul.f32 %v8861_v43, %v6906_v3  ;;  %v367_v49 = vmul.f32 %v8861_v43, %v6907_v37  ;;  %v6393_v29 = vcombine.low %v8085_v59, %v9101_v54  ;;  %v7989_v43 = vld [vmem:[%s10165_s1 + $0x88] sm:$0xff]   ;;  %v9125_v33 = vld [vmem:[#allocation2 + $0x34] sm:$0xf] }
 0x10a   : > { %v3985_v46 = vsel %vm8674_vm4, %v3983_v60, %v3984_v42  ;;  %v6394_v44 = vcombine.low %v8087_v4, %v9106_v9  ;;  %v6597_v0 = vcombine.low %v3975_v34, %v3978_v15  ;;  %v9122_v18 = vld [vmem:[#allocation2 + $0x28] sm:$0xf]  ;;  %v6396_v23 = vcombine.low %v8092_v20, %v9125_v33  ;;  %v8013_v4 = vld [vmem:[%s10165_s1 + $0xb0] sm:$0xff]   ;;  %v8002_v20 = vld [vmem:[#allocation2 + $0x18] sm:$0xff]  }
 0x10b   : > { %v405_v22 = vadd.f32 %v8877_v53, %v366_v50  ;;  %v406_v52 = vadd.f32 %v8877_v53, %v367_v49  ;;  %v6598_v58 = vcombine.low %v3982_v31, %v3985_v46  ;;  %v8001_v31 = vld [vmem:[%s10165_s1 + $0xa0] sm:$0xff]   ;;  %v8094_v50 = vld [vmem:[#allocation2 + $0x3c] sm:$0xf]  ;;  %v3337_v46 = vshll.u32 %v9043_v45, 16 }
 0x10c   : > { %v9140_v49 = vld [vmem:[#allocation2 + $0x40] sm:$0xf] }
 0x10d   : > { %vm438_vm7 = vcmp.gt.f32.partialorder %v405_v22, 0.0  ;;  %vm439_vm11 = vcmp.gt.f32.partialorder %v406_v52, 0.0  ;;  %v471_v48 = vmul.f32 %v8314_v56, %v405_v22  ;;  %v472_v2 = vmul.f32 %v8314_v56, %v406_v52 }
 0x10e   : > { %v6395_v56 = vcombine.low %v8090_v26, %v9122_v18  ;;  %v6397_v59 = vcombine.low %v8094_v50, %v9140_v49  ;;  %v8104_v50 = vld [vmem:[#allocation2 + $0x6c] sm:$0xf] }
 0x10f   : > { %v503_v53 = vsel %vm438_vm7, %v405_v22, %v471_v48  ;;  %v504_v8 = vsel %vm439_vm11, %v406_v52, %v472_v2  ;;  %v1139_v21 = vld [vmem:[#allocation2 + $0xc0] sm:$0xf]  ;;  %v1143_v42 = vld [vmem:[#allocation2 + $0xc8] sm:$0x1]  ;;  %v8098_v2 = vld [vmem:[#allocation2 + $0x54] sm:$0xf] }
 0x110   : > { %7299 = vmatmul.mubr.bf16.vlgmr.msra.gmra.mrb[0].mxu1 %v6393_v29  ;;  %7515 = vmatmul.mubr.bf16.gmra.mrb[24].mxu0 %v6597_v0  ;;  %v6810_v61 = vpack.c.bf16 %v503_v53, %v503_v53  ;;  %v6811_v16 = vpack.c.bf16 %v504_v8, %v504_v8  ;;  %v9143_v29 = vld [vmem:[#allocation2 + $0x4c] sm:$0xf] }
 0x111   : > { %7331 = vmatpush3.bf16.msra.mxu1 %v8089_v1  ;;  %7302 = vmatprep.mubr.bf16.mxu1 %v6394_v44  ;;  %v6398_v36 = vcombine.low %v8096_v27, %v9143_v29  ;;  %v9154_v1 = vld [vmem:[#allocation2 + $0x58] sm:$0xf] }
 0x112   : > { %7332 = vmatprep.subr.bf16.mxu1 %v7989_v43  ;;  %7518 = vmatprep.mubr.bf16.mxu0 %v6598_v58  ;;  %v968_v6 = vshrl.u32 %v6810_v61, 16  ;;  %v971_v11 = vshll.u32 %v6810_v61, 16  ;;  %v976_v7 = vshrl.u32 %v6811_v16, 16  ;;  %v979_v19 = vshll.u32 %v6811_v16, 16  ;;  %v8100_v61 = vld [vmem:[#allocation2 + $0x60] sm:$0xf] }
 0x113   : > { %v6399_v53 = vcombine.low %v8098_v2, %v9154_v1  ;;  %v9159_v16 = vld [vmem:[#allocation2 + $0x64] sm:$0xf] }
 0x114   : > { %v970_v35 = vrot.slane %v968_v6, 7  ;;  %v978_v38 = vrot.slane %v976_v7, 7  ;;  %v6400_v26 = vcombine.low %v8100_v61, %v9159_v16  ;;  %v2192_v6 = vld [vmem:[#allocation2] sm:$0xe]  ;;  %v6403_v61 = vcombine.low %v8905_v62, %v8907_v10 }
 0x115   : > { %7333 = vmatpush3.bf16.msra.mxu1 %v7989_v43  ;;  %v3341_v43 = vshrl.u32 %v9043_v45, 16  ;;  %v2245_v45 = vrot.slane %v9081_v12, 5  ;;  %v8102_v12 = vld [vmem:[#allocation2 + $0x8] sm:$0x1] }
 0x116   : > { %7334 = vmatprep.subr.bf16.mxu1 %v7993_v14  ;;  %v973_v3 = vor.u32 %v971_v11, %v970_v35  ;;  %v974_v37 = vrot.slane %v970_v35, 4  ;;  %v981_v13 = vor.u32 %v979_v19, %v978_v38  ;;  %v983_v34 = vrot.slane %v978_v38, 4 }
 0x117   : > { %v9166_v11 = vrot.slane %v3337_v46, 5  ;;  %v9168_v7 = vrot.slane %v3341_v43, 4  ;;  %v2252_v35 = vrot.slane %v9101_v54, 5  ;;  %v2248_v38 = vrot.slane %v8102_v12, 5 }
 0x118   : > { %7303 = vmatmul.mubr.bf16.gmra.mrb[4].mxu1 %v6395_v56  ;;  %v982_v60 = vsel %vm8353_vm14, %v974_v37, %v981_v13  ;;  %v1140_v39 = vsel %vm8360_vm15, %v973_v3, %v1139_v21  ;;  %v1144_v15 = vsel %vm8289_vm5, %v983_v34, %v1143_v42  ;;  %v8019_v56 = vld [vmem:[%s10165_s1 + $0xb8] sm:$0xff]   ;;  %v6416_v21 = vrot.slane %v2192_v6, 9  ;;  %v9177_v37 = vld [vmem:[%s10165_s1 + $0xc0] sm:$0xff]  }
 0x119   : > { %7306 = vmatprep.mubr.bf16.mxu1 %v6396_v23  ;;  %7335 = vmatpush3.bf16.msra.mxu1 %v7993_v14  ;;  %1141 = vst [vmem:[#allocation2 + $0xc0] sm:$0xf] %v1140_v39  ;;  %1142 = vst [vmem:[#allocation2 + $0xc4] sm:$0xf] %v982_v60  ;;  %v2247_v42 = vrot.slane %v2245_v45, 4  ;;  %v2259_v3 = vrot.slane %v9106_v9, 5  ;;  %v6405_v12 = vcombine.low %v8996_v55, %v8999_v47 }
 0x11a   : > { %7336 = vmatprep.subr.bf16.mxu1 %v7997_v24  ;;  %1145 = vst [vmem:[#allocation2 + $0xc8] sm:$0x1] %v1144_v15  ;;  %v2194_v13 = vld [vmem:[#allocation2 + $0x18] sm:$0xe]  ;;  %v2266_v34 = vrot.slane %v9122_v18, 5  ;;  %v2273_v9 = vrot.slane %v9125_v33, 5 }
 0x11b   : > { %v8103_v60 = vld [vmem:[#allocation2 + $0x14] sm:$0x1]  ;;  %v9196_v33 = vsel %vm8674_vm4, %v2247_v42, %v2248_v38  ;;  %v2261_v43 = vrot.slane %v2259_v3, 4  ;;  %v8110_v6 = vld [vmem:[#allocation2 + $0x38] sm:$0x1]  ;;  %v6406_v38 = vcombine.low %v9024_v51, %v9027_v25 }
 0x11c   : > { %v2255_v54 = vrot.slane %v8103_v60, 5  ;;  %v4703_v42 = vld [vmem:[#allocation2 + $0x1c] sm:$0xf]  ;;  %v4704_v15 = vld [vmem:[#allocation2 + $0x20] sm:$0x1] }
 0x11d   : > { %7337 = vmatpush3.bf16.msra.mxu1 %v7997_v24  ;;  %v2193_v24 = vld [vmem:[#allocation2 + $0xc] sm:$0xe] }
 0x11e   : > { %7338 = vmatprep.subr.bf16.mxu1 %v8001_v31  ;;  %v6417_v46 = vrot.slane %v2193_v24, 9  ;;  %v6404_v24 = vcombine.low %v8960_v28, %v8969_v17 }
 0x120   : > { %7307 = vmatmul.mubr.bf16.gmra.mrb[8].mxu1 %v6397_v59  ;;  %v3109_v44 = vld [vmem:[#allocation2 + $0xc4] sm:$0xf]  ;;  %v3832_v52 = vld [vmem:[#allocation2 + $0xc0] sm:$0xe]  ;;  %v9184_v59 = vld [vmem:[#allocation2 + $0x70] sm:$0xf]  ;;  %v9210_v62 = vsel %vm8674_vm4, %v6417_v46, %v2252_v35 }
 0x121   : > { %7310 = vmatprep.mubr.bf16.mxu1 %v6398_v36  ;;  %7339 = vmatpush3.bf16.msra.mxu1 %v8001_v31  ;;  %v3110_v22 = vld [vmem:[#allocation2 + $0xc8] sm:$0x1]  ;;  %v6567_v0 = vrot.slane %v3832_v52, 9  ;;  %v3988_v58 = vrot.slane %v3109_v44, 5  ;;  %v2195_v31 = vld [vmem:[#allocation2 + $0x24] sm:$0xe]  ;;  %v6401_v27 = vcombine.low %v8104_v50, %v9184_v59 }
 0x122   : > { %7340 = vmatprep.subr.bf16.mxu1 %v8007_v41  ;;  %v3991_v48 = vrot.slane %v3110_v22, 5  ;;  %v8106_v36 = vld [vmem:[#allocation2 + $0x78] sm:$0xf]  ;;  %v2196_v44 = vld [vmem:[#allocation2 + $0x30] sm:$0xe]  ;;  %v9192_v22 = vsel %vm8674_vm4, %v6416_v21, %v2245_v45  ;;  %v6418_v52 = vrot.slane %v2194_v13, 9  ;;  %v6407_v21 = vcombine.low %v9057_v40, %v9059_v63 }
 0x123   : > { %v3989_v8 = vsel %vm8674_vm4, %v6567_v0, %v3988_v58  ;;  %v3990_v14 = vrot.slane %v3988_v58, 4  ;;  %v8004_v0 = vld [vmem:[#allocation2 + $0x24] sm:$0xff]   ;;  %v8108_v58 = vld [vmem:[#allocation2 + $0x20] sm:$0x1]  ;;  %v6419_v2 = vrot.slane %v2195_v31, 9  ;;  %v6420_v45 = vrot.slane %v2196_v44, 9 }
 0x124   : > { %v6448_v28 = vcombine.low %v9192_v22, %v9196_v33  ;;  %v9224_v17 = vsel %vm8674_vm4, %v6418_v52, %v2259_v3  ;;  %v2198_v50 = vld [vmem:[#allocation2 + $0x48] sm:$0xe]  ;;  %v8015_v3 = vld [vmem:[%s10165_s1 + $0x1d0] sm:$0xff]   ;;  %v4760_v44 = vshll.u32 %v4703_v42, 16  ;;  %v4764_v52 = vshrl.u32 %v4703_v42, 16  ;;  %v9374_v22 = vld [vmem:[%s10165_s1 + $0x200] sm:$0xff]  }
 0x125   : > { %7341 = vmatpush3.bf16.msra.mxu1 %v8007_v41  ;;  %v3992_v19 = vsel %vm8674_vm4, %v3990_v14, %v3991_v48  ;;  %v9187_v41 = vld [vmem:[#allocation2 + $0x7c] sm:$0xf]  ;;  %v2262_v48 = vrot.slane %v8108_v58, 5  ;;  %v9232_v60 = vsel %vm8674_vm4, %v6419_v2, %v2266_v34  ;;  %v6422_v58 = vrot.slane %v2198_v50, 9  ;;  %v8014_v2 = vld [vmem:[#allocation2 + $0x48] sm:$0xff]   ;;  %10196 = vst [vmem:[#allocation5_spill] sm:$0xff] %v9374_v22 }
 0x126   : > { %7342 = vmatprep.subr.bf16.mxu1 %v8013_v4  ;;  %v6599_v23 = vcombine.low %v3989_v8, %v3992_v19  ;;  %v6402_v18 = vcombine.low %v8106_v36, %v9187_v41  ;;  %v8109_v8 = vld [vmem:[#allocation2 + $0x2c] sm:$0x1]  ;;  %v2276_v19 = vrot.slane %v8110_v6, 5  ;;  %v8021_v6 = vld [vmem:[%s10165_s1 + $0x1d8] sm:$0xff]   ;;  %v4706_v42 = vld [vmem:[#allocation2 + $0x28] sm:$0xf] }
 0x127   : > { %v2269_v14 = vrot.slane %v8109_v8, 5  ;;  %v9228_v13 = vsel %vm8674_vm4, %v2261_v43, %v2262_v48  ;;  %v8010_v43 = vld [vmem:[#allocation2 + $0x3c] sm:$0xff]   ;;  %v2287_v48 = vrot.slane %v9143_v29, 5 }
 0x128   : > { %7311 = vmatmul.mubr.bf16.gmra.mrb[12].mxu1 %v6399_v53  ;;  %7519 = vmatmul.mubr.bf16.gmra.mrb[28].mxu0 %v6599_v23  ;;  %v2268_v53 = vrot.slane %v2266_v34, 4  ;;  %v8009_v23 = vld [vmem:[%s10165_s1 + $0x1c8] sm:$0xff]   ;;  %v9246_v34 = vsel %vm8674_vm4, %v6420_v45, %v2273_v9  ;;  %v2294_v45 = vrot.slane %v9154_v1, 5  ;;  %v9269_v1 = vrot.slane %v4760_v44, 5  ;;  %v8113_v29 = vld [vmem:[#allocation2 + $0x5c] sm:$0x1] }
 0x129   : > { %7314 = vmatprep.mubr.bf16.mxu1 %v6400_v26  ;;  %7343 = vmatpush3.bf16.msra.mxu1 %v8013_v4  ;;  %v2254_v4 = vrot.slane %v2252_v35, 4  ;;  %v8008_v26 = vld [vmem:[#allocation2 + $0x30] sm:$0xff]   ;;  %v4702_v35 = vld [vmem:[#allocation2 + $0x18] sm:$0xf]  ;;  %v2289_v39 = vrot.slane %v2287_v48, 4 }
 0x12a   : > { %7344 = vmatprep.subr.bf16.mxu1 %v8019_v56  ;;  %7538 = vmatprep.mubr.bf16.mxu0 %v8002_v20  ;;  %v2197_v20 = vld [vmem:[#allocation2 + $0x3c] sm:$0xe]  ;;  %v4751_v46 = vshrl.u32 %v4702_v35, 16  ;;  %v8114_v44 = vld [vmem:[#allocation2 + $0x68] sm:$0x1] }
 0x12b   : > { %v9214_v10 = vsel %vm8674_vm4, %v2254_v4, %v2255_v54  ;;  %v9236_v54 = vsel %vm8674_vm4, %v2268_v53, %v2269_v14  ;;  %v6421_v31 = vrot.slane %v2197_v20, 9  ;;  %v4754_v4 = vshll.u32 %v4702_v35, 16  ;;  %v8111_v53 = vld [vmem:[#allocation2 + $0x44] sm:$0x1]  ;;  %v8112_v14 = vld [vmem:[#allocation2 + $0x50] sm:$0x1] }
 0x12c   : > { %v2283_v8 = vrot.slane %v8111_v53, 5  ;;  %v2301_v35 = vrot.slane %v9159_v16, 5  ;;  %v4753_v50 = vrot.slane %v4751_v46, 4  ;;  %v2296_v16 = vrot.slane %v2294_v45, 4 }
 0x12d   : > { %7345 = vmatpush3.bf16.msra.mxu1 %v8019_v56  ;;  %v2275_v56 = vrot.slane %v2273_v9, 4  ;;  %v4756_v53 = vrot.slane %v4754_v4, 5  ;;  %v4784_v9 = vshll.u32 %v4706_v42, 16 }
 0x12e   : > { %7378 = vmatprep.subr.bf16.mxu1 %v9177_v37  ;;  %v2303_v4 = vrot.slane %v2301_v35, 4 }
 0x12f   : > { %v9250_v36 = vsel %vm8674_vm4, %v2275_v56, %v2276_v19  ;;  %v4705_v56 = vld [vmem:[#allocation2 + $0x24] sm:$0xf] }
 0x130   : > { %7315 = vmatmul.mubr.bf16.gmra.mrb[16].mxu1 %v6401_v27  ;;  %7539 = vmatmul.mubr.bf16.vlgmr.msra.gmra.mrb[0].mxu0 %v8004_v0  ;;  %v4788_v0 = vshrl.u32 %v4706_v42, 16  ;;  %v8020_v27 = vld [vmem:[#allocation2 + $0x60] sm:$0xff]  }
 0x131   : > { %7318 = vmatprep.mubr.bf16.mxu1 %v6402_v18  ;;  %7571 = vmatpush3.bf16.msra.mxu0 %v8931_v30  ;;  %v2280_v18 = vrot.slane %v9140_v49, 5  ;;  %v2199_v30 = vld [vmem:[#allocation2 + $0x54] sm:$0xe] }
 0x132   : > { %7542 = vmatprep.mubr.bf16.mxu0 %v8008_v26  ;;  %7572 = vmatprep.subr.bf16.mxu0 %v8009_v23  ;;  %v2290_v26 = vrot.slane %v8112_v14, 5  ;;  %v6423_v20 = vrot.slane %v2199_v30, 9  ;;  %v9273_v14 = vsel %vm8674_vm4, %v6422_v58, %v2287_v48  ;;  %v4778_v30 = vshll.u32 %v4705_v56, 16  ;;  %v8025_v48 = vld [vmem:[%s10165_s1 + $0x1e0] sm:$0xff]  }
 0x133   : > { %v9260_v49 = vsel %vm8674_vm4, %v6421_v31, %v2280_v18  ;;  %v2282_v19 = vrot.slane %v2280_v18, 4  ;;  %v2200_v31 = vld [vmem:[#allocation2 + $0x60] sm:$0xe]  ;;  %v4775_v18 = vshrl.u32 %v4705_v56, 16  ;;  %v2308_v58 = vrot.slane %v9184_v59, 5 }
 0x134   : > { %v6424_v46 = vrot.slane %v2200_v31, 9  ;;  %v4757_v56 = vor.u32 %v4756_v53, %v4753_v50  ;;  %v9290_v59 = vsel %vm8674_vm4, %v6423_v20, %v2294_v45  ;;  %v4780_v31 = vrot.slane %v4778_v30, 5  ;;  %v8115_v53 = vld [vmem:[#allocation2 + $0x74] sm:$0x1]  ;;  %v2202_v30 = vld [vmem:[#allocation2 + $0x78] sm:$0xe] }
 0x135   : > { %7573 = vmatpush3.bf16.msra.mxu0 %v8009_v23  ;;  %v4766_v23 = vrot.slane %v4764_v52, 4  ;;  %v2201_v52 = vld [vmem:[#allocation2 + $0x6c] sm:$0xe]  ;;  %v4777_v42 = vrot.slane %v4775_v18, 4  ;;  %v9299_v50 = vrot.slane %v4784_v9, 5  ;;  %v2310_v20 = vrot.slane %v2308_v58, 4 }
 0x136   : > { %7574 = vmatprep.subr.bf16.mxu0 %v8015_v3  ;;  %v4707_v18 = vld [vmem:[#allocation2 + $0x2c] sm:$0x1] }
 0x137   : > { %v4781_v47 = vor.u32 %v4780_v31, %v4777_v42  ;;  %v4794_v25 = vshll.u32 %v4707_v18, 16  ;;  %v8116_v42 = vld [vmem:[#allocation2 + $0x80] sm:$0x1] }
 0x138   : > { %7319 = vmatmul.mubr.bf16.gmra.mrb[20].mxu1 %v6403_v61  ;;  %7543 = vmatmul.mubr.bf16.gmra.mrb[4].mxu0 %v8010_v43  ;;  %v2297_v61 = vrot.slane %v8113_v29, 5  ;;  %v9281_v43 = vsel %vm8674_vm4, %v2282_v19, %v2283_v8  ;;  %v9286_v29 = vsel %vm8674_vm4, %v2289_v39, %v2290_v26  ;;  %v8029_v8 = vld [vmem:[%s10165_s1 + $0x1e8] sm:$0xff]   ;;  %v4790_v39 = vrot.slane %v4788_v0, 4 }
 0x139   : > { %7322 = vmatprep.mubr.bf16.mxu1 %v6404_v24  ;;  %7546 = vmatprep.mubr.bf16.mxu0 %v8014_v2  ;;  %v2304_v24 = vrot.slane %v8114_v44, 5  ;;  %v4767_v2 = vor.u32 %v4766_v23, %v9269_v1  ;;  %v8016_v44 = vld [vmem:[#allocation2 + $0x54] sm:$0xff]   ;;  %v9303_v26 = vsel %vm8674_vm4, %v6424_v46, %v2301_v35  ;;  %v2311_v23 = vrot.slane %v8115_v53, 5  ;;  %v4712_v46 = vld [vmem:[#allocation2 + $0x40] sm:$0xf] }
 0x13a   : > { %7575 = vmatpush3.bf16.msra.mxu0 %v8015_v3  ;;  %v4770_v3 = vshll.u32 %v4704_v15, 16  ;;  %v9297_v19 = vsel %vm8674_vm4, %v2296_v16, %v2297_v61  ;;  %v6425_v15 = vrot.slane %v2201_v52, 9  ;;  %v4758_v0 = vrot.slane %v4757_v56, 4  ;;  %v4708_v16 = vld [vmem:[#allocation2 + $0x30] sm:$0xf] }
 0x13b   : > { %7576 = vmatprep.subr.bf16.mxu0 %v8021_v6  ;;  %v9307_v45 = vsel %vm8674_vm4, %v2303_v4, %v2304_v24  ;;  %v4768_v9 = vrot.slane %v4767_v2, 4  ;;  %v2315_v35 = vrot.slane %v9187_v41, 5  ;;  %v4791_v51 = vor.u32 %v4790_v39, %v9299_v50  ;;  %v2203_v52 = vld [vmem:[#allocation2 + $0x84] sm:$0xe] }
 0x13c   : > { %v9326_v41 = vsel %vm8674_vm4, %v6425_v15, %v2308_v58  ;;  %v9331_v4 = vsel %vm8674_vm4, %v2310_v20, %v2311_v23  ;;  %v6426_v24 = vrot.slane %v2202_v30, 9  ;;  %v4799_v56 = vshrl.u32 %v4708_v16, 16  ;;  %v8033_v58 = vld [vmem:[%s10165_s1 + $0x1f0] sm:$0xff]   ;;  %v8117_v20 = vld [vmem:[#allocation2 + $0x88] sm:$0xf]  ;;  %v8024_v30 = vld [vmem:[#allocation2 + $0x78] sm:$0xff]  }
 0x13d   : > { %v4802_v2 = vshll.u32 %v4708_v16, 16  ;;  %v2318_v31 = vrot.slane %v8116_v42, 5  ;;  %v8022_v15 = vld [vmem:[#allocation2 + $0x6c] sm:$0xff]   ;;  %v4782_v39 = vrot.slane %v4781_v47, 4  ;;  %v2322_v53 = vrot.slane %v8117_v20, 5  ;;  %v8037_v47 = vld [vmem:[%s10165_s1 + $0x1f8] sm:$0xff]  }
 0x13e   : > { %7577 = vmatpush3.bf16.msra.mxu0 %v8021_v6  ;;  %v4772_v6 = vrot.slane %v4770_v3, 5  ;;  %v4763_v3 = vsel %vm8278_vm3, %v4758_v0, %v9269_v1  ;;  %v4796_v55 = vrot.slane %v4794_v25, 5  ;;  %v6427_v1 = vrot.slane %v2203_v52, 9  ;;  %v4710_v0 = vld [vmem:[#allocation2 + $0x38] sm:$0x1]  ;;  %v8026_v20 = vld [vmem:[#allocation2 + $0x84] sm:$0xff]  }
 0x13f   : > { %7578 = vmatprep.subr.bf16.mxu0 %v8025_v48  ;;  %v8118_v25 = vld [vmem:[#allocation2 + $0x8c] sm:$0x1]  ;;  %v4787_v40 = vsel %vm8278_vm3, %v4782_v39, %v9299_v50  ;;  %v4713_v50 = vld [vmem:[#allocation2 + $0x44] sm:$0x1]  ;;  %v4717_v39 = vld [vmem:[#allocation2 + $0x54] sm:$0xf] }
 0x140   : > { %7323 = vmatmul.mubr.bf16.gmra.mrb[24].mxu1 %v6405_v12  ;;  %7547 = vmatmul.mubr.bf16.gmra.mrb[8].mxu0 %v8016_v44  ;;  %v4711_v44 = vld [vmem:[#allocation2 + $0x3c] sm:$0xf]  ;;  %v4792_v12 = vrot.slane %v4791_v51, 4  ;;  %v9353_v51 = vsel %vm8674_vm4, %v6426_v24, %v2315_v35  ;;  %v2325_v52 = vrot.slane %v8118_v25, 5  ;;  %v9367_v24 = vld [vmem:[#allocation2 + $0x4c] sm:$0xf]  ;;  %v9378_v33 = vsel %vm8674_vm4, %v6427_v1, %v2322_v53 }
 0x141   : > { %7326 = vmatprep.mubr.bf16.mxu1 %v6406_v38  ;;  %v4709_v38 = vld [vmem:[#allocation2 + $0x34] sm:$0xf]  ;;  %7550 = vmatprep.mubr.bf16.mxu0 %v8020_v27  ;;  %v4773_v27 = vsel %vm8278_vm3, %v4768_v9, %v4772_v6  ;;  %v4801_v9 = vrot.slane %v4799_v56, 4  ;;  %v4804_v6 = vrot.slane %v4802_v2, 5  ;;  %v4823_v42 = vshrl.u32 %v4711_v44, 16  ;;  %10195 = vst [vmem:[#allocation4_spill] sm:$0xff] %v9367_v24 }
 0x142   : > { %7579 = vmatpush3.bf16.msra.mxu0 %v8025_v48  ;;  %v2317_v48 = vrot.slane %v2315_v35, 4  ;;  %v4808_v23 = vshll.u32 %v4709_v38, 16  ;;  %v4812_v18 = vshrl.u32 %v4709_v38, 16  ;;  %v4826_v61 = vshll.u32 %v4711_v44, 16  ;;  %v4714_v56 = vld [vmem:[#allocation2 + $0x48] sm:$0xf] }
 0x143   : > { %7580 = vmatprep.subr.bf16.mxu0 %v8029_v8  ;;  %v9349_v38 = vcombine.low %v4763_v3, %v4773_v27  ;;  %v4797_v3 = vsel %vm8278_vm3, %v4792_v12, %v4796_v55  ;;  %v4818_v27 = vshll.u32 %v4710_v0, 16  ;;  %v4825_v44 = vrot.slane %v4823_v42, 4  ;;  %v9398_v42 = vld [vmem:[#allocation2 + $0x58] sm:$0xf]  ;;  %v8028_v25 = vld [vmem:[#allocation2 + $0x90] sm:$0xff]  }
 0x144   : > { %v9365_v2 = vrot.slane %v4808_v23, 5  ;;  %v4814_v35 = vrot.slane %v4812_v18, 4  ;;  %v4847_v55 = vshrl.u32 %v4714_v56, 16  ;;  %v4850_v12 = vshll.u32 %v4714_v56, 16  ;;  %v8027_v23 = vld [vmem:[%s10165_s1 + $0xc8] sm:$0xff]   ;;  %10197 = vst [vmem:[#allocation6_spill] sm:$0xff] %v9398_v42 }
 0x145   : > { %v9385_v18 = vcombine.low %v4787_v40, %v4797_v3  ;;  %v9394_v1 = vrot.slane %v4818_v27, 5  ;;  %v2204_v3 = vld [vmem:[#allocation2 + $0x90] sm:$0xe]  ;;  %v4874_v16 = vshll.u32 %v4717_v39, 16 }
 0x146   : > { %7581 = vmatpush3.bf16.msra.mxu0 %v8029_v8  ;;  %v9357_v8 = vsel %vm8674_vm4, %v2317_v48, %v2318_v31  ;;  %v4832_v48 = vshll.u32 %v4712_v46, 16  ;;  %v4836_v31 = vshrl.u32 %v4712_v46, 16  ;;  %v4856_v46 = vshll.u32 %v9367_v24, 16 }
 0x147   : > { %7582 = vmatprep.subr.bf16.mxu0 %v8033_v58 }
 0x148   : > { %7327 = vmatmul.mubr.bf16.gmra.mrb[28].mxu1 %v6407_v21  ;;  %v2324_v21 = vrot.slane %v2322_v53, 4  ;;  %7551 = vmatmul.mubr.bf16.gmra.mrb[12].mxu0 %v8022_v15  ;;  %v4828_v15 = vrot.slane %v4826_v61, 5  ;;  %v9396_v0 = vrot.slane %v4832_v48, 5  ;;  %v4871_v53 = vshrl.u32 %v4717_v39, 16 }
 0x149   : > { %7346 = vmatprep.mubr.bf16.mxu1 %v6448_v28  ;;  %7554 = vmatprep.mubr.bf16.mxu0 %v8024_v30  ;;  %v4805_v28 = vor.u32 %v4804_v6, %v4801_v9  ;;  %v4815_v30 = vor.u32 %v4814_v35, %v9365_v2  ;;  %v4838_v9 = vrot.slane %v4836_v31, 4  ;;  %v4842_v6 = vshll.u32 %v4713_v50, 16 }
 0x14a   : > { %7583 = vmatpush3.bf16.msra.mxu0 %v8033_v58  ;;  %v4860_v58 = vshrl.u32 %v9367_v24, 16  ;;  %v9391_v61 = vsel %vm8674_vm4, %v2324_v21, %v2325_v52  ;;  %v4829_v40 = vor.u32 %v4828_v15, %v4825_v44  ;;  %v10198_v52 = vcombine.low %v9210_v62, %v9214_v10  ;;  %v9410_v44 = vld [vmem:[#allocation2 + $0x50] sm:$0x1] }
 0x14b   : > { %7584 = vmatprep.subr.bf16.mxu0 %v8037_v47  ;;  %v4806_v56 = vrot.slane %v4805_v28, 4  ;;  %v4849_v21 = vrot.slane %v4847_v55, 4  ;;  %v4852_v35 = vrot.slane %v4850_v12, 5  ;;  %v9404_v27 = vrot.slane %v4856_v46, 5  ;;  %v8119_v28 = vld [vmem:[#allocation2 + $0x94] sm:$0xf] }
 0x14c   : > { %v4862_v48 = vrot.slane %v4860_v58, 4  ;;  %v4816_v31 = vrot.slane %v4815_v30, 4  ;;  %v2329_v50 = vrot.slane %v8119_v28, 5  ;;  %10200 = vst [vmem:[#allocation7_spill] sm:$0xff] %v9410_v44  ;;  %v4880_v62 = vshll.u32 %v9398_v42, 16  ;;  %v8031_v15 = vld [vmem:[%s10165_s1 + $0xd0] sm:$0xff]  }
 0x14d   : > { %v4884_v10 = vshrl.u32 %v9398_v42, 16  ;;  %v9418_v55 = vrot.slane %v4842_v6, 5  ;;  %v4811_v46 = vsel %vm8278_vm3, %v4806_v56, %v9365_v2  ;;  %v8121_v58 = vld [vmem:[#allocation2 + $0x98] sm:$0x1]  ;;  %v4873_v30 = vrot.slane %v4871_v53, 4 }
 0x14e   : > { %7585 = vmatpush3.bf16.msra.mxu0 %v8037_v47  ;;  %v10199_v47 = vcombine.low %v9224_v17, %v9228_v13  ;;  %v6428_v17 = vrot.slane %v2204_v3, 9  ;;  %v8120_v13 = vld [vmem:[#allocation2 + $0xa0] sm:$0xf]  ;;  %v2332_v39 = vrot.slane %v8121_v58, 5  ;;  %v4853_v28 = vor.u32 %v4852_v35, %v4849_v21  ;;  %v8032_v58 = vld [vmem:[#allocation2 + $0xa8] sm:$0xff]  }
 0x14f   : > { %7618 = vmatprep.subr.bf16.mxu0 %v9374_v22  ;;  %v2336_v12 = vrot.slane %v8120_v13, 5  ;;  %v4866_v6 = vshll.u32 %v9410_v44, 16  ;;  %v8030_v3 = vld [vmem:[#allocation2 + $0x9c] sm:$0xff]   ;;  %v4821_v2 = vsel %vm8278_vm3, %v4816_v31, %v9394_v1  ;;  %v2331_v56 = vrot.slane %v2329_v50, 4  ;;  %v8123_v31 = vld [vmem:[#allocation2 + $0xac] sm:$0xf] }
 0x150   : > { %7347 = vmatmul.mubr.bf16.vlgmr.msra.gmra.mrb[0].mxu1 %v10198_v52  ;;  %7555 = vmatmul.mubr.bf16.gmra.mrb[16].mxu0 %v8026_v20  ;;  %v2205_v20 = vld [vmem:[#allocation2 + $0x9c] sm:$0xe]  ;;  %v4876_v52 = vrot.slane %v4874_v16, 5  ;;  %v9433_v53 = vrot.slane %v4880_v62, 5  ;;  %v4886_v16 = vrot.slane %v4884_v10, 4  ;;  %v9441_v44 = vsel %vm8674_vm4, %v6428_v17, %v2329_v50 }
 0x151   : > { %7379 = vmatpush3.bf16.msra.mxu1 %v9177_v37  ;;  %7350 = vmatprep.mubr.bf16.mxu1 %v10199_v47  ;;  %v4839_v37 = vor.u32 %v4838_v9, %v9396_v0  ;;  %v9423_v47 = vrot.slane %v4829_v40, 4  ;;  %v4863_v9 = vor.u32 %v4862_v48, %v9404_v27  ;;  %v6429_v21 = vrot.slane %v2205_v20, 9  ;;  %v8122_v48 = vld [vmem:[#allocation2 + $0xa4] sm:$0x1]  ;;  %v2206_v22 = vld [vmem:[#allocation2 + $0xa8] sm:$0xe] }
 0x152   : > { %7380 = vmatprep.subr.bf16.mxu1 %v8027_v23  ;;  %7558 = vmatprep.mubr.bf16.mxu0 %v8028_v25  ;;  %v8035_v25 = vld [vmem:[%s10165_s1 + $0xd8] sm:$0xff]   ;;  %v2338_v35 = vrot.slane %v2336_v12, 4  ;;  %v2339_v13 = vrot.slane %v8122_v48, 5  ;;  %v4877_v1 = vor.u32 %v4876_v52, %v4873_v30  ;;  %v2343_v62 = vrot.slane %v8123_v31, 5 }
 0x153   : > { %v4840_v40 = vrot.slane %v4839_v37, 4  ;;  %v10201_v10 = vcombine.low %v9232_v60, %v9236_v54  ;;  %v9446_v37 = vcombine.low %v4811_v46, %v4821_v2  ;;  %v4854_v20 = vrot.slane %v4853_v28, 4  ;;  %v2207_v46 = vld [vmem:[#allocation2 + $0xb4] sm:$0xe]  ;;  %v8124_v28 = vld [vmem:[#allocation2 + $0xb0] sm:$0x1] }
 0x154   : > { %v4864_v48 = vrot.slane %v4863_v9, 4  ;;  %v4868_v24 = vrot.slane %v4866_v6, 5  ;;  %v10202_v42 = vcombine.low %v9246_v34, %v9250_v36  ;;  %v4835_v50 = vsel %vm8278_vm3, %v9423_v47, %v9396_v0  ;;  %v8039_v34 = vld [vmem:[%s10165_s1 + $0xe0] sm:$0xff]  }
 0x155   : > { %7381 = vmatpush3.bf16.msra.mxu1 %v8027_v23  ;;  %v9435_v23 = vld [vmem:[#allocation2 + $0x5c] sm:$0x1]  ;;  %v9457_v60 = vsel %vm8674_vm4, %v2331_v56, %v2332_v39  ;;  %v4887_v54 = vor.u32 %v4886_v16, %v9433_v53  ;;  %v10203_v30 = vshll.u32 %v9047_v57, 16  ;;  %v4845_v36 = vsel %vm8278_vm3, %v4840_v40, %v9418_v55  ;;  %v4720_v57 = vld [vmem:[#allocation2 + $0x60] sm:$0xf] }
 0x156   : > { %7382 = vmatprep.subr.bf16.mxu1 %v8031_v15  ;;  %v4890_v17 = vshll.u32 %v9435_v23, 16  ;;  %v9473_v0 = vsel %vm8674_vm4, %v6429_v21, %v2336_v12  ;;  %v6430_v39 = vrot.slane %v2206_v22, 9  ;;  %v2345_v47 = vrot.slane %v2343_v62, 4  ;;  %v9481_v6 = vld [vmem:[#allocation2 + $0x64] sm:$0xf]  ;;  %v8034_v21 = vld [vmem:[#allocation2 + $0xb4] sm:$0xff]  }
 0x157   : > { %v9463_v52 = vrot.slane %v10203_v30, 5  ;;  %10205 = vst [vmem:[#allocation9_spill] sm:$0xff] %v9473_v0  ;;  %v2346_v9 = vrot.slane %v8124_v28, 5  ;;  %v4859_v55 = vsel %vm8278_vm3, %v4854_v20, %v9404_v27  ;;  %v4869_v12 = vsel %vm8278_vm3, %v4864_v48, %v4868_v24  ;;  %v4723_v48 = vld [vmem:[#allocation2 + $0x6c] sm:$0xf] }
 0x158   : > { %7351 = vmatmul.mubr.bf16.gmra.mrb[4].mxu1 %v10201_v10  ;;  %7559 = vmatmul.mubr.bf16.gmra.mrb[20].mxu0 %v8030_v3  ;;  %v6431_v3 = vrot.slane %v2207_v46, 9  ;;  %v2350_v2 = vrot.slane %v9059_v63, 5  ;;  %v9489_v56 = vrot.slane %v4887_v54, 4  ;;  %v9491_v16 = vrot.slane %v4890_v17, 5 }
 0x159   : > { %7354 = vmatprep.mubr.bf16.mxu1 %v10202_v42  ;;  %7383 = vmatpush3.bf16.msra.mxu1 %v8031_v15  ;;  %10204 = vst [vmem:[#allocation8_spill] sm:$0xff] %v9463_v52  ;;  %v9477_v42 = vsel %vm8674_vm4, %v2338_v35, %v2339_v13  ;;  %v9479_v15 = vrot.slane %v4877_v1, 4  ;;  %v4895_v22 = vshrl.u32 %v4720_v57, 16  ;;  %v4898_v40 = vshll.u32 %v4720_v57, 16  ;;  %v8041_v35 = vld [vmem:[%s10165_s1 + $0xe8] sm:$0xff]  }
 0x15a   : > { %7384 = vmatprep.subr.bf16.mxu1 %v8035_v25  ;;  %10206 = vst [vmem:[#allocation10_spill] sm:$0xff] %v9477_v42  ;;  %7562 = vmatprep.mubr.bf16.mxu0 %v8032_v58  ;;  %v9496_v27 = vcombine.low %v4835_v50, %v4845_v36  ;;  %v9500_v13 = vld [vmem:[#allocation2 + $0x68] sm:$0x1]  ;;  %v4904_v63 = vshll.u32 %v9481_v6, 16  ;;  %v8036_v58 = vld [vmem:[#allocation2 + $0xc0] sm:$0xff]   ;;  %v9506_v31 = vcombine.low %v4859_v55, %v4869_v12  ;;  %v2352_v30 = vrot.slane %v2350_v2, 4 }
 0x15b   : > { %10207 = vst [vmem:[#allocation11_spill] sm:$0xff] %v9500_v13  ;;  %v9514_v20 = vsel %vm8674_vm4, %v6430_v39, %v2343_v62  ;;  %v9516_v50 = vld [vmem:[#allocation2 + $0x70] sm:$0xf]  ;;  %v10209_v54 = vcombine.low %v9260_v49, %v9281_v43  ;;  %v9523_v17 = vsel %vm8674_vm4, %v2345_v47, %v2346_v9  ;;  %v9527_v46 = vsel %vm8674_vm4, %v6431_v3, %v2350_v2  ;;  %v8125_v36 = vld [vmem:[#allocation2 + $0xbc] sm:$0x1] }
 0x15c   : > { %10208 = vst [vmem:[#allocation12_spill] sm:$0xff] %v9516_v50  ;;  %v2353_v57 = vrot.slane %v8125_v36, 5  ;;  %v4726_v62 = vld [vmem:[#allocation2 + $0x78] sm:$0xf]  ;;  %v9529_v39 = vld [vmem:[#allocation2 + $0x7c] sm:$0xf]  ;;  %v10211_v28 = vcombine.low %v9273_v14, %v9286_v29 }
 0x15d   : > { %7385 = vmatpush3.bf16.msra.mxu1 %v8035_v25  ;;  %v4908_v25 = vshrl.u32 %v9481_v6, 16  ;;  %10210 = vst [vmem:[#allocation13_spill] sm:$0xff] %v9529_v39  ;;  %v8043_v49 = vld [vmem:[%s10165_s1 + $0xf0] sm:$0xff]   ;;  %v4897_v47 = vrot.slane %v4895_v22, 4  ;;  %v4900_v9 = vrot.slane %v4898_v40, 5  ;;  %v4914_v55 = vshll.u32 %v9500_v13, 16 }
 0x15e   : > { %7386 = vmatprep.subr.bf16.mxu1 %v8039_v34  ;;  %v4729_v12 = vld [vmem:[#allocation2 + $0x84] sm:$0xf]  ;;  %v9542_v3 = vrot.slane %v4904_v63, 5  ;;  %v4919_v29 = vshrl.u32 %v4723_v48, 16  ;;  %v9544_v2 = vld [vmem:[#allocation2 + $0x88] sm:$0xf] }
 0x15f   : > { %v4910_v14 = vrot.slane %v4908_v25, 4  ;;  %10212 = vst [vmem:[#allocation14_spill] sm:$0xff] %v9544_v2  ;;  %v4928_v36 = vshll.u32 %v9516_v50, 16  ;;  %v4932_v22 = vshrl.u32 %v9516_v50, 16  ;;  %v4943_v40 = vshrl.u32 %v4726_v62, 16  ;;  %v8038_v25 = vld [vmem:[#allocation2 + $0xcc] sm:$0xff]  }
 0x160   : > { %7355 = vmatmul.mubr.bf16.gmra.mrb[8].mxu1 %v10209_v54  ;;  %7563 = vmatmul.mubr.bf16.gmra.mrb[24].mxu0 %v8034_v21  ;;  %v9546_v54 = vld [vmem:[#allocation2 + $0x74] sm:$0x1]  ;;  %v4952_v1 = vshll.u32 %v9529_v39, 16  ;;  %v4956_v21 = vshrl.u32 %v9529_v39, 16  ;;  %v4967_v63 = vshrl.u32 %v4729_v12, 16  ;;  %v4970_v24 = vshll.u32 %v4729_v12, 16 }
 0x161   : > { %7358 = vmatprep.mubr.bf16.mxu1 %v10211_v28  ;;  %7387 = vmatpush3.bf16.msra.mxu1 %v8039_v34  ;;  %v4922_v34 = vshll.u32 %v4723_v48, 16  ;;  %10213 = vst [vmem:[#allocation15_spill] sm:$0xff] %v9546_v54  ;;  %v4946_v28 = vshll.u32 %v4726_v62, 16  ;;  %v9554_v48 = vsel %vm8674_vm4, %v2352_v30, %v2353_v57  ;;  %v4976_v10 = vshll.u32 %v9544_v2, 16  ;;  %v8045_v62 = vld [vmem:[%s10165_s1 + $0xf8] sm:$0xff]  }
 0x162   : > { %7388 = vmatprep.subr.bf16.mxu1 %v8041_v35  ;;  %7566 = vmatprep.mubr.bf16.mxu0 %v8036_v58  ;;  %v4901_v58 = vor.u32 %v4900_v9, %v4897_v47  ;;  %v4980_v43 = vshrl.u32 %v9544_v2, 16  ;;  %v4911_v39 = vor.u32 %v4910_v14, %v9542_v3  ;;  %v4921_v52 = vrot.slane %v4919_v29, 4  ;;  %v4732_v50 = vld [vmem:[#allocation2 + $0x90] sm:$0xf]  ;;  %v9565_v9 = vld [vmem:[#allocation2 + $0x94] sm:$0xf] }
 0x163   : > { %v4924_v12 = vrot.slane %v4922_v34, 5  ;;  %v9563_v13 = vrot.slane %v4928_v36, 5  ;;  %v4934_v30 = vrot.slane %v4932_v22, 4  ;;  %v4945_v57 = vrot.slane %v4943_v40, 4  ;;  %10214 = vst [vmem:[#allocation16_spill] sm:$0xff] %v9565_v9 }
 0x164   : > { %v4948_v47 = vrot.slane %v4946_v28, 5  ;;  %v10215_v2 = vcombine.low %v9290_v59, %v9297_v19  ;;  %v9570_v42 = vld [vmem:[#allocation2 + $0x80] sm:$0x1]  ;;  %v9572_v0 = vrot.slane %v4952_v1, 5  ;;  %v4958_v14 = vrot.slane %v4956_v21, 4 }
 0x165   : > { %7389 = vmatpush3.bf16.msra.mxu1 %v8041_v35  ;;  %v4938_v35 = vshll.u32 %v9546_v54, 16  ;;  %v4969_v29 = vrot.slane %v4967_v63, 4  ;;  %v4972_v34 = vrot.slane %v4970_v24, 5  ;;  %v10216_v36 = vcombine.low %v9303_v26, %v9307_v45  ;;  %v9577_v22 = vld [vmem:[#allocation2 + $0x8c] sm:$0x1] }
 0x166   : > { %7390 = vmatprep.subr.bf16.mxu1 %v8043_v49  ;;  %v9579_v40 = vrot.slane %v4976_v10, 5  ;;  %v4982_v28 = vrot.slane %v4980_v43, 4  ;;  %v4991_v54 = vshrl.u32 %v4732_v50, 16  ;;  %v4994_v59 = vshll.u32 %v4732_v50, 16  ;;  %v4735_v43 = vld [vmem:[#allocation2 + $0x9c] sm:$0xf] }
 0x167   : > { %v9581_v19 = vrot.slane %v4901_v58, 4  ;;  %v9583_v1 = vrot.slane %v4914_v55, 5  ;;  %v5000_v24 = vshll.u32 %v9565_v9, 16  ;;  %v4925_v26 = vor.u32 %v4924_v12, %v4921_v52  ;;  %v9597_v12 = vld [vmem:[#allocation2 + $0xa0] sm:$0xf] }
 0x168   : > { %7359 = vmatmul.mubr.bf16.gmra.mrb[12].mxu1 %v10215_v2  ;;  %7567 = vmatmul.mubr.bf16.gmra.mrb[28].mxu0 %v8038_v25  ;;  %v5004_v2 = vshrl.u32 %v9565_v9, 16  ;;  %v4935_v45 = vor.u32 %v4934_v30, %v9563_v13  ;;  %v4949_v10 = vor.u32 %v4948_v47, %v4945_v57  ;;  %v9590_v50 = vrot.slane %v4911_v39, 4  ;;  %v9602_v30 = vld [vmem:[%s10165_s1 + $0x100] sm:$0xff]   ;;  %v9605_v39 = vld [vmem:[#allocation2 + $0x98] sm:$0x1] }
 0x169   : > { %7362 = vmatprep.mubr.bf16.mxu1 %v10216_v36  ;;  %7391 = vmatpush3.bf16.msra.mxu1 %v8043_v49  ;;  %v4962_v49 = vshll.u32 %v9570_v42, 16  ;;  %v9592_v21 = vrot.slane %v4938_v35, 5  ;;  %v4959_v55 = vor.u32 %v4958_v14, %v9572_v0  ;;  %v4986_v63 = vshll.u32 %v9577_v22, 16 }
 0x16a   : > { %7392 = vmatprep.subr.bf16.mxu1 %v8045_v62  ;;  %7586 = vmatprep.mubr.bf16.mxu0 %v9349_v38  ;;  %v4973_v25 = vor.u32 %v4972_v34, %v4969_v29  ;;  %v4983_v58 = vor.u32 %v4982_v28, %v9579_v40  ;;  %v4993_v38 = vrot.slane %v4991_v54, 4  ;;  %v4996_v52 = vrot.slane %v4994_v59, 5  ;;  %v8042_v28 = vld [vmem:[%s10165_s1 + $0x208] sm:$0xff]  }
 0x16b   : > { %v9607_v35 = vrot.slane %v5000_v24, 5  ;;  %v5006_v57 = vrot.slane %v5004_v2, 4  ;;  %v5018_v47 = vshll.u32 %v4735_v43, 16  ;;  %v4926_v14 = vrot.slane %v4925_v26, 4 }
 0x16c   : > { %v4936_v29 = vrot.slane %v4935_v45, 4  ;;  %v4950_v54 = vrot.slane %v4949_v10, 4  ;;  %v4964_v34 = vrot.slane %v4962_v49, 5  ;;  %v10217_v36 = vcombine.low %v9326_v41, %v9331_v4 }
 0x16d   : > { %7393 = vmatpush3.bf16.msra.mxu1 %v8045_v62  ;;  %v5015_v62 = vshrl.u32 %v4735_v43, 16  ;;  %v4960_v59 = vrot.slane %v4959_v55, 4  ;;  %v4988_v9 = vrot.slane %v4986_v63, 5  ;;  %v5024_v24 = vshll.u32 %v9597_v12, 16 }
 0x16e   : > { %7666 = vmatprep.subr.bf16.mxu1 %v9602_v30  ;;  %v5028_v2 = vshrl.u32 %v9597_v12, 16  ;;  %v10218_v26 = vcombine.low %v9353_v51, %v9357_v8  ;;  %v4974_v45 = vrot.slane %v4973_v25, 4  ;;  %v4984_v10 = vrot.slane %v4983_v58, 4  ;;  %v10220_v25 = vld [vmem:[#allocation5_spill] sm:$0xff]  ;;  %v4738_v58 = vld [vmem:[#allocation2 + $0xa8] sm:$0xf] }
 0x16f   : > { %v4997_v49 = vor.u32 %v4996_v52, %v4993_v38  ;;  %v5010_v41 = vshll.u32 %v9605_v39, 16  ;;  %v4907_v4 = vsel %vm8278_vm3, %v9581_v19, %v9542_v3  ;;  %v5007_v43 = vor.u32 %v5006_v57, %v9607_v35  ;;  %v9656_v52 = vld [vmem:[#allocation2 + $0xac] sm:$0xf] }
 0x170   : > { %7363 = vmatmul.mubr.bf16.gmra.mrb[16].mxu1 %v10217_v36  ;;  %7587 = vmatmul.mubr.bf16.vlgmr.msra.gmra.mrb[0].mxu0 %v9385_v18  ;;  %v5017_v55 = vrot.slane %v5015_v62, 4  ;;  %v5020_v63 = vrot.slane %v5018_v47, 5  ;;  %v10219_v51 = vor.u32 %v9168_v7, %v9166_v11  ;;  %v4917_v18 = vsel %vm8278_vm3, %v9590_v50, %v9583_v1  ;;  %v9644_v7 = vld [vmem:[#allocation2 + $0xa4] sm:$0x1] }
 0x171   : > { %7366 = vmatprep.mubr.bf16.mxu1 %v10218_v26  ;;  %7619 = vmatpush3.bf16.msra.mxu0 %v10220_v25  ;;  %v4931_v3 = vsel %vm8278_vm3, %v4926_v14, %v9563_v13  ;;  %v4941_v19 = vsel %vm8278_vm3, %v4936_v29, %v9592_v21  ;;  %v4955_v1 = vsel %vm8278_vm3, %v4950_v54, %v9572_v0  ;;  %v9654_v13 = vrot.slane %v5024_v24, 5 }
 0x172   : > { %v9630_v8 = vrot.slane %v10219_v51, 4  ;;  %7590 = vmatprep.mubr.bf16.mxu0 %v9446_v37  ;;  %7620 = vmatprep.subr.bf16.mxu0 %v8042_v28  ;;  %v8044_v37 = vld [vmem:[%s10165_s1 + $0x210] sm:$0xff]   ;;  %v4965_v50 = vsel %vm8278_vm3, %v4960_v59, %v4964_v34  ;;  %v5030_v38 = vrot.slane %v5028_v2, 4  ;;  %v4979_v21 = vsel %vm8278_vm3, %v4974_v45, %v9579_v40  ;;  %v10225_v51 = vld [vmem:[#allocation4_spill] sm:$0xff] }
 0x173   : > { %v4989_v57 = vsel %vm8278_vm3, %v4984_v10, %v4988_v9  ;;  %v9663_v62 = vrot.slane %v4997_v49, 4  ;;  %v9665_v47 = vrot.slane %v5010_v41, 5  ;;  %v9667_v0 = vrot.slane %v5007_v43, 4  ;;  %v9710_v10 = vld [vmem:[#allocation2 + $0xb0] sm:$0x1] }
 0x174   : > { %v5021_v14 = vor.u32 %v5020_v63, %v5017_v55  ;;  %v5034_v29 = vshll.u32 %v9644_v7, 16  ;;  %v5039_v54 = vshrl.u32 %v4738_v58, 16  ;;  %v10221_v34 = vsel %vm8278_vm3, %v9489_v56, %v9491_v16  ;;  %v9712_v49 = vld [vmem:[#allocation2 + $0xb4] sm:$0xf] }
 0x175   : > { %7621 = vmatpush3.bf16.msra.mxu0 %v8042_v28  ;;  %v10222_v9 = vsel %vm8278_vm3, %v9479_v15, %v9433_v53  ;;  %v6462_v36 = vcombine.low %v9514_v20, %v9523_v17  ;;  %v5042_v59 = vshll.u32 %v4738_v58, 16  ;;  %v5048_v24 = vshll.u32 %v9656_v52, 16  ;;  %v8046_v53 = vld [vmem:[%s10165_s1 + $0x218] sm:$0xff]   ;;  %v5460_v17 = vld [vmem:[#allocation2 + $0x48] sm:$0xe] }
 0x176   : > { %v9680_v40 = vcombine.low %v10222_v9, %v10221_v34  ;;  %v10223_v28 = vcombine.low %v9378_v33, %v9391_v61  ;;  %7622 = vmatprep.subr.bf16.mxu0 %v8044_v37  ;;  %v6463_v56 = vcombine.low %v9527_v46, %v9554_v48  ;;  %v9690_v16 = vcombine.low %v4907_v4, %v4917_v18  ;;  %v5461_v43 = vld [vmem:[#allocation2 + $0x54] sm:$0xe]  ;;  %v5462_v18 = vld [vmem:[#allocation2 + $0x60] sm:$0xe] }
 0x177   : > { %v5031_v15 = vor.u32 %v5030_v38, %v9654_v13  ;;  %v5052_v20 = vshrl.u32 %v9656_v52, 16  ;;  %v10224_v2 = vcombine.low %v9441_v44, %v9457_v60  ;;  %v9700_v33 = vcombine.low %v4931_v3, %v4941_v19  ;;  %v8049_v3 = vld [vmem:[%s10165_s1 + $0x220] sm:$0xff]  }
 0x178   : > { %7367 = vmatmul.mubr.bf16.gmra.mrb[20].mxu1 %v10223_v28  ;;  %v9702_v61 = vcombine.low %v4955_v1, %v4965_v50  ;;  %v9704_v26 = vcombine.low %v4979_v21, %v4989_v57  ;;  %v5003_v45 = vsel %vm8278_vm3, %v9663_v62, %v9607_v35  ;;  %7591 = vmatmul.mubr.bf16.gmra.mrb[4].mxu0 %v9496_v27  ;;  %v9719_v60 = vrot.slane %v5021_v14, 4  ;;  %v10227_v57 = vld [vmem:[#allocation6_spill] sm:$0xff] }
 0x179   : > { %7370 = vmatprep.mubr.bf16.mxu1 %v10224_v2  ;;  %v5013_v44 = vsel %vm8278_vm3, %v9667_v0, %v9665_v47  ;;  %v9721_v41 = vrot.slane %v5034_v29, 5  ;;  %v9723_v4 = vrot.slane %v5039_v54, 4  ;;  %7594 = vmatprep.mubr.bf16.mxu0 %v9506_v31  ;;  %v9726_v55 = vrot.slane %v5042_v59, 5  ;;  %v10226_v31 = vld [vmem:[#allocation7_spill] sm:$0xff]  ;;  %v5463_v59 = vld [vmem:[#allocation2 + $0x6c] sm:$0xe] }
 0x17a   : > { %7623 = vmatpush3.bf16.msra.mxu0 %v8044_v37  ;;  %v9728_v63 = vrot.slane %v5048_v24, 5  ;;  %v6692_v27 = vrot.slane %v5460_v17, 9  ;;  %v5550_v25 = vrot.slane %v10225_v51, 5  ;;  %v9734_v19 = vrot.slane %v5031_v15, 4  ;;  %v10228_v17 = vld [vmem:[#allocation9_spill] sm:$0xff]  ;;  %v10229_v2 = vld [vmem:[#allocation10_spill] sm:$0xff] }
 0x17b   : > { %7624 = vmatprep.subr.bf16.mxu0 %v8046_v53  ;;  %v5054_v58 = vrot.slane %v5052_v20, 4  ;;  %v5058_v1 = vshll.u32 %v9710_v10, 16  ;;  %v5553_v37 = vrot.slane %v10226_v31, 5  ;;  %v6693_v21 = vrot.slane %v5461_v43, 9  ;;  %v5466_v47 = vld [vmem:[#allocation2 + $0x90] sm:$0xe] }
 0x17c   : > { %v9740_v50 = vsel %vm8674_vm4, %v6692_v27, %v5550_v25  ;;  %v5552_v38 = vrot.slane %v5550_v25, 4  ;;  %v5557_v14 = vrot.slane %v10227_v57, 5  ;;  %v5063_v29 = vshrl.u32 %v9712_v49, 16  ;;  %v10231_v27 = vld [vmem:[#allocation11_spill] sm:$0xff]  ;;  %v9768_v25 = vld [vmem:[#allocation2 + $0xb8] sm:$0xf] }
 0x17d   : > { %v5560_v54 = vrot.slane %v9435_v23, 5  ;;  %v6694_v34 = vrot.slane %v5462_v18, 9  ;;  %v5564_v9 = vrot.slane %v9481_v6, 5  ;;  %v5066_v24 = vshll.u32 %v9712_v49, 16  ;;  %v8052_v23 = vld [vmem:[%s10165_s1 + $0x228] sm:$0xff]  }
 0x17e   : > { %7625 = vmatpush3.bf16.msra.mxu0 %v8046_v53  ;;  %v9749_v28 = vsel %vm8674_vm4, %v5552_v38, %v5553_v37  ;;  %v9753_v15 = vsel %vm8674_vm4, %v6693_v21, %v5557_v14  ;;  %v5559_v20 = vrot.slane %v5557_v14, 4  ;;  %v10230_v43 = vcombine.low %v10228_v17, %v10229_v2  ;;  %v10232_v37 = vld [vmem:[#allocation12_spill] sm:$0xff]  ;;  %v10233_v21 = vld [vmem:[#allocation15_spill] sm:$0xff] }
 0x17f   : > { %7626 = vmatprep.subr.bf16.mxu0 %v8049_v3  ;;  %v9765_v53 = vsel %vm8674_vm4, %v6694_v34, %v5564_v9  ;;  %v5566_v49 = vrot.slane %v5564_v9, 4  ;;  %v5567_v51 = vrot.slane %v10231_v27, 5  ;;  %v6695_v31 = vrot.slane %v5463_v59, 9  ;;  %v8055_v59 = vld [vmem:[%s10165_s1 + $0x230] sm:$0xff]   ;;  %v5464_v2 = vld [vmem:[#allocation2 + $0x78] sm:$0xe] }
 0x180   : > { %7371 = vmatmul.mubr.bf16.gmra.mrb[24].mxu1 %v10230_v43  ;;  %v9772_v18 = vsel %vm8674_vm4, %v5559_v20, %v5560_v54  ;;  %v5571_v38 = vrot.slane %v10232_v37, 5  ;;  %v5574_v57 = vrot.slane %v10233_v21, 5  ;;  %7595 = vmatmul.mubr.bf16.gmra.mrb[8].mxu0 %v9680_v40  ;;  %v5045_v14 = vor.u32 %v9726_v55, %v9723_v4  ;;  %v3090_v54 = vld [vmem:[#allocation2 + $0x78] sm:$0xf]  ;;  %v8047_v43 = vld [vmem:[#allocation2 + $0xc] sm:$0xff]  }
 0x181   : > { %7374 = vmatprep.mubr.bf16.mxu1 %v6462_v36  ;;  %v5055_v34 = vor.u32 %v5054_v58, %v9728_v63  ;;  %v9784_v9 = vsel %vm8674_vm4, %v5566_v49, %v5567_v51  ;;  %7598 = vmatprep.mubr.bf16.mxu0 %v9690_v16  ;;  %v9806_v20 = vrot.slane %v5063_v29, 4  ;;  %v5072_v17 = vshll.u32 %v9768_v25, 16  ;;  %v4744_v27 = vld [vmem:[#allocation2 + $0xc0] sm:$0xf]  ;;  %v5465_v4 = vld [vmem:[#allocation2 + $0x84] sm:$0xe] }
 0x182   : > { %7627 = vmatpush3.bf16.msra.mxu0 %v8049_v3  ;;  %v9795_v55 = vsel %vm8674_vm4, %v6695_v31, %v5571_v38  ;;  %v5573_v58 = vrot.slane %v5571_v38, 4  ;;  %v9801_v3 = vrot.slane %v5058_v1, 5  ;;  %v9809_v49 = vrot.slane %v5066_v24, 5  ;;  %v9822_v24 = vld [vmem:[#allocation2 + $0xc4] sm:$0xf]  ;;  %v10234_v40 = vld [vmem:[#allocation8_spill] sm:$0xff] }
 0x183   : > { %7628 = vmatprep.subr.bf16.mxu0 %v8052_v23  ;;  %v3328_v31 = vshrl.u32 %v3090_v54, 16  ;;  %v3331_v1 = vshll.u32 %v3090_v54, 16  ;;  %v9815_v37 = vrot.slane %v5045_v14, 4  ;;  %v9817_v38 = vrot.slane %v5055_v34, 4 }
 0x184   : > { %v9813_v51 = vsel %vm8674_vm4, %v5573_v58, %v5574_v57  ;;  %v5076_v29 = vshrl.u32 %v9768_v25, 16  ;;  %v3350_v57 = vsel %vm8278_vm3, %v9630_v8, %v10234_v40  ;;  %v6696_v14 = vrot.slane %v5464_v2, 9  ;;  %v10235_v58 = vld [vmem:[#allocation13_spill] sm:$0xff]  ;;  %v10236_v40 = vld [vmem:[#allocation14_spill] sm:$0xff] }
 0x185   : > { %v3330_v36 = vrot.slane %v3328_v31, 4  ;;  %v3333_v6 = vrot.slane %v3331_v1, 5  ;;  %v9831_v34 = vrot.slane %v5072_v17, 5  ;;  %v5087_v54 = vshrl.u32 %v4744_v27, 16 }
 0x186   : > { %7629 = vmatpush3.bf16.msra.mxu0 %v8052_v23  ;;  %v8058_v23 = vld [vmem:[%s10165_s1 + $0x238] sm:$0xff]   ;;  %v5578_v31 = vrot.slane %v10235_v58, 5  ;;  %v5581_v1 = vrot.slane %v9570_v42, 5  ;;  %v6697_v8 = vrot.slane %v5465_v4, 9  ;;  %v5585_v2 = vrot.slane %v10236_v40, 5 }
 0x187   : > { %7630 = vmatprep.subr.bf16.mxu0 %v8055_v59  ;;  %v3334_v21 = vor.u32 %v3333_v6, %v3330_v36  ;;  %v5588_v46 = vrot.slane %v9577_v22, 5  ;;  %v5090_v48 = vshll.u32 %v4744_v27, 16  ;;  %v5100_v42 = vshrl.u32 %v9822_v24, 16  ;;  %v9868_v58 = vld [vmem:[#allocation2 + $0xc8] sm:$0x1] }
 0x188   : > { %7375 = vmatmul.mubr.bf16.gmra.mrb[28].mxu1 %v6463_v56  ;;  %7599 = vmatmul.mubr.bf16.gmra.mrb[12].mxu0 %v9700_v33  ;;  %v5096_v56 = vshll.u32 %v9822_v24, 16  ;;  %v9844_v17 = vsel %vm8674_vm4, %v6696_v14, %v5578_v31  ;;  %v5580_v16 = vrot.slane %v5578_v31, 4  ;;  %v9850_v36 = vsel %vm8674_vm4, %v6697_v8, %v5585_v2  ;;  %v8048_v33 = vld [vmem:[#allocation2 + $0x18] sm:$0xff]  }
 0x189   : > { %7394 = vmatprep.mubr.bf16.mxu1 %v8047_v43  ;;  %7602 = vmatprep.mubr.bf16.mxu0 %v9702_v61  ;;  %v3335_v6 = vrot.slane %v3334_v21, 4  ;;  %v5587_v22 = vrot.slane %v5585_v2, 4  ;;  %v5051_v4 = vsel %vm8278_vm3, %v9815_v37, %v9728_v63  ;;  %v5069_v43 = vor.u32 %v9809_v49, %v9806_v20  ;;  %v9866_v14 = vld [vmem:[#allocation2 + $0xbc] sm:$0x1] }
 0x18a   : > { %7631 = vmatpush3.bf16.msra.mxu0 %v8055_v59  ;;  %v5078_v27 = vrot.slane %v5076_v29, 4  ;;  %v9860_v61 = vsel %vm8674_vm4, %v5580_v16, %v5581_v1  ;;  %v8050_v59 = vld [vmem:[#allocation2 + $0x24] sm:$0xff]   ;;  %v5061_v21 = vsel %vm8278_vm3, %v9817_v38, %v9801_v3  ;;  %v5089_v49 = vrot.slane %v5087_v54, 4  ;;  %v4747_v29 = vld [vmem:[#allocation2 + $0xcc] sm:$0xf] }
 0x18b   : > { %7632 = vmatprep.subr.bf16.mxu0 %v8058_v23  ;;  %v3340_v63 = vsel %vm8278_vm3, %v3335_v6, %v9166_v11  ;;  %v6728_v20 = vcombine.low %v9844_v17, %v9860_v61  ;;  %v9877_v16 = vsel %vm8674_vm4, %v5587_v22, %v5588_v46  ;;  %v5092_v37 = vrot.slane %v5090_v48, 5  ;;  %v9895_v1 = vld [vmem:[#allocation2 + $0xd0] sm:$0xf] }
 0x18c   : > { %v9879_v31 = vcombine.low %v3340_v63, %v3350_v57  ;;  %v6729_v3 = vcombine.low %v9850_v36, %v9877_v16  ;;  %v6674_v11 = vcombine.low %v5003_v45, %v5013_v44  ;;  %v9893_v38 = vrot.slane %v5096_v56, 5  ;;  %v10239_v56 = vld [vmem:[#allocation16_spill] sm:$0xff]  ;;  %v8152_v61 = vld [vmem:[#allocation2 + $0xb0] sm:$0x1] }
 0x18d   : > { %v5102_v54 = vrot.slane %v5100_v42, 4  ;;  %v5079_v57 = vor.u32 %v5078_v27, %v9831_v34  ;;  %v5082_v8 = vshll.u32 %v9866_v14, 16  ;;  %v5106_v40 = vshll.u32 %v9868_v58, 16 }
 0x18e   : > { %7633 = vmatpush3.bf16.msra.mxu0 %v8058_v23  ;;  %v10237_v35 = vsel %vm8278_vm3, %v9734_v19, %v9721_v41  ;;  %v10238_v62 = vsel %vm8278_vm3, %v9719_v60, %v9654_v13  ;;  %v6676_v45 = vcombine.low %v5051_v4, %v5061_v21  ;;  %v5111_v44 = vshrl.u32 %v4747_v29, 16  ;;  %v5467_v19 = vld [vmem:[#allocation2 + $0x9c] sm:$0xe] }
 0x18f   : > { %v6675_v0 = vcombine.low %v10238_v62, %v10237_v35  ;;  %v5070_v23 = vrot.slane %v5069_v43, 4  ;;  %v5093_v2 = vor.u32 %v5092_v37, %v5089_v49  ;;  %v5114_v46 = vshll.u32 %v4747_v29, 16  ;;  %v8053_v43 = vld [vmem:[#allocation2 + $0x3c] sm:$0xff]   ;;  %v8128_v49 = vld [vmem:[%s10165_s1 + $0x110] sm:$0xff]  }
 0x190   : > { %7395 = vmatmul.mubr.bf16.vlgmr.msra.gmra.mrb[0].mxu1 %v8048_v33  ;;  %7603 = vmatmul.mubr.bf16.gmra.mrb[16].mxu0 %v9704_v26  ;;  %v5120_v41 = vshll.u32 %v9895_v1, 16  ;;  %v5103_v48 = vor.u32 %v5102_v54, %v9893_v38  ;;  %v5124_v13 = vshrl.u32 %v9895_v1, 16  ;;  %v6698_v60 = vrot.slane %v5466_v47, 9  ;;  %v8051_v26 = vld [vmem:[#allocation2 + $0x30] sm:$0xff]  }
 0x191   : > { %7674 = vmatpush3.bf16.msra.mxu1 %v9602_v30  ;;  %7398 = vmatprep.mubr.bf16.mxu1 %v8050_v59  ;;  %v8127_v30 = vld [vmem:[%s10165_s1 + $0x108] sm:$0xff]   ;;  %v5592_v42 = vrot.slane %v10239_v56, 5  ;;  %v5080_v6 = vrot.slane %v5079_v57, 4  ;;  %v5084_v22 = vrot.slane %v5082_v8, 5  ;;  %v5108_v33 = vrot.slane %v5106_v40, 5 }
 0x192   : > { %7667 = vmatprep.subr.bf16.mxu1 %v8127_v30  ;;  %7606 = vmatprep.mubr.bf16.mxu0 %v6674_v11  ;;  %v5595_v4 = vrot.slane %v9605_v39, 5  ;;  %v5113_v27 = vrot.slane %v5111_v44, 4  ;;  %v6699_v63 = vrot.slane %v5467_v19, 9  ;;  %v5094_v37 = vrot.slane %v5093_v2, 4  ;;  %v9930_v57 = vld [vmem:[#allocation2 + $0xd4] sm:$0x1] }
 0x193   : > { %v9922_v59 = vsel %vm8674_vm4, %v6698_v60, %v5592_v42  ;;  %v5594_v21 = vrot.slane %v5592_v42, 4  ;;  %v5116_v29 = vrot.slane %v5114_v46, 5  ;;  %v9927_v11 = vrot.slane %v5120_v41, 5  ;;  %v5468_v56 = vld [vmem:[#allocation2 + $0xa8] sm:$0xe] }
 0x194   : > { %v5599_v39 = vrot.slane %v9597_v12, 5  ;;  %v5104_v54 = vrot.slane %v5103_v48, 4  ;;  %v5126_v8 = vrot.slane %v5124_v13, 4  ;;  %v5602_v47 = vrot.slane %v9644_v7, 5  ;;  %v8129_v7 = vld [vmem:[%s10165_s1 + $0x118] sm:$0xff]   ;;  %v8054_v48 = vld [vmem:[#allocation2 + $0x48] sm:$0xff]  }
 0x195   : > { %7675 = vmatpush3.bf16.msra.mxu1 %v8127_v30  ;;  %v9934_v40 = vsel %vm8674_vm4, %v5594_v21, %v5595_v4  ;;  %v5075_v44 = vsel %vm8278_vm3, %v5070_v23, %v9831_v34  ;;  %v5085_v30 = vsel %vm8278_vm3, %v5080_v6, %v5084_v22  ;;  %v5117_v2 = vor.u32 %v5116_v29, %v5113_v27  ;;  %v5456_v23 = vld [vmem:[#allocation2 + $0x18] sm:$0xe]  ;;  %v8130_v13 = vld [vmem:[#allocation2 + $0x1c] sm:$0xf]  ;;  %v8132_v29 = vld [vmem:[#allocation2 + $0x20] sm:$0x1] }
 0x196   : > { %7668 = vmatprep.subr.bf16.mxu1 %v8128_v49  ;;  %v6730_v35 = vcombine.low %v9922_v59, %v9934_v40  ;;  %v9941_v62 = vsel %vm8674_vm4, %v6699_v63, %v5599_v39  ;;  %v5601_v12 = vrot.slane %v5599_v39, 4  ;;  %v5130_v46 = vshll.u32 %v9930_v57, 16 }
 0x197   : > { %v5109_v41 = vsel %vm8278_vm3, %v5104_v54, %v5108_v33  ;;  %v5127_v34 = vor.u32 %v5126_v8, %v9927_v11  ;;  %v5522_v60 = vrot.slane %v8130_v13, 5  ;;  %v6677_v42 = vcombine.low %v5075_v44, %v5085_v30  ;;  %v8131_v33 = vld [vmem:[%s10165_s1 + $0x120] sm:$0xff]   ;;  %v8133_v8 = vld [vmem:[#allocation2 + $0x28] sm:$0xf] }
 0x198   : > { %7399 = vmatmul.mubr.bf16.gmra.mrb[4].mxu1 %v8051_v26  ;;  %7607 = vmatmul.mubr.bf16.gmra.mrb[20].mxu0 %v6675_v0  ;;  %v5099_v0 = vsel %vm8278_vm3, %v5094_v37, %v9893_v38  ;;  %v9960_v19 = vsel %vm8674_vm4, %v5601_v12, %v5602_v47  ;;  %v8056_v26 = vld [vmem:[#allocation2 + $0x54] sm:$0xff]   ;;  %v5118_v6 = vrot.slane %v5117_v2, 4  ;;  %v5132_v22 = vrot.slane %v5130_v46, 5  ;;  %v5457_v54 = vld [vmem:[#allocation2 + $0x24] sm:$0xe] }
 0x199   : > { %7402 = vmatprep.mubr.bf16.mxu1 %v8053_v43  ;;  %7676 = vmatpush3.bf16.msra.mxu1 %v8128_v49  ;;  %v6678_v38 = vcombine.low %v5099_v0, %v5109_v41  ;;  %v6688_v4 = vrot.slane %v5456_v23, 9  ;;  %v5469_v43 = vld [vmem:[#allocation2 + $0xb4] sm:$0xe]  ;;  %v5128_v27 = vrot.slane %v5127_v34, 4  ;;  %v6700_v21 = vrot.slane %v5468_v56, 9  ;;  %v8057_v13 = vld [vmem:[#allocation2 + $0x60] sm:$0xff]  }
 0x19a   : > { %7669 = vmatprep.subr.bf16.mxu1 %v8129_v7  ;;  %7610 = vmatprep.mubr.bf16.mxu0 %v6676_v45  ;;  %v6731_v45 = vcombine.low %v9941_v62, %v9960_v19  ;;  %v5606_v63 = vrot.slane %v9656_v52, 5  ;;  %v5609_v49 = vrot.slane %v9710_v10, 5  ;;  %v5524_v37 = vrot.slane %v5522_v60, 4  ;;  %v8134_v52 = vld [vmem:[%s10165_s1 + $0x128] sm:$0xff]   ;;  %v5458_v10 = vld [vmem:[#allocation2 + $0x30] sm:$0xe] }
 0x19b   : > { %v5525_v39 = vrot.slane %v8132_v29, 5  ;;  %v5529_v47 = vrot.slane %v8133_v8, 5  ;;  %v6701_v30 = vrot.slane %v5469_v43, 9  ;;  %v5613_v46 = vrot.slane %v9768_v25, 5  ;;  %v8137_v43 = vld [vmem:[#allocation2 + $0x38] sm:$0x1] }
 0x19c   : > { %v9971_v12 = vsel %vm8674_vm4, %v6700_v21, %v5606_v63  ;;  %v5608_v44 = vrot.slane %v5606_v63, 4  ;;  %v5616_v0 = vrot.slane %v9866_v14, 5  ;;  %v5123_v41 = vsel %vm8278_vm3, %v5118_v6, %v9927_v11  ;;  %v8138_v21 = vld [vmem:[%s10165_s1 + $0x130] sm:$0xff]   ;;  %v5470_v29 = vld [vmem:[#allocation2 + $0xc0] sm:$0xe] }
 0x19d   : > { %7677 = vmatpush3.bf16.msra.mxu1 %v8129_v7  ;;  %v8135_v7 = vld [vmem:[#allocation2 + $0x34] sm:$0xf]  ;;  %v5133_v34 = vsel %vm8278_vm3, %v5128_v27, %v5132_v22  ;;  %v5523_v23 = vsel %vm8674_vm4, %v6688_v4, %v5522_v60  ;;  %v5526_v25 = vsel %vm8674_vm4, %v5524_v37, %v5525_v39  ;;  %v9995_v11 = vsel %vm8674_vm4, %v6701_v30, %v5613_v46  ;;  %v8136_v60 = vld [vmem:[#allocation2 + $0x2c] sm:$0x1]  ;;  %v5459_v8 = vld [vmem:[#allocation2 + $0x3c] sm:$0xe] }
 0x19e   : > { %7670 = vmatprep.subr.bf16.mxu1 %v8131_v33  ;;  %v5536_v2 = vrot.slane %v8135_v7, 5  ;;  %v5615_v56 = vrot.slane %v5613_v46, 4  ;;  %v5532_v6 = vrot.slane %v8136_v60, 5  ;;  %v6690_v22 = vrot.slane %v5458_v10, 9  ;;  %v5471_v7 = vld [vmem:[#allocation2 + $0xcc] sm:$0xe] }
 0x19f   : > { %v5539_v27 = vrot.slane %v8137_v43, 5  ;;  %v6702_v10 = vrot.slane %v5470_v29, 9  ;;  %v8140_v46 = vld [vmem:[#allocation2 + $0x40] sm:$0xf]  ;;  %v6703_v60 = vrot.slane %v5471_v7, 9  ;;  %v8062_v7 = vld [vmem:[#allocation2 + $0x90] sm:$0xff]  }
 0x1a0   : > { %7403 = vmatmul.mubr.bf16.gmra.mrb[8].mxu1 %v8054_v48  ;;  %7611 = vmatmul.mubr.bf16.gmra.mrb[24].mxu0 %v6677_v42  ;;  %v9987_v48 = vsel %vm8674_vm4, %v5608_v44, %v5609_v49  ;;  %v8059_v42 = vld [vmem:[#allocation2 + $0x6c] sm:$0xff]   ;;  %v5538_v4 = vrot.slane %v5536_v2, 4  ;;  %v10002_v63 = vsel %vm8674_vm4, %v5615_v56, %v5616_v0  ;;  %v6720_v49 = vcombine.low %v5523_v23, %v5526_v25 }
 0x1a1   : > { %7406 = vmatprep.mubr.bf16.mxu1 %v8056_v26  ;;  %7678 = vmatpush3.bf16.msra.mxu1 %v8131_v33  ;;  %v6732_v14 = vcombine.low %v9971_v12, %v9987_v48  ;;  %v6689_v26 = vrot.slane %v5457_v54, 9  ;;  %v6679_v33 = vcombine.low %v5123_v41, %v5133_v34  ;;  %v6733_v37 = vcombine.low %v9995_v11, %v10002_v63  ;;  %v3087_v41 = vld [vmem:[#allocation2 + $0x6c] sm:$0xf]  ;;  %v8060_v34 = vld [vmem:[#allocation2 + $0x78] sm:$0xff]  }
 0x1a2   : > { %7671 = vmatprep.subr.bf16.mxu1 %v8134_v52  ;;  %7614 = vmatprep.mubr.bf16.mxu0 %v6678_v38  ;;  %v5531_v38 = vrot.slane %v5529_v47, 4  ;;  %v5537_v44 = vsel %vm8674_vm4, %v6690_v22, %v5536_v2  ;;  %v5540_v30 = vsel %vm8674_vm4, %v5538_v4, %v5539_v27  ;;  %v5543_v0 = vrot.slane %v8140_v46, 5  ;;  %v8141_v2 = vld [vmem:[#allocation2 + $0x44] sm:$0x1]  ;;  %v8142_v27 = vld [vmem:[#allocation2 + $0x70] sm:$0xf] }
 0x1a3   : > { %v5530_v39 = vsel %vm8674_vm4, %v6689_v26, %v5529_v47  ;;  %v5620_v47 = vrot.slane %v9822_v24, 5  ;;  %v5546_v25 = vrot.slane %v8141_v2, 5  ;;  %v6722_v26 = vcombine.low %v5537_v44, %v5540_v30  ;;  %v8063_v46 = vld [vmem:[#allocation2 + $0x9c] sm:$0xff]  }
 0x1a4   : > { %v5533_v54 = vsel %vm8674_vm4, %v5531_v38, %v5532_v6  ;;  %v5623_v24 = vrot.slane %v9868_v58, 5  ;;  %v3304_v6 = vshrl.u32 %v3087_v41, 16  ;;  %v3307_v22 = vshll.u32 %v3087_v41, 16  ;;  %v3093_v41 = vld [vmem:[#allocation2 + $0x84] sm:$0xf] }
 0x1a5   : > { %7679 = vmatpush3.bf16.msra.mxu1 %v8134_v52  ;;  %v8139_v52 = vld [vmem:[%s10165_s1 + $0x138] sm:$0xff]   ;;  %v6721_v23 = vcombine.low %v5530_v39, %v5533_v54  ;;  %v5622_v56 = vrot.slane %v5620_v47, 4  ;;  %v10020_v38 = vsel %vm8674_vm4, %v6702_v10, %v5620_v47  ;;  %v5630_v4 = vrot.slane %v9930_v57, 5 }
 0x1a6   : > { %7672 = vmatprep.subr.bf16.mxu1 %v8138_v21  ;;  %v5545_v43 = vrot.slane %v5543_v0, 4  ;;  %v3306_v57 = vrot.slane %v3304_v6, 4  ;;  %v10240_v6 = vcombine.low %v9740_v50, %v9749_v28  ;;  %v8145_v50 = vld [vmem:[#allocation2 + $0x8c] sm:$0x1] }
 0x1a7   : > { %v10027_v29 = vsel %vm8674_vm4, %v5622_v56, %v5623_v24  ;;  %v3352_v56 = vshrl.u32 %v3093_v41, 16  ;;  %v3371_v28 = vshll.u32 %v8145_v50, 16 }
 0x1a8   : > { %7407 = vmatmul.mubr.bf16.gmra.mrb[12].mxu1 %v8057_v13  ;;  %7615 = vmatmul.mubr.bf16.gmra.mrb[28].mxu0 %v6679_v33  ;;  %v6691_v13 = vrot.slane %v5459_v8, 9  ;;  %v5627_v33 = vrot.slane %v9895_v1, 5  ;;  %v6734_v39 = vcombine.low %v10020_v38, %v10027_v29  ;;  %v3309_v8 = vrot.slane %v3307_v22, 5 }
 0x1a9   : > { %7410 = vmatprep.mubr.bf16.mxu1 %v8059_v42  ;;  %7680 = vmatpush3.bf16.msra.mxu1 %v8138_v21  ;;  %v8061_v42 = vld [vmem:[#allocation2 + $0x84] sm:$0xff]   ;;  %v3313_v21 = vshll.u32 %v8142_v27, 16  ;;  %v5547_v30 = vsel %vm8674_vm4, %v5545_v43, %v5546_v25  ;;  %v8065_v43 = vld [vmem:[#allocation2 + $0xb4] sm:$0xff]  }
 0x1aa   : > { %7673 = vmatprep.subr.bf16.mxu1 %v8139_v52  ;;  %7634 = vmatprep.mubr.bf16.mxu0 %v6720_v49  ;;  %v3317_v49 = vshrl.u32 %v8142_v27, 16  ;;  %v10033_v58 = vsel %vm8674_vm4, %v6703_v60, %v5627_v33  ;;  %v5629_v54 = vrot.slane %v5627_v33, 4  ;;  %v5544_v1 = vsel %vm8674_vm4, %v6691_v13, %v5543_v0  ;;  %v8143_v13 = vld [vmem:[#allocation2 + $0x74] sm:$0x1]  ;;  %v3096_v60 = vld [vmem:[#allocation2 + $0x90] sm:$0xf] }
 0x1ab   : > { %v3310_v0 = vor.u32 %v3309_v8, %v3306_v57  ;;  %v3323_v2 = vshll.u32 %v8143_v13, 16  ;;  %v3354_v27 = vrot.slane %v3352_v56, 4  ;;  %v3379_v57 = vshll.u32 %v3096_v60, 16  ;;  %v3099_v8 = vld [vmem:[#allocation2 + $0x9c] sm:$0xf] }
 0x1ac   : > { %v10039_v44 = vsel %vm8674_vm4, %v5629_v54, %v5630_v4  ;;  %v3319_v10 = vrot.slane %v3317_v49, 4  ;;  %v8064_v4 = vld [vmem:[#allocation2 + $0xa8] sm:$0xff]  }
 0x1ad   : > { %7681 = vmatpush3.bf16.msra.mxu1 %v8139_v52  ;;  %v3315_v52 = vrot.slane %v3313_v21, 5  ;;  %v6735_v47 = vcombine.low %v10033_v58, %v10039_v44  ;;  %v3311_v24 = vrot.slane %v3310_v0, 4  ;;  %v3325_v33 = vrot.slane %v3323_v2, 5 }
 0x1ae   : > { %v3403_v0 = vshll.u32 %v3099_v8, 16 }
 0x1b0   : > { %7411 = vmatmul.mubr.bf16.gmra.mrb[16].mxu1 %v8060_v34  ;;  %7635 = vmatmul.mubr.bf16.vlgmr.msra.gmra.mrb[0].mxu0 %v6721_v23  ;;  %v6723_v34 = vcombine.low %v5544_v1, %v5547_v30  ;;  %v3320_v23 = vor.u32 %v3319_v10, %v3315_v52  ;;  %v3376_v1 = vshrl.u32 %v3096_v60, 16  ;;  %v3316_v30 = vsel %vm8278_vm3, %v3311_v24, %v3315_v52 }
 0x1b1   : > { %7414 = vmatprep.mubr.bf16.mxu1 %v8061_v42  ;;  %7638 = vmatprep.mubr.bf16.mxu0 %v6722_v26  ;;  %v3355_v42 = vshll.u32 %v3093_v41, 16  ;;  %v8144_v26 = vld [vmem:[#allocation2 + $0x88] sm:$0xf]  ;;  %v3381_v52 = vrot.slane %v3379_v57, 5  ;;  %v10242_v24 = vcombine.low %v9765_v53, %v9784_v9  ;;  %v8149_v53 = vld [vmem:[#allocation2 + $0xa4] sm:$0x1] }
 0x1b2   : > { %v3361_v5 = vshll.u32 %v8144_v26, 16  ;;  %v3365_v25 = vshrl.u32 %v8144_v26, 16  ;;  %v3321_v22 = vrot.slane %v3320_v23, 4  ;;  %v8147_v23 = vld [vmem:[#allocation2 + $0xa0] sm:$0xf]  ;;  %v3378_v26 = vrot.slane %v3376_v1, 4 }
 0x1b3   : > { %v3357_v21 = vrot.slane %v3355_v42, 5  ;;  %v3409_v13 = vshll.u32 %v8147_v23, 16  ;;  %v3413_v2 = vshrl.u32 %v8147_v23, 16  ;;  %v3419_v9 = vshll.u32 %v8149_v53, 16 }
 0x1b4   : > { %v10048_v49 = vrot.slane %v3361_v5, 5  ;;  %v3367_v54 = vrot.slane %v3365_v25, 4  ;;  %v3326_v10 = vsel %vm8278_vm3, %v3321_v22, %v3325_v33  ;;  %v10241_v5 = vcombine.low %v9753_v15, %v9772_v18  ;;  %v8066_v25 = vld [vmem:[#allocation2 + $0xc0] sm:$0xff]   ;;  %v8148_v18 = vld [vmem:[#allocation2 + $0x98] sm:$0x1] }
 0x1b5   : > { %v3358_v56 = vor.u32 %v3357_v21, %v3354_v27  ;;  %v6536_v60 = vcombine.low %v3316_v30, %v3326_v10  ;;  %v10063_v27 = vrot.slane %v3409_v13, 5  ;;  %v3415_v21 = vrot.slane %v3413_v2, 4 }
 0x1b6   : > { %v3368_v42 = vor.u32 %v3367_v54, %v10048_v49  ;;  %v3102_v54 = vld [vmem:[#allocation2 + $0xa8] sm:$0xf]  ;;  %v3382_v15 = vor.u32 %v3381_v52, %v3378_v26 }
 0x1b7   : > { %v3359_v1 = vrot.slane %v3358_v56, 4  ;;  %v3424_v30 = vshrl.u32 %v3102_v54, 16  ;;  %v3427_v10 = vshll.u32 %v3102_v54, 16 }
 0x1b8   : > { %7415 = vmatmul.mubr.bf16.gmra.mrb[20].mxu1 %v8062_v7  ;;  %7639 = vmatmul.mubr.bf16.gmra.mrb[4].mxu0 %v6723_v34  ;;  %v8146_v7 = vld [vmem:[#allocation2 + $0x94] sm:$0xf]  ;;  %v3400_v34 = vshrl.u32 %v3099_v8, 16  ;;  %v3369_v57 = vrot.slane %v3368_v42, 4  ;;  %v3395_v8 = vshll.u32 %v8148_v18, 16  ;;  %v3383_v2 = vrot.slane %v3382_v15, 4 }
 0x1b9   : > { %7418 = vmatprep.mubr.bf16.mxu1 %v8063_v46  ;;  %7642 = vmatprep.mubr.bf16.mxu0 %v10240_v6  ;;  %v3385_v46 = vshll.u32 %v8146_v7, 16  ;;  %v3389_v41 = vshrl.u32 %v8146_v7, 16  ;;  %v3373_v6 = vrot.slane %v3371_v28, 5  ;;  %v3105_v28 = vld [vmem:[#allocation2 + $0xb4] sm:$0xf]  ;;  %v3364_v23 = vsel %vm8278_vm3, %v3359_v1, %v10048_v49 }
 0x1ba   : > { %v3397_v56 = vrot.slane %v3395_v8, 5  ;;  %v10243_v42 = vcombine.low %v9795_v55, %v9813_v51  ;;  %v3448_v26 = vshrl.u32 %v3105_v28, 16  ;;  %v3451_v52 = vshll.u32 %v3105_v28, 16  ;;  %v3108_v18 = vld [vmem:[#allocation2 + $0xc0] sm:$0xf] }
 0x1bb   : > { %v10061_v22 = vrot.slane %v3385_v46, 5  ;;  %v3391_v33 = vrot.slane %v3389_v41, 4  ;;  %v3416_v46 = vor.u32 %v3415_v21, %v10063_v27  ;;  %v8150_v41 = vld [vmem:[#allocation2 + $0xac] sm:$0xf]  ;;  %v3374_v13 = vsel %vm8278_vm3, %v3369_v57, %v3373_v6 }
 0x1bc   : > { %v3421_v49 = vrot.slane %v3419_v9, 5  ;;  %v6538_v1 = vcombine.low %v3364_v23, %v3374_v13  ;;  %v3450_v55 = vrot.slane %v3448_v26, 4  ;;  %v3453_v51 = vrot.slane %v3451_v52, 5 }
 0x1bd   : > { %v3392_v50 = vor.u32 %v3391_v33, %v10061_v22  ;;  %v3426_v33 = vrot.slane %v3424_v30, 4  ;;  %v3388_v8 = vsel %vm8278_vm3, %v3383_v2, %v10061_v22  ;;  %v3475_v28 = vshll.u32 %v3108_v18, 16  ;;  %v8153_v22 = vld [vmem:[#allocation2 + $0xc4] sm:$0xf] }
 0x1bf   : > { %v3477_v26 = vrot.slane %v3475_v28, 5 }
 0x1c0   : > { %7419 = vmatmul.mubr.bf16.gmra.mrb[24].mxu1 %v8064_v4  ;;  %7643 = vmatmul.mubr.bf16.gmra.mrb[8].mxu0 %v10241_v5  ;;  %v3402_v4 = vrot.slane %v3400_v34, 4  ;;  %v3433_v34 = vshll.u32 %v8150_v41, 16  ;;  %v8151_v5 = vld [vmem:[#allocation2 + $0xb8] sm:$0xf] }
 0x1c1   : > { %7422 = vmatprep.mubr.bf16.mxu1 %v8065_v43  ;;  %7646 = vmatprep.mubr.bf16.mxu0 %v10242_v24  ;;  %v3405_v43 = vrot.slane %v3403_v0, 5  ;;  %v3437_v0 = vshrl.u32 %v8150_v41, 16  ;;  %v3461_v24 = vshrl.u32 %v8151_v5, 16 }
 0x1c2   : > { %v3435_v21 = vrot.slane %v3433_v34, 5  ;;  %v8154_v34 = vld [vmem:[#allocation2 + $0xbc] sm:$0x1] }
 0x1c3   : > { %v3406_v7 = vor.u32 %v3405_v43, %v3402_v4  ;;  %v3429_v4 = vrot.slane %v3427_v10, 5  ;;  %v3417_v43 = vrot.slane %v3416_v46, 4  ;;  %v3439_v54 = vrot.slane %v3437_v0, 4 }
 0x1c4   : > { %v3463_v15 = vrot.slane %v3461_v24, 4  ;;  %v3472_v10 = vshrl.u32 %v3108_v18, 16  ;;  %v3485_v46 = vshrl.u32 %v8153_v22, 16  ;;  %v3467_v0 = vshll.u32 %v8154_v34, 16  ;;  %v8155_v24 = vld [vmem:[#allocation2 + $0xc8] sm:$0x1] }
 0x1c5   : > { %v3407_v6 = vrot.slane %v3406_v7, 4  ;;  %v3422_v53 = vsel %vm8278_vm3, %v3417_v43, %v3421_v49  ;;  %v3430_v9 = vor.u32 %v3429_v4, %v3426_v33  ;;  %v3440_v30 = vor.u32 %v3439_v54, %v3435_v21 }
 0x1c6   : > { %v3481_v7 = vshll.u32 %v8153_v22, 16  ;;  %v3469_v16 = vrot.slane %v3467_v0, 5 }
 0x1c7   : > { %v3431_v13 = vrot.slane %v3430_v9, 4  ;;  %v3441_v2 = vrot.slane %v3440_v30, 4 }
 0x1c8   : > { %7423 = vmatmul.mubr.bf16.gmra.mrb[28].mxu1 %v8066_v25  ;;  %7647 = vmatmul.mubr.bf16.gmra.mrb[12].mxu0 %v10243_v42  ;;  %v3457_v25 = vshll.u32 %v8151_v5, 16  ;;  %v3474_v42 = vrot.slane %v3472_v10, 4  ;;  %v3483_v52 = vrot.slane %v3481_v7, 5  ;;  %v3487_v5 = vrot.slane %v3485_v46, 4 }
 0x1c9   : > { %7458 = vmatprep.mubr.bf16.mxu1 %v6536_v60  ;;  %7650 = vmatprep.mubr.bf16.mxu0 %v6728_v20  ;;  %v3393_v60 = vrot.slane %v3392_v50, 4  ;;  %v3443_v20 = vshll.u32 %v8152_v61, 16  ;;  %v3412_v50 = vsel %vm8278_vm3, %v3407_v6, %v10063_v27 }
 0x1ca   : > { %v3459_v57 = vrot.slane %v3457_v25, 5  ;;  %v6540_v23 = vcombine.low %v3412_v50, %v3422_v53  ;;  %v3478_v40 = vor.u32 %v3477_v26, %v3474_v42 }
 0x1cb   : > { %v3398_v17 = vsel %vm8278_vm3, %v3393_v60, %v3397_v56  ;;  %v3445_v56 = vrot.slane %v3443_v20, 5  ;;  %v3491_v60 = vshll.u32 %v8155_v24, 16 }
 0x1cc   : > { %v3464_v41 = vor.u32 %v3463_v15, %v3459_v57  ;;  %v6539_v27 = vcombine.low %v3388_v8, %v3398_v17  ;;  %v3479_v43 = vrot.slane %v3478_v40, 4 }
 0x1cd   : > { %v3446_v59 = vsel %vm8278_vm3, %v3441_v2, %v3445_v56  ;;  %v3493_v54 = vrot.slane %v3491_v60, 5 }
 0x1ce   : > { %v3465_v36 = vrot.slane %v3464_v41, 4  ;;  %v3484_v62 = vsel %vm8278_vm3, %v3479_v43, %v3483_v52 }
 0x1d0   : > { %7459 = vmatmul.mubr.bf16.vlgmr.msra.gmra.mrb[16].mxu1 %v9879_v31  ;;  %7651 = vmatmul.mubr.bf16.gmra.mrb[16].mxu0 %v6729_v3  ;;  %v3454_v31 = vor.u32 %v3453_v51, %v3450_v55  ;;  %v3436_v3 = vsel %vm8278_vm3, %v3431_v13, %v3435_v21  ;;  %v3470_v33 = vsel %vm8278_vm3, %v3465_v36, %v3469_v16 }
 0x1d1   : > { %7462 = vmatprep.mubr.bf16.mxu1 %v6538_v1  ;;  %7654 = vmatprep.mubr.bf16.mxu0 %v6730_v35  ;;  %v3488_v35 = vor.u32 %v3487_v5, %v3483_v52  ;;  %v6541_v4 = vcombine.low %v3436_v3, %v3446_v59 }
 0x1d2   : > { %v3455_v25 = vrot.slane %v3454_v31, 4 }
 0x1d3   : > { %v3489_v21 = vrot.slane %v3488_v35, 4 }
 0x1d4   : > { %v3460_v49 = vsel %vm8278_vm3, %v3455_v25, %v3459_v57 }
 0x1d5   : > { %v6542_v6 = vcombine.low %v3460_v49, %v3470_v33  ;;  %v3494_v19 = vsel %vm8278_vm3, %v3489_v21, %v3493_v54 }
 0x1d8   : > { %7463 = vmatmul.mubr.bf16.gmra.mrb[20].mxu1 %v6539_v27  ;;  %7655 = vmatmul.mubr.bf16.gmra.mrb[20].mxu0 %v6731_v45  ;;  %v6543_v45 = vcombine.low %v3484_v62, %v3494_v19 }
 0x1d9   : > { %7466 = vmatprep.mubr.bf16.mxu1 %v6540_v23  ;;  %7658 = vmatprep.mubr.bf16.mxu0 %v6732_v14 }
 0x1e0   : > { %7467 = vmatmul.mubr.bf16.gmra.mrb[24].mxu1 %v6541_v4  ;;  %7659 = vmatmul.mubr.bf16.gmra.mrb[24].mxu0 %v6733_v37 }
 0x1e1   : > { %7470 = vmatprep.mubr.bf16.mxu1 %v6542_v6  ;;  %7662 = vmatprep.mubr.bf16.mxu0 %v6734_v39 }
 0x1e8   : > { %7471 = vmatmul.mubr.bf16.gmra.mrb[28].mxu1 %v6543_v45  ;;  %7663 = vmatmul.mubr.bf16.gmra.mrb[28].mxu0 %v6735_v47 }
 0x263   : > { %v7396_v12 = vpop.f32.mrb[0].mxu1 }
 0x264   : > { %v2904_v48 = vpop.f32.mrb[1].mxu1 }
 0x265   : > { %v7397_v14 = vpop.f32.mrb[2].mxu1 }
 0x266   : > { %v2907_v1 = vpop.f32.mrb[3].mxu1 }
 0x26b   : > { %v7400_v32 = vpop.f32.mrb[4].mxu1 }
 0x26c   : > { %v2920_v55 = vpop.f32.mrb[5].mxu1 }
 0x26d   : > { %v7401_v51 = vpop.f32.mrb[6].mxu1 }
 0x26e   : > { %v2923_v57 = vpop.f32.mrb[7].mxu1 }
 0x273   : > { %v7404_v11 = vpop.f32.mrb[8].mxu1 }
 0x274   : > { %v2936_v63 = vpop.f32.mrb[9].mxu1 }
 0x275   : > { %v7405_v37 = vpop.f32.mrb[10].mxu1 }
 0x276   : > { %v2939_v38 = vpop.f32.mrb[11].mxu1 }
 0x27b   : > { %v10122_v29 = vpop.f32.mrb[12].mxu1 }
 0x27c   : > { %v10124_v39 = vpop.f32.mrb[13].mxu1 }
 0x27d   : > { %v10126_v15 = vpop.f32.mrb[14].mxu1 }
 0x27e   : > { %v10128_v58 = vpop.f32.mrb[15].mxu1 }
 0x283   : > { %v7636_v44 = vpop.f32.mrb[0].mxu0 }
 0x284   : > { %v7682_v47 = vadd.f32 %v7636_v44, %v7396_v12  ;;  %v5795_v18 = vpop.f32.mrb[1].mxu0 }
 0x285   : > { %v7683_v8 = vadd.f32 %v5795_v18, %v2904_v48  ;;  %v7637_v17 = vpop.f32.mrb[2].mxu0 }
 0x286   : > { %v7684_v61 = vadd.f32 %v7637_v17, %v7397_v14  ;;  %v5798_v20 = vpop.f32.mrb[3].mxu0  ;;  %v6154_v22 = vmul.f32 %v7682_v47, %v7682_v47 }
 0x287   : > { %v7685_v50 = vadd.f32 %v5798_v20, %v2907_v1  ;;  %v6152_v9 = vmul.f32 %v7683_v8, %v7683_v8 }
 0x288   : > { %v6916_v53 = vpack.c.bf16 %v7684_v61, %v7682_v47  ;;  %v6155_v0 = vmul.f32 %v7684_v61, %v7684_v61 }
 0x289   : > { %v6911_v30 = vpack.c.bf16 %v7685_v50, %v7683_v8  ;;  %v6114_v10 = vadd.f32 %v7685_v50, %v7683_v8  ;;  %v6153_v28 = vmul.f32 %v7685_v50, %v7685_v50 }
 0x28a   : > { %7003 = vst [vmem:[%s10135_s9 + $0x8] sm:$0xff] %v6916_v53  }
 0x28b   : > { %6912 = vst [vmem:[%s10135_s9] sm:$0xff] %v6911_v30   ;;  %v6115_v7 = vadd.f32 %v7682_v47, %v6114_v10  ;;  %v6184_v46 = vadd.f32 %v6153_v28, %v6152_v9  ;;  %v7640_v31 = vpop.f32.mrb[4].mxu0 }
 0x28c   : > { %v7686_v41 = vadd.f32 %v7640_v31, %v7400_v32  ;;  %v5811_v34 = vpop.f32.mrb[5].mxu0 }
 0x28d   : > { %v6185_v27 = vadd.f32 %v6184_v46, %v6154_v22  ;;  %v7687_v23 = vadd.f32 %v5811_v34, %v2920_v55  ;;  %v6116_v13 = vadd.f32 %v7684_v61, %v6115_v7  ;;  %v7641_v2 = vpop.f32.mrb[6].mxu0 }
 0x28e   : > { %v7688_v56 = vadd.f32 %v7641_v2, %v7401_v51  ;;  %v5814_v42 = vpop.f32.mrb[7].mxu0  ;;  %v6158_v35 = vmul.f32 %v7686_v41, %v7686_v41 }
 0x28f   : > { %v6117_v26 = vadd.f32 %v7687_v23, %v6116_v13  ;;  %v6156_v52 = vmul.f32 %v7687_v23, %v7687_v23  ;;  %v6186_v5 = vadd.f32 %v6185_v27, %v6155_v0  ;;  %v7689_v25 = vadd.f32 %v5814_v42, %v2923_v57 }
 0x290   : > { %v6926_v36 = vpack.c.bf16 %v7688_v56, %v7686_v41  ;;  %v6159_v6 = vmul.f32 %v7688_v56, %v7688_v56 }
 0x291   : > { %v6187_v16 = vadd.f32 %v6186_v5, %v6156_v52  ;;  %v6921_v3 = vpack.c.bf16 %v7689_v25, %v7687_v23  ;;  %v6118_v59 = vadd.f32 %v7689_v25, %v6117_v26  ;;  %v6157_v40 = vmul.f32 %v7689_v25, %v7689_v25 }
 0x292   : > { %7005 = vst [vmem:[%s10135_s9 + $0x18] sm:$0xff] %v6926_v36  }
 0x293   : > { %7004 = vst [vmem:[%s10135_s9 + $0x10] sm:$0xff] %v6921_v3   ;;  %v6119_v24 = vadd.f32 %v7686_v41, %v6118_v59  ;;  %v6188_v60 = vadd.f32 %v6187_v16, %v6157_v40  ;;  %v7644_v49 = vpop.f32.mrb[8].mxu0 }
 0x294   : > { %v7690_v33 = vadd.f32 %v7644_v49, %v7404_v11  ;;  %v5827_v4 = vpop.f32.mrb[9].mxu0 }
 0x295   : > { %v6189_v43 = vadd.f32 %v6188_v60, %v6158_v35  ;;  %v7691_v21 = vadd.f32 %v5827_v4, %v2936_v63  ;;  %v6120_v54 = vadd.f32 %v7688_v56, %v6119_v24  ;;  %v7645_v62 = vpop.f32.mrb[10].mxu0 }
 0x296   : > { %v7692_v19 = vadd.f32 %v7645_v62, %v7405_v37  ;;  %v5830_v45 = vpop.f32.mrb[11].mxu0  ;;  %v6162_v11 = vmul.f32 %v7690_v33, %v7690_v33 }
 0x297   : > { %v6121_v12 = vadd.f32 %v7691_v21, %v6120_v54  ;;  %v6160_v48 = vmul.f32 %v7691_v21, %v7691_v21  ;;  %v6190_v14 = vadd.f32 %v6189_v43, %v6159_v6  ;;  %v7693_v1 = vadd.f32 %v5830_v45, %v2939_v38 }
 0x298   : > { %v6936_v32 = vpack.c.bf16 %v7692_v19, %v7690_v33  ;;  %v6163_v37 = vmul.f32 %v7692_v19, %v7692_v19 }
 0x299   : > { %v6191_v55 = vadd.f32 %v6190_v14, %v6160_v48  ;;  %v6931_v51 = vpack.c.bf16 %v7693_v1, %v7691_v21  ;;  %v6122_v57 = vadd.f32 %v7693_v1, %v6121_v12  ;;  %v6161_v44 = vmul.f32 %v7693_v1, %v7693_v1 }
 0x29a   : > { %7007 = vst [vmem:[%s10135_s9 + $0x28] sm:$0xff] %v6936_v32  }
 0x29b   : > { %7006 = vst [vmem:[%s10135_s9 + $0x20] sm:$0xff] %v6931_v51   ;;  %v6123_v47 = vadd.f32 %v7690_v33, %v6122_v57  ;;  %v6192_v18 = vadd.f32 %v6191_v55, %v6161_v44  ;;  %v7648_v63 = vpop.f32.mrb[12].mxu0 }
 0x29c   : > { %v7694_v8 = vadd.f32 %v7648_v63, %v10122_v29  ;;  %v5843_v17 = vpop.f32.mrb[13].mxu0 }
 0x29d   : > { %v6193_v61 = vadd.f32 %v6192_v18, %v6162_v11  ;;  %v7695_v20 = vadd.f32 %v5843_v17, %v10124_v39  ;;  %v6124_v38 = vadd.f32 %v7692_v19, %v6123_v47  ;;  %v7649_v50 = vpop.f32.mrb[14].mxu0 }
 0x29e   : > { %v7696_v53 = vadd.f32 %v7649_v50, %v10126_v15  ;;  %v5846_v9 = vpop.f32.mrb[15].mxu0  ;;  %v6166_v39 = vmul.f32 %v7694_v8, %v7694_v8 }
 0x29f   : > { %v6125_v30 = vadd.f32 %v7695_v20, %v6124_v38  ;;  %v6164_v10 = vmul.f32 %v7695_v20, %v7695_v20  ;;  %v6194_v28 = vadd.f32 %v6193_v61, %v6163_v37  ;;  %v7697_v22 = vadd.f32 %v5846_v9, %v10128_v58 }
 0x2a0   : > { %v6946_v7 = vpack.c.bf16 %v7696_v53, %v7694_v8  ;;  %v6167_v26 = vmul.f32 %v7696_v53, %v7696_v53 }
 0x2a1   : > { %v6195_v46 = vadd.f32 %v6194_v28, %v6164_v10  ;;  %v6941_v29 = vpack.c.bf16 %v7697_v22, %v7695_v20  ;;  %v6126_v31 = vadd.f32 %v7697_v22, %v6125_v30  ;;  %v6165_v41 = vmul.f32 %v7697_v22, %v7697_v22 }
 0x2a2   : > { %7009 = vst [vmem:[%s10135_s9 + $0x38] sm:$0xff] %v6946_v7  }
 0x2a3   : > { %v7460_v34 = vpop.f32.mrb[16].mxu1  ;;  %7008 = vst [vmem:[%s10135_s9 + $0x30] sm:$0xff] %v6941_v29   ;;  %v6127_v27 = vadd.f32 %v7694_v8, %v6126_v31  ;;  %v6196_v23 = vadd.f32 %v6195_v46, %v6165_v41  ;;  %v7652_v13 = vpop.f32.mrb[16].mxu0 }
 0x2a4   : > { %v3722_v0 = vpop.f32.mrb[17].mxu1  ;;  %v7698_v2 = vadd.f32 %v7652_v13, %v7460_v34  ;;  %v5859_v56 = vpop.f32.mrb[17].mxu0 }
 0x2a5   : > { %v7461_v15 = vpop.f32.mrb[18].mxu1  ;;  %v6197_v52 = vadd.f32 %v6196_v23, %v6166_v39  ;;  %v7699_v58 = vadd.f32 %v5859_v56, %v3722_v0  ;;  %v6128_v5 = vadd.f32 %v7696_v53, %v6127_v27  ;;  %v7653_v25 = vpop.f32.mrb[18].mxu0 }
 0x2a6   : > { %v3725_v42 = vpop.f32.mrb[19].mxu1  ;;  %v7700_v36 = vadd.f32 %v7653_v25, %v7461_v15  ;;  %v5862_v16 = vpop.f32.mrb[19].mxu0  ;;  %v6170_v21 = vmul.f32 %v7698_v2, %v7698_v2 }
 0x2a7   : > { %v6129_v3 = vadd.f32 %v7699_v58, %v6128_v5  ;;  %v6168_v59 = vmul.f32 %v7699_v58, %v7699_v58  ;;  %v6198_v40 = vadd.f32 %v6197_v52, %v6167_v26  ;;  %v7701_v35 = vadd.f32 %v5862_v16, %v3725_v42 }
 0x2a8   : > { %v6956_v24 = vpack.c.bf16 %v7700_v36, %v7698_v2  ;;  %v6171_v1 = vmul.f32 %v7700_v36, %v7700_v36 }
 0x2a9   : > { %v6199_v60 = vadd.f32 %v6198_v40, %v6168_v59  ;;  %v6951_v49 = vpack.c.bf16 %v7701_v35, %v7699_v58  ;;  %v6130_v33 = vadd.f32 %v7701_v35, %v6129_v3  ;;  %v6169_v4 = vmul.f32 %v7701_v35, %v7701_v35 }
 0x2aa   : > { %7011 = vst [vmem:[%s10135_s9 + $0x48] sm:$0xff] %v6956_v24  }
 0x2ab   : > { %v7464_v6 = vpop.f32.mrb[20].mxu1  ;;  %7010 = vst [vmem:[%s10135_s9 + $0x40] sm:$0xff] %v6951_v49   ;;  %v6131_v54 = vadd.f32 %v7698_v2, %v6130_v33  ;;  %v6200_v62 = vadd.f32 %v6199_v60, %v6169_v4  ;;  %v7656_v19 = vpop.f32.mrb[20].mxu0 }
 0x2ac   : > { %v3738_v43 = vpop.f32.mrb[21].mxu1  ;;  %v7702_v12 = vadd.f32 %v7656_v19, %v7464_v6  ;;  %v5875_v48 = vpop.f32.mrb[21].mxu0 }
 0x2ad   : > { %v7465_v45 = vpop.f32.mrb[22].mxu1  ;;  %v6201_v32 = vadd.f32 %v6200_v62, %v6170_v21  ;;  %v7703_v55 = vadd.f32 %v5875_v48, %v3738_v43  ;;  %v6132_v51 = vadd.f32 %v7700_v36, %v6131_v54  ;;  %v7657_v57 = vpop.f32.mrb[22].mxu0 }
 0x2ae   : > { %v3741_v14 = vpop.f32.mrb[23].mxu1  ;;  %v7704_v44 = vadd.f32 %v7657_v57, %v7465_v45  ;;  %v5878_v11 = vpop.f32.mrb[23].mxu0  ;;  %v6174_v9 = vmul.f32 %v7702_v12, %v7702_v12 }
 0x2af   : > { %v6133_v47 = vadd.f32 %v7703_v55, %v6132_v51  ;;  %v6172_v18 = vmul.f32 %v7703_v55, %v7703_v55  ;;  %v6202_v63 = vadd.f32 %v6201_v32, %v6171_v1  ;;  %v7705_v8 = vadd.f32 %v5878_v11, %v3741_v14 }
 0x2b0   : > { %v6966_v17 = vpack.c.bf16 %v7704_v44, %v7702_v12  ;;  %v6175_v31 = vmul.f32 %v7704_v44, %v7704_v44 }
 0x2b1   : > { %v6203_v37 = vadd.f32 %v6202_v63, %v6172_v18  ;;  %v6961_v61 = vpack.c.bf16 %v7705_v8, %v7703_v55  ;;  %v6134_v20 = vadd.f32 %v7705_v8, %v6133_v47  ;;  %v6173_v38 = vmul.f32 %v7705_v8, %v7705_v8 }
 0x2b2   : > { %7013 = vst [vmem:[%s10135_s9 + $0x58] sm:$0xff] %v6966_v17  }
 0x2b3   : > { %v7468_v50 = vpop.f32.mrb[24].mxu1  ;;  %7012 = vst [vmem:[%s10135_s9 + $0x50] sm:$0xff] %v6961_v61   ;;  %v6135_v30 = vadd.f32 %v7702_v12, %v6134_v20  ;;  %v6204_v10 = vadd.f32 %v6203_v37, %v6173_v38  ;;  %v7660_v28 = vpop.f32.mrb[24].mxu0 }
 0x2b4   : > { %v3754_v53 = vpop.f32.mrb[25].mxu1  ;;  %v7706_v7 = vadd.f32 %v7660_v28, %v7468_v50  ;;  %v5891_v46 = vpop.f32.mrb[25].mxu0 }
 0x2b5   : > { %v7469_v22 = vpop.f32.mrb[26].mxu1  ;;  %v6205_v41 = vadd.f32 %v6204_v10, %v6174_v9  ;;  %v7707_v34 = vadd.f32 %v5891_v46, %v3754_v53  ;;  %v6136_v0 = vadd.f32 %v7704_v44, %v6135_v30  ;;  %v7661_v39 = vpop.f32.mrb[26].mxu0 }
 0x2b6   : > { %v3757_v29 = vpop.f32.mrb[27].mxu1  ;;  %v7708_v27 = vadd.f32 %v7661_v39, %v7469_v22  ;;  %v5894_v23 = vpop.f32.mrb[27].mxu0  ;;  %v6178_v16 = vmul.f32 %v7706_v7, %v7706_v7 }
 0x2b7   : > { %v6137_v13 = vadd.f32 %v7707_v34, %v6136_v0  ;;  %v6176_v15 = vmul.f32 %v7707_v34, %v7707_v34  ;;  %v6206_v2 = vadd.f32 %v6205_v41, %v6175_v31  ;;  %v7709_v56 = vadd.f32 %v5894_v23, %v3757_v29 }
 0x2b8   : > { %v6976_v42 = vpack.c.bf16 %v7708_v27, %v7706_v7  ;;  %v6179_v33 = vmul.f32 %v7708_v27, %v7708_v27 }
 0x2b9   : > { %v6207_v26 = vadd.f32 %v6206_v2, %v6176_v15  ;;  %v6971_v52 = vpack.c.bf16 %v7709_v56, %v7707_v34  ;;  %v6138_v58 = vadd.f32 %v7709_v56, %v6137_v13  ;;  %v6177_v5 = vmul.f32 %v7709_v56, %v7709_v56 }
 0x2ba   : > { %7015 = vst [vmem:[%s10135_s9 + $0x68] sm:$0xff] %v6976_v42  }
 0x2bb   : > { %v7472_v25 = vpop.f32.mrb[28].mxu1  ;;  %7014 = vst [vmem:[%s10135_s9 + $0x60] sm:$0xff] %v6971_v52   ;;  %v6139_v3 = vadd.f32 %v7706_v7, %v6138_v58  ;;  %v6208_v59 = vadd.f32 %v6207_v26, %v6177_v5  ;;  %v7664_v40 = vpop.f32.mrb[28].mxu0 }
 0x2bc   : > { %v3770_v36 = vpop.f32.mrb[29].mxu1  ;;  %v7710_v24 = vadd.f32 %v7664_v40, %v7472_v25  ;;  %v5907_v60 = vpop.f32.mrb[29].mxu0 }
 0x2bd   : > { %v7473_v35 = vpop.f32.mrb[30].mxu1  ;;  %v6209_v4 = vadd.f32 %v6208_v59, %v6178_v16  ;;  %v7711_v6 = vadd.f32 %v5907_v60, %v3770_v36  ;;  %v6140_v43 = vadd.f32 %v7708_v27, %v6139_v3  ;;  %v7665_v21 = vpop.f32.mrb[30].mxu0 }
 0x2be   : > { %v3773_v49 = vpop.f32.mrb[31].mxu1  ;;  %v7712_v54 = vadd.f32 %v7665_v21, %v7473_v35  ;;  %v5910_v62 = vpop.f32.mrb[31].mxu0  ;;  %v6182_v57 = vmul.f32 %v7710_v24, %v7710_v24 }
 0x2bf   : > { %v6141_v19 = vadd.f32 %v7711_v6, %v6140_v43  ;;  %v6180_v45 = vmul.f32 %v7711_v6, %v7711_v6  ;;  %v6210_v12 = vadd.f32 %v6209_v4, %v6179_v33  ;;  %v7713_v48 = vadd.f32 %v5910_v62, %v3773_v49 }
 0x2c0   : > { %v6986_v14 = vpack.c.bf16 %v7712_v54, %v7710_v24  ;;  %v6183_v47 = vmul.f32 %v7712_v54, %v7712_v54 }
 0x2c1   : > { %v6211_v1 = vadd.f32 %v6210_v12, %v6180_v45  ;;  %v6981_v32 = vpack.c.bf16 %v7713_v48, %v7711_v6  ;;  %v6142_v55 = vadd.f32 %v7713_v48, %v6141_v19  ;;  %v6181_v51 = vmul.f32 %v7713_v48, %v7713_v48 }
 0x2c2   : > { %7017 = vst [vmem:[%s10135_s9 + $0x78] sm:$0xff] %v6986_v14  }
 0x2c3   : > { %7016 = vst [vmem:[%s10135_s9 + $0x70] sm:$0xff] %v6981_v32   ;;  %v6143_v44 = vadd.f32 %v7710_v24, %v6142_v55  ;;  %v6212_v11 = vadd.f32 %v6211_v1, %v6181_v51 }
 0x2c5   : > { %v6144_v18 = vadd.f32 %v7712_v54, %v6143_v44  ;;  %v6213_v63 = vadd.f32 %v6212_v11, %v6182_v57 }
 0x2c7   : > { %v6145_v8 = vrot.slane %v6144_v18, 4  ;;  %v6214_v17 = vadd.f32 %v6213_v63, %v6183_v47 }
 0x2c9   : > { %v6146_v37 = vadd.f32 %v6145_v8, %v6144_v18  ;;  %v6215_v61 = vrot.slane %v6214_v17, 4 }
 0x2cb   : > { %v6147_v20 = vrot.slane %v6146_v37, 2  ;;  %v6216_v38 = vadd.f32 %v6215_v61, %v6214_v17 }
 0x2cd   : > { %v6148_v50 = vadd.f32 %v6147_v20, %v6146_v37  ;;  %v6217_v53 = vrot.slane %v6216_v38, 2 }
 0x2cf   : > { %v6149_v9 = vrot.slane %v6148_v50, 1  ;;  %v6218_v30 = vadd.f32 %v6217_v53, %v6216_v38 }
 0x2d1   : > { %v6150_v10 = vadd.f32 %v6149_v9, %v6148_v50  ;;  %v6219_v28 = vrot.slane %v6218_v30, 1 }
 0x2d3   : > { %6151 = vst [vmem:[%s263_s12] sm:$0x1] %v6150_v10  ;;  %v6220_v22 = vadd.f32 %v6219_v28, %v6218_v30 }
 0x2d5   : > { %6221 = vst [vmem:[%s263_s12 + $0x1] sm:$0x1] %v6220_v22 }
 0x2d6 PF: > { %s18_s23 = sadd.s32 1, %s8162_s23  }
 0x2d7   : > { %p15_p4 = scmp.ge.s32.totalorder %s18_s23, 4  }
 0x2d9   :  { %17 = sbr.rel (!%p15_p4) target bundleno = 2 (0x2), region = 93 }

</bundles_post_ra>
